<compile_context>
chip_gen: v7x
topology: tpu7x:2x2x1
jax: 0.10.0
libtpu: 0.0.40
codegen_flags: <defaults>
</compile_context>

<pallas_src>
import functools

import jax
import jax.numpy as jnp
from jax.experimental import pallas as pl
from jax.experimental.pallas import tpu as pltpu

LANE = 128                 # lane-dense channel padding for every matmul N dim
CIN_PAD1 = 8               # conv1 input channels padded 3 -> 8 (sublane align)
COMPUTE_DTYPE = jnp.bfloat16


def _round_up(x, m):
    return (x + m - 1) // m * m


# ---------------------------------------------------------------------------
# Pallas kernels
# ---------------------------------------------------------------------------
def _conv_bn_relu_pool_kernel(x_ref, w_ref, scale_ref, shift_ref, o_ref,
                              *, H, W, Cp, Np):
    """Fused conv3x3(pad=1) + BN(eval) + ReLU + maxpool2x2 for one image.

    x_ref     : (1, H+2, W+2, Cp) f32   spatially/channel zero-padded input
    w_ref     : (9, Cp, Np)       bf16  tap index = kh*3 + kw
    scale_ref : (1, Np)           f32   gamma / sqrt(var + eps)      (0 in pad)
    shift_ref : (1, Np)           f32   beta + (bias - mean) * scale (0 in pad)
    o_ref     : (1, H*W//4, Np)   f32   pooled output, row = h2*(W//2) + w2
    """
    # --- conv as 9 accumulated matmuls over shifted windows (no HBM im2col) ---
    acc = jnp.zeros((H * W, Np), jnp.float32)
    for kh in range(3):
        for kw in range(3):
            xs = x_ref[0, kh:kh + H, kw:kw + W, :]          # (H, W, Cp) f32
            xm = xs.reshape(H * W, Cp).astype(COMPUTE_DTYPE)
            acc = acc + jnp.dot(xm, w_ref[kh * 3 + kw],
                                preferred_element_type=jnp.float32)

    # --- BN fold + conv bias + ReLU (f32 epilogue) ---
    y = jnp.maximum(acc * scale_ref[...] + shift_ref[...], 0.0)   # (H*W, Np)

    # --- 2x2 max-pool, step 1 (H direction): pair adjacent conv rows ---
    y4 = y.reshape(H // 2, 2, W, Np)                 # splits major dims only
    rows = jnp.maximum(y4[:, 0, :, :], y4[:, 1, :, :])            # (H//2, W, Np)
    rows = rows.reshape(H // 2 * W, Np)              # row index = h2*W + w

    # --- step 2 (W direction): even/odd column gather via 0/1 selection
    #     matmuls (exact; avoids sublane-strided ops) then elementwise max. ---
    n = H * W // 4                                   # pooled rows per image
    r_idx = jax.lax.broadcasted_iota(jnp.int32, (n, 2 * n), 0)
    c_idx = jax.lax.broadcasted_iota(jnp.int32, (n, 2 * n), 1)
    sel_even = (c_idx == 2 * r_idx).astype(jnp.float32)
    sel_odd = (c_idx == 2 * r_idx + 1).astype(jnp.float32)
    even = jnp.dot(sel_even, rows, preferred_element_type=jnp.float32)
    odd = jnp.dot(sel_odd, rows, preferred_element_type=jnp.float32)
    o_ref[0] = jnp.maximum(even, odd).astype(o_ref.dtype)


def _fc_fused_kernel(x_ref, w1_ref, b1_ref, w2_ref, b2_ref, w3_ref, b3_ref,
                     o_ref):
    """fc1 -> ReLU -> (dropout = identity in eval) -> fc2 -> ReLU -> fc3,
    all three matmuls chained in VMEM, bf16 operands / f32 accumulate."""
    x = x_ref[...].astype(w1_ref.dtype)
    h = jnp.dot(x, w1_ref[...], preferred_element_type=jnp.float32)
    h = jnp.maximum(h + b1_ref[...], 0.0)
    # Dropout(p=0.3): identity in eval mode.
    h = jnp.dot(h.astype(w2_ref.dtype), w2_ref[...],
                preferred_element_type=jnp.float32)
    h = jnp.maximum(h + b2_ref[...], 0.0)
    h = jnp.dot(h.astype(w3_ref.dtype), w3_ref[...],
                preferred_element_type=jnp.float32)
    o_ref[...] = (h + b3_ref[...]).astype(o_ref.dtype)


# ---------------------------------------------------------------------------
# pallas_call wrappers
# ---------------------------------------------------------------------------
def conv_bn_relu_pool(x_pad, w9, scale, shift, *, H, W):
    """x_pad: (B, H+2, W+2, Cp) f32 -> pooled (B, (H//2)*(W//2), 128) f32."""
    B, _, _, Cp = x_pad.shape
    Np = w9.shape[-1]
    n_out = (H // 2) * (W // 2)
    kernel = functools.partial(_conv_bn_relu_pool_kernel, H=H, W=W, Cp=Cp, Np=Np)

    flops = 2 * B * H * W * 9 * Cp * Np
    bytes_accessed = int(x_pad.size * x_pad.dtype.itemsize
                         + w9.size * w9.dtype.itemsize
                         + B * n_out * Np * 4)

    return pl.pallas_call(
        kernel,
        out_shape=jax.ShapeDtypeStruct((B, n_out, Np), jnp.float32),
        grid=(B,),
        in_specs=[
            pl.BlockSpec((1, H + 2, W + 2, Cp), lambda b: (b, 0, 0, 0)),
            pl.BlockSpec((9, Cp, Np), lambda b: (0, 0, 0)),
            pl.BlockSpec((1, Np), lambda b: (0, 0)),
            pl.BlockSpec((1, Np), lambda b: (0, 0)),
        ],
        out_specs=pl.BlockSpec((1, n_out, Np), lambda b: (b, 0, 0)),
        compiler_params=pltpu.CompilerParams(
            dimension_semantics=("parallel",)),
        cost_estimate=pl.CostEstimate(flops=flops, transcendentals=0,
                                      bytes_accessed=bytes_accessed),
    )(x_pad, w9, scale, shift)


def fc_head(x_flat, w1, b1, w2, b2, w3, b3):
    """Fused fc1/fc2/fc3 head.  x_flat: (B, 2048) f32 -> logits (B, 10) f32."""
    B, K = x_flat.shape
    tm = 256 if B > 256 else _round_up(max(B, 8), 8)
    M = _round_up(B, tm)
    if M != B:
        x_flat = jnp.pad(x_flat, ((0, M - B), (0, 0)))
    N = LANE

    flops = 2 * M * (K * N + N * N + N * N)
    bytes_accessed = int((M * K + M * N) * 4 + (K * N + 2 * N * N) * 2)

    out = pl.pallas_call(
        _fc_fused_kernel,
        out_shape=jax.ShapeDtypeStruct((M, N), jnp.float32),
        grid=(M // tm,),
        in_specs=[
            pl.BlockSpec((tm, K), lambda i: (i, 0)),
            pl.BlockSpec((K, N), lambda i: (0, 0)),
            pl.BlockSpec((1, N), lambda i: (0, 0)),
            pl.BlockSpec((N, N), lambda i: (0, 0)),
            pl.BlockSpec((1, N), lambda i: (0, 0)),
            pl.BlockSpec((N, N), lambda i: (0, 0)),
            pl.BlockSpec((1, N), lambda i: (0, 0)),
        ],
        out_specs=pl.BlockSpec((tm, N), lambda i: (i, 0)),
        compiler_params=pltpu.CompilerParams(
            dimension_semantics=("parallel",)),
        cost_estimate=pl.CostEstimate(flops=flops, transcendentals=0,
                                      bytes_accessed=bytes_accessed),
    )(x_flat, w1, b1, w2, b2, w3, b3)
    return out[:B, :10]


# ---------------------------------------------------------------------------
# Parameter preparation (fold BN, pad to 128 lanes, reorder fc1 rows)
# ---------------------------------------------------------------------------
def _prep_conv_block(w, b, gamma, beta, mean, var, *, cin_pad, eps=1e-5):
    cout, cin, _, _ = w.shape                                 # (Cout, Cin, 3, 3)
    wt = jnp.transpose(w, (2, 3, 1, 0)).reshape(9, cin, cout)  # tap = kh*3+kw
    wt = jnp.pad(wt, ((0, 0), (0, cin_pad - cin), (0, LANE - cout)))
    scale = gamma / jnp.sqrt(var + eps)
    shift = beta + (b - mean) * scale
    scale = jnp.pad(scale, (0, LANE - cout)).reshape(1, LANE).astype(jnp.float32)
    shift = jnp.pad(shift, (0, LANE - cout)).reshape(1, LANE).astype(jnp.float32)
    return wt.astype(COMPUTE_DTYPE), scale, shift


def _prep_fc_head(fc1_w, fc1_b, fc2_w, fc2_b, fc3_w, fc3_b):
    # fc1: reorder rows so the (h, w, c[128-padded]) flatten of the block-3
    # output matches PyTorch's view(-1, 64*4*4) on NCHW (flat = c*16 + h*4 + w).
    w1 = fc1_w.reshape(128, 64, 4, 4)             # (o, c, h, w)
    w1 = jnp.transpose(w1, (2, 3, 1, 0))          # (h, w, c, o)
    w1 = jnp.pad(w1, ((0, 0), (0, 0), (0, LANE - 64), (0, 0)))
    w1 = w1.reshape(4 * 4 * LANE, 128)            # (2048, 128)
    b1 = fc1_b.reshape(1, 128).astype(jnp.float32)

    w2 = jnp.pad(fc2_w.T, ((0, 0), (0, LANE - 64)))               # (128, 128)
    b2 = jnp.pad(fc2_b, (0, LANE - 64)).reshape(1, LANE).astype(jnp.float32)
    w3 = jnp.pad(fc3_w.T, ((0, LANE - 64), (0, LANE - 10)))       # (128, 128)
    b3 = jnp.pad(fc3_b, (0, LANE - 10)).reshape(1, LANE).astype(jnp.float32)
    return (w1.astype(COMPUTE_DTYPE), b1,
            w2.astype(COMPUTE_DTYPE), b2,
            w3.astype(COMPUTE_DTYPE), b3)


def prepare_params(params):
    return {
        "block1": _prep_conv_block(*params["conv1"], cin_pad=CIN_PAD1),
        "block2": _prep_conv_block(*params["conv2"], cin_pad=LANE),
        "block3": _prep_conv_block(*params["conv3"], cin_pad=LANE),
        "fc": _prep_fc_head(*params["fc1"], *params["fc2"], *params["fc3"]),
    }


# ---------------------------------------------------------------------------
# Forward pass
# ---------------------------------------------------------------------------
def cifar10_cnn_forward(x_nchw, prep):
    B = x_nchw.shape[0]
    x = jnp.transpose(x_nchw, (0, 2, 3, 1)).astype(jnp.float32)   # NHWC
    x = jnp.pad(x, ((0, 0), (1, 1), (1, 1), (0, CIN_PAD1 - 3)))   # (B,34,34,8)

    w9, sc, sh = prep["block1"]
    y = conv_bn_relu_pool(x, w9, sc, sh, H=32, W=32)              # (B,256,128)
    y = y.reshape(B, 16, 16, LANE)
    y = jnp.pad(y, ((0, 0), (1, 1), (1, 1), (0, 0)))              # (B,18,18,128)

    w9, sc, sh = prep["block2"]
    y = conv_bn_relu_pool(y, w9, sc, sh, H=16, W=16)              # (B,64,128)
    y = y.reshape(B, 8, 8, LANE)
    y = jnp.pad(y, ((0, 0), (1, 1), (1, 1), (0, 0)))              # (B,10,10,128)

    w9, sc, sh = prep["block3"]
    y = conv_bn_relu_pool(y, w9, sc, sh, H=8, W=8)                # (B,16,128)

    flat = y.reshape(B, 4 * 4 * LANE)                             # (B, 2048)
    return fc_head(flat, *prep["fc"])                             # (B, 10)


# ---------------------------------------------------------------------------
# Deterministic parameter init (shapes from CIFAR10_CNN.__init__)
# ---------------------------------------------------------------------------
def init_params(key):
    ks = jax.random.split(key, 12)

    def conv(kw_key, kb_key, cout, cin):
        w = jax.random.normal(kw_key, (cout, cin, 3, 3), jnp.float32) * 0.05
        b = jax.random.normal(kb_key, (cout,), jnp.float32) * 0.05
        gamma = jnp.ones((cout,), jnp.float32)
        beta = jnp.zeros((cout,), jnp.float32)
        run_mean = jnp.zeros((cout,), jnp.float32)
        run_var = jnp.ones((cout,), jnp.float32)
        return (w, b, gamma, beta, run_mean, run_var)

    def fc(kw_key, kb_key, n_out, n_in):
        w = jax.random.normal(kw_key, (n_out, n_in), jnp.float32) * 0.05
        b = jax.random.normal(kb_key, (n_out,), jnp.float32) * 0.05
        return (w, b)

    return {
        "conv1": conv(ks[0], ks[1], 16, 3),
        "conv2": conv(ks[2], ks[3], 32, 16),
        "conv3": conv(ks[4], ks[5], 64, 32),
        "fc1": fc(ks[6], ks[7], 128, 64 * 4 * 4),
        "fc2": fc(ks[8], ks[9], 64, 128),
        "fc3": fc(ks[10], ks[11], 10, 64),
    }


# ---------------------------------------------------------------------------
# Main
# ---------------------------------------------------------------------------
if __name__ == "__main__":
    key = jax.random.PRNGKey(0)
    k_params, k_x = jax.random.split(key)

    params = init_params(k_params)
    prep = prepare_params(params)

    # CIFAR-10 input: fc1 (64*4*4) forces 3x32x32 spatial input.  NCHW, batch=2.
    x = jax.random.normal(k_x, (2, 3, 32, 32), jnp.float32)

    fwd = jax.jit(lambda xx: cifar10_cnn_forward(xx, prep))
    logits = fwd(x)
    jax.block_until_ready(logits)

    assert logits.shape == (2, 10), logits.shape
    assert bool(jnp.all(jnp.isfinite(logits)))
    print("KERNEL_OK")
</pallas_src>

<mosaic_0001>
module attributes {stable_mosaic.version = 11 : i64} {
  func.func @_conv_bn_relu_pool_kernel(%arg0: i32, %arg1: memref<1x34x34x8xf32, #tpu.memory_space<vmem>>, %arg2: memref<9x8x128xbf16, #tpu.memory_space<vmem>>, %arg3: memref<1x128xf32, #tpu.memory_space<vmem>>, %arg4: memref<1x128xf32, #tpu.memory_space<vmem>>, %arg5: memref<1x256x128xf32, #tpu.memory_space<vmem>>) attributes {dimension_semantics = [#tpu.dimension_semantics<parallel>], iteration_bounds = array<i64: 2>, scalar_prefetch = 0 : i64, scratch_operands = 0 : i64, tpu.core_type = #tpu.core_type<tc>, window_params = [{transform_indices = @transform_0, window_bounds = array<i64: 1, 34, 34, 8>}, {pipeline_mode = #tpu.pipeline_mode<synchronous>, transform_indices = @transform_1, window_bounds = array<i64: 9, 8, 128>}, {pipeline_mode = #tpu.pipeline_mode<synchronous>, transform_indices = @transform_2, window_bounds = array<i64: 1, 128>}, {pipeline_mode = #tpu.pipeline_mode<synchronous>, transform_indices = @transform_3, window_bounds = array<i64: 1, 128>}, {transform_indices = @transform_4, window_bounds = array<i64: 1, 256, 128>}]} {
    %cst = arith.constant 0.000000e+00 : f32
    %0 = vector.broadcast %cst : f32 to vector<1024x128xf32>
    %c0 = arith.constant 0 : index
    %c0_0 = arith.constant 0 : index
    %c0_1 = arith.constant 0 : index
    %c0_2 = arith.constant 0 : index
    %1 = vector.load %arg1[%c0, %c0_0, %c0_1, %c0_2] : memref<1x34x34x8xf32, #tpu.memory_space<vmem>>, vector<1x32x32x8xf32>
    %2 = vector.shape_cast %1 : vector<1x32x32x8xf32> to vector<32x32x8xf32>
    %3 = vector.shape_cast %2 : vector<32x32x8xf32> to vector<1024x8xf32>
    %4 = arith.truncf %3 : vector<1024x8xf32> to vector<1024x8xbf16>
    %c0_3 = arith.constant 0 : index
    %c0_4 = arith.constant 0 : index
    %c0_5 = arith.constant 0 : index
    %5 = vector.load %arg2[%c0_3, %c0_4, %c0_5] : memref<9x8x128xbf16, #tpu.memory_space<vmem>>, vector<1x8x128xbf16>
    %6 = vector.shape_cast %5 : vector<1x8x128xbf16> to vector<8x128xbf16>
    %cst_6 = arith.constant dense<0.000000e+00> : vector<1024x128xf32>
    %7 = tpu.matmul %4, %6, %cst_6 {dimension_numbers = #tpu.dot_dimension_numbers<[1], [0], [0], [1], [0, 0, 1, 1], [], []>} : vector<1024x8xbf16>, vector<8x128xbf16>, vector<1024x128xf32> -> vector<1024x128xf32>
    %8 = arith.addf %0, %7 : vector<1024x128xf32>
    %c0_7 = arith.constant 0 : index
    %c0_8 = arith.constant 0 : index
    %c1 = arith.constant 1 : index
    %c0_9 = arith.constant 0 : index
    %9 = vector.load %arg1[%c0_7, %c0_8, %c1, %c0_9] : memref<1x34x34x8xf32, #tpu.memory_space<vmem>>, vector<1x32x32x8xf32>
    %10 = vector.shape_cast %9 : vector<1x32x32x8xf32> to vector<32x32x8xf32>
    %11 = vector.shape_cast %10 : vector<32x32x8xf32> to vector<1024x8xf32>
    %12 = arith.truncf %11 : vector<1024x8xf32> to vector<1024x8xbf16>
    %c1_10 = arith.constant 1 : index
    %c0_11 = arith.constant 0 : index
    %c0_12 = arith.constant 0 : index
    %13 = vector.load %arg2[%c1_10, %c0_11, %c0_12] : memref<9x8x128xbf16, #tpu.memory_space<vmem>>, vector<1x8x128xbf16>
    %14 = vector.shape_cast %13 : vector<1x8x128xbf16> to vector<8x128xbf16>
    %cst_13 = arith.constant dense<0.000000e+00> : vector<1024x128xf32>
    %15 = tpu.matmul %12, %14, %cst_13 {dimension_numbers = #tpu.dot_dimension_numbers<[1], [0], [0], [1], [0, 0, 1, 1], [], []>} : vector<1024x8xbf16>, vector<8x128xbf16>, vector<1024x128xf32> -> vector<1024x128xf32>
    %16 = arith.addf %8, %15 : vector<1024x128xf32>
    %c0_14 = arith.constant 0 : index
    %c0_15 = arith.constant 0 : index
    %c2 = arith.constant 2 : index
    %c0_16 = arith.constant 0 : index
    %17 = vector.load %arg1[%c0_14, %c0_15, %c2, %c0_16] : memref<1x34x34x8xf32, #tpu.memory_space<vmem>>, vector<1x32x32x8xf32>
    %18 = vector.shape_cast %17 : vector<1x32x32x8xf32> to vector<32x32x8xf32>
    %19 = vector.shape_cast %18 : vector<32x32x8xf32> to vector<1024x8xf32>
    %20 = arith.truncf %19 : vector<1024x8xf32> to vector<1024x8xbf16>
    %c2_17 = arith.constant 2 : index
    %c0_18 = arith.constant 0 : index
    %c0_19 = arith.constant 0 : index
    %21 = vector.load %arg2[%c2_17, %c0_18, %c0_19] : memref<9x8x128xbf16, #tpu.memory_space<vmem>>, vector<1x8x128xbf16>
    %22 = vector.shape_cast %21 : vector<1x8x128xbf16> to vector<8x128xbf16>
    %cst_20 = arith.constant dense<0.000000e+00> : vector<1024x128xf32>
    %23 = tpu.matmul %20, %22, %cst_20 {dimension_numbers = #tpu.dot_dimension_numbers<[1], [0], [0], [1], [0, 0, 1, 1], [], []>} : vector<1024x8xbf16>, vector<8x128xbf16>, vector<1024x128xf32> -> vector<1024x128xf32>
    %24 = arith.addf %16, %23 : vector<1024x128xf32>
    %c0_21 = arith.constant 0 : index
    %c1_22 = arith.constant 1 : index
    %c0_23 = arith.constant 0 : index
    %c0_24 = arith.constant 0 : index
    %25 = vector.load %arg1[%c0_21, %c1_22, %c0_23, %c0_24] : memref<1x34x34x8xf32, #tpu.memory_space<vmem>>, vector<1x32x32x8xf32>
    %26 = vector.shape_cast %25 : vector<1x32x32x8xf32> to vector<32x32x8xf32>
    %27 = vector.shape_cast %26 : vector<32x32x8xf32> to vector<1024x8xf32>
    %28 = arith.truncf %27 : vector<1024x8xf32> to vector<1024x8xbf16>
    %c3 = arith.constant 3 : index
    %c0_25 = arith.constant 0 : index
    %c0_26 = arith.constant 0 : index
    %29 = vector.load %arg2[%c3, %c0_25, %c0_26] : memref<9x8x128xbf16, #tpu.memory_space<vmem>>, vector<1x8x128xbf16>
    %30 = vector.shape_cast %29 : vector<1x8x128xbf16> to vector<8x128xbf16>
    %cst_27 = arith.constant dense<0.000000e+00> : vector<1024x128xf32>
    %31 = tpu.matmul %28, %30, %cst_27 {dimension_numbers = #tpu.dot_dimension_numbers<[1], [0], [0], [1], [0, 0, 1, 1], [], []>} : vector<1024x8xbf16>, vector<8x128xbf16>, vector<1024x128xf32> -> vector<1024x128xf32>
    %32 = arith.addf %24, %31 : vector<1024x128xf32>
    %c0_28 = arith.constant 0 : index
    %c1_29 = arith.constant 1 : index
    %c1_30 = arith.constant 1 : index
    %c0_31 = arith.constant 0 : index
    %33 = vector.load %arg1[%c0_28, %c1_29, %c1_30, %c0_31] : memref<1x34x34x8xf32, #tpu.memory_space<vmem>>, vector<1x32x32x8xf32>
    %34 = vector.shape_cast %33 : vector<1x32x32x8xf32> to vector<32x32x8xf32>
    %35 = vector.shape_cast %34 : vector<32x32x8xf32> to vector<1024x8xf32>
    %36 = arith.truncf %35 : vector<1024x8xf32> to vector<1024x8xbf16>
    %c4 = arith.constant 4 : index
    %c0_32 = arith.constant 0 : index
    %c0_33 = arith.constant 0 : index
    %37 = vector.load %arg2[%c4, %c0_32, %c0_33] : memref<9x8x128xbf16, #tpu.memory_space<vmem>>, vector<1x8x128xbf16>
    %38 = vector.shape_cast %37 : vector<1x8x128xbf16> to vector<8x128xbf16>
    %cst_34 = arith.constant dense<0.000000e+00> : vector<1024x128xf32>
    %39 = tpu.matmul %36, %38, %cst_34 {dimension_numbers = #tpu.dot_dimension_numbers<[1], [0], [0], [1], [0, 0, 1, 1], [], []>} : vector<1024x8xbf16>, vector<8x128xbf16>, vector<1024x128xf32> -> vector<1024x128xf32>
    %40 = arith.addf %32, %39 : vector<1024x128xf32>
    %c0_35 = arith.constant 0 : index
    %c1_36 = arith.constant 1 : index
    %c2_37 = arith.constant 2 : index
    %c0_38 = arith.constant 0 : index
    %41 = vector.load %arg1[%c0_35, %c1_36, %c2_37, %c0_38] : memref<1x34x34x8xf32, #tpu.memory_space<vmem>>, vector<1x32x32x8xf32>
    %42 = vector.shape_cast %41 : vector<1x32x32x8xf32> to vector<32x32x8xf32>
    %43 = vector.shape_cast %42 : vector<32x32x8xf32> to vector<1024x8xf32>
    %44 = arith.truncf %43 : vector<1024x8xf32> to vector<1024x8xbf16>
    %c5 = arith.constant 5 : index
    %c0_39 = arith.constant 0 : index
    %c0_40 = arith.constant 0 : index
    %45 = vector.load %arg2[%c5, %c0_39, %c0_40] : memref<9x8x128xbf16, #tpu.memory_space<vmem>>, vector<1x8x128xbf16>
    %46 = vector.shape_cast %45 : vector<1x8x128xbf16> to vector<8x128xbf16>
    %cst_41 = arith.constant dense<0.000000e+00> : vector<1024x128xf32>
    %47 = tpu.matmul %44, %46, %cst_41 {dimension_numbers = #tpu.dot_dimension_numbers<[1], [0], [0], [1], [0, 0, 1, 1], [], []>} : vector<1024x8xbf16>, vector<8x128xbf16>, vector<1024x128xf32> -> vector<1024x128xf32>
    %48 = arith.addf %40, %47 : vector<1024x128xf32>
    %c0_42 = arith.constant 0 : index
    %c2_43 = arith.constant 2 : index
    %c0_44 = arith.constant 0 : index
    %c0_45 = arith.constant 0 : index
    %49 = vector.load %arg1[%c0_42, %c2_43, %c0_44, %c0_45] : memref<1x34x34x8xf32, #tpu.memory_space<vmem>>, vector<1x32x32x8xf32>
    %50 = vector.shape_cast %49 : vector<1x32x32x8xf32> to vector<32x32x8xf32>
    %51 = vector.shape_cast %50 : vector<32x32x8xf32> to vector<1024x8xf32>
    %52 = arith.truncf %51 : vector<1024x8xf32> to vector<1024x8xbf16>
    %c6 = arith.constant 6 : index
    %c0_46 = arith.constant 0 : index
    %c0_47 = arith.constant 0 : index
    %53 = vector.load %arg2[%c6, %c0_46, %c0_47] : memref<9x8x128xbf16, #tpu.memory_space<vmem>>, vector<1x8x128xbf16>
    %54 = vector.shape_cast %53 : vector<1x8x128xbf16> to vector<8x128xbf16>
    %cst_48 = arith.constant dense<0.000000e+00> : vector<1024x128xf32>
    %55 = tpu.matmul %52, %54, %cst_48 {dimension_numbers = #tpu.dot_dimension_numbers<[1], [0], [0], [1], [0, 0, 1, 1], [], []>} : vector<1024x8xbf16>, vector<8x128xbf16>, vector<1024x128xf32> -> vector<1024x128xf32>
    %56 = arith.addf %48, %55 : vector<1024x128xf32>
    %c0_49 = arith.constant 0 : index
    %c2_50 = arith.constant 2 : index
    %c1_51 = arith.constant 1 : index
    %c0_52 = arith.constant 0 : index
    %57 = vector.load %arg1[%c0_49, %c2_50, %c1_51, %c0_52] : memref<1x34x34x8xf32, #tpu.memory_space<vmem>>, vector<1x32x32x8xf32>
    %58 = vector.shape_cast %57 : vector<1x32x32x8xf32> to vector<32x32x8xf32>
    %59 = vector.shape_cast %58 : vector<32x32x8xf32> to vector<1024x8xf32>
    %60 = arith.truncf %59 : vector<1024x8xf32> to vector<1024x8xbf16>
    %c7 = arith.constant 7 : index
    %c0_53 = arith.constant 0 : index
    %c0_54 = arith.constant 0 : index
    %61 = vector.load %arg2[%c7, %c0_53, %c0_54] : memref<9x8x128xbf16, #tpu.memory_space<vmem>>, vector<1x8x128xbf16>
    %62 = vector.shape_cast %61 : vector<1x8x128xbf16> to vector<8x128xbf16>
    %cst_55 = arith.constant dense<0.000000e+00> : vector<1024x128xf32>
    %63 = tpu.matmul %60, %62, %cst_55 {dimension_numbers = #tpu.dot_dimension_numbers<[1], [0], [0], [1], [0, 0, 1, 1], [], []>} : vector<1024x8xbf16>, vector<8x128xbf16>, vector<1024x128xf32> -> vector<1024x128xf32>
    %64 = arith.addf %56, %63 : vector<1024x128xf32>
    %c0_56 = arith.constant 0 : index
    %c2_57 = arith.constant 2 : index
    %c2_58 = arith.constant 2 : index
    %c0_59 = arith.constant 0 : index
    %65 = vector.load %arg1[%c0_56, %c2_57, %c2_58, %c0_59] : memref<1x34x34x8xf32, #tpu.memory_space<vmem>>, vector<1x32x32x8xf32>
    %66 = vector.shape_cast %65 : vector<1x32x32x8xf32> to vector<32x32x8xf32>
    %67 = vector.shape_cast %66 : vector<32x32x8xf32> to vector<1024x8xf32>
    %68 = arith.truncf %67 : vector<1024x8xf32> to vector<1024x8xbf16>
    %c8 = arith.constant 8 : index
    %c0_60 = arith.constant 0 : index
    %c0_61 = arith.constant 0 : index
    %69 = vector.load %arg2[%c8, %c0_60, %c0_61] : memref<9x8x128xbf16, #tpu.memory_space<vmem>>, vector<1x8x128xbf16>
    %70 = vector.shape_cast %69 : vector<1x8x128xbf16> to vector<8x128xbf16>
    %cst_62 = arith.constant dense<0.000000e+00> : vector<1024x128xf32>
    %71 = tpu.matmul %68, %70, %cst_62 {dimension_numbers = #tpu.dot_dimension_numbers<[1], [0], [0], [1], [0, 0, 1, 1], [], []>} : vector<1024x8xbf16>, vector<8x128xbf16>, vector<1024x128xf32> -> vector<1024x128xf32>
    %72 = arith.addf %64, %71 : vector<1024x128xf32>
    %c0_63 = arith.constant 0 : index
    %c0_64 = arith.constant 0 : index
    %73 = vector.load %arg3[%c0_63, %c0_64] : memref<1x128xf32, #tpu.memory_space<vmem>>, vector<1x128xf32>
    %74 = vector.broadcast %73 : vector<1x128xf32> to vector<1024x128xf32>
    %75 = arith.mulf %72, %74 : vector<1024x128xf32>
    %c0_65 = arith.constant 0 : index
    %c0_66 = arith.constant 0 : index
    %76 = vector.load %arg4[%c0_65, %c0_66] : memref<1x128xf32, #tpu.memory_space<vmem>>, vector<1x128xf32>
    %77 = vector.broadcast %76 : vector<1x128xf32> to vector<1024x128xf32>
    %78 = arith.addf %75, %77 : vector<1024x128xf32>
    %cst_67 = arith.constant 0.000000e+00 : f32
    %79 = vector.broadcast %cst_67 : f32 to vector<1024x128xf32>
    %80 = arith.maximumf %78, %79 : vector<1024x128xf32>
    %81 = vector.shape_cast %80 : vector<1024x128xf32> to vector<16x2x32x128xf32>
    %82 = vector.extract_strided_slice %81 {offsets = [0, 0, 0, 0], sizes = [16, 1, 32, 128], strides = [1, 1, 1, 1]} : vector<16x2x32x128xf32> to vector<16x1x32x128xf32>
    %83 = vector.shape_cast %82 : vector<16x1x32x128xf32> to vector<16x32x128xf32>
    %84 = vector.extract_strided_slice %81 {offsets = [0, 1, 0, 0], sizes = [16, 1, 32, 128], strides = [1, 1, 1, 1]} : vector<16x2x32x128xf32> to vector<16x1x32x128xf32>
    %85 = vector.shape_cast %84 : vector<16x1x32x128xf32> to vector<16x32x128xf32>
    %86 = arith.maximumf %83, %85 : vector<16x32x128xf32>
    %87 = vector.shape_cast %86 : vector<16x32x128xf32> to vector<512x128xf32>
    %88 = tpu.iota {dimensions = array<i32: 0>} : vector<256x512xi32>
    %89 = tpu.iota {dimensions = array<i32: 1>} : vector<256x512xi32>
    %c2_i32 = arith.constant 2 : i32
    %90 = vector.broadcast %c2_i32 : i32 to vector<256x512xi32>
    %91 = arith.muli %90, %88 : vector<256x512xi32>
    %92 = arith.cmpi eq, %89, %91 : vector<256x512xi32>
    %93 = arith.extui %92 : vector<256x512xi1> to vector<256x512xi32>
    %94 = arith.sitofp %93 : vector<256x512xi32> to vector<256x512xf32>
    %c2_i32_68 = arith.constant 2 : i32
    %95 = vector.broadcast %c2_i32_68 : i32 to vector<256x512xi32>
    %96 = arith.muli %95, %88 : vector<256x512xi32>
    %c1_i32 = arith.constant 1 : i32
    %97 = vector.broadcast %c1_i32 : i32 to vector<256x512xi32>
    %98 = arith.addi %96, %97 : vector<256x512xi32>
    %99 = arith.cmpi eq, %89, %98 : vector<256x512xi32>
    %100 = arith.extui %99 : vector<256x512xi1> to vector<256x512xi32>
    %101 = arith.sitofp %100 : vector<256x512xi32> to vector<256x512xf32>
    %cst_69 = arith.constant dense<0.000000e+00> : vector<256x128xf32>
    %102 = tpu.matmul %94, %87, %cst_69 {dimension_numbers = #tpu.dot_dimension_numbers<[1], [0], [0], [1], [0, 0, 1, 1], [], []>} : vector<256x512xf32>, vector<512x128xf32>, vector<256x128xf32> -> vector<256x128xf32>
    %cst_70 = arith.constant dense<0.000000e+00> : vector<256x128xf32>
    %103 = tpu.matmul %101, %87, %cst_70 {dimension_numbers = #tpu.dot_dimension_numbers<[1], [0], [0], [1], [0, 0, 1, 1], [], []>} : vector<256x512xf32>, vector<512x128xf32>, vector<256x128xf32> -> vector<256x128xf32>
    %104 = arith.maximumf %102, %103 : vector<256x128xf32>
    %c0_71 = arith.constant 0 : index
    %c0_72 = arith.constant 0 : index
    %c0_73 = arith.constant 0 : index
    %105 = vector.load %arg5[%c0_71, %c0_72, %c0_73] : memref<1x256x128xf32, #tpu.memory_space<vmem>>, vector<1x256x128xf32>
    %106 = vector.shape_cast %105 : vector<1x256x128xf32> to vector<256x128xf32>
    %107 = vector.shape_cast %104 : vector<256x128xf32> to vector<1x256x128xf32>
    tpu.vector_store %arg5[%c0_71, %c0_72, %c0_73], %107 {strides = array<i32>} : memref<1x256x128xf32, #tpu.memory_space<vmem>>, vector<1x256x128xf32>,
    return
  }
  func.func @transform_0(%arg0: i32) -> (i32, i32, i32, i32) {
    %c0_i32 = arith.constant 0 : i32
    %c0_i32_0 = arith.constant 0 : i32
    %c0_i32_1 = arith.constant 0 : i32
    %c0_i32_2 = arith.constant 0 : i32
    return %arg0, %c0_i32, %c0_i32_0, %c0_i32_1 : i32, i32, i32, i32
  }
  func.func @transform_1(%arg0: i32) -> (i32, i32, i32) {
    %c0_i32 = arith.constant 0 : i32
    %c0_i32_0 = arith.constant 0 : i32
    %c0_i32_1 = arith.constant 0 : i32
    %c0_i32_2 = arith.constant 0 : i32
    return %c0_i32, %c0_i32_0, %c0_i32_1 : i32, i32, i32
  }
  func.func @transform_2(%arg0: i32) -> (i32, i32) {
    %c0_i32 = arith.constant 0 : i32
    %c0_i32_0 = arith.constant 0 : i32
    %c0_i32_1 = arith.constant 0 : i32
    return %c0_i32, %c0_i32_0 : i32, i32
  }
  func.func @transform_3(%arg0: i32) -> (i32, i32) {
    %c0_i32 = arith.constant 0 : i32
    %c0_i32_0 = arith.constant 0 : i32
    %c0_i32_1 = arith.constant 0 : i32
    return %c0_i32, %c0_i32_0 : i32, i32
  }
  func.func @transform_4(%arg0: i32) -> (i32, i32, i32) {
    %c0_i32 = arith.constant 0 : i32
    %c0_i32_0 = arith.constant 0 : i32
    %c0_i32_1 = arith.constant 0 : i32
    return %arg0, %c0_i32, %c0_i32_0 : i32, i32, i32
  }
}

module attributes {stable_mosaic.version = 11 : i64} {
  func.func @_conv_bn_relu_pool_kernel(%arg0: i32, %arg1: memref<1x18x18x128xf32, #tpu.memory_space<vmem>>, %arg2: memref<9x128x128xbf16, #tpu.memory_space<vmem>>, %arg3: memref<1x128xf32, #tpu.memory_space<vmem>>, %arg4: memref<1x128xf32, #tpu.memory_space<vmem>>, %arg5: memref<1x64x128xf32, #tpu.memory_space<vmem>>) attributes {dimension_semantics = [#tpu.dimension_semantics<parallel>], iteration_bounds = array<i64: 2>, scalar_prefetch = 0 : i64, scratch_operands = 0 : i64, tpu.core_type = #tpu.core_type<tc>, window_params = [{transform_indices = @transform_0, window_bounds = array<i64: 1, 18, 18, 128>}, {pipeline_mode = #tpu.pipeline_mode<synchronous>, transform_indices = @transform_1, window_bounds = array<i64: 9, 128, 128>}, {pipeline_mode = #tpu.pipeline_mode<synchronous>, transform_indices = @transform_2, window_bounds = array<i64: 1, 128>}, {pipeline_mode = #tpu.pipeline_mode<synchronous>, transform_indices = @transform_3, window_bounds = array<i64: 1, 128>}, {transform_indices = @transform_4, window_bounds = array<i64: 1, 64, 128>}]} {
    %cst = arith.constant 0.000000e+00 : f32
    %0 = vector.broadcast %cst : f32 to vector<256x128xf32>
    %c0 = arith.constant 0 : index
    %c0_0 = arith.constant 0 : index
    %c0_1 = arith.constant 0 : index
    %c0_2 = arith.constant 0 : index
    %1 = vector.load %arg1[%c0, %c0_0, %c0_1, %c0_2] : memref<1x18x18x128xf32, #tpu.memory_space<vmem>>, vector<1x16x16x128xf32>
    %2 = vector.shape_cast %1 : vector<1x16x16x128xf32> to vector<16x16x128xf32>
    %3 = vector.shape_cast %2 : vector<16x16x128xf32> to vector<256x128xf32>
    %4 = arith.truncf %3 : vector<256x128xf32> to vector<256x128xbf16>
    %c0_3 = arith.constant 0 : index
    %c0_4 = arith.constant 0 : index
    %c0_5 = arith.constant 0 : index
    %5 = vector.load %arg2[%c0_3, %c0_4, %c0_5] : memref<9x128x128xbf16, #tpu.memory_space<vmem>>, vector<1x128x128xbf16>
    %6 = vector.shape_cast %5 : vector<1x128x128xbf16> to vector<128x128xbf16>
    %cst_6 = arith.constant dense<0.000000e+00> : vector<256x128xf32>
    %7 = tpu.matmul %4, %6, %cst_6 {dimension_numbers = #tpu.dot_dimension_numbers<[1], [0], [0], [1], [0, 0, 1, 1], [], []>} : vector<256x128xbf16>, vector<128x128xbf16>, vector<256x128xf32> -> vector<256x128xf32>
    %8 = arith.addf %0, %7 : vector<256x128xf32>
    %c0_7 = arith.constant 0 : index
    %c0_8 = arith.constant 0 : index
    %c1 = arith.constant 1 : index
    %c0_9 = arith.constant 0 : index
    %9 = vector.load %arg1[%c0_7, %c0_8, %c1, %c0_9] : memref<1x18x18x128xf32, #tpu.memory_space<vmem>>, vector<1x16x16x128xf32>
    %10 = vector.shape_cast %9 : vector<1x16x16x128xf32> to vector<16x16x128xf32>
    %11 = vector.shape_cast %10 : vector<16x16x128xf32> to vector<256x128xf32>
    %12 = arith.truncf %11 : vector<256x128xf32> to vector<256x128xbf16>
    %c1_10 = arith.constant 1 : index
    %c0_11 = arith.constant 0 : index
    %c0_12 = arith.constant 0 : index
    %13 = vector.load %arg2[%c1_10, %c0_11, %c0_12] : memref<9x128x128xbf16, #tpu.memory_space<vmem>>, vector<1x128x128xbf16>
    %14 = vector.shape_cast %13 : vector<1x128x128xbf16> to vector<128x128xbf16>
    %cst_13 = arith.constant dense<0.000000e+00> : vector<256x128xf32>
    %15 = tpu.matmul %12, %14, %cst_13 {dimension_numbers = #tpu.dot_dimension_numbers<[1], [0], [0], [1], [0, 0, 1, 1], [], []>} : vector<256x128xbf16>, vector<128x128xbf16>, vector<256x128xf32> -> vector<256x128xf32>
    %16 = arith.addf %8, %15 : vector<256x128xf32>
    %c0_14 = arith.constant 0 : index
    %c0_15 = arith.constant 0 : index
    %c2 = arith.constant 2 : index
    %c0_16 = arith.constant 0 : index
    %17 = vector.load %arg1[%c0_14, %c0_15, %c2, %c0_16] : memref<1x18x18x128xf32, #tpu.memory_space<vmem>>, vector<1x16x16x128xf32>
    %18 = vector.shape_cast %17 : vector<1x16x16x128xf32> to vector<16x16x128xf32>
    %19 = vector.shape_cast %18 : vector<16x16x128xf32> to vector<256x128xf32>
    %20 = arith.truncf %19 : vector<256x128xf32> to vector<256x128xbf16>
    %c2_17 = arith.constant 2 : index
    %c0_18 = arith.constant 0 : index
    %c0_19 = arith.constant 0 : index
    %21 = vector.load %arg2[%c2_17, %c0_18, %c0_19] : memref<9x128x128xbf16, #tpu.memory_space<vmem>>, vector<1x128x128xbf16>
    %22 = vector.shape_cast %21 : vector<1x128x128xbf16> to vector<128x128xbf16>
    %cst_20 = arith.constant dense<0.000000e+00> : vector<256x128xf32>
    %23 = tpu.matmul %20, %22, %cst_20 {dimension_numbers = #tpu.dot_dimension_numbers<[1], [0], [0], [1], [0, 0, 1, 1], [], []>} : vector<256x128xbf16>, vector<128x128xbf16>, vector<256x128xf32> -> vector<256x128xf32>
    %24 = arith.addf %16, %23 : vector<256x128xf32>
    %c0_21 = arith.constant 0 : index
    %c1_22 = arith.constant 1 : index
    %c0_23 = arith.constant 0 : index
    %c0_24 = arith.constant 0 : index
    %25 = vector.load %arg1[%c0_21, %c1_22, %c0_23, %c0_24] : memref<1x18x18x128xf32, #tpu.memory_space<vmem>>, vector<1x16x16x128xf32>
    %26 = vector.shape_cast %25 : vector<1x16x16x128xf32> to vector<16x16x128xf32>
    %27 = vector.shape_cast %26 : vector<16x16x128xf32> to vector<256x128xf32>
    %28 = arith.truncf %27 : vector<256x128xf32> to vector<256x128xbf16>
    %c3 = arith.constant 3 : index
    %c0_25 = arith.constant 0 : index
    %c0_26 = arith.constant 0 : index
    %29 = vector.load %arg2[%c3, %c0_25, %c0_26] : memref<9x128x128xbf16, #tpu.memory_space<vmem>>, vector<1x128x128xbf16>
    %30 = vector.shape_cast %29 : vector<1x128x128xbf16> to vector<128x128xbf16>
    %cst_27 = arith.constant dense<0.000000e+00> : vector<256x128xf32>
    %31 = tpu.matmul %28, %30, %cst_27 {dimension_numbers = #tpu.dot_dimension_numbers<[1], [0], [0], [1], [0, 0, 1, 1], [], []>} : vector<256x128xbf16>, vector<128x128xbf16>, vector<256x128xf32> -> vector<256x128xf32>
    %32 = arith.addf %24, %31 : vector<256x128xf32>
    %c0_28 = arith.constant 0 : index
    %c1_29 = arith.constant 1 : index
    %c1_30 = arith.constant 1 : index
    %c0_31 = arith.constant 0 : index
    %33 = vector.load %arg1[%c0_28, %c1_29, %c1_30, %c0_31] : memref<1x18x18x128xf32, #tpu.memory_space<vmem>>, vector<1x16x16x128xf32>
    %34 = vector.shape_cast %33 : vector<1x16x16x128xf32> to vector<16x16x128xf32>
    %35 = vector.shape_cast %34 : vector<16x16x128xf32> to vector<256x128xf32>
    %36 = arith.truncf %35 : vector<256x128xf32> to vector<256x128xbf16>
    %c4 = arith.constant 4 : index
    %c0_32 = arith.constant 0 : index
    %c0_33 = arith.constant 0 : index
    %37 = vector.load %arg2[%c4, %c0_32, %c0_33] : memref<9x128x128xbf16, #tpu.memory_space<vmem>>, vector<1x128x128xbf16>
    %38 = vector.shape_cast %37 : vector<1x128x128xbf16> to vector<128x128xbf16>
    %cst_34 = arith.constant dense<0.000000e+00> : vector<256x128xf32>
    %39 = tpu.matmul %36, %38, %cst_34 {dimension_numbers = #tpu.dot_dimension_numbers<[1], [0], [0], [1], [0, 0, 1, 1], [], []>} : vector<256x128xbf16>, vector<128x128xbf16>, vector<256x128xf32> -> vector<256x128xf32>
    %40 = arith.addf %32, %39 : vector<256x128xf32>
    %c0_35 = arith.constant 0 : index
    %c1_36 = arith.constant 1 : index
    %c2_37 = arith.constant 2 : index
    %c0_38 = arith.constant 0 : index
    %41 = vector.load %arg1[%c0_35, %c1_36, %c2_37, %c0_38] : memref<1x18x18x128xf32, #tpu.memory_space<vmem>>, vector<1x16x16x128xf32>
    %42 = vector.shape_cast %41 : vector<1x16x16x128xf32> to vector<16x16x128xf32>
    %43 = vector.shape_cast %42 : vector<16x16x128xf32> to vector<256x128xf32>
    %44 = arith.truncf %43 : vector<256x128xf32> to vector<256x128xbf16>
    %c5 = arith.constant 5 : index
    %c0_39 = arith.constant 0 : index
    %c0_40 = arith.constant 0 : index
    %45 = vector.load %arg2[%c5, %c0_39, %c0_40] : memref<9x128x128xbf16, #tpu.memory_space<vmem>>, vector<1x128x128xbf16>
    %46 = vector.shape_cast %45 : vector<1x128x128xbf16> to vector<128x128xbf16>
    %cst_41 = arith.constant dense<0.000000e+00> : vector<256x128xf32>
    %47 = tpu.matmul %44, %46, %cst_41 {dimension_numbers = #tpu.dot_dimension_numbers<[1], [0], [0], [1], [0, 0, 1, 1], [], []>} : vector<256x128xbf16>, vector<128x128xbf16>, vector<256x128xf32> -> vector<256x128xf32>
    %48 = arith.addf %40, %47 : vector<256x128xf32>
    %c0_42 = arith.constant 0 : index
    %c2_43 = arith.constant 2 : index
    %c0_44 = arith.constant 0 : index
    %c0_45 = arith.constant 0 : index
    %49 = vector.load %arg1[%c0_42, %c2_43, %c0_44, %c0_45] : memref<1x18x18x128xf32, #tpu.memory_space<vmem>>, vector<1x16x16x128xf32>
    %50 = vector.shape_cast %49 : vector<1x16x16x128xf32> to vector<16x16x128xf32>
    %51 = vector.shape_cast %50 : vector<16x16x128xf32> to vector<256x128xf32>
    %52 = arith.truncf %51 : vector<256x128xf32> to vector<256x128xbf16>
    %c6 = arith.constant 6 : index
    %c0_46 = arith.constant 0 : index
    %c0_47 = arith.constant 0 : index
    %53 = vector.load %arg2[%c6, %c0_46, %c0_47] : memref<9x128x128xbf16, #tpu.memory_space<vmem>>, vector<1x128x128xbf16>
    %54 = vector.shape_cast %53 : vector<1x128x128xbf16> to vector<128x128xbf16>
    %cst_48 = arith.constant dense<0.000000e+00> : vector<256x128xf32>
    %55 = tpu.matmul %52, %54, %cst_48 {dimension_numbers = #tpu.dot_dimension_numbers<[1], [0], [0], [1], [0, 0, 1, 1], [], []>} : vector<256x128xbf16>, vector<128x128xbf16>, vector<256x128xf32> -> vector<256x128xf32>
    %56 = arith.addf %48, %55 : vector<256x128xf32>
    %c0_49 = arith.constant 0 : index
    %c2_50 = arith.constant 2 : index
    %c1_51 = arith.constant 1 : index
    %c0_52 = arith.constant 0 : index
    %57 = vector.load %arg1[%c0_49, %c2_50, %c1_51, %c0_52] : memref<1x18x18x128xf32, #tpu.memory_space<vmem>>, vector<1x16x16x128xf32>
    %58 = vector.shape_cast %57 : vector<1x16x16x128xf32> to vector<16x16x128xf32>
    %59 = vector.shape_cast %58 : vector<16x16x128xf32> to vector<256x128xf32>
    %60 = arith.truncf %59 : vector<256x128xf32> to vector<256x128xbf16>
    %c7 = arith.constant 7 : index
    %c0_53 = arith.constant 0 : index
    %c0_54 = arith.constant 0 : index
    %61 = vector.load %arg2[%c7, %c0_53, %c0_54] : memref<9x128x128xbf16, #tpu.memory_space<vmem>>, vector<1x128x128xbf16>
    %62 = vector.shape_cast %61 : vector<1x128x128xbf16> to vector<128x128xbf16>
    %cst_55 = arith.constant dense<0.000000e+00> : vector<256x128xf32>
    %63 = tpu.matmul %60, %62, %cst_55 {dimension_numbers = #tpu.dot_dimension_numbers<[1], [0], [0], [1], [0, 0, 1, 1], [], []>} : vector<256x128xbf16>, vector<128x128xbf16>, vector<256x128xf32> -> vector<256x128xf32>
    %64 = arith.addf %56, %63 : vector<256x128xf32>
    %c0_56 = arith.constant 0 : index
    %c2_57 = arith.constant 2 : index
    %c2_58 = arith.constant 2 : index
    %c0_59 = arith.constant 0 : index
    %65 = vector.load %arg1[%c0_56, %c2_57, %c2_58, %c0_59] : memref<1x18x18x128xf32, #tpu.memory_space<vmem>>, vector<1x16x16x128xf32>
    %66 = vector.shape_cast %65 : vector<1x16x16x128xf32> to vector<16x16x128xf32>
    %67 = vector.shape_cast %66 : vector<16x16x128xf32> to vector<256x128xf32>
    %68 = arith.truncf %67 : vector<256x128xf32> to vector<256x128xbf16>
    %c8 = arith.constant 8 : index
    %c0_60 = arith.constant 0 : index
    %c0_61 = arith.constant 0 : index
    %69 = vector.load %arg2[%c8, %c0_60, %c0_61] : memref<9x128x128xbf16, #tpu.memory_space<vmem>>, vector<1x128x128xbf16>
    %70 = vector.shape_cast %69 : vector<1x128x128xbf16> to vector<128x128xbf16>
    %cst_62 = arith.constant dense<0.000000e+00> : vector<256x128xf32>
    %71 = tpu.matmul %68, %70, %cst_62 {dimension_numbers = #tpu.dot_dimension_numbers<[1], [0], [0], [1], [0, 0, 1, 1], [], []>} : vector<256x128xbf16>, vector<128x128xbf16>, vector<256x128xf32> -> vector<256x128xf32>
    %72 = arith.addf %64, %71 : vector<256x128xf32>
    %c0_63 = arith.constant 0 : index
    %c0_64 = arith.constant 0 : index
    %73 = vector.load %arg3[%c0_63, %c0_64] : memref<1x128xf32, #tpu.memory_space<vmem>>, vector<1x128xf32>
    %74 = vector.broadcast %73 : vector<1x128xf32> to vector<256x128xf32>
    %75 = arith.mulf %72, %74 : vector<256x128xf32>
    %c0_65 = arith.constant 0 : index
    %c0_66 = arith.constant 0 : index
    %76 = vector.load %arg4[%c0_65, %c0_66] : memref<1x128xf32, #tpu.memory_space<vmem>>, vector<1x128xf32>
    %77 = vector.broadcast %76 : vector<1x128xf32> to vector<256x128xf32>
    %78 = arith.addf %75, %77 : vector<256x128xf32>
    %cst_67 = arith.constant 0.000000e+00 : f32
    %79 = vector.broadcast %cst_67 : f32 to vector<256x128xf32>
    %80 = arith.maximumf %78, %79 : vector<256x128xf32>
    %81 = vector.shape_cast %80 : vector<256x128xf32> to vector<8x2x16x128xf32>
    %82 = vector.extract_strided_slice %81 {offsets = [0, 0, 0, 0], sizes = [8, 1, 16, 128], strides = [1, 1, 1, 1]} : vector<8x2x16x128xf32> to vector<8x1x16x128xf32>
    %83 = vector.shape_cast %82 : vector<8x1x16x128xf32> to vector<8x16x128xf32>
    %84 = vector.extract_strided_slice %81 {offsets = [0, 1, 0, 0], sizes = [8, 1, 16, 128], strides = [1, 1, 1, 1]} : vector<8x2x16x128xf32> to vector<8x1x16x128xf32>
    %85 = vector.shape_cast %84 : vector<8x1x16x128xf32> to vector<8x16x128xf32>
    %86 = arith.maximumf %83, %85 : vector<8x16x128xf32>
    %87 = vector.shape_cast %86 : vector<8x16x128xf32> to vector<128x128xf32>
    %88 = tpu.iota {dimensions = array<i32: 0>} : vector<64x128xi32>
    %89 = tpu.iota {dimensions = array<i32: 1>} : vector<64x128xi32>
    %c2_i32 = arith.constant 2 : i32
    %90 = vector.broadcast %c2_i32 : i32 to vector<64x128xi32>
    %91 = arith.muli %90, %88 : vector<64x128xi32>
    %92 = arith.cmpi eq, %89, %91 : vector<64x128xi32>
    %93 = arith.extui %92 : vector<64x128xi1> to vector<64x128xi32>
    %94 = arith.sitofp %93 : vector<64x128xi32> to vector<64x128xf32>
    %c2_i32_68 = arith.constant 2 : i32
    %95 = vector.broadcast %c2_i32_68 : i32 to vector<64x128xi32>
    %96 = arith.muli %95, %88 : vector<64x128xi32>
    %c1_i32 = arith.constant 1 : i32
    %97 = vector.broadcast %c1_i32 : i32 to vector<64x128xi32>
    %98 = arith.addi %96, %97 : vector<64x128xi32>
    %99 = arith.cmpi eq, %89, %98 : vector<64x128xi32>
    %100 = arith.extui %99 : vector<64x128xi1> to vector<64x128xi32>
    %101 = arith.sitofp %100 : vector<64x128xi32> to vector<64x128xf32>
    %cst_69 = arith.constant dense<0.000000e+00> : vector<64x128xf32>
    %102 = tpu.matmul %94, %87, %cst_69 {dimension_numbers = #tpu.dot_dimension_numbers<[1], [0], [0], [1], [0, 0, 1, 1], [], []>} : vector<64x128xf32>, vector<128x128xf32>, vector<64x128xf32> -> vector<64x128xf32>
    %cst_70 = arith.constant dense<0.000000e+00> : vector<64x128xf32>
    %103 = tpu.matmul %101, %87, %cst_70 {dimension_numbers = #tpu.dot_dimension_numbers<[1], [0], [0], [1], [0, 0, 1, 1], [], []>} : vector<64x128xf32>, vector<128x128xf32>, vector<64x128xf32> -> vector<64x128xf32>
    %104 = arith.maximumf %102, %103 : vector<64x128xf32>
    %c0_71 = arith.constant 0 : index
    %c0_72 = arith.constant 0 : index
    %c0_73 = arith.constant 0 : index
    %105 = vector.load %arg5[%c0_71, %c0_72, %c0_73] : memref<1x64x128xf32, #tpu.memory_space<vmem>>, vector<1x64x128xf32>
    %106 = vector.shape_cast %105 : vector<1x64x128xf32> to vector<64x128xf32>
    %107 = vector.shape_cast %104 : vector<64x128xf32> to vector<1x64x128xf32>
    tpu.vector_store %arg5[%c0_71, %c0_72, %c0_73], %107 {strides = array<i32>} : memref<1x64x128xf32, #tpu.memory_space<vmem>>, vector<1x64x128xf32>,
    return
  }
  func.func @transform_0(%arg0: i32) -> (i32, i32, i32, i32) {
    %c0_i32 = arith.constant 0 : i32
    %c0_i32_0 = arith.constant 0 : i32
    %c0_i32_1 = arith.constant 0 : i32
    %c0_i32_2 = arith.constant 0 : i32
    return %arg0, %c0_i32, %c0_i32_0, %c0_i32_1 : i32, i32, i32, i32
  }
  func.func @transform_1(%arg0: i32) -> (i32, i32, i32) {
    %c0_i32 = arith.constant 0 : i32
    %c0_i32_0 = arith.constant 0 : i32
    %c0_i32_1 = arith.constant 0 : i32
    %c0_i32_2 = arith.constant 0 : i32
    return %c0_i32, %c0_i32_0, %c0_i32_1 : i32, i32, i32
  }
  func.func @transform_2(%arg0: i32) -> (i32, i32) {
    %c0_i32 = arith.constant 0 : i32
    %c0_i32_0 = arith.constant 0 : i32
    %c0_i32_1 = arith.constant 0 : i32
    return %c0_i32, %c0_i32_0 : i32, i32
  }
  func.func @transform_3(%arg0: i32) -> (i32, i32) {
    %c0_i32 = arith.constant 0 : i32
    %c0_i32_0 = arith.constant 0 : i32
    %c0_i32_1 = arith.constant 0 : i32
    return %c0_i32, %c0_i32_0 : i32, i32
  }
  func.func @transform_4(%arg0: i32) -> (i32, i32, i32) {
    %c0_i32 = arith.constant 0 : i32
    %c0_i32_0 = arith.constant 0 : i32
    %c0_i32_1 = arith.constant 0 : i32
    return %arg0, %c0_i32, %c0_i32_0 : i32, i32, i32
  }
}

module attributes {stable_mosaic.version = 11 : i64} {
  func.func @_conv_bn_relu_pool_kernel(%arg0: i32, %arg1: memref<1x10x10x128xf32, #tpu.memory_space<vmem>>, %arg2: memref<9x128x128xbf16, #tpu.memory_space<vmem>>, %arg3: memref<1x128xf32, #tpu.memory_space<vmem>>, %arg4: memref<1x128xf32, #tpu.memory_space<vmem>>, %arg5: memref<1x16x128xf32, #tpu.memory_space<vmem>>) attributes {dimension_semantics = [#tpu.dimension_semantics<parallel>], iteration_bounds = array<i64: 2>, scalar_prefetch = 0 : i64, scratch_operands = 0 : i64, tpu.core_type = #tpu.core_type<tc>, window_params = [{transform_indices = @transform_0, window_bounds = array<i64: 1, 10, 10, 128>}, {pipeline_mode = #tpu.pipeline_mode<synchronous>, transform_indices = @transform_1, window_bounds = array<i64: 9, 128, 128>}, {pipeline_mode = #tpu.pipeline_mode<synchronous>, transform_indices = @transform_2, window_bounds = array<i64: 1, 128>}, {pipeline_mode = #tpu.pipeline_mode<synchronous>, transform_indices = @transform_3, window_bounds = array<i64: 1, 128>}, {transform_indices = @transform_4, window_bounds = array<i64: 1, 16, 128>}]} {
    %cst = arith.constant 0.000000e+00 : f32
    %0 = vector.broadcast %cst : f32 to vector<64x128xf32>
    %c0 = arith.constant 0 : index
    %c0_0 = arith.constant 0 : index
    %c0_1 = arith.constant 0 : index
    %c0_2 = arith.constant 0 : index
    %1 = vector.load %arg1[%c0, %c0_0, %c0_1, %c0_2] : memref<1x10x10x128xf32, #tpu.memory_space<vmem>>, vector<1x8x8x128xf32>
    %2 = vector.shape_cast %1 : vector<1x8x8x128xf32> to vector<8x8x128xf32>
    %3 = vector.shape_cast %2 : vector<8x8x128xf32> to vector<64x128xf32>
    %4 = arith.truncf %3 : vector<64x128xf32> to vector<64x128xbf16>
    %c0_3 = arith.constant 0 : index
    %c0_4 = arith.constant 0 : index
    %c0_5 = arith.constant 0 : index
    %5 = vector.load %arg2[%c0_3, %c0_4, %c0_5] : memref<9x128x128xbf16, #tpu.memory_space<vmem>>, vector<1x128x128xbf16>
    %6 = vector.shape_cast %5 : vector<1x128x128xbf16> to vector<128x128xbf16>
    %cst_6 = arith.constant dense<0.000000e+00> : vector<64x128xf32>
    %7 = tpu.matmul %4, %6, %cst_6 {dimension_numbers = #tpu.dot_dimension_numbers<[1], [0], [0], [1], [0, 0, 1, 1], [], []>} : vector<64x128xbf16>, vector<128x128xbf16>, vector<64x128xf32> -> vector<64x128xf32>
    %8 = arith.addf %0, %7 : vector<64x128xf32>
    %c0_7 = arith.constant 0 : index
    %c0_8 = arith.constant 0 : index
    %c1 = arith.constant 1 : index
    %c0_9 = arith.constant 0 : index
    %9 = vector.load %arg1[%c0_7, %c0_8, %c1, %c0_9] : memref<1x10x10x128xf32, #tpu.memory_space<vmem>>, vector<1x8x8x128xf32>
    %10 = vector.shape_cast %9 : vector<1x8x8x128xf32> to vector<8x8x128xf32>
    %11 = vector.shape_cast %10 : vector<8x8x128xf32> to vector<64x128xf32>
    %12 = arith.truncf %11 : vector<64x128xf32> to vector<64x128xbf16>
    %c1_10 = arith.constant 1 : index
    %c0_11 = arith.constant 0 : index
    %c0_12 = arith.constant 0 : index
    %13 = vector.load %arg2[%c1_10, %c0_11, %c0_12] : memref<9x128x128xbf16, #tpu.memory_space<vmem>>, vector<1x128x128xbf16>
    %14 = vector.shape_cast %13 : vector<1x128x128xbf16> to vector<128x128xbf16>
    %cst_13 = arith.constant dense<0.000000e+00> : vector<64x128xf32>
    %15 = tpu.matmul %12, %14, %cst_13 {dimension_numbers = #tpu.dot_dimension_numbers<[1], [0], [0], [1], [0, 0, 1, 1], [], []>} : vector<64x128xbf16>, vector<128x128xbf16>, vector<64x128xf32> -> vector<64x128xf32>
    %16 = arith.addf %8, %15 : vector<64x128xf32>
    %c0_14 = arith.constant 0 : index
    %c0_15 = arith.constant 0 : index
    %c2 = arith.constant 2 : index
    %c0_16 = arith.constant 0 : index
    %17 = vector.load %arg1[%c0_14, %c0_15, %c2, %c0_16] : memref<1x10x10x128xf32, #tpu.memory_space<vmem>>, vector<1x8x8x128xf32>
    %18 = vector.shape_cast %17 : vector<1x8x8x128xf32> to vector<8x8x128xf32>
    %19 = vector.shape_cast %18 : vector<8x8x128xf32> to vector<64x128xf32>
    %20 = arith.truncf %19 : vector<64x128xf32> to vector<64x128xbf16>
    %c2_17 = arith.constant 2 : index
    %c0_18 = arith.constant 0 : index
    %c0_19 = arith.constant 0 : index
    %21 = vector.load %arg2[%c2_17, %c0_18, %c0_19] : memref<9x128x128xbf16, #tpu.memory_space<vmem>>, vector<1x128x128xbf16>
    %22 = vector.shape_cast %21 : vector<1x128x128xbf16> to vector<128x128xbf16>
    %cst_20 = arith.constant dense<0.000000e+00> : vector<64x128xf32>
    %23 = tpu.matmul %20, %22, %cst_20 {dimension_numbers = #tpu.dot_dimension_numbers<[1], [0], [0], [1], [0, 0, 1, 1], [], []>} : vector<64x128xbf16>, vector<128x128xbf16>, vector<64x128xf32> -> vector<64x128xf32>
    %24 = arith.addf %16, %23 : vector<64x128xf32>
    %c0_21 = arith.constant 0 : index
    %c1_22 = arith.constant 1 : index
    %c0_23 = arith.constant 0 : index
    %c0_24 = arith.constant 0 : index
    %25 = vector.load %arg1[%c0_21, %c1_22, %c0_23, %c0_24] : memref<1x10x10x128xf32, #tpu.memory_space<vmem>>, vector<1x8x8x128xf32>
    %26 = vector.shape_cast %25 : vector<1x8x8x128xf32> to vector<8x8x128xf32>
    %27 = vector.shape_cast %26 : vector<8x8x128xf32> to vector<64x128xf32>
    %28 = arith.truncf %27 : vector<64x128xf32> to vector<64x128xbf16>
    %c3 = arith.constant 3 : index
    %c0_25 = arith.constant 0 : index
    %c0_26 = arith.constant 0 : index
    %29 = vector.load %arg2[%c3, %c0_25, %c0_26] : memref<9x128x128xbf16, #tpu.memory_space<vmem>>, vector<1x128x128xbf16>
    %30 = vector.shape_cast %29 : vector<1x128x128xbf16> to vector<128x128xbf16>
    %cst_27 = arith.constant dense<0.000000e+00> : vector<64x128xf32>
    %31 = tpu.matmul %28, %30, %cst_27 {dimension_numbers = #tpu.dot_dimension_numbers<[1], [0], [0], [1], [0, 0, 1, 1], [], []>} : vector<64x128xbf16>, vector<128x128xbf16>, vector<64x128xf32> -> vector<64x128xf32>
    %32 = arith.addf %24, %31 : vector<64x128xf32>
    %c0_28 = arith.constant 0 : index
    %c1_29 = arith.constant 1 : index
    %c1_30 = arith.constant 1 : index
    %c0_31 = arith.constant 0 : index
    %33 = vector.load %arg1[%c0_28, %c1_29, %c1_30, %c0_31] : memref<1x10x10x128xf32, #tpu.memory_space<vmem>>, vector<1x8x8x128xf32>
    %34 = vector.shape_cast %33 : vector<1x8x8x128xf32> to vector<8x8x128xf32>
    %35 = vector.shape_cast %34 : vector<8x8x128xf32> to vector<64x128xf32>
    %36 = arith.truncf %35 : vector<64x128xf32> to vector<64x128xbf16>
    %c4 = arith.constant 4 : index
    %c0_32 = arith.constant 0 : index
    %c0_33 = arith.constant 0 : index
    %37 = vector.load %arg2[%c4, %c0_32, %c0_33] : memref<9x128x128xbf16, #tpu.memory_space<vmem>>, vector<1x128x128xbf16>
    %38 = vector.shape_cast %37 : vector<1x128x128xbf16> to vector<128x128xbf16>
    %cst_34 = arith.constant dense<0.000000e+00> : vector<64x128xf32>
    %39 = tpu.matmul %36, %38, %cst_34 {dimension_numbers = #tpu.dot_dimension_numbers<[1], [0], [0], [1], [0, 0, 1, 1], [], []>} : vector<64x128xbf16>, vector<128x128xbf16>, vector<64x128xf32> -> vector<64x128xf32>
    %40 = arith.addf %32, %39 : vector<64x128xf32>
    %c0_35 = arith.constant 0 : index
    %c1_36 = arith.constant 1 : index
    %c2_37 = arith.constant 2 : index
    %c0_38 = arith.constant 0 : index
    %41 = vector.load %arg1[%c0_35, %c1_36, %c2_37, %c0_38] : memref<1x10x10x128xf32, #tpu.memory_space<vmem>>, vector<1x8x8x128xf32>
    %42 = vector.shape_cast %41 : vector<1x8x8x128xf32> to vector<8x8x128xf32>
    %43 = vector.shape_cast %42 : vector<8x8x128xf32> to vector<64x128xf32>
    %44 = arith.truncf %43 : vector<64x128xf32> to vector<64x128xbf16>
    %c5 = arith.constant 5 : index
    %c0_39 = arith.constant 0 : index
    %c0_40 = arith.constant 0 : index
    %45 = vector.load %arg2[%c5, %c0_39, %c0_40] : memref<9x128x128xbf16, #tpu.memory_space<vmem>>, vector<1x128x128xbf16>
    %46 = vector.shape_cast %45 : vector<1x128x128xbf16> to vector<128x128xbf16>
    %cst_41 = arith.constant dense<0.000000e+00> : vector<64x128xf32>
    %47 = tpu.matmul %44, %46, %cst_41 {dimension_numbers = #tpu.dot_dimension_numbers<[1], [0], [0], [1], [0, 0, 1, 1], [], []>} : vector<64x128xbf16>, vector<128x128xbf16>, vector<64x128xf32> -> vector<64x128xf32>
    %48 = arith.addf %40, %47 : vector<64x128xf32>
    %c0_42 = arith.constant 0 : index
    %c2_43 = arith.constant 2 : index
    %c0_44 = arith.constant 0 : index
    %c0_45 = arith.constant 0 : index
    %49 = vector.load %arg1[%c0_42, %c2_43, %c0_44, %c0_45] : memref<1x10x10x128xf32, #tpu.memory_space<vmem>>, vector<1x8x8x128xf32>
    %50 = vector.shape_cast %49 : vector<1x8x8x128xf32> to vector<8x8x128xf32>
    %51 = vector.shape_cast %50 : vector<8x8x128xf32> to vector<64x128xf32>
    %52 = arith.truncf %51 : vector<64x128xf32> to vector<64x128xbf16>
    %c6 = arith.constant 6 : index
    %c0_46 = arith.constant 0 : index
    %c0_47 = arith.constant 0 : index
    %53 = vector.load %arg2[%c6, %c0_46, %c0_47] : memref<9x128x128xbf16, #tpu.memory_space<vmem>>, vector<1x128x128xbf16>
    %54 = vector.shape_cast %53 : vector<1x128x128xbf16> to vector<128x128xbf16>
    %cst_48 = arith.constant dense<0.000000e+00> : vector<64x128xf32>
    %55 = tpu.matmul %52, %54, %cst_48 {dimension_numbers = #tpu.dot_dimension_numbers<[1], [0], [0], [1], [0, 0, 1, 1], [], []>} : vector<64x128xbf16>, vector<128x128xbf16>, vector<64x128xf32> -> vector<64x128xf32>
    %56 = arith.addf %48, %55 : vector<64x128xf32>
    %c0_49 = arith.constant 0 : index
    %c2_50 = arith.constant 2 : index
    %c1_51 = arith.constant 1 : index
    %c0_52 = arith.constant 0 : index
    %57 = vector.load %arg1[%c0_49, %c2_50, %c1_51, %c0_52] : memref<1x10x10x128xf32, #tpu.memory_space<vmem>>, vector<1x8x8x128xf32>
    %58 = vector.shape_cast %57 : vector<1x8x8x128xf32> to vector<8x8x128xf32>
    %59 = vector.shape_cast %58 : vector<8x8x128xf32> to vector<64x128xf32>
    %60 = arith.truncf %59 : vector<64x128xf32> to vector<64x128xbf16>
    %c7 = arith.constant 7 : index
    %c0_53 = arith.constant 0 : index
    %c0_54 = arith.constant 0 : index
    %61 = vector.load %arg2[%c7, %c0_53, %c0_54] : memref<9x128x128xbf16, #tpu.memory_space<vmem>>, vector<1x128x128xbf16>
    %62 = vector.shape_cast %61 : vector<1x128x128xbf16> to vector<128x128xbf16>
    %cst_55 = arith.constant dense<0.000000e+00> : vector<64x128xf32>
    %63 = tpu.matmul %60, %62, %cst_55 {dimension_numbers = #tpu.dot_dimension_numbers<[1], [0], [0], [1], [0, 0, 1, 1], [], []>} : vector<64x128xbf16>, vector<128x128xbf16>, vector<64x128xf32> -> vector<64x128xf32>
    %64 = arith.addf %56, %63 : vector<64x128xf32>
    %c0_56 = arith.constant 0 : index
    %c2_57 = arith.constant 2 : index
    %c2_58 = arith.constant 2 : index
    %c0_59 = arith.constant 0 : index
    %65 = vector.load %arg1[%c0_56, %c2_57, %c2_58, %c0_59] : memref<1x10x10x128xf32, #tpu.memory_space<vmem>>, vector<1x8x8x128xf32>
    %66 = vector.shape_cast %65 : vector<1x8x8x128xf32> to vector<8x8x128xf32>
    %67 = vector.shape_cast %66 : vector<8x8x128xf32> to vector<64x128xf32>
    %68 = arith.truncf %67 : vector<64x128xf32> to vector<64x128xbf16>
    %c8 = arith.constant 8 : index
    %c0_60 = arith.constant 0 : index
    %c0_61 = arith.constant 0 : index
    %69 = vector.load %arg2[%c8, %c0_60, %c0_61] : memref<9x128x128xbf16, #tpu.memory_space<vmem>>, vector<1x128x128xbf16>
    %70 = vector.shape_cast %69 : vector<1x128x128xbf16> to vector<128x128xbf16>
    %cst_62 = arith.constant dense<0.000000e+00> : vector<64x128xf32>
    %71 = tpu.matmul %68, %70, %cst_62 {dimension_numbers = #tpu.dot_dimension_numbers<[1], [0], [0], [1], [0, 0, 1, 1], [], []>} : vector<64x128xbf16>, vector<128x128xbf16>, vector<64x128xf32> -> vector<64x128xf32>
    %72 = arith.addf %64, %71 : vector<64x128xf32>
    %c0_63 = arith.constant 0 : index
    %c0_64 = arith.constant 0 : index
    %73 = vector.load %arg3[%c0_63, %c0_64] : memref<1x128xf32, #tpu.memory_space<vmem>>, vector<1x128xf32>
    %74 = vector.broadcast %73 : vector<1x128xf32> to vector<64x128xf32>
    %75 = arith.mulf %72, %74 : vector<64x128xf32>
    %c0_65 = arith.constant 0 : index
    %c0_66 = arith.constant 0 : index
    %76 = vector.load %arg4[%c0_65, %c0_66] : memref<1x128xf32, #tpu.memory_space<vmem>>, vector<1x128xf32>
    %77 = vector.broadcast %76 : vector<1x128xf32> to vector<64x128xf32>
    %78 = arith.addf %75, %77 : vector<64x128xf32>
    %cst_67 = arith.constant 0.000000e+00 : f32
    %79 = vector.broadcast %cst_67 : f32 to vector<64x128xf32>
    %80 = arith.maximumf %78, %79 : vector<64x128xf32>
    %81 = vector.shape_cast %80 : vector<64x128xf32> to vector<4x2x8x128xf32>
    %82 = vector.extract_strided_slice %81 {offsets = [0, 0, 0, 0], sizes = [4, 1, 8, 128], strides = [1, 1, 1, 1]} : vector<4x2x8x128xf32> to vector<4x1x8x128xf32>
    %83 = vector.shape_cast %82 : vector<4x1x8x128xf32> to vector<4x8x128xf32>
    %84 = vector.extract_strided_slice %81 {offsets = [0, 1, 0, 0], sizes = [4, 1, 8, 128], strides = [1, 1, 1, 1]} : vector<4x2x8x128xf32> to vector<4x1x8x128xf32>
    %85 = vector.shape_cast %84 : vector<4x1x8x128xf32> to vector<4x8x128xf32>
    %86 = arith.maximumf %83, %85 : vector<4x8x128xf32>
    %87 = vector.shape_cast %86 : vector<4x8x128xf32> to vector<32x128xf32>
    %88 = tpu.iota {dimensions = array<i32: 0>} : vector<16x32xi32>
    %89 = tpu.iota {dimensions = array<i32: 1>} : vector<16x32xi32>
    %c2_i32 = arith.constant 2 : i32
    %90 = vector.broadcast %c2_i32 : i32 to vector<16x32xi32>
    %91 = arith.muli %90, %88 : vector<16x32xi32>
    %92 = arith.cmpi eq, %89, %91 : vector<16x32xi32>
    %93 = arith.extui %92 : vector<16x32xi1> to vector<16x32xi32>
    %94 = arith.sitofp %93 : vector<16x32xi32> to vector<16x32xf32>
    %c2_i32_68 = arith.constant 2 : i32
    %95 = vector.broadcast %c2_i32_68 : i32 to vector<16x32xi32>
    %96 = arith.muli %95, %88 : vector<16x32xi32>
    %c1_i32 = arith.constant 1 : i32
    %97 = vector.broadcast %c1_i32 : i32 to vector<16x32xi32>
    %98 = arith.addi %96, %97 : vector<16x32xi32>
    %99 = arith.cmpi eq, %89, %98 : vector<16x32xi32>
    %100 = arith.extui %99 : vector<16x32xi1> to vector<16x32xi32>
    %101 = arith.sitofp %100 : vector<16x32xi32> to vector<16x32xf32>
    %cst_69 = arith.constant dense<0.000000e+00> : vector<16x128xf32>
    %102 = tpu.matmul %94, %87, %cst_69 {dimension_numbers = #tpu.dot_dimension_numbers<[1], [0], [0], [1], [0, 0, 1, 1], [], []>} : vector<16x32xf32>, vector<32x128xf32>, vector<16x128xf32> -> vector<16x128xf32>
    %cst_70 = arith.constant dense<0.000000e+00> : vector<16x128xf32>
    %103 = tpu.matmul %101, %87, %cst_70 {dimension_numbers = #tpu.dot_dimension_numbers<[1], [0], [0], [1], [0, 0, 1, 1], [], []>} : vector<16x32xf32>, vector<32x128xf32>, vector<16x128xf32> -> vector<16x128xf32>
    %104 = arith.maximumf %102, %103 : vector<16x128xf32>
    %c0_71 = arith.constant 0 : index
    %c0_72 = arith.constant 0 : index
    %c0_73 = arith.constant 0 : index
    %105 = vector.load %arg5[%c0_71, %c0_72, %c0_73] : memref<1x16x128xf32, #tpu.memory_space<vmem>>, vector<1x16x128xf32>
    %106 = vector.shape_cast %105 : vector<1x16x128xf32> to vector<16x128xf32>
    %107 = vector.shape_cast %104 : vector<16x128xf32> to vector<1x16x128xf32>
    tpu.vector_store %arg5[%c0_71, %c0_72, %c0_73], %107 {strides = array<i32>} : memref<1x16x128xf32, #tpu.memory_space<vmem>>, vector<1x16x128xf32>,
    return
  }
  func.func @transform_0(%arg0: i32) -> (i32, i32, i32, i32) {
    %c0_i32 = arith.constant 0 : i32
    %c0_i32_0 = arith.constant 0 : i32
    %c0_i32_1 = arith.constant 0 : i32
    %c0_i32_2 = arith.constant 0 : i32
    return %arg0, %c0_i32, %c0_i32_0, %c0_i32_1 : i32, i32, i32, i32
  }
  func.func @transform_1(%arg0: i32) -> (i32, i32, i32) {
    %c0_i32 = arith.constant 0 : i32
    %c0_i32_0 = arith.constant 0 : i32
    %c0_i32_1 = arith.constant 0 : i32
    %c0_i32_2 = arith.constant 0 : i32
    return %c0_i32, %c0_i32_0, %c0_i32_1 : i32, i32, i32
  }
  func.func @transform_2(%arg0: i32) -> (i32, i32) {
    %c0_i32 = arith.constant 0 : i32
    %c0_i32_0 = arith.constant 0 : i32
    %c0_i32_1 = arith.constant 0 : i32
    return %c0_i32, %c0_i32_0 : i32, i32
  }
  func.func @transform_3(%arg0: i32) -> (i32, i32) {
    %c0_i32 = arith.constant 0 : i32
    %c0_i32_0 = arith.constant 0 : i32
    %c0_i32_1 = arith.constant 0 : i32
    return %c0_i32, %c0_i32_0 : i32, i32
  }
  func.func @transform_4(%arg0: i32) -> (i32, i32, i32) {
    %c0_i32 = arith.constant 0 : i32
    %c0_i32_0 = arith.constant 0 : i32
    %c0_i32_1 = arith.constant 0 : i32
    return %arg0, %c0_i32, %c0_i32_0 : i32, i32, i32
  }
}

module attributes {stable_mosaic.version = 11 : i64} {
  func.func @_fc_fused_kernel(%arg0: i32, %arg1: memref<8x2048xf32, #tpu.memory_space<vmem>>, %arg2: memref<2048x128xbf16, #tpu.memory_space<vmem>>, %arg3: memref<1x128xf32, #tpu.memory_space<vmem>>, %arg4: memref<128x128xbf16, #tpu.memory_space<vmem>>, %arg5: memref<1x128xf32, #tpu.memory_space<vmem>>, %arg6: memref<128x128xbf16, #tpu.memory_space<vmem>>, %arg7: memref<1x128xf32, #tpu.memory_space<vmem>>, %arg8: memref<8x128xf32, #tpu.memory_space<vmem>>) attributes {dimension_semantics = [#tpu.dimension_semantics<parallel>], iteration_bounds = array<i64: 1>, scalar_prefetch = 0 : i64, scratch_operands = 0 : i64, tpu.core_type = #tpu.core_type<tc>, window_params = [{transform_indices = @transform_0, window_bounds = array<i64: 8, 2048>}, {pipeline_mode = #tpu.pipeline_mode<synchronous>, transform_indices = @transform_1, window_bounds = array<i64: 2048, 128>}, {pipeline_mode = #tpu.pipeline_mode<synchronous>, transform_indices = @transform_2, window_bounds = array<i64: 1, 128>}, {pipeline_mode = #tpu.pipeline_mode<synchronous>, transform_indices = @transform_3, window_bounds = array<i64: 128, 128>}, {pipeline_mode = #tpu.pipeline_mode<synchronous>, transform_indices = @transform_4, window_bounds = array<i64: 1, 128>}, {pipeline_mode = #tpu.pipeline_mode<synchronous>, transform_indices = @transform_5, window_bounds = array<i64: 128, 128>}, {pipeline_mode = #tpu.pipeline_mode<synchronous>, transform_indices = @transform_6, window_bounds = array<i64: 1, 128>}, {transform_indices = @transform_7, window_bounds = array<i64: 8, 128>}]} {
    %c0 = arith.constant 0 : index
    %c0_0 = arith.constant 0 : index
    %0 = vector.load %arg1[%c0, %c0_0] : memref<8x2048xf32, #tpu.memory_space<vmem>>, vector<8x2048xf32>
    %1 = arith.truncf %0 : vector<8x2048xf32> to vector<8x2048xbf16>
    %c0_1 = arith.constant 0 : index
    %c0_2 = arith.constant 0 : index
    %2 = vector.load %arg2[%c0_1, %c0_2] : memref<2048x128xbf16, #tpu.memory_space<vmem>>, vector<2048x128xbf16>
    %cst = arith.constant dense<0.000000e+00> : vector<8x128xf32>
    %3 = tpu.matmul %1, %2, %cst {dimension_numbers = #tpu.dot_dimension_numbers<[1], [0], [0], [1], [0, 0, 1, 1], [], []>} : vector<8x2048xbf16>, vector<2048x128xbf16>, vector<8x128xf32> -> vector<8x128xf32>
    %c0_3 = arith.constant 0 : index
    %c0_4 = arith.constant 0 : index
    %4 = vector.load %arg3[%c0_3, %c0_4] : memref<1x128xf32, #tpu.memory_space<vmem>>, vector<1x128xf32>
    %5 = vector.broadcast %4 : vector<1x128xf32> to vector<8x128xf32>
    %6 = arith.addf %3, %5 : vector<8x128xf32>
    %cst_5 = arith.constant 0.000000e+00 : f32
    %7 = vector.broadcast %cst_5 : f32 to vector<8x128xf32>
    %8 = arith.maximumf %6, %7 : vector<8x128xf32>
    %9 = arith.truncf %8 : vector<8x128xf32> to vector<8x128xbf16>
    %c0_6 = arith.constant 0 : index
    %c0_7 = arith.constant 0 : index
    %10 = vector.load %arg4[%c0_6, %c0_7] : memref<128x128xbf16, #tpu.memory_space<vmem>>, vector<128x128xbf16>
    %cst_8 = arith.constant dense<0.000000e+00> : vector<8x128xf32>
    %11 = tpu.matmul %9, %10, %cst_8 {dimension_numbers = #tpu.dot_dimension_numbers<[1], [0], [0], [1], [0, 0, 1, 1], [], []>} : vector<8x128xbf16>, vector<128x128xbf16>, vector<8x128xf32> -> vector<8x128xf32>
    %c0_9 = arith.constant 0 : index
    %c0_10 = arith.constant 0 : index
    %12 = vector.load %arg5[%c0_9, %c0_10] : memref<1x128xf32, #tpu.memory_space<vmem>>, vector<1x128xf32>
    %13 = vector.broadcast %12 : vector<1x128xf32> to vector<8x128xf32>
    %14 = arith.addf %11, %13 : vector<8x128xf32>
    %cst_11 = arith.constant 0.000000e+00 : f32
    %15 = vector.broadcast %cst_11 : f32 to vector<8x128xf32>
    %16 = arith.maximumf %14, %15 : vector<8x128xf32>
    %17 = arith.truncf %16 : vector<8x128xf32> to vector<8x128xbf16>
    %c0_12 = arith.constant 0 : index
    %c0_13 = arith.constant 0 : index
    %18 = vector.load %arg6[%c0_12, %c0_13] : memref<128x128xbf16, #tpu.memory_space<vmem>>, vector<128x128xbf16>
    %cst_14 = arith.constant dense<0.000000e+00> : vector<8x128xf32>
    %19 = tpu.matmul %17, %18, %cst_14 {dimension_numbers = #tpu.dot_dimension_numbers<[1], [0], [0], [1], [0, 0, 1, 1], [], []>} : vector<8x128xbf16>, vector<128x128xbf16>, vector<8x128xf32> -> vector<8x128xf32>
    %c0_15 = arith.constant 0 : index
    %c0_16 = arith.constant 0 : index
    %20 = vector.load %arg7[%c0_15, %c0_16] : memref<1x128xf32, #tpu.memory_space<vmem>>, vector<1x128xf32>
    %21 = vector.broadcast %20 : vector<1x128xf32> to vector<8x128xf32>
    %22 = arith.addf %19, %21 : vector<8x128xf32>
    %c0_17 = arith.constant 0 : index
    %c0_18 = arith.constant 0 : index
    %23 = vector.load %arg8[%c0_17, %c0_18] : memref<8x128xf32, #tpu.memory_space<vmem>>, vector<8x128xf32>
    tpu.vector_store %arg8[%c0_17, %c0_18], %22 {strides = array<i32>} : memref<8x128xf32, #tpu.memory_space<vmem>>, vector<8x128xf32>,
    return
  }
  func.func @transform_0(%arg0: i32) -> (i32, i32) {
    %c0_i32 = arith.constant 0 : i32
    %c0_i32_0 = arith.constant 0 : i32
    return %arg0, %c0_i32 : i32, i32
  }
  func.func @transform_1(%arg0: i32) -> (i32, i32) {
    %c0_i32 = arith.constant 0 : i32
    %c0_i32_0 = arith.constant 0 : i32
    %c0_i32_1 = arith.constant 0 : i32
    return %c0_i32, %c0_i32_0 : i32, i32
  }
  func.func @transform_2(%arg0: i32) -> (i32, i32) {
    %c0_i32 = arith.constant 0 : i32
    %c0_i32_0 = arith.constant 0 : i32
    %c0_i32_1 = arith.constant 0 : i32
    return %c0_i32, %c0_i32_0 : i32, i32
  }
  func.func @transform_3(%arg0: i32) -> (i32, i32) {
    %c0_i32 = arith.constant 0 : i32
    %c0_i32_0 = arith.constant 0 : i32
    %c0_i32_1 = arith.constant 0 : i32
    return %c0_i32, %c0_i32_0 : i32, i32
  }
  func.func @transform_4(%arg0: i32) -> (i32, i32) {
    %c0_i32 = arith.constant 0 : i32
    %c0_i32_0 = arith.constant 0 : i32
    %c0_i32_1 = arith.constant 0 : i32
    return %c0_i32, %c0_i32_0 : i32, i32
  }
  func.func @transform_5(%arg0: i32) -> (i32, i32) {
    %c0_i32 = arith.constant 0 : i32
    %c0_i32_0 = arith.constant 0 : i32
    %c0_i32_1 = arith.constant 0 : i32
    return %c0_i32, %c0_i32_0 : i32, i32
  }
  func.func @transform_6(%arg0: i32) -> (i32, i32) {
    %c0_i32 = arith.constant 0 : i32
    %c0_i32_0 = arith.constant 0 : i32
    %c0_i32_1 = arith.constant 0 : i32
    return %c0_i32, %c0_i32_0 : i32, i32
  }
  func.func @transform_7(%arg0: i32) -> (i32, i32) {
    %c0_i32 = arith.constant 0 : i32
    %c0_i32_0 = arith.constant 0 : i32
    return %arg0, %c0_i32 : i32, i32
  }
}

</mosaic_0001>

<bundles_post_ra>
// kernel: _lambda_.6
= control target key start
LH: loop header
LB: loop body
LE: loop exit
PB: predicated region body
PF: predicated region fallthrough
CT: control target
= control target key end

     0   :  { %s2642_s15 = smov 0   ;;  %s3030_s0 = inlined_call_operand.vmem [shape: f32[2,10,10,128], index: 0, kind: input, shape index: {}]   ;;  %s3031_s1 = inlined_call_operand.vmem [shape: bf16[9,128,128], index: 1, kind: input, shape index: {}]   ;;  %s3032_s2 = inlined_call_operand.vmem [shape: f32[1,128], index: 2, kind: input, shape index: {}]   ;;  %s3033_s3 = inlined_call_operand.vmem [shape: f32[1,128], index: 3, kind: input, shape index: {}]   ;;  %s3034_s4 = inlined_call_operand.vmem [shape: f32[2,16,128], index: 4, kind: output, shape index: {}]  }
   0x1 LB: > { %s1819_s16 = sadd.s32 4294967295, %s2614_s15   ;;  %p1823_p0 = scmp.ge.s32.totalorder %s2614_s15, 1  ;;  %s2614_s15 = sphi %s2642_s15, %s14_s15  }
   0x2   : > { %p162_p1 = scmp.lt.s32.totalorder %s2614_s15, 3 }
   0x4   : > { %p163_p2 = pnand %p1823_p0, %p162_p1 }
   0x5   : > { %v2536_v0 = vld [vmem:[%s3031_s1 + $0x40] sm:$0xff] (!%p163_p2)   ;;  %p188_p3 = scmp.lt.s32.totalorder (!%p163_p2), %s1819_s16, 1  ;;  %v2538_v2 = vld [vmem:[%s3031_s1 + $0x48] sm:$0xff] (!%p163_p2)   ;;  %v2540_v4 = vld [vmem:[%s3031_s1 + $0x50] sm:$0xff] (!%p163_p2)   ;;  %vm1597_vm1 = vcmask (!%p163_p2), 261120  }
   0x6   : > { %166 = sbr.rel (%p163_p2) target bundleno = 630 (0x276), region = 36  ;;  %v2537_v1 = vld [vmem:[%s3031_s1 + $0x100] sm:$0xff] (!%p163_p2)   ;;  %2208 = vmatprep.subr.bf16.mxu1 (!%p163_p2), %v2536_v0  ;;  %v2539_v3 = vld [vmem:[%s3031_s1 + $0x108] sm:$0xff] (!%p163_p2)   ;;  %v2541_v5 = vld [vmem:[%s3031_s1 + $0x110] sm:$0xff] (!%p163_p2)  }
   0x7   : > { %2304 = vmatprep.subr.bf16.mxu0 (!%p163_p2), %v2537_v1  ;;  %2209 = vmatpush3.bf16.msra.mxu1 (!%p163_p2), %v2536_v0  ;;  %v2542_v6 = vld [vmem:[%s3031_s1 + $0x58] sm:$0xff] (!%p163_p2)   ;;  %v2544_v8 = vld [vmem:[%s3031_s1 + $0x60] sm:$0xff] (!%p163_p2)   ;;  %v2546_v10 = vld [vmem:[%s3031_s1 + $0x68] sm:$0xff] (!%p163_p2)  }
   0x8   : > { %2305 = vmatpush3.bf16.msra.mxu0 (!%p163_p2), %v2537_v1  ;;  %2210 = vmatprep.subr.bf16.mxu1 (!%p163_p2), %v2538_v2  ;;  %v2543_v7 = vld [vmem:[%s3031_s1 + $0x118] sm:$0xff] (!%p163_p2)   ;;  %v2545_v9 = vld [vmem:[%s3031_s1 + $0x120] sm:$0xff] (!%p163_p2)   ;;  %v2547_v13 = vld [vmem:[%s3031_s1 + $0x128] sm:$0xff] (!%p163_p2)  }
   0x9   : > { %2306 = vmatprep.subr.bf16.mxu0 (!%p163_p2), %v2539_v3  ;;  %v2548_v17 = vld [vmem:[%s3031_s1 + $0x70] sm:$0xff] (!%p163_p2)   ;;  %v2550_v19 = vld [vmem:[%s3031_s1 + $0x78] sm:$0xff] (!%p163_p2)   ;;  %v2552_v21 = vld [vmem:[%s3031_s1] sm:$0xff] (!%p163_p2)  }
   0xa   : > { %v2549_v18 = vld [vmem:[%s3031_s1 + $0x130] sm:$0xff] (!%p163_p2)   ;;  %v2551_v20 = vld [vmem:[%s3031_s1 + $0x138] sm:$0xff] (!%p163_p2)   ;;  %v2553_v24 = vld [vmem:[%s3031_s1 + $0x140] sm:$0xff] (!%p163_p2)  }
   0xb   : > { %2211 = vmatpush3.bf16.msra.mxu1 (!%p163_p2), %v2538_v2  ;;  %v2554_v29 = vld [vmem:[%s3031_s1 + $0x8] sm:$0xff] (!%p163_p2)   ;;  %v2556_v34 = vld [vmem:[%s3031_s1 + $0x10] sm:$0xff] (!%p163_p2)   ;;  %v2558_v43 = vld [vmem:[%s3031_s1 + $0x18] sm:$0xff] (!%p163_p2)  }
   0xc   : > { %2307 = vmatpush3.bf16.msra.mxu0 (!%p163_p2), %v2539_v3  ;;  %2212 = vmatprep.subr.bf16.mxu1 (!%p163_p2), %v2540_v4  ;;  %v2555_v30 = vld [vmem:[%s3031_s1 + $0x148] sm:$0xff] (!%p163_p2)   ;;  %v2557_v36 = vld [vmem:[%s3031_s1 + $0x150] sm:$0xff] (!%p163_p2)   ;;  %v2559_v44 = vld [vmem:[%s3031_s1 + $0x158] sm:$0xff] (!%p163_p2)  }
   0xd   : > { %s3036_s16 = smov (!%p188_p3, %s1819_s16), 1  ;;  %2308 = vmatprep.subr.bf16.mxu0 %v2541_v5  ;;  %v2560_v47 = vld [vmem:[%s3031_s1 + $0x20] sm:$0xff]   ;;  %v2562_v49 = vld [vmem:[%s3031_s1 + $0x28] sm:$0xff]   ;;  %v2564_v51 = vld [vmem:[%s3031_s1 + $0x30] sm:$0xff]  }
   0xe   : > { %s2526_s7 = smul.u32 160, %s3036_s16  ;;  %v2561_v48 = vld [vmem:[%s3031_s1 + $0x160] sm:$0xff]   ;;  %v2563_v50 = vld [vmem:[%s3031_s1 + $0x168] sm:$0xff]   ;;  %v2565_v52 = vld [vmem:[%s3031_s1 + $0x170] sm:$0xff]   ;;  %s2087_s29 = sshll.u32 %s3036_s16, 4 }
   0xf   : > { %2213 = vmatpush3.bf16.msra.mxu1 %v2540_v4  ;;  %v2566_v53 = vld [vmem:[%s3031_s1 + $0x38] sm:$0xff]   ;;  %v2568_v57 = vld [vmem:[%s3031_s1 + $0x80] sm:$0xff]   ;;  %v2570_v0 = vld [vmem:[%s3031_s1 + $0x88] sm:$0xff]   ;;  %s197_s6 = scalar_lea.vmem %s3034_s4, %s2087_s29 }
  0x10   : > { %2309 = vmatpush3.bf16.msra.mxu0 %v2541_v5  ;;  %2214 = vmatprep.subr.bf16.mxu1 %v2542_v6  ;;  %s2686_s14 = scalar_lea.vmem %s3030_s0, %s2526_s7  ;;  %v2567_v54 = vld [vmem:[%s3031_s1 + $0x178] sm:$0xff]   ;;  %v2569_v59 = vld [vmem:[%s3031_s1 + $0x180] sm:$0xff]   ;;  %v2571_v4 = vld [vmem:[%s3031_s1 + $0x188] sm:$0xff]  }
  0x11   : > { %2310 = vmatprep.subr.bf16.mxu0 %v2543_v7  ;;  %v227_v11 = vld [vmem:[%s2686_s14 + $0x1] sm:$0xff]  ;;  %v228_v12 = vld [vmem:[%s2686_s14 + $0x11] sm:$0xff] }
  0x12   : > { %v235_v14 = vpack.c.bf16 %v228_v12, %v227_v11  ;;  %v1916_v15 = vld [vmem:[%s2686_s14 + $0x21] sm:$0xff]  ;;  %v230_v22 = vld [vmem:[%s2686_s14 + $0x31] sm:$0xff] }
  0x13   : > { %2215 = vmatpush3.bf16.msra.mxu1 %v2542_v6  ;;  %v791_v16 = vpack.c.bf16 %v1916_v15, %v228_v12  ;;  %v1918_v23 = vld [vmem:[%s2686_s14 + $0x41] sm:$0xff]  ;;  %v2717_v25 = vpack.c.bf16 %v230_v22, %v1916_v15  ;;  %v232_v26 = vld [vmem:[%s2686_s14 + $0x51] sm:$0xff] }
  0x14   : > { %2311 = vmatpush3.bf16.msra.mxu0 %v2543_v7  ;;  %2216 = vmatprep.subr.bf16.mxu1 %v2544_v8  ;;  %v792_v27 = vpack.c.bf16 %v1918_v23, %v230_v22  ;;  %v1920_v28 = vld [vmem:[%s2686_s14 + $0x61] sm:$0xff]  ;;  %v2727_v31 = vpack.c.bf16 %v232_v26, %v1918_v23  ;;  %v234_v33 = vld [vmem:[%s2686_s14 + $0x71] sm:$0xff] }
  0x15   : > { %2312 = vmatprep.subr.bf16.mxu0 %v2545_v9  ;;  %2224 = vmatprep.mubr.bf16.mxu1 %v235_v14  ;;  %v793_v32 = vpack.c.bf16 %v1920_v28, %v232_v26  ;;  %v2735_v35 = vld [vmem:[%s2686_s14 + $0x81] sm:$0xff]  ;;  %v2741_v37 = vpack.c.bf16 %v234_v33, %v1920_v28  ;;  %v2745_v39 = vld [vmem:[%s2686_s14 + $0x10] sm:$0xff]  ;;  %v2582_v26 = vld [vmem:[%s3031_s1 + $0xb8] sm:$0xff]  }
  0x16   : > { %2320 = vmatprep.mubr.bf16.mxu0 %v791_v16  ;;  %v199_v38 = vld [vmem:[%s2686_s14] sm:$0xff]  ;;  %v794_v40 = vpack.c.bf16 %v2735_v35, %v234_v33  ;;  %v2749_v41 = vld [vmem:[%s2686_s14 + $0x12] sm:$0xff]  ;;  %v2579_v22 = vld [vmem:[%s3031_s1 + $0x1a8] sm:$0xff]  }
  0x17   : > { %2217 = vmatpush3.bf16.msra.mxu1 %v2544_v8  ;;  %v2752_v42 = vld [vmem:[%s2686_s14 + $0x22] sm:$0xff]  ;;  %v207_v45 = vpack.c.bf16 %v2745_v39, %v199_v38  ;;  %v2792_v56 = vld [vmem:[%s2686_s14 + $0x30] sm:$0xff]  ;;  %v2574_v16 = vld [vmem:[%s3031_s1 + $0x98] sm:$0xff]  }
  0x18   : > { %2313 = vmatpush3.bf16.msra.mxu0 %v2545_v9  ;;  %2218 = vmatprep.subr.bf16.mxu1 %v2546_v10  ;;  %v941_v46 = vpack.c.bf16 %v2752_v42, %v2749_v41  ;;  %v2789_v55 = vld [vmem:[%s2686_s14 + $0x20] sm:$0xff]  ;;  %v2798_v58 = vld [vmem:[%s2686_s14 + $0x32] sm:$0xff]  ;;  %v2587_v33 = vld [vmem:[%s3031_s1 + $0x1c8] sm:$0xff]  }
  0x19   : > { %2314 = vmatprep.subr.bf16.mxu0 %v2547_v13  ;;  %v2804_v60 = vld [vmem:[%s2686_s14 + $0x42] sm:$0xff]  ;;  %v2810_v62 = vld [vmem:[%s2686_s14 + $0x50] sm:$0xff]  ;;  %v208_v63 = vpack.c.bf16 %v2792_v56, %v2789_v55 }
  0x1a   : > { %v2807_v61 = vld [vmem:[%s2686_s14 + $0x40] sm:$0xff]  ;;  %v2818_v1 = vld [vmem:[%s2686_s14 + $0x52] sm:$0xff]  ;;  %v942_v2 = vpack.c.bf16 %v2804_v60, %v2798_v58 }
  0x1b   : > { %2219 = vmatpush3.bf16.msra.mxu1 %v2546_v10  ;;  %v2823_v3 = vld [vmem:[%s2686_s14 + $0x62] sm:$0xff]  ;;  %v2830_v5 = vpack.c.bf16 %v2810_v62, %v2807_v61  ;;  %v2572_v7 = vld [vmem:[%s3031_s1 + $0x90] sm:$0xff]  }
  0x1c   : > { %2315 = vmatpush3.bf16.msra.mxu0 %v2547_v13  ;;  %2220 = vmatprep.subr.bf16.mxu1 %v2548_v17  ;;  %v2833_v6 = vld [vmem:[%s2686_s14 + $0x60] sm:$0xff]  ;;  %v943_v8 = vpack.c.bf16 %v2823_v3, %v2818_v1  ;;  %v2841_v9 = vld [vmem:[%s2686_s14 + $0x70] sm:$0xff] }
  0x1d   : > { %2316 = vmatprep.subr.bf16.mxu0 %v2549_v18  ;;  %v2844_v10 = vld [vmem:[%s2686_s14 + $0x72] sm:$0xff]  ;;  %v2847_v11 = vld [vmem:[%s2686_s14 + $0x82] sm:$0xff]  ;;  %v2855_v13 = vpack.c.bf16 %v2841_v9, %v2833_v6 }
  0x1e   : > { %v2573_v12 = vld [vmem:[%s3031_s1 + $0x190] sm:$0xff]   ;;  %v482_v14 = vld [vmem:[%s2686_s14 + $0x2] sm:$0xff]  ;;  %v944_v15 = vpack.c.bf16 %v2847_v11, %v2844_v10 }
  0x1f   : > { %2221 = vmatpush3.bf16.msra.mxu1 %v2548_v17  ;;  %v2575_v17 = vld [vmem:[%s3031_s1 + $0x198] sm:$0xff]   ;;  %v2580_v23 = vld [vmem:[%s3031_s1 + $0xb0] sm:$0xff]   ;;  %v2584_v28 = vld [vmem:[%s3031_s1 + $0xc0] sm:$0xff]  }
  0x20   : > { %2317 = vmatpush3.bf16.msra.mxu0 %v2549_v18  ;;  %2222 = vmatprep.subr.bf16.mxu1 %v2550_v19  ;;  %v490_v18 = vpack.c.bf16 %v2749_v41, %v482_v14  ;;  %v2918_v38 = vld [vmem:[%s2686_s14 + $0x80] sm:$0xff]  ;;  %v2589_v41 = vld [vmem:[%s3031_s1 + $0x1d0] sm:$0xff]  }
  0x21   : > { %2318 = vmatprep.subr.bf16.mxu0 %v2551_v20 }
  0x23   : > { %2223 = vmatpush3.bf16.msra.mxu1 %v2550_v19  ;;  %v2576_v19 = vld [vmem:[%s3031_s1 + $0xa0] sm:$0xff]  }
  0x24   : > { %2319 = vmatpush3.bf16.msra.mxu0 %v2551_v20  ;;  %2232 = vmatprep.subr.bf16.mxu1 %v2552_v21  ;;  %v2577_v20 = vld [vmem:[%s3031_s1 + $0x1a0] sm:$0xff]  }
  0x25   : > { %2328 = vmatprep.subr.bf16.mxu0 %v2553_v24 }
  0x26   : > { %2225 = vmatmul.mubr.bf16.vlgmr.msra.gmra.mrb[0].mxu1 %v2717_v25 }
  0x27   : > { %2233 = vmatpush3.bf16.msra.mxu1 %v2552_v21  ;;  %2321 = vmatmul.mubr.bf16.vlgmr.msra.gmra.mrb[0].mxu0 %v792_v27  ;;  %v2578_v21 = vld [vmem:[%s3031_s1 + $0xa8] sm:$0xff]   ;;  %v2583_v27 = vld [vmem:[%s3031_s1 + $0x1b8] sm:$0xff]  }
  0x28   : > { %2329 = vmatpush3.bf16.msra.mxu0 %v2553_v24  ;;  %2234 = vmatprep.subr.bf16.mxu1 %v2554_v29  ;;  %v2581_v24 = vld [vmem:[%s3031_s1 + $0x1b0] sm:$0xff]  }
  0x29   : > { %2330 = vmatprep.subr.bf16.mxu0 %v2555_v30  ;;  %2228 = vmatprep.mubr.bf16.mxu1 %v2727_v31 }
  0x2a   : > { %2324 = vmatprep.mubr.bf16.mxu0 %v793_v32  ;;  %v2586_v32 = vld [vmem:[%s3031_s1 + $0xc8] sm:$0xff]  }
  0x2b   : > { %2235 = vmatpush3.bf16.msra.mxu1 %v2554_v29  ;;  %v2585_v29 = vld [vmem:[%s3031_s1 + $0x1c0] sm:$0xff]  }
  0x2c   : > { %2331 = vmatpush3.bf16.msra.mxu0 %v2555_v30  ;;  %2236 = vmatprep.subr.bf16.mxu1 %v2556_v34  ;;  %v2900_v30 = vpack.c.bf16 %v2798_v58, %v2752_v42  ;;  %v2927_v42 = vpack.c.bf16 %v2844_v10, %v2823_v3  ;;  %v2018_v58 = vld [vmem:[%s2686_s14 + $0x91] sm:$0xff] }
  0x2d   : > { %2332 = vmatprep.subr.bf16.mxu0 %v2557_v36 }
  0x2e   : > { %2229 = vmatmul.mubr.bf16.gmra.mrb[4].mxu1 %v2741_v37 }
  0x2f   : > { %2237 = vmatpush3.bf16.msra.mxu1 %v2556_v34  ;;  %2325 = vmatmul.mubr.bf16.gmra.mrb[4].mxu0 %v794_v40  ;;  %v2910_v34 = vpack.c.bf16 %v2818_v1, %v2804_v60  ;;  %v1986_v40 = vld [vmem:[%s2686_s14 + $0x90] sm:$0xff]  ;;  %v1245_v60 = vpack.c.bf16 %v2018_v58, %v2735_v35  ;;  %v2605_v35 = vld [vmem:[%s3031_s1 + $0x228] sm:$0xff]   ;;  %v1576_v1 = vlaneseq }
  0x30   : > { %2333 = vmatpush3.bf16.msra.mxu0 %v2557_v36  ;;  %2238 = vmatprep.subr.bf16.mxu1 %v2558_v43  ;;  %v2588_v36 = vld [vmem:[%s3031_s1 + $0xd0] sm:$0xff]  }
  0x31   : > { %2334 = vmatprep.subr.bf16.mxu0 %v2559_v44  ;;  %2248 = vmatprep.mubr.bf16.mxu1 %v207_v45  ;;  %v2591_v45 = vld [vmem:[%s3031_s1 + $0x1d8] sm:$0xff]  }
  0x32   : > { %2344 = vmatprep.mubr.bf16.mxu0 %v941_v46  ;;  %v641_v46 = vpack.c.bf16 %v2789_v55, %v2745_v39  ;;  %v2594_v39 = vld [vmem:[%s3031_s1 + $0xe8] sm:$0xff]   ;;  %v643_v55 = vpack.c.bf16 %v2833_v6, %v2810_v62  ;;  %v2607_v62 = vld [vmem:[%s3031_s1 + $0x238] sm:$0xff]  }
  0x33   : > { %2239 = vmatpush3.bf16.msra.mxu1 %v2558_v43  ;;  %v1095_v43 = vpack.c.bf16 %v1986_v40, %v2918_v38 }
  0x34   : > { %2335 = vmatpush3.bf16.msra.mxu0 %v2559_v44  ;;  %2240 = vmatprep.subr.bf16.mxu1 %v2560_v47  ;;  %v2590_v44 = vld [vmem:[%s3031_s1 + $0xd8] sm:$0xff]  }
  0x35   : > { %2336 = vmatprep.subr.bf16.mxu0 %v2561_v48 }
  0x37   : > { %2241 = vmatpush3.bf16.msra.mxu1 %v2560_v47  ;;  %v2592_v47 = vld [vmem:[%s3031_s1 + $0xe0] sm:$0xff]  }
  0x38   : > { %2337 = vmatpush3.bf16.msra.mxu0 %v2561_v48  ;;  %2242 = vmatprep.subr.bf16.mxu1 %v2562_v49  ;;  %v2593_v48 = vld [vmem:[%s3031_s1 + $0x1e0] sm:$0xff]  }
  0x39   : > { %2338 = vmatprep.subr.bf16.mxu0 %v2563_v50 }
  0x3b   : > { %2243 = vmatpush3.bf16.msra.mxu1 %v2562_v49  ;;  %v2595_v49 = vld [vmem:[%s3031_s1 + $0x1e8] sm:$0xff]  }
  0x3c   : > { %2339 = vmatpush3.bf16.msra.mxu0 %v2563_v50  ;;  %2244 = vmatprep.subr.bf16.mxu1 %v2564_v51  ;;  %v2596_v50 = vld [vmem:[%s3031_s1 + $0xf0] sm:$0xff]  }
  0x3d   : > { %2340 = vmatprep.subr.bf16.mxu0 %v2565_v52 }
  0x3f   : > { %2245 = vmatpush3.bf16.msra.mxu1 %v2564_v51  ;;  %v2598_v51 = vld [vmem:[%s3031_s1 + $0xf8] sm:$0xff]  }
  0x40   : > { %2341 = vmatpush3.bf16.msra.mxu0 %v2565_v52  ;;  %2246 = vmatprep.subr.bf16.mxu1 %v2566_v53  ;;  %v2599_v52 = vld [vmem:[%s3031_s1 + $0x1f8] sm:$0xff]  }
  0x41   : > { %2342 = vmatprep.subr.bf16.mxu0 %v2567_v54 }
  0x43   : > { %2247 = vmatpush3.bf16.msra.mxu1 %v2566_v53  ;;  %v2600_v53 = vld [vmem:[%s3031_s1 + $0x200] sm:$0xff]  }
  0x44   : > { %2343 = vmatpush3.bf16.msra.mxu0 %v2567_v54  ;;  %2256 = vmatprep.subr.bf16.mxu1 %v2568_v57  ;;  %v642_v54 = vpack.c.bf16 %v2807_v61, %v2792_v56  ;;  %v2602_v56 = vld [vmem:[%s3031_s1 + $0x210] sm:$0xff]  }
  0x45   : > { %2352 = vmatprep.subr.bf16.mxu0 %v2569_v59  ;;  %v2606_v61 = vld [vmem:[%s3031_s1 + $0x230] sm:$0xff]  }
  0x46   : > { %2249 = vmatmul.mubr.bf16.vlgmr.msra.gmra.mrb[0].mxu1 %v208_v63 }
  0x47   : > { %2257 = vmatpush3.bf16.msra.mxu1 %v2568_v57  ;;  %2345 = vmatmul.mubr.bf16.vlgmr.msra.gmra.mrb[0].mxu0 %v942_v2  ;;  %v2601_v57 = vld [vmem:[%s3031_s1 + $0x208] sm:$0xff]   ;;  %v1577_v2 = vshrl.u32 %v1576_v1, 7 }
  0x48   : > { %2353 = vmatpush3.bf16.msra.mxu0 %v2569_v59  ;;  %2258 = vmatprep.subr.bf16.mxu1 %v2570_v0  ;;  %v644_v59 = vpack.c.bf16 %v2918_v38, %v2841_v9 }
  0x49   : > { %2354 = vmatprep.subr.bf16.mxu0 %v2571_v4  ;;  %2252 = vmatprep.mubr.bf16.mxu1 %v2830_v5  ;;  %v1578_v3 = vadd.s32 8, %v1577_v2 }
  0x4a   : > { %2348 = vmatprep.mubr.bf16.mxu0 %v943_v8 }
  0x4b   : > { %2259 = vmatpush3.bf16.msra.mxu1 %v2570_v0  ;;  %v1582_v6 = vmul.u32 2, %v1578_v3 }
  0x4c   : > { %2355 = vmatpush3.bf16.msra.mxu0 %v2571_v4  ;;  %2260 = vmatprep.subr.bf16.mxu1 %v2572_v7  ;;  %v1580_v4 = vand.u32 127, %v1576_v1 }
  0x4d   : > { %2356 = vmatprep.subr.bf16.mxu0 %v2573_v12 }
  0x4e   : > { %2253 = vmatmul.mubr.bf16.gmra.mrb[4].mxu1 %v2855_v13  ;;  %vm1584_vm2 = vcmp.eq.s32.totalorder %v1580_v4, %v1582_v6 }
  0x4f   : > { %2261 = vmatpush3.bf16.msra.mxu1 %v2572_v7  ;;  %2349 = vmatmul.mubr.bf16.gmra.mrb[4].mxu0 %v944_v15  ;;  %v2616_v7 = vmov 0.0  }
  0x50   : > { %2357 = vmatpush3.bf16.msra.mxu0 %v2573_v12  ;;  %2262 = vmatprep.subr.bf16.mxu1 %v2574_v16  ;;  %v3005_v9 = vsel %vm1584_vm2, 1.0, %v2616_v7  ;;  %v1590_v12 = vadd.s32 1, %v1582_v6 }
  0x51   : > { %2358 = vmatprep.subr.bf16.mxu0 %v2575_v17  ;;  %2272 = vmatprep.mubr.bf16.mxu1 %v490_v18 }
  0x52   : > { %2368 = vmatprep.mubr.bf16.mxu0 %v208_v63  ;;  %v2050_v63 = vld [vmem:[%s2686_s14 + $0x92] sm:$0xff]  ;;  %vm1592_vm4 = vcmp.eq.s32.totalorder %v1580_v4, %v1590_v12 }
  0x53   : > { %2263 = vmatpush3.bf16.msra.mxu1 %v2574_v16  ;;  %v1395_v0 = vpack.c.bf16 %v2050_v63, %v2847_v11 }
  0x54   : > { %2359 = vmatpush3.bf16.msra.mxu0 %v2575_v17  ;;  %2264 = vmatprep.subr.bf16.mxu1 %v2576_v19 }
  0x55   : > { %2360 = vmatprep.subr.bf16.mxu0 %v2577_v20 }
  0x57   : > { %2265 = vmatpush3.bf16.msra.mxu1 %v2576_v19 }
  0x58   : > { %2361 = vmatpush3.bf16.msra.mxu0 %v2577_v20  ;;  %2266 = vmatprep.subr.bf16.mxu1 %v2578_v21 }
  0x59   : > { %2362 = vmatprep.subr.bf16.mxu0 %v2579_v22 }
  0x5b   : > { %2267 = vmatpush3.bf16.msra.mxu1 %v2578_v21 }
  0x5c   : > { %2363 = vmatpush3.bf16.msra.mxu0 %v2579_v22  ;;  %2268 = vmatprep.subr.bf16.mxu1 %v2580_v23 }
  0x5d   : > { %2364 = vmatprep.subr.bf16.mxu0 %v2581_v24 }
  0x5f   : > { %2269 = vmatpush3.bf16.msra.mxu1 %v2580_v23  ;;  %v2075_v23 = vld [vmem:[%s3032_s2] ss:$0 sm:$0xff] }
  0x60   : > { %2365 = vmatpush3.bf16.msra.mxu0 %v2581_v24  ;;  %2270 = vmatprep.subr.bf16.mxu1 %v2582_v26 }
  0x61   : > { %2366 = vmatprep.subr.bf16.mxu0 %v2583_v27 }
  0x63   : > { %2271 = vmatpush3.bf16.msra.mxu1 %v2582_v26 }
  0x64   : > { %2367 = vmatpush3.bf16.msra.mxu0 %v2583_v27  ;;  %2280 = vmatprep.subr.bf16.mxu1 %v2584_v28  ;;  %v2076_v27 = vld [vmem:[%s3033_s3] ss:$0 sm:$0xff] }
  0x65   : > { %2376 = vmatprep.subr.bf16.mxu0 %v2585_v29 }
  0x66   : > { %2273 = vmatmul.mubr.bf16.vlgmr.msra.gmra.mrb[0].mxu1 %v2900_v30 }
  0x67   : > { %2281 = vmatpush3.bf16.msra.mxu1 %v2584_v28  ;;  %2369 = vmatmul.mubr.bf16.vlgmr.msra.gmra.mrb[0].mxu0 %v2830_v5  ;;  %v1581_v5 = vmul.u32 2, %v1577_v2 }
  0x68   : > { %2377 = vmatpush3.bf16.msra.mxu0 %v2585_v29  ;;  %2282 = vmatprep.subr.bf16.mxu1 %v2586_v32 }
  0x69   : > { %2378 = vmatprep.subr.bf16.mxu0 %v2587_v33  ;;  %2276 = vmatprep.mubr.bf16.mxu1 %v2910_v34  ;;  %vm1583_vm0 = vcmp.eq.s32.totalorder %v1580_v4, %v1581_v5  ;;  %v1589_v10 = vadd.s32 1, %v1581_v5 }
  0x6a   : > { %2372 = vmatprep.mubr.bf16.mxu0 %v2855_v13  ;;  %v2077_v8 = vsel %vm1583_vm0, 1.0, %v2616_v7  ;;  %v3009_v13 = vsel %vm1592_vm4, 1.0, %v2616_v7 }
  0x6b   : > { %2283 = vmatpush3.bf16.msra.mxu1 %v2586_v32  ;;  %vm1591_vm3 = vcmp.eq.s32.totalorder %v1580_v4, %v1589_v10 }
  0x6c   : > { %2379 = vmatpush3.bf16.msra.mxu0 %v2587_v33  ;;  %2284 = vmatprep.subr.bf16.mxu1 %v2588_v36  ;;  %v3007_v11 = vsel %vm1591_vm3, 1.0, %v2616_v7 }
  0x6d   : > { %2380 = vmatprep.subr.bf16.mxu0 %v2589_v41 }
  0x6e   : > { %2277 = vmatmul.mubr.bf16.gmra.mrb[4].mxu1 %v2927_v42 }
  0x6f   : > { %2285 = vmatpush3.bf16.msra.mxu1 %v2588_v36  ;;  %2373 = vmatmul.mubr.bf16.gmra.mrb[4].mxu0 %v1095_v43 }
  0x70   : > { %2381 = vmatpush3.bf16.msra.mxu0 %v2589_v41  ;;  %2286 = vmatprep.subr.bf16.mxu1 %v2590_v44 }
  0x71   : > { %2382 = vmatprep.subr.bf16.mxu0 %v2591_v45  ;;  %2296 = vmatprep.mubr.bf16.mxu1 %v641_v46 }
  0x72   : > { %2392 = vmatprep.mubr.bf16.mxu0 %v2717_v25  ;;  %v2597_v25 = vld [vmem:[%s3031_s1 + $0x1f0] sm:$0xff]  }
  0x73   : > { %2287 = vmatpush3.bf16.msra.mxu1 %v2590_v44 }
  0x74   : > { %2383 = vmatpush3.bf16.msra.mxu0 %v2591_v45  ;;  %2288 = vmatprep.subr.bf16.mxu1 %v2592_v47 }
  0x75   : > { %2384 = vmatprep.subr.bf16.mxu0 %v2593_v48 }
  0x77   : > { %2289 = vmatpush3.bf16.msra.mxu1 %v2592_v47 }
  0x78   : > { %2385 = vmatpush3.bf16.msra.mxu0 %v2593_v48  ;;  %2290 = vmatprep.subr.bf16.mxu1 %v2594_v39 }
  0x79   : > { %2386 = vmatprep.subr.bf16.mxu0 %v2595_v49 }
  0x7b   : > { %2291 = vmatpush3.bf16.msra.mxu1 %v2594_v39 }
  0x7c   : > { %2387 = vmatpush3.bf16.msra.mxu0 %v2595_v49  ;;  %2292 = vmatprep.subr.bf16.mxu1 %v2596_v50 }
  0x7d   : > { %2388 = vmatprep.subr.bf16.mxu0 %v2597_v25 }
  0x7f   : > { %2293 = vmatpush3.bf16.msra.mxu1 %v2596_v50 }
  0x80   : > { %2389 = vmatpush3.bf16.msra.mxu0 %v2597_v25  ;;  %2294 = vmatprep.subr.bf16.mxu1 %v2598_v51 }
  0x81   : > { %2390 = vmatprep.subr.bf16.mxu0 %v2599_v52 }
  0x83   : > { %2295 = vmatpush3.bf16.msra.mxu1 %v2598_v51 }
  0x84   : > { %2391 = vmatpush3.bf16.msra.mxu0 %v2599_v52 }
  0x85   : > { %2400 = vmatprep.subr.bf16.mxu0 %v2600_v53 }
  0x86   : > { %2297 = vmatmul.mubr.bf16.vlgmr.msra.gmra.mrb[0].mxu1 %v642_v54 }
  0x87   : > { %2393 = vmatmul.mubr.bf16.vlgmr.msra.gmra.mrb[0].mxu0 %v2727_v31  ;;  %2300 = vmatprep.mubr.bf16.mxu1 %v643_v55  ;;  %v2603_v31 = vld [vmem:[%s3031_s1 + $0x218] sm:$0xff]  }
  0x88   : > { %2401 = vmatpush3.bf16.msra.mxu0 %v2600_v53  ;;  %2396 = vmatprep.mubr.bf16.mxu0 %v2741_v37  ;;  %v2604_v37 = vld [vmem:[%s3031_s1 + $0x220] sm:$0xff]  }
  0x89   : > { %2402 = vmatprep.subr.bf16.mxu0 %v2601_v57 }
  0x8c   : > { %2403 = vmatpush3.bf16.msra.mxu0 %v2601_v57 }
  0x8d   : > { %2404 = vmatprep.subr.bf16.mxu0 %v2602_v56 }
  0x8e   : > { %2301 = vmatmul.mubr.bf16.gmra.mrb[4].mxu1 %v644_v59 }
  0x8f   : > { %2397 = vmatmul.mubr.bf16.gmra.mrb[4].mxu0 %v1245_v60  ;;  %2432 = vmatprep.mubr.msk.f32.mxu1 %vm1597_vm1, %v2077_v8 }
  0x90   : > { %2405 = vmatpush3.bf16.msra.mxu0 %v2602_v56  ;;  %2416 = vmatprep.mubr.bf16.mxu0 %v2900_v30 }
  0x91   : > { %2406 = vmatprep.subr.bf16.mxu0 %v2603_v31 }
  0x94   : > { %2407 = vmatpush3.bf16.msra.mxu0 %v2603_v31 }
  0x95   : > { %2408 = vmatprep.subr.bf16.mxu0 %v2604_v37 }
  0x98   : > { %2409 = vmatpush3.bf16.msra.mxu0 %v2604_v37 }
  0x99   : > { %2410 = vmatprep.subr.bf16.mxu0 %v2605_v35 }
  0x9c   : > { %2411 = vmatpush3.bf16.msra.mxu0 %v2605_v35 }
  0x9d   : > { %2412 = vmatprep.subr.bf16.mxu0 %v2606_v61 }
  0xa0   : > { %2413 = vmatpush3.bf16.msra.mxu0 %v2606_v61 }
  0xa1   : > { %2414 = vmatprep.subr.bf16.mxu0 %v2607_v62 }
  0xa4   : > { %2415 = vmatpush3.bf16.msra.mxu0 %v2607_v62 }
  0xa7   : > { %2417 = vmatmul.mubr.bf16.vlgmr.msra.gmra.mrb[0].mxu0 %v2910_v34 }
  0xa8   : > { %2420 = vmatprep.mubr.bf16.mxu0 %v2927_v42 }
  0xaf   : > { %2421 = vmatmul.mubr.bf16.gmra.mrb[4].mxu0 %v1395_v0 }
 0x159   : > { %v2298_v14 = vpop.f32.mrb[0].mxu1 }
 0x15a   : > { %v744_v15 = vpop.f32.mrb[1].mxu1 }
 0x15b   : > { %v2299_v16 = vpop.f32.mrb[2].mxu1 }
 0x15c   : > { %v747_v17 = vpop.f32.mrb[3].mxu1 }
 0x161   : > { %v2302_v18 = vpop.f32.mrb[4].mxu1 }
 0x162   : > { %v760_v19 = vpop.f32.mrb[5].mxu1 }
 0x163   : > { %v2303_v20 = vpop.f32.mrb[6].mxu1 }
 0x164   : > { %v763_v21 = vpop.f32.mrb[7].mxu1 }
 0x17a   : > { %v2418_v22 = vpop.f32.mrb[0].mxu0 }
 0x17b   : > { %v2462_v24 = vadd.f32 %v2418_v22, %v2298_v14  ;;  %v1495_v26 = vpop.f32.mrb[1].mxu0 }
 0x17c   : > { %v2463_v28 = vadd.f32 %v1495_v26, %v744_v15  ;;  %v2419_v29 = vpop.f32.mrb[2].mxu0 }
 0x17d   : > { %v1543_v30 = vmul.f32 %v2462_v24, %v2075_v23  ;;  %v2464_v32 = vadd.f32 %v2419_v29, %v2299_v16  ;;  %v1498_v33 = vpop.f32.mrb[3].mxu0 }
 0x17e   : > { %v1541_v34 = vmul.f32 %v2463_v28, %v2075_v23  ;;  %v2465_v36 = vadd.f32 %v1498_v33, %v747_v17 }
 0x17f   : > { %v1558_v38 = vadd.f32 %v2076_v27, %v1543_v30  ;;  %v1544_v40 = vmul.f32 %v2464_v32, %v2075_v23 }
 0x180   : > { %v1556_v41 = vadd.f32 %v2076_v27, %v1541_v34  ;;  %v1542_v42 = vmul.f32 %v2465_v36, %v2075_v23 }
 0x181   : > { %v1559_v43 = vadd.f32 %v2076_v27, %v1544_v40  ;;  %v1566_v46 = vmax.f32 %v1558_v38, 0.0 }
 0x182   : > { %v1557_v44 = vadd.f32 %v2076_v27, %v1542_v42  ;;  %v2422_v45 = vpop.f32.mrb[4].mxu0  ;;  %v1564_v49 = vmax.f32 %v1556_v41, 0.0 }
 0x183   : > { %v1567_v47 = vmax.f32 %v1559_v43, 0.0  ;;  %v2466_v48 = vadd.f32 %v2422_v45, %v2302_v18  ;;  %v1511_v39 = vpop.f32.mrb[5].mxu0 }
 0x184   : > { %v1565_v50 = vmax.f32 %v1557_v44, 0.0  ;;  %v2467_v25 = vadd.f32 %v1511_v39, %v760_v19  ;;  %v2423_v51 = vpop.f32.mrb[6].mxu0 }
 0x185   : > { %v1573_v52 = vmax.f32 %v1566_v46, %v1567_v47  ;;  %v1547_v53 = vmul.f32 %v2466_v48, %v2075_v23  ;;  %v2468_v54 = vadd.f32 %v2423_v51, %v2303_v20  ;;  %v1514_v55 = vpop.f32.mrb[7].mxu0 }
 0x186   : > { %v1572_v57 = vmax.f32 %v1564_v49, %v1565_v50  ;;  %v1545_v58 = vmul.f32 %v2467_v25, %v2075_v23  ;;  %v2469_v56 = vadd.f32 %v1514_v55, %v763_v21 }
 0x187   : > { %v1562_v59 = vadd.f32 %v2076_v27, %v1547_v53  ;;  %v1548_v60 = vmul.f32 %v2468_v54, %v2075_v23 }
 0x188   : > { %v1560_v31 = vadd.f32 %v2076_v27, %v1545_v58  ;;  %v1546_v37 = vmul.f32 %v2469_v56, %v2075_v23  ;;  %v2446_v35 = vpack.c.bf16 %v1573_v52, %v1572_v57 }
 0x189   : > { %v1563_v61 = vadd.f32 %v2076_v27, %v1548_v60  ;;  %v1570_v63 = vmax.f32 %v1562_v59, 0.0 }
 0x18a   : > { %v1561_v62 = vadd.f32 %v2076_v27, %v1546_v37  ;;  %2447 = vmatprep.subr.bf16.mxu1 %v2446_v35  ;;  %v1568_v1 = vmax.f32 %v1560_v31, 0.0 }
 0x18b   : > { %v1571_v0 = vmax.f32 %v1563_v61, 0.0  ;;  %2449 = vmatpush3.bf16.msra.mxu1 %v2446_v35 }
 0x18c   : > { %v1569_v2 = vmax.f32 %v1561_v62, 0.0 }
 0x18d   : > { %v1575_v3 = vmax.f32 %v1570_v63, %v1571_v0 }
 0x18e   : > { %v1574_v4 = vmax.f32 %v1568_v1, %v1569_v2 }
 0x190   : > { %v2450_v5 = vpack.c.bf16 %v1575_v3, %v1574_v4 }
 0x192   : > { %2451 = vmatprep.subr.bf16.mxu1 %v2450_v5 }
 0x193   : > { %2453 = vmatpush3.bf16.msra.mxu1 %v2450_v5 }
 0x194   : > { %2455 = vmatprep.subr.bf16.mxu1 %v2446_v35 }
 0x196   : > { %2433 = vmatmul.mubr.msk.f32.vlgmr.msra.gmra.mrb[8].mxu1 %vm1597_vm1, %v3005_v9 }
 0x197   : > { %2457 = vmatpush3.bf16.msra.mxu1 %v2446_v35  ;;  %2443 = vmatprep.mubr.msk.f32.mxu1 %vm1597_vm1, %v3007_v11 }
 0x198   : > { %2459 = vmatprep.subr.bf16.mxu1 %v2450_v5 }
 0x19b   : > { %2461 = vmatpush3.bf16.msra.mxu1 %v2450_v5 }
 0x19e   : > { %2444 = vmatmul.mubr.msk.f32.vlgmr.msra.gmra.mrb[10].mxu1 %vm1597_vm1, %v3009_v13 }
 0x269   : > { %v2434_v6 = vpop.f32.mrb[8].mxu1 }
 0x26a   : > { %v1670_v7 = vpop.f32.mrb[9].mxu1 }
 0x271   : > { %v2445_v8 = vpop.f32.mrb[10].mxu1 }
 0x272   : > { %v1761_v10 = vmax.f32 %v2434_v6, %v2445_v8  ;;  %v1751_v12 = vpop.f32.mrb[11].mxu1 }
 0x273   : > { %v1760_v9 = vmax.f32 %v1670_v7, %v1751_v12 }
 0x274   : > { %1763 = vst [vmem:[%s197_s6 + $0x8] sm:$0xff] %v1761_v10 }
 0x275   : > { %1762 = vst [vmem:[%s197_s6] sm:$0xff] %v1760_v9 }
 0x276 PF: > { %s14_s15 = sadd.s32 1, %s2614_s15  }
 0x277   : > { %p11_p4 = scmp.ge.s32.totalorder %s14_s15, 4  }
 0x279   :  { %13 = sbr.rel (!%p11_p4) target bundleno = 1 (0x1), region = 76 }

// kernel: _lambda_.5
= control target key start
LH: loop header
LB: loop body
LE: loop exit
PB: predicated region body
PF: predicated region fallthrough
CT: control target
= control target key end

     0   :  { %s5029_s15 = smov 0   ;;  %s5911_s0 = inlined_call_operand.vmem [shape: f32[2,18,18,128], index: 0, kind: input, shape index: {}]   ;;  %s5912_s1 = inlined_call_operand.vmem [shape: bf16[9,128,128], index: 1, kind: input, shape index: {}]   ;;  %s5913_s2 = inlined_call_operand.vmem [shape: f32[1,128], index: 2, kind: input, shape index: {}]   ;;  %s5914_s3 = inlined_call_operand.vmem [shape: f32[1,128], index: 3, kind: input, shape index: {}]   ;;  %s5915_s4 = inlined_call_operand.vmem [shape: f32[2,64,128], index: 4, kind: output, shape index: {}]  }
   0x1 LB: > { %s3372_s16 = sadd.s32 4294967295, %s5001_s15   ;;  %p3376_p0 = scmp.ge.s32.totalorder %s5001_s15, 1  ;;  %s5001_s15 = sphi %s5029_s15, %s14_s15  }
   0x2   : > { %p162_p1 = scmp.lt.s32.totalorder %s5001_s15, 3 }
   0x4   : > { %p163_p2 = pnand %p3376_p0, %p162_p1 }
   0x6   : > { %166 = sbr.rel (%p163_p2) target bundleno = 850 (0x352), region = 36 }
   0xd   : > { %v4923_v0 = vld [vmem:[%s5912_s1 + $0x40] sm:$0xff]   ;;  %p188_p3 = scmp.lt.s32.totalorder %s3372_s16, 1  ;;  %v4925_v2 = vld [vmem:[%s5912_s1 + $0x48] sm:$0xff]   ;;  %v4927_v4 = vld [vmem:[%s5912_s1 + $0x50] sm:$0xff]  }
   0xe   : > { %v4924_v1 = vld [vmem:[%s5912_s1 + $0x100] sm:$0xff]   ;;  %4073 = vmatprep.subr.bf16.mxu1 %v4923_v0  ;;  %v4926_v3 = vld [vmem:[%s5912_s1 + $0x108] sm:$0xff]   ;;  %v4928_v5 = vld [vmem:[%s5912_s1 + $0x110] sm:$0xff]  }
   0xf   : > { %4265 = vmatprep.subr.bf16.mxu0 %v4924_v1  ;;  %4074 = vmatpush3.bf16.msra.mxu1 %v4923_v0  ;;  %s5937_s16 = smov (!%p188_p3, %s3372_s16), 1  ;;  %v4929_v6 = vld [vmem:[%s5912_s1 + $0x58] sm:$0xff]   ;;  %v4931_v8 = vld [vmem:[%s5912_s1 + $0x60] sm:$0xff]   ;;  %v4933_v10 = vld [vmem:[%s5912_s1 + $0x68] sm:$0xff]  }
  0x10   : > { %4266 = vmatpush3.bf16.msra.mxu0 %v4924_v1  ;;  %4075 = vmatprep.subr.bf16.mxu1 %v4925_v2  ;;  %v4930_v7 = vld [vmem:[%s5912_s1 + $0x118] sm:$0xff]   ;;  %s4913_s7 = smul.u32 432, %s5937_s16  ;;  %v4932_v9 = vld [vmem:[%s5912_s1 + $0x120] sm:$0xff]   ;;  %v4934_v14 = vld [vmem:[%s5912_s1 + $0x128] sm:$0xff]   ;;  %s3808_s29 = sshll.u32 %s5937_s16, 6 }
  0x11   : > { %4267 = vmatprep.subr.bf16.mxu0 %v4926_v3  ;;  %v4935_v18 = vld [vmem:[%s5912_s1 + $0x70] sm:$0xff]   ;;  %v4937_v20 = vld [vmem:[%s5912_s1 + $0x78] sm:$0xff]   ;;  %v4939_v24 = vld [vmem:[%s5912_s1 + $0x140] sm:$0xff]   ;;  %s197_s6 = scalar_lea.vmem %s5915_s4, %s3808_s29 }
  0x12   : > { %s5073_s14 = scalar_lea.vmem %s5911_s0, %s4913_s7  ;;  %v4936_v19 = vld [vmem:[%s5912_s1 + $0x130] sm:$0xff]   ;;  %v4938_v21 = vld [vmem:[%s5912_s1 + $0x138] sm:$0xff]   ;;  %v4943_v26 = vld [vmem:[%s5912_s1] sm:$0xff]  }
  0x13   : > { %4076 = vmatpush3.bf16.msra.mxu1 %v4925_v2  ;;  %v263_v11 = vld [vmem:[%s5073_s14 + $0x1] sm:$0xff]  ;;  %v264_v12 = vld [vmem:[%s5073_s14 + $0x9] sm:$0xff]  ;;  %v3492_v13 = vld [vmem:[%s5073_s14 + $0x19] sm:$0xff] }
  0x14   : > { %4268 = vmatpush3.bf16.msra.mxu0 %v4926_v3  ;;  %4077 = vmatprep.subr.bf16.mxu1 %v4927_v4  ;;  %v295_v15 = vpack.c.bf16 %v264_v12, %v263_v11  ;;  %v3493_v16 = vld [vmem:[%s5073_s14 + $0x21] sm:$0xff]  ;;  %v3494_v22 = vld [vmem:[%s5073_s14 + $0x31] sm:$0xff]  ;;  %v3495_v23 = vld [vmem:[%s5073_s14 + $0x39] sm:$0xff] }
  0x15   : > { %4269 = vmatprep.subr.bf16.mxu0 %v4928_v5  ;;  %v1391_v17 = vpack.c.bf16 %v3493_v16, %v3492_v13  ;;  %v3496_v25 = vld [vmem:[%s5073_s14 + $0x49] sm:$0xff]  ;;  %v3497_v27 = vld [vmem:[%s5073_s14 + $0x51] sm:$0xff]  ;;  %v1392_v28 = vpack.c.bf16 %v3495_v23, %v3494_v22  ;;  %v3498_v32 = vld [vmem:[%s5073_s14 + $0x61] sm:$0xff] }
  0x16   : > { %4089 = vmatprep.mubr.bf16.mxu1 %v295_v15  ;;  %v1393_v29 = vpack.c.bf16 %v3497_v27, %v3496_v25  ;;  %v4940_v30 = vld [vmem:[%s5912_s1 + $0x148] sm:$0xff]   ;;  %v3500_v34 = vld [vmem:[%s5073_s14 + $0x79] sm:$0xff]  ;;  %v4941_v36 = vld [vmem:[%s5912_s1 + $0x150] sm:$0xff]  }
  0x17   : > { %4078 = vmatpush3.bf16.msra.mxu1 %v4927_v4  ;;  %4281 = vmatprep.mubr.bf16.mxu0 %v1391_v17  ;;  %v4945_v31 = vld [vmem:[%s5912_s1 + $0x8] sm:$0xff]   ;;  %v4946_v37 = vld [vmem:[%s5912_s1 + $0x10] sm:$0xff]   ;;  %v4942_v40 = vld [vmem:[%s5912_s1 + $0x158] sm:$0xff]  }
  0x18   : > { %4270 = vmatpush3.bf16.msra.mxu0 %v4928_v5  ;;  %4079 = vmatprep.subr.bf16.mxu1 %v4929_v6  ;;  %v3499_v33 = vld [vmem:[%s5073_s14 + $0x69] sm:$0xff]  ;;  %v3501_v35 = vld [vmem:[%s5073_s14 + $0x81] sm:$0xff]  ;;  %v4948_v41 = vld [vmem:[%s5912_s1 + $0x18] sm:$0xff]  }
  0x19   : > { %4271 = vmatprep.subr.bf16.mxu0 %v4930_v7  ;;  %v1394_v38 = vpack.c.bf16 %v3499_v33, %v3498_v32  ;;  %v1395_v39 = vpack.c.bf16 %v3501_v35, %v3500_v34  ;;  %v3502_v42 = vld [vmem:[%s5073_s14 + $0x91] sm:$0xff]  ;;  %v3503_v43 = vld [vmem:[%s5073_s14 + $0x99] sm:$0xff]  ;;  %v3504_v44 = vld [vmem:[%s5073_s14 + $0xa9] sm:$0xff] }
  0x1a   : > { %v3505_v45 = vld [vmem:[%s5073_s14 + $0xb1] sm:$0xff]  ;;  %v4944_v46 = vld [vmem:[%s5912_s1 + $0x160] sm:$0xff]   ;;  %v1396_v48 = vpack.c.bf16 %v3503_v43, %v3502_v42  ;;  %v4947_v50 = vld [vmem:[%s5912_s1 + $0x168] sm:$0xff]  }
  0x1b   : > { %4080 = vmatpush3.bf16.msra.mxu1 %v4929_v6  ;;  %v4949_v47 = vld [vmem:[%s5912_s1 + $0x20] sm:$0xff]   ;;  %v1397_v49 = vpack.c.bf16 %v3505_v45, %v3504_v44  ;;  %v4951_v51 = vld [vmem:[%s5912_s1 + $0x28] sm:$0xff]   ;;  %v4950_v56 = vld [vmem:[%s5912_s1 + $0x170] sm:$0xff]  }
  0x1c   : > { %4272 = vmatpush3.bf16.msra.mxu0 %v4930_v7  ;;  %4081 = vmatprep.subr.bf16.mxu1 %v4931_v8  ;;  %v3506_v52 = vld [vmem:[%s5073_s14 + $0xc1] sm:$0xff]  ;;  %v3507_v53 = vld [vmem:[%s5073_s14 + $0xc9] sm:$0xff]  ;;  %v3508_v54 = vld [vmem:[%s5073_s14 + $0xd9] sm:$0xff] }
  0x1d   : > { %4273 = vmatprep.subr.bf16.mxu0 %v4932_v9  ;;  %v3509_v55 = vld [vmem:[%s5073_s14 + $0xe1] sm:$0xff]  ;;  %v4952_v57 = vld [vmem:[%s5912_s1 + $0x30] sm:$0xff]   ;;  %v1398_v58 = vpack.c.bf16 %v3507_v53, %v3506_v52  ;;  %v4953_v60 = vld [vmem:[%s5912_s1 + $0x178] sm:$0xff]  }
  0x1e   : > { %v1399_v59 = vpack.c.bf16 %v3509_v55, %v3508_v54  ;;  %v4954_v61 = vld [vmem:[%s5912_s1 + $0x38] sm:$0xff]   ;;  %v3512_v0 = vld [vmem:[%s5073_s14 + $0x109] sm:$0xff]  ;;  %v5168_v2 = vld [vmem:[%s5912_s1 + $0x180] sm:$0xff]  }
  0x1f   : > { %4082 = vmatpush3.bf16.msra.mxu1 %v4931_v8  ;;  %v3510_v62 = vld [vmem:[%s5073_s14 + $0xf1] sm:$0xff]  ;;  %v3511_v63 = vld [vmem:[%s5073_s14 + $0xf9] sm:$0xff]  ;;  %v3514_v6 = vld [vmem:[%s5073_s14 + $0x121] sm:$0xff] }
  0x20   : > { %4274 = vmatpush3.bf16.msra.mxu0 %v4932_v9  ;;  %4083 = vmatprep.subr.bf16.mxu1 %v4933_v10  ;;  %v3513_v1 = vld [vmem:[%s5073_s14 + $0x111] sm:$0xff]  ;;  %v5173_v3 = vld [vmem:[%s5912_s1 + $0x80] sm:$0xff]   ;;  %v1400_v4 = vpack.c.bf16 %v3511_v63, %v3510_v62  ;;  %v3515_v7 = vld [vmem:[%s5073_s14 + $0x129] sm:$0xff] }
  0x21   : > { %4275 = vmatprep.subr.bf16.mxu0 %v4934_v14  ;;  %v1401_v5 = vpack.c.bf16 %v3513_v1, %v3512_v0  ;;  %v3516_v8 = vld [vmem:[%s5073_s14 + $0x139] sm:$0xff]  ;;  %v3517_v9 = vld [vmem:[%s5073_s14 + $0x141] sm:$0xff]  ;;  %v3518_v12 = vld [vmem:[%s5073_s14 + $0x151] sm:$0xff] }
  0x22   : > { %v1403_v11 = vpack.c.bf16 %v3517_v9, %v3516_v8  ;;  %v3519_v13 = vld [vmem:[%s5073_s14 + $0x159] sm:$0xff]  ;;  %v3521_v15 = vld [vmem:[%s5073_s14 + $0x171] sm:$0xff]  ;;  %v3549_v23 = vld [vmem:[%s5073_s14 + $0x22] sm:$0xff] }
  0x23   : > { %4084 = vmatpush3.bf16.msra.mxu1 %v4933_v10  ;;  %v1402_v10 = vpack.c.bf16 %v3515_v7, %v3514_v6  ;;  %v1404_v16 = vpack.c.bf16 %v3519_v13, %v3518_v12  ;;  %v3548_v22 = vld [vmem:[%s5073_s14 + $0x1a] sm:$0xff]  ;;  %v3552_v33 = vld [vmem:[%s5073_s14 + $0x4a] sm:$0xff]  ;;  %v3553_v34 = vld [vmem:[%s5073_s14 + $0x52] sm:$0xff] }
  0x24   : > { %4276 = vmatpush3.bf16.msra.mxu0 %v4934_v14  ;;  %4085 = vmatprep.subr.bf16.mxu1 %v4935_v18  ;;  %v3520_v14 = vld [vmem:[%s5073_s14 + $0x169] sm:$0xff]  ;;  %v201_v27 = vld [vmem:[%s5073_s14 + $0x18] sm:$0xff]  ;;  %v207_v45 = vld [vmem:[%s5073_s14 + $0x60] sm:$0xff] }
  0x25   : > { %4277 = vmatprep.subr.bf16.mxu0 %v4936_v19  ;;  %v204_v32 = vld [vmem:[%s5073_s14 + $0x38] sm:$0xff]  ;;  %v3554_v42 = vld [vmem:[%s5073_s14 + $0x62] sm:$0xff]  ;;  %v3555_v43 = vld [vmem:[%s5073_s14 + $0x6a] sm:$0xff] }
  0x26   : > { %v4961_v44 = vld [vmem:[%s5912_s1 + $0x88] sm:$0xff]   ;;  %v5238_v52 = vpack.c.bf16 %v3555_v43, %v3554_v42  ;;  %v4958_v55 = vld [vmem:[%s5912_s1 + $0x198] sm:$0xff]   ;;  %v4960_v1 = vld [vmem:[%s5912_s1 + $0x1a0] sm:$0xff]  }
  0x27   : > { %4086 = vmatpush3.bf16.msra.mxu1 %v4935_v18  ;;  %v3522_v18 = vld [vmem:[%s5073_s14 + $0x181] sm:$0xff]  ;;  %v212_v62 = vld [vmem:[%s5073_s14 + $0x98] sm:$0xff]  ;;  %v3560_v63 = vld [vmem:[%s5073_s14 + $0xaa] sm:$0xff] }
  0x28   : > { %4278 = vmatpush3.bf16.msra.mxu0 %v4936_v19  ;;  %4087 = vmatprep.subr.bf16.mxu1 %v4937_v20  ;;  %v3523_v19 = vld [vmem:[%s5073_s14 + $0x189] sm:$0xff]  ;;  %v3561_v0 = vld [vmem:[%s5073_s14 + $0xb2] sm:$0xff]  ;;  %v215_v13 = vld [vmem:[%s5073_s14 + $0xc0] sm:$0xff] }
  0x29   : > { %4279 = vmatprep.subr.bf16.mxu0 %v4938_v21  ;;  %v5274_v6 = vpack.c.bf16 %v3561_v0, %v3560_v63  ;;  %v4963_v7 = vld [vmem:[%s5912_s1 + $0x1a8] sm:$0xff]   ;;  %v3575_v63 = vld [vmem:[%s5073_s14 + $0x15a] sm:$0xff]  ;;  %v227_v0 = vld [vmem:[%s5073_s14 + $0x150] sm:$0xff] }
  0x2a   : > { %v4967_v8 = vld [vmem:[%s5912_s1 + $0xa8] sm:$0xff]  }
  0x2b   : > { %4088 = vmatpush3.bf16.msra.mxu1 %v4937_v20  ;;  %v199_v20 = vld [vmem:[%s5073_s14] sm:$0xff]  ;;  %v213_v9 = vld [vmem:[%s5073_s14 + $0xa8] sm:$0xff] }
  0x2c   : > { %4280 = vmatpush3.bf16.msra.mxu0 %v4938_v21  ;;  %4121 = vmatprep.subr.bf16.mxu1 %v4943_v26  ;;  %v200_v21 = vld [vmem:[%s5073_s14 + $0x8] sm:$0xff] }
  0x2d   : > { %4313 = vmatprep.subr.bf16.mxu0 %v4939_v24  ;;  %v231_v25 = vpack.c.bf16 %v200_v21, %v199_v20  ;;  %v3563_v12 = vld [vmem:[%s5073_s14 + $0xca] sm:$0xff] }
  0x2e   : > { %4090 = vmatmul.mubr.bf16.vlgmr.msra.gmra.mrb[0].mxu1 %v1391_v17  ;;  %v1405_v17 = vpack.c.bf16 %v3521_v15, %v3520_v14  ;;  %v216_v14 = vld [vmem:[%s5073_s14 + $0xc8] sm:$0xff]  ;;  %v3564_v15 = vld [vmem:[%s5073_s14 + $0xda] sm:$0xff] }
  0x2f   : > { %4282 = vmatmul.mubr.bf16.vlgmr.msra.gmra.mrb[0].mxu0 %v1392_v28  ;;  %4093 = vmatprep.mubr.bf16.mxu1 %v1392_v28  ;;  %v202_v28 = vld [vmem:[%s5073_s14 + $0x20] sm:$0xff]  ;;  %v5304_v21 = vpack.c.bf16 %v216_v14, %v215_v13  ;;  %v230_v13 = vld [vmem:[%s5073_s14 + $0x170] sm:$0xff] }
  0x30   : > { %4314 = vmatpush3.bf16.msra.mxu0 %v4939_v24  ;;  %4285 = vmatprep.mubr.bf16.mxu0 %v1393_v29  ;;  %v1406_v24 = vpack.c.bf16 %v3523_v19, %v3522_v18  ;;  %v5202_v35 = vpack.c.bf16 %v202_v28, %v201_v27  ;;  %v4968_v19 = vld [vmem:[%s5912_s1 + $0xb0] sm:$0xff]   ;;  %v218_v27 = vld [vmem:[%s5073_s14 + $0xe0] sm:$0xff] }
  0x31   : > { %4315 = vmatprep.subr.bf16.mxu0 %v4940_v30  ;;  %4122 = vmatpush3.bf16.msra.mxu1 %v4943_v26  ;;  %v5191_v26 = vpack.c.bf16 %v3549_v23, %v3548_v22  ;;  %v4969_v23 = vld [vmem:[%s5912_s1 + $0x1b8] sm:$0xff]   ;;  %v3578_v14 = vld [vmem:[%s5073_s14 + $0x182] sm:$0xff] }
  0x32   : > { %4123 = vmatprep.subr.bf16.mxu1 %v4945_v31  ;;  %v3566_v28 = vld [vmem:[%s5073_s14 + $0xf2] sm:$0xff] }
  0x34   : > { %4316 = vmatpush3.bf16.msra.mxu0 %v4940_v30  ;;  %v3551_v30 = vld [vmem:[%s5073_s14 + $0x3a] sm:$0xff] }
  0x35   : > { %4317 = vmatprep.subr.bf16.mxu0 %v4941_v36  ;;  %4124 = vmatpush3.bf16.msra.mxu1 %v4945_v31  ;;  %v203_v31 = vld [vmem:[%s5073_s14 + $0x30] sm:$0xff] }
  0x36   : > { %4094 = vmatmul.mubr.bf16.gmra.mrb[4].mxu1 %v1393_v29  ;;  %4125 = vmatprep.subr.bf16.mxu1 %v4946_v37  ;;  %v3550_v29 = vld [vmem:[%s5073_s14 + $0x32] sm:$0xff] }
  0x37   : > { %4286 = vmatmul.mubr.bf16.gmra.mrb[4].mxu0 %v1394_v38  ;;  %4097 = vmatprep.mubr.bf16.mxu1 %v1394_v38  ;;  %v5208_v38 = vpack.c.bf16 %v3553_v34, %v3552_v33  ;;  %v3569_v33 = vld [vmem:[%s5073_s14 + $0x112] sm:$0xff]  ;;  %v5329_v34 = vld [vmem:[%s5912_s1 + $0x1c0] sm:$0xff]  }
  0x38   : > { %4289 = vmatprep.mubr.bf16.mxu0 %v1395_v39  ;;  %4318 = vmatpush3.bf16.msra.mxu0 %v4941_v36  ;;  %v5204_v36 = vpack.c.bf16 %v3551_v30, %v3550_v29  ;;  %v3567_v29 = vld [vmem:[%s5073_s14 + $0xfa] sm:$0xff]  ;;  %v219_v30 = vld [vmem:[%s5073_s14 + $0xf0] sm:$0xff] }
  0x39   : > { %4319 = vmatprep.subr.bf16.mxu0 %v4942_v40  ;;  %4126 = vmatpush3.bf16.msra.mxu1 %v4946_v37  ;;  %v5206_v37 = vpack.c.bf16 %v204_v32, %v203_v31  ;;  %v220_v31 = vld [vmem:[%s5073_s14 + $0xf8] sm:$0xff]  ;;  %v3568_v32 = vld [vmem:[%s5073_s14 + $0x10a] sm:$0xff] }
  0x3a   : > { %4127 = vmatprep.subr.bf16.mxu1 %v4948_v41  ;;  %v5340_v42 = vpack.c.bf16 %v220_v31, %v219_v30  ;;  %v5342_v43 = vpack.c.bf16 %v3569_v33, %v3568_v32  ;;  %v4976_v30 = vld [vmem:[%s5912_s1 + $0x1e0] sm:$0xff]   ;;  %v4983_v31 = vld [vmem:[%s5912_s1 + $0xe8] sm:$0xff]   ;;  %v4982_v32 = vld [vmem:[%s5912_s1 + $0x1f0] sm:$0xff]  }
  0x3b   : > { %v4986_v33 = vld [vmem:[%s5912_s1 + $0xf8] sm:$0xff]  }
  0x3c   : > { %4320 = vmatpush3.bf16.msra.mxu0 %v4942_v40  ;;  %v206_v40 = vld [vmem:[%s5073_s14 + $0x50] sm:$0xff] }
  0x3d   : > { %4321 = vmatprep.subr.bf16.mxu0 %v4944_v46  ;;  %4128 = vmatpush3.bf16.msra.mxu1 %v4948_v41  ;;  %v4956_v41 = vld [vmem:[%s5912_s1 + $0x188] sm:$0xff]  }
  0x3e   : > { %4098 = vmatmul.mubr.bf16.gmra.mrb[8].mxu1 %v1395_v39  ;;  %4129 = vmatprep.subr.bf16.mxu1 %v4949_v47  ;;  %v205_v39 = vld [vmem:[%s5073_s14 + $0x48] sm:$0xff] }
  0x3f   : > { %4290 = vmatmul.mubr.bf16.gmra.mrb[8].mxu0 %v1396_v48  ;;  %4101 = vmatprep.mubr.bf16.mxu1 %v1396_v48  ;;  %v3557_v48 = vld [vmem:[%s5073_s14 + $0x82] sm:$0xff] }
  0x40   : > { %4293 = vmatprep.mubr.bf16.mxu0 %v1397_v49  ;;  %4322 = vmatpush3.bf16.msra.mxu0 %v4944_v46  ;;  %v208_v46 = vld [vmem:[%s5073_s14 + $0x68] sm:$0xff] }
  0x41   : > { %4323 = vmatprep.subr.bf16.mxu0 %v4947_v50  ;;  %4130 = vmatpush3.bf16.msra.mxu1 %v4949_v47  ;;  %v3556_v47 = vld [vmem:[%s5073_s14 + $0x7a] sm:$0xff]  ;;  %v5240_v53 = vpack.c.bf16 %v208_v46, %v207_v45  ;;  %v222_v45 = vld [vmem:[%s5073_s14 + $0x110] sm:$0xff]  ;;  %v3570_v46 = vld [vmem:[%s5073_s14 + $0x122] sm:$0xff] }
  0x42   : > { %4131 = vmatprep.subr.bf16.mxu1 %v4951_v51  ;;  %v5242_v54 = vpack.c.bf16 %v3557_v48, %v3556_v47  ;;  %v3571_v47 = vld [vmem:[%s5073_s14 + $0x12a] sm:$0xff]  ;;  %v223_v48 = vld [vmem:[%s5073_s14 + $0x120] sm:$0xff] }
  0x44   : > { %4324 = vmatpush3.bf16.msra.mxu0 %v4947_v50  ;;  %v4962_v50 = vld [vmem:[%s5912_s1 + $0x90] sm:$0xff]  }
  0x45   : > { %4325 = vmatprep.subr.bf16.mxu0 %v4950_v56  ;;  %4132 = vmatpush3.bf16.msra.mxu1 %v4951_v51  ;;  %v5236_v51 = vpack.c.bf16 %v206_v40, %v205_v39  ;;  %v5336_v40 = vld [vmem:[%s5912_s1 + $0xc0] sm:$0xff]  }
  0x46   : > { %4102 = vmatmul.mubr.bf16.gmra.mrb[12].mxu1 %v1397_v49  ;;  %4133 = vmatprep.subr.bf16.mxu1 %v4952_v57  ;;  %v4957_v49 = vld [vmem:[%s5912_s1 + $0x190] sm:$0xff]  }
  0x47   : > { %4294 = vmatmul.mubr.bf16.gmra.mrb[12].mxu0 %v1398_v58  ;;  %4105 = vmatprep.mubr.bf16.mxu1 %v1398_v58  ;;  %v210_v58 = vld [vmem:[%s5073_s14 + $0x80] sm:$0xff] }
  0x48   : > { %4297 = vmatprep.mubr.bf16.mxu0 %v1399_v59  ;;  %4326 = vmatpush3.bf16.msra.mxu0 %v4950_v56  ;;  %v4964_v56 = vld [vmem:[%s5912_s1 + $0x98] sm:$0xff]  }
  0x49   : > { %4134 = vmatpush3.bf16.msra.mxu1 %v4952_v57  ;;  %4327 = vmatprep.subr.bf16.mxu0 %v4953_v60  ;;  %v209_v57 = vld [vmem:[%s5073_s14 + $0x78] sm:$0xff] }
  0x4a   : > { %4135 = vmatprep.subr.bf16.mxu1 %v4954_v61 }
  0x4c   : > { %4328 = vmatpush3.bf16.msra.mxu0 %v4953_v60  ;;  %v3559_v60 = vld [vmem:[%s5073_s14 + $0x9a] sm:$0xff] }
  0x4d   : > { %4136 = vmatpush3.bf16.msra.mxu1 %v4954_v61  ;;  %4361 = vmatprep.subr.bf16.mxu0 %v5168_v2  ;;  %v211_v61 = vld [vmem:[%s5073_s14 + $0x90] sm:$0xff] }
  0x4e   : > { %4106 = vmatmul.mubr.bf16.gmra.mrb[16].mxu1 %v1399_v59  ;;  %4169 = vmatprep.subr.bf16.mxu1 %v5173_v3  ;;  %v3558_v59 = vld [vmem:[%s5073_s14 + $0x92] sm:$0xff] }
  0x4f   : > { %4298 = vmatmul.mubr.bf16.gmra.mrb[16].mxu0 %v1400_v4  ;;  %4109 = vmatprep.mubr.bf16.mxu1 %v1400_v4  ;;  %v5270_v4 = vpack.c.bf16 %v3559_v60, %v3558_v59  ;;  %v225_v60 = vld [vmem:[%s5073_s14 + $0x138] sm:$0xff] }
  0x50   : > { %4301 = vmatprep.mubr.bf16.mxu0 %v1401_v5 }
  0x56   : > { %4110 = vmatmul.mubr.bf16.gmra.mrb[20].mxu1 %v1401_v5  ;;  %v5272_v5 = vpack.c.bf16 %v212_v62, %v211_v61  ;;  %v226_v61 = vld [vmem:[%s5073_s14 + $0x140] sm:$0xff]  ;;  %v3574_v62 = vld [vmem:[%s5073_s14 + $0x152] sm:$0xff] }
  0x57   : > { %4302 = vmatmul.mubr.bf16.gmra.mrb[20].mxu0 %v1402_v10  ;;  %4113 = vmatprep.mubr.bf16.mxu1 %v1402_v10  ;;  %v214_v10 = vld [vmem:[%s5073_s14 + $0xb0] sm:$0xff] }
  0x58   : > { %4305 = vmatprep.mubr.bf16.mxu0 %v1403_v11  ;;  %v5297_v18 = vpack.c.bf16 %v214_v10, %v213_v9  ;;  %v5380_v9 = vpack.c.bf16 %v3575_v63, %v3574_v62  ;;  %v4988_v62 = vld [vmem:[%s5912_s1 + $0x208] sm:$0xff]  }
  0x59   : > { %v3667_v63 = vld [vmem:[%s5073_s14 + $0x81] sm:$0xff] }
  0x5e   : > { %4114 = vmatmul.mubr.bf16.gmra.mrb[24].mxu1 %v1403_v11  ;;  %v3562_v11 = vld [vmem:[%s5073_s14 + $0xc2] sm:$0xff] }
  0x5f   : > { %4306 = vmatmul.mubr.bf16.gmra.mrb[24].mxu0 %v1404_v16  ;;  %4117 = vmatprep.mubr.bf16.mxu1 %v1404_v16  ;;  %v3565_v16 = vld [vmem:[%s5073_s14 + $0xe2] sm:$0xff]  ;;  %v5302_v20 = vpack.c.bf16 %v3563_v12, %v3562_v11 }
  0x60   : > { %4309 = vmatprep.mubr.bf16.mxu0 %v1405_v17  ;;  %v5306_v22 = vpack.c.bf16 %v3565_v16, %v3564_v15  ;;  %v229_v12 = vld [vmem:[%s5073_s14 + $0x168] sm:$0xff] }
  0x61   : > { %v3579_v15 = vld [vmem:[%s5073_s14 + $0x18a] sm:$0xff]  ;;  %v746_v16 = vld [vmem:[%s5073_s14 + $0x2] sm:$0xff] }
  0x66   : > { %4118 = vmatmul.mubr.bf16.gmra.mrb[28].mxu1 %v1405_v17  ;;  %v4966_v17 = vld [vmem:[%s5912_s1 + $0x1b0] sm:$0xff]  }
  0x67   : > { %4310 = vmatmul.mubr.bf16.gmra.mrb[28].mxu0 %v1406_v24  ;;  %4137 = vmatprep.mubr.bf16.mxu1 %v231_v25  ;;  %v4970_v24 = vld [vmem:[%s5912_s1 + $0xb8] sm:$0xff]  }
  0x68   : > { %4329 = vmatprep.mubr.bf16.mxu0 %v5191_v26  ;;  %v217_v25 = vld [vmem:[%s5073_s14 + $0xd8] sm:$0xff] }
  0x69   : > { %v5331_v39 = vpack.c.bf16 %v218_v27, %v217_v25  ;;  %v4972_v25 = vld [vmem:[%s5912_s1 + $0x1c8] sm:$0xff]  }
  0x6a   : > { %v4977_v27 = vld [vmem:[%s5912_s1 + $0xc8] sm:$0xff]  }
  0x6e   : > { %4138 = vmatmul.mubr.bf16.vlgmr.msra.gmra.mrb[0].mxu1 %v5202_v35 }
  0x6f   : > { %4330 = vmatmul.mubr.bf16.vlgmr.msra.gmra.mrb[0].mxu0 %v5204_v36  ;;  %4141 = vmatprep.mubr.bf16.mxu1 %v5206_v37 }
  0x70   : > { %4362 = vmatpush3.bf16.msra.mxu0 %v5168_v2  ;;  %4333 = vmatprep.mubr.bf16.mxu0 %v5208_v38  ;;  %v5265_v2 = vpack.c.bf16 %v210_v58, %v209_v57  ;;  %v5360_v57 = vpack.c.bf16 %v3571_v47, %v3570_v46 }
  0x71   : > { %4363 = vmatprep.subr.bf16.mxu0 %v4956_v41  ;;  %4170 = vmatpush3.bf16.msra.mxu1 %v5173_v3  ;;  %v4965_v3 = vld [vmem:[%s5912_s1 + $0xa0] sm:$0xff]  }
  0x72   : > { %4171 = vmatprep.subr.bf16.mxu1 %v4961_v44 }
  0x74   : > { %4364 = vmatpush3.bf16.msra.mxu0 %v4956_v41  ;;  %v5338_v41 = vpack.c.bf16 %v3567_v29, %v3566_v28  ;;  %v4973_v28 = vld [vmem:[%s5912_s1 + $0x1d0] sm:$0xff]   ;;  %v4980_v29 = vld [vmem:[%s5912_s1 + $0xd8] sm:$0xff]  }
  0x75   : > { %4365 = vmatprep.subr.bf16.mxu0 %v4957_v49  ;;  %4172 = vmatpush3.bf16.msra.mxu1 %v4961_v44  ;;  %v221_v44 = vld [vmem:[%s5073_s14 + $0x108] sm:$0xff] }
  0x76   : > { %4142 = vmatmul.mubr.bf16.gmra.mrb[4].mxu1 %v5236_v51  ;;  %4173 = vmatprep.subr.bf16.mxu1 %v4962_v50 }
  0x77   : > { %4334 = vmatmul.mubr.bf16.gmra.mrb[4].mxu0 %v5238_v52  ;;  %4145 = vmatprep.mubr.bf16.mxu1 %v5240_v53 }
  0x78   : > { %4337 = vmatprep.mubr.bf16.mxu0 %v5242_v54  ;;  %4366 = vmatpush3.bf16.msra.mxu0 %v4957_v49  ;;  %v224_v49 = vld [vmem:[%s5073_s14 + $0x128] sm:$0xff] }
  0x79   : > { %4367 = vmatprep.subr.bf16.mxu0 %v4958_v55  ;;  %4174 = vmatpush3.bf16.msra.mxu1 %v4962_v50  ;;  %v3572_v50 = vld [vmem:[%s5073_s14 + $0x13a] sm:$0xff]  ;;  %v5362_v58 = vpack.c.bf16 %v224_v49, %v223_v48  ;;  %v3662_v48 = vld [vmem:[%s5073_s14 + $0x49] sm:$0xff]  ;;  %v3663_v49 = vld [vmem:[%s5073_s14 + $0x51] sm:$0xff] }
  0x7a   : > { %4175 = vmatprep.subr.bf16.mxu1 %v4964_v56 }
  0x7c   : > { %4368 = vmatpush3.bf16.msra.mxu0 %v4958_v55  ;;  %v3573_v55 = vld [vmem:[%s5073_s14 + $0x142] sm:$0xff] }
  0x7d   : > { %4369 = vmatprep.subr.bf16.mxu0 %v4960_v1  ;;  %4176 = vmatpush3.bf16.msra.mxu1 %v4964_v56  ;;  %v5358_v56 = vpack.c.bf16 %v222_v45, %v221_v44  ;;  %v5364_v59 = vpack.c.bf16 %v3573_v55, %v3572_v50  ;;  %v3660_v44 = vld [vmem:[%s5073_s14 + $0x31] sm:$0xff]  ;;  %v3661_v45 = vld [vmem:[%s5073_s14 + $0x39] sm:$0xff]  ;;  %v3664_v50 = vld [vmem:[%s5073_s14 + $0x61] sm:$0xff] }
  0x7e   : > { %4146 = vmatmul.mubr.bf16.gmra.mrb[8].mxu1 %v5265_v2  ;;  %4177 = vmatprep.subr.bf16.mxu1 %v4965_v3  ;;  %v2310_v47 = vpack.c.bf16 %v3661_v45, %v3660_v44  ;;  %v3665_v55 = vld [vmem:[%s5073_s14 + $0x69] sm:$0xff]  ;;  %v3691_v44 = vld [vmem:[%s5073_s14 + $0x1a1] sm:$0xff] }
  0x7f   : > { %4338 = vmatmul.mubr.bf16.gmra.mrb[8].mxu0 %v5270_v4  ;;  %4149 = vmatprep.mubr.bf16.mxu1 %v5272_v5  ;;  %v3717_v45 = vld [vmem:[%s5073_s14 + $0x3a] sm:$0xff] }
  0x80   : > { %4341 = vmatprep.mubr.bf16.mxu0 %v5274_v6  ;;  %4370 = vmatpush3.bf16.msra.mxu0 %v4960_v1  ;;  %v228_v1 = vld [vmem:[%s5073_s14 + $0x158] sm:$0xff] }
  0x81   : > { %4371 = vmatprep.subr.bf16.mxu0 %v4963_v7  ;;  %4178 = vmatpush3.bf16.msra.mxu1 %v4965_v3  ;;  %v3576_v3 = vld [vmem:[%s5073_s14 + $0x16a] sm:$0xff]  ;;  %v5382_v10 = vpack.c.bf16 %v228_v1, %v227_v0  ;;  %v3669_v1 = vld [vmem:[%s5073_s14 + $0x99] sm:$0xff] }
  0x82   : > { %4179 = vmatprep.subr.bf16.mxu1 %v4967_v8  ;;  %v3668_v0 = vld [vmem:[%s5073_s14 + $0x91] sm:$0xff] }
  0x84   : > { %4372 = vmatpush3.bf16.msra.mxu0 %v4963_v7  ;;  %v3577_v7 = vld [vmem:[%s5073_s14 + $0x172] sm:$0xff] }
  0x85   : > { %4373 = vmatprep.subr.bf16.mxu0 %v4966_v17  ;;  %4180 = vmatpush3.bf16.msra.mxu1 %v4967_v8  ;;  %v5378_v8 = vpack.c.bf16 %v226_v61, %v225_v60  ;;  %v5384_v11 = vpack.c.bf16 %v3577_v7, %v3576_v3  ;;  %v2311_v60 = vpack.c.bf16 %v3663_v49, %v3662_v48  ;;  %v4989_v3 = vld [vmem:[%s5912_s1 + $0x210] sm:$0xff]  }
  0x86   : > { %4150 = vmatmul.mubr.bf16.gmra.mrb[12].mxu1 %v5297_v18  ;;  %4181 = vmatprep.subr.bf16.mxu1 %v4968_v19  ;;  %v2312_v61 = vpack.c.bf16 %v3665_v55, %v3664_v50  ;;  %v3719_v48 = vld [vmem:[%s5073_s14 + $0x52] sm:$0xff]  ;;  %v3721_v49 = vld [vmem:[%s5073_s14 + $0x6a] sm:$0xff] }
  0x87   : > { %4342 = vmatmul.mubr.bf16.gmra.mrb[12].mxu0 %v5302_v20  ;;  %4153 = vmatprep.mubr.bf16.mxu1 %v5304_v21 }
  0x88   : > { %4345 = vmatprep.mubr.bf16.mxu0 %v5306_v22  ;;  %4374 = vmatpush3.bf16.msra.mxu0 %v4966_v17  ;;  %v747_v17 = vld [vmem:[%s5073_s14 + $0xa] sm:$0xff] }
  0x89   : > { %4182 = vmatpush3.bf16.msra.mxu1 %v4968_v19  ;;  %4375 = vmatprep.subr.bf16.mxu0 %v4969_v23  ;;  %v5396_v19 = vpack.c.bf16 %v230_v13, %v229_v12  ;;  %v3670_v12 = vld [vmem:[%s5073_s14 + $0xa9] sm:$0xff]  ;;  %v3671_v13 = vld [vmem:[%s5073_s14 + $0xb1] sm:$0xff] }
  0x8a   : > { %4183 = vmatprep.subr.bf16.mxu1 %v4970_v24 }
  0x8c   : > { %4376 = vmatpush3.bf16.msra.mxu0 %v4969_v23  ;;  %v5398_v23 = vpack.c.bf16 %v3579_v15, %v3578_v14  ;;  %v3672_v14 = vld [vmem:[%s5073_s14 + $0xc1] sm:$0xff]  ;;  %v3673_v15 = vld [vmem:[%s5073_s14 + $0xc9] sm:$0xff] }
  0x8d   : > { %4184 = vmatpush3.bf16.msra.mxu1 %v4970_v24  ;;  %4409 = vmatprep.subr.bf16.mxu0 %v5329_v34  ;;  %v778_v24 = vpack.c.bf16 %v747_v17, %v746_v16  ;;  %v4991_v16 = vld [vmem:[%s5912_s1 + $0x220] sm:$0xff]   ;;  %v2315_v17 = vpack.c.bf16 %v3671_v13, %v3670_v12 }
  0x8e   : > { %4154 = vmatmul.mubr.bf16.gmra.mrb[16].mxu1 %v5331_v39  ;;  %4217 = vmatprep.subr.bf16.mxu1 %v5336_v40  ;;  %v3730_v12 = vld [vmem:[%s5073_s14 + $0xda] sm:$0xff]  ;;  %v3731_v13 = vld [vmem:[%s5073_s14 + $0xe2] sm:$0xff] }
  0x8f   : > { %4346 = vmatmul.mubr.bf16.gmra.mrb[16].mxu0 %v5338_v41  ;;  %4157 = vmatprep.mubr.bf16.mxu1 %v5340_v42 }
  0x90   : > { %4349 = vmatprep.mubr.bf16.mxu0 %v5342_v43 }
  0x96   : > { %4158 = vmatmul.mubr.bf16.gmra.mrb[20].mxu1 %v5358_v56 }
  0x97   : > { %4350 = vmatmul.mubr.bf16.gmra.mrb[20].mxu0 %v5360_v57  ;;  %4161 = vmatprep.mubr.bf16.mxu1 %v5362_v58 }
  0x98   : > { %4353 = vmatprep.mubr.bf16.mxu0 %v5364_v59 }
  0x9e   : > { %4162 = vmatmul.mubr.bf16.gmra.mrb[24].mxu1 %v5378_v8 }
  0x9f   : > { %4354 = vmatmul.mubr.bf16.gmra.mrb[24].mxu0 %v5380_v9  ;;  %4165 = vmatprep.mubr.bf16.mxu1 %v5382_v10 }
  0xa0   : > { %4357 = vmatprep.mubr.bf16.mxu0 %v5384_v11 }
  0xa6   : > { %4166 = vmatmul.mubr.bf16.gmra.mrb[28].mxu1 %v5396_v19 }
  0xa7   : > { %4358 = vmatmul.mubr.bf16.gmra.mrb[28].mxu0 %v5398_v23  ;;  %4185 = vmatprep.mubr.bf16.mxu1 %v778_v24  ;;  %v3674_v24 = vld [vmem:[%s5073_s14 + $0xd9] sm:$0xff] }
  0xa8   : > { %4377 = vmatprep.mubr.bf16.mxu0 %v5206_v37 }
  0xae   : > { %4186 = vmatmul.mubr.bf16.vlgmr.msra.gmra.mrb[0].mxu1 %v5191_v26  ;;  %v4978_v26 = vld [vmem:[%s5912_s1 + $0xd0] sm:$0xff]  }
  0xaf   : > { %4378 = vmatmul.mubr.bf16.vlgmr.msra.gmra.mrb[0].mxu0 %v5236_v51  ;;  %4189 = vmatprep.mubr.bf16.mxu1 %v5204_v36  ;;  %v4974_v36 = vld [vmem:[%s5912_s1 + $0x1d8] sm:$0xff]  }
  0xb0   : > { %4410 = vmatpush3.bf16.msra.mxu0 %v5329_v34  ;;  %4381 = vmatprep.mubr.bf16.mxu0 %v5240_v53  ;;  %v3633_v34 = vld [vmem:[%s5073_s14 + $0x188] sm:$0xff] }
  0xb1   : > { %4411 = vmatprep.subr.bf16.mxu0 %v4972_v25  ;;  %4218 = vmatpush3.bf16.msra.mxu1 %v5336_v40  ;;  %v3634_v40 = vld [vmem:[%s5073_s14 + $0x198] sm:$0xff] }
  0xb2   : > { %4219 = vmatprep.subr.bf16.mxu1 %v4977_v27 }
  0xb4   : > { %4412 = vmatpush3.bf16.msra.mxu0 %v4972_v25  ;;  %v3675_v25 = vld [vmem:[%s5073_s14 + $0xe1] sm:$0xff] }
  0xb5   : > { %4413 = vmatprep.subr.bf16.mxu0 %v4973_v28  ;;  %4220 = vmatpush3.bf16.msra.mxu1 %v4977_v27  ;;  %v3676_v27 = vld [vmem:[%s5073_s14 + $0xf1] sm:$0xff] }
  0xb6   : > { %4190 = vmatmul.mubr.bf16.gmra.mrb[4].mxu1 %v5208_v38  ;;  %4221 = vmatprep.subr.bf16.mxu1 %v4978_v26  ;;  %v4981_v38 = vld [vmem:[%s5912_s1 + $0xe0] sm:$0xff]  }
  0xb7   : > { %4382 = vmatmul.mubr.bf16.gmra.mrb[4].mxu0 %v5265_v2  ;;  %4193 = vmatprep.mubr.bf16.mxu1 %v5238_v52  ;;  %v4979_v52 = vld [vmem:[%s5912_s1 + $0x1e8] sm:$0xff]  }
  0xb8   : > { %4385 = vmatprep.mubr.bf16.mxu0 %v5272_v5  ;;  %4414 = vmatpush3.bf16.msra.mxu0 %v4973_v28  ;;  %v3677_v28 = vld [vmem:[%s5073_s14 + $0xf9] sm:$0xff] }
  0xb9   : > { %4415 = vmatprep.subr.bf16.mxu0 %v4974_v36  ;;  %4222 = vmatpush3.bf16.msra.mxu1 %v4978_v26  ;;  %v4993_v26 = vld [vmem:[%s5912_s1 + $0x230] sm:$0xff]  }
  0xba   : > { %4223 = vmatprep.subr.bf16.mxu1 %v4980_v29 }
  0xbc   : > { %4416 = vmatpush3.bf16.msra.mxu0 %v4974_v36  ;;  %v2317_v36 = vpack.c.bf16 %v3675_v25, %v3674_v24 }
  0xbd   : > { %4417 = vmatprep.subr.bf16.mxu0 %v4976_v30  ;;  %4224 = vmatpush3.bf16.msra.mxu1 %v4980_v29  ;;  %v3678_v29 = vld [vmem:[%s5073_s14 + $0x109] sm:$0xff] }
  0xbe   : > { %4194 = vmatmul.mubr.bf16.gmra.mrb[8].mxu1 %v5242_v54  ;;  %4225 = vmatprep.subr.bf16.mxu1 %v4981_v38  ;;  %v4984_v54 = vld [vmem:[%s5912_s1 + $0xf0] sm:$0xff]  }
  0xbf   : > { %4386 = vmatmul.mubr.bf16.gmra.mrb[8].mxu0 %v5297_v18  ;;  %4197 = vmatprep.mubr.bf16.mxu1 %v5270_v4  ;;  %v4985_v4 = vld [vmem:[%s5912_s1 + $0x1f8] sm:$0xff]  }
  0xc0   : > { %4389 = vmatprep.mubr.bf16.mxu0 %v5304_v21  ;;  %4418 = vmatpush3.bf16.msra.mxu0 %v4976_v30  ;;  %v3679_v30 = vld [vmem:[%s5073_s14 + $0x111] sm:$0xff] }
  0xc1   : > { %4419 = vmatprep.subr.bf16.mxu0 %v4979_v52  ;;  %4226 = vmatpush3.bf16.msra.mxu1 %v4981_v38  ;;  %v3680_v38 = vld [vmem:[%s5073_s14 + $0x121] sm:$0xff] }
  0xc2   : > { %4227 = vmatprep.subr.bf16.mxu1 %v4983_v31 }
  0xc4   : > { %4420 = vmatpush3.bf16.msra.mxu0 %v4979_v52  ;;  %v3681_v52 = vld [vmem:[%s5073_s14 + $0x129] sm:$0xff] }
  0xc5   : > { %4421 = vmatprep.subr.bf16.mxu0 %v4982_v32  ;;  %4228 = vmatpush3.bf16.msra.mxu1 %v4983_v31  ;;  %v2319_v31 = vpack.c.bf16 %v3679_v30, %v3678_v29  ;;  %v5916_v30 = vmov 1.0  }
  0xc6   : > { %4198 = vmatmul.mubr.bf16.gmra.mrb[12].mxu1 %v5274_v6  ;;  %4229 = vmatprep.subr.bf16.mxu1 %v4984_v54  ;;  %v4987_v6 = vld [vmem:[%s5912_s1 + $0x200] sm:$0xff]  }
  0xc7   : > { %4390 = vmatmul.mubr.bf16.gmra.mrb[12].mxu0 %v5331_v39  ;;  %4201 = vmatprep.mubr.bf16.mxu1 %v5302_v20  ;;  %v3632_v20 = vld [vmem:[%s5073_s14 + $0x180] sm:$0xff] }
  0xc8   : > { %4393 = vmatprep.mubr.bf16.mxu0 %v5340_v42  ;;  %4422 = vmatpush3.bf16.msra.mxu0 %v4982_v32  ;;  %v2320_v32 = vpack.c.bf16 %v3681_v52, %v3680_v38 }
  0xc9   : > { %4230 = vmatpush3.bf16.msra.mxu1 %v4984_v54  ;;  %4423 = vmatprep.subr.bf16.mxu0 %v4985_v4  ;;  %v3684_v54 = vld [vmem:[%s5073_s14 + $0x151] sm:$0xff] }
  0xca   : > { %4231 = vmatprep.subr.bf16.mxu1 %v4986_v33 }
  0xcc   : > { %4424 = vmatpush3.bf16.msra.mxu0 %v4985_v4  ;;  %v3685_v4 = vld [vmem:[%s5073_s14 + $0x159] sm:$0xff] }
  0xcd   : > { %4232 = vmatpush3.bf16.msra.mxu1 %v4986_v33  ;;  %4457 = vmatprep.subr.bf16.mxu0 %v4987_v6 }
  0xce   : > { %4202 = vmatmul.mubr.bf16.gmra.mrb[16].mxu1 %v5306_v22  ;;  %v5476_v22 = vpack.c.bf16 %v3633_v34, %v3632_v20  ;;  %v3687_v20 = vld [vmem:[%s5073_s14 + $0x171] sm:$0xff]  ;;  %v3689_v34 = vld [vmem:[%s5073_s14 + $0x189] sm:$0xff] }
  0xcf   : > { %4394 = vmatmul.mubr.bf16.gmra.mrb[16].mxu0 %v5358_v56  ;;  %4205 = vmatprep.mubr.bf16.mxu1 %v5338_v41  ;;  %v3635_v41 = vld [vmem:[%s5073_s14 + $0x1a0] sm:$0xff] }
  0xd0   : > { %4397 = vmatprep.mubr.bf16.mxu0 %v5362_v58  ;;  %v2019_v46 = vpack.c.bf16 %v3635_v41, %v3634_v40 }
  0xd6   : > { %4206 = vmatmul.mubr.bf16.gmra.mrb[20].mxu1 %v5342_v43 }
  0xd7   : > { %4398 = vmatmul.mubr.bf16.gmra.mrb[20].mxu0 %v5378_v8  ;;  %4209 = vmatprep.mubr.bf16.mxu1 %v5360_v57 }
  0xd8   : > { %4401 = vmatprep.mubr.bf16.mxu0 %v5382_v10 }
  0xde   : > { %4210 = vmatmul.mubr.bf16.gmra.mrb[24].mxu1 %v5364_v59 }
  0xdf   : > { %4402 = vmatmul.mubr.bf16.gmra.mrb[24].mxu0 %v5396_v19  ;;  %4213 = vmatprep.mubr.bf16.mxu1 %v5380_v9 }
  0xe0   : > { %4405 = vmatprep.mubr.bf16.mxu0 %v5476_v22 }
  0xe6   : > { %4214 = vmatmul.mubr.bf16.gmra.mrb[28].mxu1 %v5384_v11 }
  0xe7   : > { %4406 = vmatmul.mubr.bf16.gmra.mrb[28].mxu0 %v2019_v46  ;;  %4233 = vmatprep.mubr.bf16.mxu1 %v5202_v35  ;;  %v3666_v35 = vld [vmem:[%s5073_s14 + $0x79] sm:$0xff] }
  0xe8   : > { %4425 = vmatprep.mubr.bf16.mxu0 %v2310_v47  ;;  %v2313_v7 = vpack.c.bf16 %v3667_v63, %v3666_v35 }
  0xee   : > { %4234 = vmatmul.mubr.bf16.vlgmr.msra.gmra.mrb[0].mxu1 %v5206_v37  ;;  %v2314_v37 = vpack.c.bf16 %v3669_v1, %v3668_v0  ;;  %v3726_v0 = vld [vmem:[%s5073_s14 + $0xaa] sm:$0xff]  ;;  %v3727_v1 = vld [vmem:[%s5073_s14 + $0xb2] sm:$0xff] }
  0xef   : > { %4426 = vmatmul.mubr.bf16.vlgmr.msra.gmra.mrb[0].mxu0 %v2311_v60  ;;  %4237 = vmatprep.mubr.bf16.mxu1 %v5236_v51  ;;  %v4990_v51 = vld [vmem:[%s5912_s1 + $0x218] sm:$0xff]  }
  0xf0   : > { %4458 = vmatpush3.bf16.msra.mxu0 %v4987_v6  ;;  %4429 = vmatprep.mubr.bf16.mxu0 %v2312_v61  ;;  %v2322_v6 = vpack.c.bf16 %v3685_v4, %v3684_v54  ;;  %v3722_v60 = vld [vmem:[%s5073_s14 + $0x7a] sm:$0xff]  ;;  %v3723_v61 = vld [vmem:[%s5073_s14 + $0x82] sm:$0xff] }
  0xf1   : > { %4459 = vmatprep.subr.bf16.mxu0 %v4988_v62  ;;  %v2619_v35 = vpack.c.bf16 %v3723_v61, %v3722_v60 }
  0xf4   : > { %4460 = vmatpush3.bf16.msra.mxu0 %v4988_v62  ;;  %v3724_v62 = vld [vmem:[%s5073_s14 + $0x92] sm:$0xff] }
  0xf5   : > { %4461 = vmatprep.subr.bf16.mxu0 %v4989_v3 }
  0xf6   : > { %4238 = vmatmul.mubr.bf16.gmra.mrb[4].mxu1 %v5240_v53  ;;  %v2316_v53 = vpack.c.bf16 %v3673_v15, %v3672_v14  ;;  %v3732_v14 = vld [vmem:[%s5073_s14 + $0xf2] sm:$0xff]  ;;  %v3733_v15 = vld [vmem:[%s5073_s14 + $0xfa] sm:$0xff] }
  0xf7   : > { %4430 = vmatmul.mubr.bf16.gmra.mrb[4].mxu0 %v2313_v7  ;;  %4241 = vmatprep.mubr.bf16.mxu1 %v5265_v2  ;;  %v4992_v2 = vld [vmem:[%s5912_s1 + $0x228] sm:$0xff]  }
  0xf8   : > { %4433 = vmatprep.mubr.bf16.mxu0 %v2314_v37  ;;  %4462 = vmatpush3.bf16.msra.mxu0 %v4989_v3  ;;  %v3728_v3 = vld [vmem:[%s5073_s14 + $0xc2] sm:$0xff]  ;;  %v3729_v7 = vld [vmem:[%s5073_s14 + $0xca] sm:$0xff]  ;;  %v2621_v37 = vpack.c.bf16 %v3727_v1, %v3726_v0 }
  0xf9   : > { %4463 = vmatprep.subr.bf16.mxu0 %v4990_v51 }
  0xfc   : > { %4464 = vmatpush3.bf16.msra.mxu0 %v4990_v51  ;;  %v2622_v51 = vpack.c.bf16 %v3729_v7, %v3728_v3 }
  0xfd   : > { %4465 = vmatprep.subr.bf16.mxu0 %v4991_v16 }
  0xfe   : > { %4242 = vmatmul.mubr.bf16.gmra.mrb[8].mxu1 %v5272_v5  ;;  %v2318_v5 = vpack.c.bf16 %v3677_v28, %v3676_v27 }
  0xff   : > { %4434 = vmatmul.mubr.bf16.gmra.mrb[8].mxu0 %v2315_v17  ;;  %4245 = vmatprep.mubr.bf16.mxu1 %v5297_v18  ;;  %v4994_v18 = vld [vmem:[%s5912_s1 + $0x238] sm:$0xff]   ;;  %v2624_v17 = vpack.c.bf16 %v3733_v15, %v3732_v14 }
 0x100   : > { %4437 = vmatprep.mubr.bf16.mxu0 %v2316_v53  ;;  %4466 = vmatpush3.bf16.msra.mxu0 %v4991_v16  ;;  %v2623_v16 = vpack.c.bf16 %v3731_v13, %v3730_v12  ;;  %v3746_v53 = vld [vmem:[%s5073_s14 + $0x19a] sm:$0xff] }
 0x101   : > { %4467 = vmatprep.subr.bf16.mxu0 %v4992_v2 }
 0x104   : > { %4468 = vmatpush3.bf16.msra.mxu0 %v4992_v2  ;;  %v3747_v2 = vld [vmem:[%s5073_s14 + $0x1a2] sm:$0xff] }
 0x105   : > { %4469 = vmatprep.subr.bf16.mxu0 %v4993_v26  ;;  %v2631_v24 = vpack.c.bf16 %v3747_v2, %v3746_v53 }
 0x106   : > { %4246 = vmatmul.mubr.bf16.gmra.mrb[12].mxu1 %v5304_v21  ;;  %v3682_v21 = vld [vmem:[%s5073_s14 + $0x139] sm:$0xff] }
 0x107   : > { %4438 = vmatmul.mubr.bf16.gmra.mrb[12].mxu0 %v2317_v36  ;;  %4249 = vmatprep.mubr.bf16.mxu1 %v5331_v39  ;;  %v3683_v39 = vld [vmem:[%s5073_s14 + $0x141] sm:$0xff] }
 0x108   : > { %4441 = vmatprep.mubr.bf16.mxu0 %v2318_v5  ;;  %4470 = vmatpush3.bf16.msra.mxu0 %v4993_v26  ;;  %v2321_v33 = vpack.c.bf16 %v3683_v39, %v3682_v21 }
 0x109   : > { %4471 = vmatprep.subr.bf16.mxu0 %v4994_v18 }
 0x10c   : > { %4472 = vmatpush3.bf16.msra.mxu0 %v4994_v18 }
 0x10e   : > { %4250 = vmatmul.mubr.bf16.gmra.mrb[16].mxu1 %v5340_v42  ;;  %v3686_v42 = vld [vmem:[%s5073_s14 + $0x169] sm:$0xff] }
 0x10f   : > { %4442 = vmatmul.mubr.bf16.gmra.mrb[16].mxu0 %v2319_v31  ;;  %4253 = vmatprep.mubr.bf16.mxu1 %v5358_v56  ;;  %v3688_v56 = vld [vmem:[%s5073_s14 + $0x181] sm:$0xff]  ;;  %v2323_v40 = vpack.c.bf16 %v3687_v20, %v3686_v42 }
 0x110   : > { %4445 = vmatprep.mubr.bf16.mxu0 %v2320_v32  ;;  %v2324_v41 = vpack.c.bf16 %v3689_v34, %v3688_v56 }
 0x116   : > { %4254 = vmatmul.mubr.bf16.gmra.mrb[20].mxu1 %v5362_v58  ;;  %v3690_v58 = vld [vmem:[%s5073_s14 + $0x199] sm:$0xff] }
 0x117   : > { %4446 = vmatmul.mubr.bf16.gmra.mrb[20].mxu0 %v2321_v33  ;;  %4257 = vmatprep.mubr.bf16.mxu1 %v5378_v8  ;;  %v3716_v8 = vld [vmem:[%s5073_s14 + $0x32] sm:$0xff]  ;;  %v2325_v46 = vpack.c.bf16 %v3691_v44, %v3690_v58 }
 0x118   : > { %4449 = vmatprep.mubr.bf16.mxu0 %v2322_v6  ;;  %v2616_v47 = vpack.c.bf16 %v3717_v45, %v3716_v8 }
 0x11e   : > { %4258 = vmatmul.mubr.bf16.gmra.mrb[24].mxu1 %v5382_v10  ;;  %v3718_v10 = vld [vmem:[%s5073_s14 + $0x4a] sm:$0xff] }
 0x11f   : > { %4450 = vmatmul.mubr.bf16.gmra.mrb[24].mxu0 %v2323_v40  ;;  %4261 = vmatprep.mubr.bf16.mxu1 %v5396_v19  ;;  %v3720_v19 = vld [vmem:[%s5073_s14 + $0x62] sm:$0xff]  ;;  %v2617_v50 = vpack.c.bf16 %v3719_v48, %v3718_v10 }
 0x120   : > { %4453 = vmatprep.mubr.bf16.mxu0 %v2324_v41  ;;  %v2618_v55 = vpack.c.bf16 %v3721_v49, %v3720_v19 }
 0x126   : > { %4262 = vmatmul.mubr.bf16.gmra.mrb[28].mxu1 %v5476_v22  ;;  %v3725_v22 = vld [vmem:[%s5073_s14 + $0x9a] sm:$0xff] }
 0x127   : > { %4454 = vmatmul.mubr.bf16.gmra.mrb[28].mxu0 %v2325_v46  ;;  %v2620_v63 = vpack.c.bf16 %v3725_v22, %v3724_v62 }
 0x128   : > { %4473 = vmatprep.mubr.bf16.mxu0 %v2616_v47 }
 0x12f   : > { %4474 = vmatmul.mubr.bf16.vlgmr.msra.gmra.mrb[0].mxu0 %v2617_v50 }
 0x130   : > { %4477 = vmatprep.mubr.bf16.mxu0 %v2618_v55 }
 0x137   : > { %4478 = vmatmul.mubr.bf16.gmra.mrb[4].mxu0 %v2619_v35 }
 0x138   : > { %4481 = vmatprep.mubr.bf16.mxu0 %v2620_v63 }
 0x13f   : > { %4482 = vmatmul.mubr.bf16.gmra.mrb[8].mxu0 %v2621_v37 }
 0x140   : > { %4485 = vmatprep.mubr.bf16.mxu0 %v2622_v51 }
 0x147   : > { %4486 = vmatmul.mubr.bf16.gmra.mrb[12].mxu0 %v2623_v16 }
 0x148   : > { %4489 = vmatprep.mubr.bf16.mxu0 %v2624_v17 }
 0x14f   : > { %4490 = vmatmul.mubr.bf16.gmra.mrb[16].mxu0 %v5342_v43 }
 0x150   : > { %4493 = vmatprep.mubr.bf16.mxu0 %v5360_v57  ;;  %v3016_v57 = vlaneseq }
 0x157   : > { %4494 = vmatmul.mubr.bf16.gmra.mrb[20].mxu0 %v5364_v59  ;;  %v3017_v59 = vshrl.u32 %v3016_v57, 7 }
 0x158   : > { %4497 = vmatprep.mubr.bf16.mxu0 %v5380_v9 }
 0x159   : > { %v3018_v9 = vadd.s32 8, %v3017_v59  ;;  %v3027_v36 = vmul.u32 2, %v3017_v59  ;;  %v3019_v33 = vadd.s32 16, %v3017_v59  ;;  %v3020_v42 = vadd.s32 24, %v3017_v59 }
 0x15a   : > { %v3021_v40 = vadd.s32 32, %v3017_v59  ;;  %v3022_v58 = vadd.s32 40, %v3017_v59  ;;  %v3023_v48 = vadd.s32 48, %v3017_v59  ;;  %v3024_v50 = vadd.s32 56, %v3017_v59 }
 0x15b   : > { %v3028_v18 = vmul.u32 2, %v3018_v9  ;;  %v3029_v20 = vmul.u32 2, %v3019_v33  ;;  %v5663_v63 = vadd.s32 1, %v3027_v36 }
 0x15c   : > { %v3030_v56 = vmul.u32 2, %v3020_v42  ;;  %v3031_v8 = vmul.u32 2, %v3021_v40  ;;  %v5724_v42 = vld [vmem:[%s5914_s3] ss:$0 sm:$0xff] }
 0x15d   : > { %v3032_v46 = vmul.u32 2, %v3022_v58  ;;  %v3033_v55 = vmul.u32 2, %v3023_v48  ;;  %v5667_v1 = vadd.s32 1, %v3028_v18  ;;  %v5675_v7 = vadd.s32 1, %v3029_v20 }
 0x15e   : > { %v3034_v60 = vmul.u32 2, %v3024_v50  ;;  %v5677_v37 = vadd.s32 1, %v3030_v56  ;;  %v5687_v13 = vadd.s32 1, %v3031_v8 }
 0x15f   : > { %4498 = vmatmul.mubr.bf16.gmra.mrb[24].mxu0 %v5384_v11  ;;  %v5691_v15 = vadd.s32 1, %v3032_v46  ;;  %v5699_v17 = vadd.s32 1, %v3033_v55 }
 0x160   : > { %4501 = vmatprep.mubr.bf16.mxu0 %v5398_v23  ;;  %v5592_v23 = vand.u32 127, %v3016_v57  ;;  %v5701_v53 = vadd.s32 1, %v3034_v60 }
 0x162   : > { %vm3035_vm0 = vcmp.eq.s32.totalorder %v5592_v23, %v3027_v36  ;;  %vm5601_vm1 = vcmp.eq.s32.totalorder %v5592_v23, %v3028_v18  ;;  %vm5622_vm2 = vcmp.eq.s32.totalorder %v5592_v23, %v3029_v20  ;;  %vm5627_vm3 = vcmp.eq.s32.totalorder %v5592_v23, %v3030_v56  ;;  %5933 = vst [vmem:[#allocation2_spill] sm:$0xff] %v5701_v53  ;;  %v5718_v36 = vld [vmem:[%s5913_s2] ss:$0 sm:$0xff] }
 0x163   : > { %4537 = vmatprep.mubr.msk.f32.mxu1 %vm3035_vm0, %v5916_v30  ;;  %vm5638_vm4 = vcmp.eq.s32.totalorder %v5592_v23, %v3031_v8  ;;  %vm5645_vm5 = vcmp.eq.s32.totalorder %v5592_v23, %v3032_v46  ;;  %vm5650_vm6 = vcmp.eq.s32.totalorder %v5592_v23, %v3033_v55  ;;  %vm5655_vm7 = vcmp.eq.s32.totalorder %v5592_v23, %v3034_v60 }
 0x164   : > { %vm3067_vm8 = vcmp.eq.s32.totalorder %v5592_v23, %v5663_v63  ;;  %vm3068_vm9 = vcmp.eq.s32.totalorder %v5592_v23, %v5667_v1  ;;  %vm3069_vm10 = vcmp.eq.s32.totalorder %v5592_v23, %v5675_v7  ;;  %vm3070_vm11 = vcmp.eq.s32.totalorder %v5592_v23, %v5677_v37 }
 0x165   : > { %vm3071_vm12 = vcmp.eq.s32.totalorder %v5592_v23, %v5687_v13  ;;  %vm3072_vm13 = vcmp.eq.s32.totalorder %v5592_v23, %v5691_v15  ;;  %vm3073_vm14 = vcmp.eq.s32.totalorder %v5592_v23, %v5699_v17  ;;  %vm3074_vm15 = vcmp.eq.s32.totalorder %v5592_v23, %v5701_v53 }
 0x167   : > { %4502 = vmatmul.mubr.bf16.gmra.mrb[28].mxu0 %v2631_v24 }
 0x1c1   : > { %v5580_v25 = vpop.f32.mrb[0].mxu1 }
 0x1c2   : > { %v5582_v27 = vpop.f32.mrb[1].mxu1 }
 0x1c3   : > { %v5584_v28 = vpop.f32.mrb[2].mxu1 }
 0x1c4   : > { %v5586_v43 = vpop.f32.mrb[3].mxu1 }
 0x1c9   : > { %v5588_v26 = vpop.f32.mrb[4].mxu1 }
 0x1ca   : > { %v5590_v11 = vpop.f32.mrb[5].mxu1 }
 0x1cb   : > { %v5594_v5 = vpop.f32.mrb[6].mxu1 }
 0x1cc   : > { %v5596_v29 = vpop.f32.mrb[7].mxu1 }
 0x1d1   : > { %v5605_v52 = vpop.f32.mrb[8].mxu1 }
 0x1d2   : > { %v5607_v31 = vpop.f32.mrb[9].mxu1 }
 0x1d3   : > { %v5609_v32 = vpop.f32.mrb[10].mxu1 }
 0x1d4   : > { %v5611_v21 = vpop.f32.mrb[11].mxu1 }
 0x1d9   : > { %v5613_v39 = vpop.f32.mrb[12].mxu1 }
 0x1da   : > { %v5615_v54 = vpop.f32.mrb[13].mxu1 }
 0x1db   : > { %v5617_v4 = vpop.f32.mrb[14].mxu1 }
 0x1dc   : > { %v5619_v6 = vpop.f32.mrb[15].mxu1 }
 0x1e1   : > { %v5631_v44 = vpop.f32.mrb[16].mxu1 }
 0x1e2   : > { %v5633_v45 = vpop.f32.mrb[17].mxu1 }
 0x1e3   : > { %v5635_v47 = vpop.f32.mrb[18].mxu1 }
 0x1e4   : > { %v5642_v19 = vpop.f32.mrb[19].mxu1 }
 0x1e9   : > { %v5659_v22 = vpop.f32.mrb[20].mxu1 }
 0x1ea   : > { %v5661_v35 = vpop.f32.mrb[21].mxu1 }
 0x1eb   : > { %v5665_v0 = vpop.f32.mrb[22].mxu1 }
 0x1ec   : > { %v5669_v3 = vpop.f32.mrb[23].mxu1 }
 0x1f1   : > { %v5681_v51 = vpop.f32.mrb[24].mxu1 }
 0x1f2   : > { %v5685_v12 = vpop.f32.mrb[25].mxu1 }
 0x1f3   : > { %v5689_v14 = vpop.f32.mrb[26].mxu1 }
 0x1f4   : > { %v5693_v16 = vpop.f32.mrb[27].mxu1 }
 0x1f9   : > { %v5705_v2 = vpop.f32.mrb[28].mxu1 }
 0x1fa   : > { %v5709_v24 = vpop.f32.mrb[29].mxu1 }
 0x1fb   : > { %v5711_v57 = vpop.f32.mrb[30].mxu1 }
 0x1fc   : > { %v5713_v59 = vpop.f32.mrb[31].mxu1 }
 0x202   : > { %v4475_v9 = vpop.f32.mrb[0].mxu0 }
 0x203   : > { %v4657_v18 = vadd.f32 %v4475_v9, %v5580_v25  ;;  %v2731_v33 = vpop.f32.mrb[1].mxu0 }
 0x204   : > { %v4658_v20 = vadd.f32 %v2731_v33, %v5582_v27  ;;  %v4476_v56 = vpop.f32.mrb[2].mxu0 }
 0x205   : > { %v2899_v40 = vmul.f32 %v4657_v18, %v5718_v36  ;;  %v4659_v58 = vadd.f32 %v4476_v56, %v5584_v28  ;;  %v2734_v8 = vpop.f32.mrb[3].mxu0 }
 0x206   : > { %v2897_v46 = vmul.f32 %v4658_v20, %v5718_v36  ;;  %v4660_v48 = vadd.f32 %v2734_v8, %v5586_v43 }
 0x207   : > { %v2938_v25 = vadd.f32 %v5724_v42, %v2899_v40  ;;  %v2900_v50 = vmul.f32 %v4659_v58, %v5718_v36 }
 0x208   : > { %v2936_v55 = vadd.f32 %v5724_v42, %v2897_v46  ;;  %v2898_v60 = vmul.f32 %v4660_v48, %v5718_v36 }
 0x209   : > { %v2970_v9 = vmax.f32 %v2938_v25, 0.0  ;;  %v2939_v27 = vadd.f32 %v5724_v42, %v2900_v50 }
 0x20a   : > { %v2968_v33 = vmax.f32 %v2936_v55, 0.0  ;;  %v2937_v18 = vadd.f32 %v5724_v42, %v2898_v60  ;;  %v4479_v28 = vpop.f32.mrb[4].mxu0 }
 0x20b   : > { %v2971_v56 = vmax.f32 %v2939_v27, 0.0  ;;  %v4661_v20 = vadd.f32 %v4479_v28, %v5588_v26  ;;  %v2747_v30 = vpop.f32.mrb[5].mxu0 }
 0x20c   : > { %v3000_v43 = vmax.f32 %v2968_v33, %v2970_v9  ;;  %v2969_v8 = vmax.f32 %v2937_v18, 0.0  ;;  %v4662_v40 = vadd.f32 %v2747_v30, %v5590_v11  ;;  %v4480_v58 = vpop.f32.mrb[6].mxu0 }
 0x20d   : > { %v2903_v46 = vmul.f32 %v4661_v20, %v5718_v36  ;;  %v4663_v48 = vadd.f32 %v4480_v58, %v5594_v5  ;;  %v2750_v25 = vpop.f32.mrb[7].mxu0 }
 0x20e   : > { %v3001_v53 = vmax.f32 %v2969_v8, %v2971_v56  ;;  %v2901_v50 = vmul.f32 %v4662_v40, %v5718_v36  ;;  %v4664_v55 = vadd.f32 %v2750_v25, %v5596_v29 }
 0x20f   : > { %v2942_v60 = vadd.f32 %v5724_v42, %v2903_v46  ;;  %v2904_v26 = vmul.f32 %v4663_v48, %v5718_v36 }
 0x210   : > { %v2940_v9 = vadd.f32 %v5724_v42, %v2901_v50  ;;  %v2902_v27 = vmul.f32 %v4664_v55, %v5718_v36  ;;  %v5747_v11 = vpack.c.bf16 %v3001_v53, %v3000_v43 }
 0x211   : > { %v2974_v30 = vmax.f32 %v2942_v60, 0.0  ;;  %v2943_v33 = vadd.f32 %v5724_v42, %v2904_v26 }
 0x212   : > { %v2972_v5 = vmax.f32 %v2940_v9, 0.0  ;;  %v2941_v18 = vadd.f32 %v5724_v42, %v2902_v27  ;;  %v4483_v28 = vpop.f32.mrb[8].mxu0  ;;  %4594 = vmatprep.subr.bf16.mxu1 %v5747_v11 }
 0x213   : > { %v2975_v29 = vmax.f32 %v2943_v33, 0.0  ;;  %v4665_v56 = vadd.f32 %v4483_v28, %v5605_v52  ;;  %v2763_v20 = vpop.f32.mrb[9].mxu0  ;;  %4596 = vmatpush3.bf16.msra.mxu1 %v5747_v11 }
 0x214   : > { %v3002_v8 = vmax.f32 %v2972_v5, %v2974_v30  ;;  %v2973_v40 = vmax.f32 %v2941_v18, 0.0  ;;  %v4666_v53 = vadd.f32 %v2763_v20, %v5607_v31  ;;  %v4484_v43 = vpop.f32.mrb[10].mxu0 }
 0x215   : > { %v2907_v58 = vmul.f32 %v4665_v56, %v5718_v36  ;;  %v4667_v46 = vadd.f32 %v4484_v43, %v5609_v32  ;;  %v2766_v48 = vpop.f32.mrb[11].mxu0 }
 0x216   : > { %v3003_v25 = vmax.f32 %v2973_v40, %v2975_v29  ;;  %v2905_v50 = vmul.f32 %v4666_v53, %v5718_v36  ;;  %v4668_v55 = vadd.f32 %v2766_v48, %v5611_v21 }
 0x217   : > { %v2946_v52 = vadd.f32 %v5724_v42, %v2907_v58  ;;  %v2908_v60 = vmul.f32 %v4667_v46, %v5718_v36 }
 0x218   : > { %v2944_v26 = vadd.f32 %v5724_v42, %v2905_v50  ;;  %v2906_v9 = vmul.f32 %v4668_v55, %v5718_v36  ;;  %v5763_v31 = vpack.c.bf16 %v3003_v25, %v3002_v8 }
 0x219   : > { %v2978_v27 = vmax.f32 %v2946_v52, 0.0  ;;  %v2947_v30 = vadd.f32 %v5724_v42, %v2908_v60 }
 0x21a   : > { %v2976_v32 = vmax.f32 %v2944_v26, 0.0  ;;  %v2945_v33 = vadd.f32 %v5724_v42, %v2906_v9  ;;  %v4487_v5 = vpop.f32.mrb[12].mxu0  ;;  %4598 = vmatprep.subr.bf16.mxu1 %v5763_v31 }
 0x21b   : > { %v2979_v21 = vmax.f32 %v2947_v30, 0.0  ;;  %v4669_v18 = vadd.f32 %v4487_v5, %v5613_v39  ;;  %v2779_v28 = vpop.f32.mrb[13].mxu0  ;;  %4600 = vmatpush3.bf16.msra.mxu1 %v5763_v31 }
 0x21c   : > { %v3004_v29 = vmax.f32 %v2976_v32, %v2978_v27  ;;  %v2977_v56 = vmax.f32 %v2945_v33, 0.0  ;;  %v4670_v20 = vadd.f32 %v2779_v28, %v5615_v54  ;;  %v4488_v8 = vpop.f32.mrb[14].mxu0 }
 0x21d   : > { %v2911_v40 = vmul.f32 %v4669_v18, %v5718_v36  ;;  %v4671_v53 = vadd.f32 %v4488_v8, %v5617_v4  ;;  %v2782_v43 = vpop.f32.mrb[15].mxu0 }
 0x21e   : > { %v3005_v58 = vmax.f32 %v2977_v56, %v2979_v21  ;;  %v2909_v46 = vmul.f32 %v4670_v20, %v5718_v36  ;;  %v4672_v48 = vadd.f32 %v2782_v43, %v5619_v6 }
 0x21f   : > { %v2950_v39 = vadd.f32 %v5724_v42, %v2911_v40  ;;  %v2912_v25 = vmul.f32 %v4671_v53, %v5718_v36 }
 0x220   : > { %v2948_v50 = vadd.f32 %v5724_v42, %v2909_v46  ;;  %v2910_v55 = vmul.f32 %v4672_v48, %v5718_v36  ;;  %v5779_v54 = vpack.c.bf16 %v3005_v58, %v3004_v29 }
 0x221   : > { %v2982_v52 = vmax.f32 %v2950_v39, 0.0  ;;  %v2951_v60 = vadd.f32 %v5724_v42, %v2912_v25 }
 0x222   : > { %v2980_v4 = vmax.f32 %v2948_v50, 0.0  ;;  %v2949_v26 = vadd.f32 %v5724_v42, %v2910_v55  ;;  %v4491_v9 = vpop.f32.mrb[16].mxu0  ;;  %4602 = vmatprep.subr.bf16.mxu1 %v5779_v54 }
 0x223   : > { %v2983_v6 = vmax.f32 %v2951_v60, 0.0  ;;  %v4673_v27 = vadd.f32 %v4491_v9, %v5631_v44  ;;  %v2795_v30 = vpop.f32.mrb[17].mxu0  ;;  %4604 = vmatpush3.bf16.msra.mxu1 %v5779_v54 }
 0x224   : > { %v3006_v32 = vmax.f32 %v2980_v4, %v2982_v52  ;;  %v2981_v33 = vmax.f32 %v2949_v26, 0.0  ;;  %v4674_v5 = vadd.f32 %v2795_v30, %v5633_v45  ;;  %v4492_v21 = vpop.f32.mrb[18].mxu0 }
 0x225   : > { %v2915_v18 = vmul.f32 %v4673_v27, %v5718_v36  ;;  %v4675_v28 = vadd.f32 %v4492_v21, %v5635_v47  ;;  %v2798_v29 = vpop.f32.mrb[19].mxu0 }
 0x226   : > { %v3007_v56 = vmax.f32 %v2981_v33, %v2983_v6  ;;  %v2913_v20 = vmul.f32 %v4674_v5, %v5718_v36  ;;  %v4676_v8 = vadd.f32 %v2798_v29, %v5642_v19 }
 0x227   : > { %v2954_v44 = vadd.f32 %v5724_v42, %v2915_v18  ;;  %v2916_v40 = vmul.f32 %v4675_v28, %v5718_v36 }
 0x228   : > { %v2952_v53 = vadd.f32 %v5724_v42, %v2913_v20  ;;  %v2914_v43 = vmul.f32 %v4676_v8, %v5718_v36  ;;  %v5795_v45 = vpack.c.bf16 %v3007_v56, %v3006_v32 }
 0x229   : > { %v2986_v58 = vmax.f32 %v2954_v44, 0.0  ;;  %v2955_v46 = vadd.f32 %v5724_v42, %v2916_v40 }
 0x22a   : > { %v2984_v47 = vmax.f32 %v2952_v53, 0.0  ;;  %v2953_v48 = vadd.f32 %v5724_v42, %v2914_v43  ;;  %v4495_v39 = vpop.f32.mrb[20].mxu0  ;;  %4606 = vmatprep.subr.bf16.mxu1 %v5795_v45 }
 0x22b   : > { %v2987_v19 = vmax.f32 %v2955_v46, 0.0  ;;  %v4677_v25 = vadd.f32 %v4495_v39, %v5659_v22  ;;  %v2811_v50 = vpop.f32.mrb[21].mxu0  ;;  %4608 = vmatpush3.bf16.msra.mxu1 %v5795_v45 }
 0x22c   : > { %v3008_v55 = vmax.f32 %v2984_v47, %v2986_v58  ;;  %v2985_v52 = vmax.f32 %v2953_v48, 0.0  ;;  %v4678_v60 = vadd.f32 %v2811_v50, %v5661_v35  ;;  %v4496_v4 = vpop.f32.mrb[22].mxu0 }
 0x22d   : > { %v2919_v26 = vmul.f32 %v4677_v25, %v5718_v36  ;;  %v4679_v9 = vadd.f32 %v4496_v4, %v5665_v0  ;;  %v2814_v6 = vpop.f32.mrb[23].mxu0 }
 0x22e   : > { %v3009_v27 = vmax.f32 %v2985_v52, %v2987_v19  ;;  %v2917_v30 = vmul.f32 %v4678_v60, %v5718_v36  ;;  %v4680_v32 = vadd.f32 %v2814_v6, %v5669_v3 }
 0x22f   : > { %v2958_v22 = vadd.f32 %v5724_v42, %v2919_v26  ;;  %v2920_v33 = vmul.f32 %v4679_v9, %v5718_v36 }
 0x230   : > { %v2956_v5 = vadd.f32 %v5724_v42, %v2917_v30  ;;  %v2918_v21 = vmul.f32 %v4680_v32, %v5718_v36  ;;  %v5811_v35 = vpack.c.bf16 %v3009_v27, %v3008_v55 }
 0x231   : > { %v2990_v18 = vmax.f32 %v2958_v22, 0.0  ;;  %v2959_v28 = vadd.f32 %v5724_v42, %v2920_v33 }
 0x232   : > { %v2988_v0 = vmax.f32 %v2956_v5, 0.0  ;;  %v2957_v29 = vadd.f32 %v5724_v42, %v2918_v21  ;;  %v4499_v56 = vpop.f32.mrb[24].mxu0  ;;  %4610 = vmatprep.subr.bf16.mxu1 %v5811_v35 }
 0x233   : > { %v2991_v3 = vmax.f32 %v2959_v28, 0.0  ;;  %v4681_v20 = vadd.f32 %v4499_v56, %v5681_v51  ;;  %v2827_v8 = vpop.f32.mrb[25].mxu0  ;;  %4612 = vmatpush3.bf16.msra.mxu1 %v5811_v35 }
 0x234   : > { %v3010_v44 = vmax.f32 %v2988_v0, %v2990_v18  ;;  %v2989_v40 = vmax.f32 %v2957_v29, 0.0  ;;  %v4682_v53 = vadd.f32 %v2827_v8, %v5685_v12  ;;  %v4500_v43 = vpop.f32.mrb[26].mxu0 }
 0x235   : > { %v2923_v58 = vmul.f32 %v4681_v20, %v5718_v36  ;;  %v4683_v46 = vadd.f32 %v4500_v43, %v5689_v14  ;;  %v2830_v47 = vpop.f32.mrb[27].mxu0 }
 0x236   : > { %v3011_v48 = vmax.f32 %v2989_v40, %v2991_v3  ;;  %v2921_v39 = vmul.f32 %v4682_v53, %v5718_v36  ;;  %v4684_v19 = vadd.f32 %v2830_v47, %v5693_v16 }
 0x237   : > { %v2962_v51 = vadd.f32 %v5724_v42, %v2923_v58  ;;  %v2924_v25 = vmul.f32 %v4683_v46, %v5718_v36  ;;  %v5934_v46 = vmov 1.0  }
 0x238   : > { %v2960_v50 = vadd.f32 %v5724_v42, %v2921_v39  ;;  %v2922_v55 = vmul.f32 %v4684_v19, %v5718_v36  ;;  %v4613_v12 = vpack.c.bf16 %v3011_v48, %v3010_v44 }
 0x239   : > { %v2994_v52 = vmax.f32 %v2962_v51, 0.0  ;;  %v2963_v60 = vadd.f32 %v5724_v42, %v2924_v25 }
 0x23a   : > { %v2992_v4 = vmax.f32 %v2960_v50, 0.0  ;;  %v2961_v14 = vadd.f32 %v5724_v42, %v2922_v55  ;;  %v4503_v26 = vpop.f32.mrb[28].mxu0  ;;  %4614 = vmatprep.subr.bf16.mxu1 %v4613_v12 }
 0x23b   : > { %v2995_v9 = vmax.f32 %v2963_v60, 0.0  ;;  %v4685_v16 = vadd.f32 %v4503_v26, %v5705_v2  ;;  %v2843_v6 = vpop.f32.mrb[29].mxu0  ;;  %4616 = vmatpush3.bf16.msra.mxu1 %v4613_v12 }
 0x23c   : > { %v3012_v27 = vmax.f32 %v2992_v4, %v2994_v52  ;;  %v2993_v30 = vmax.f32 %v2961_v14, 0.0  ;;  %v4686_v32 = vadd.f32 %v2843_v6, %v5709_v24  ;;  %v4504_v22 = vpop.f32.mrb[30].mxu0 }
 0x23d   : > { %v2927_v33 = vmul.f32 %v4685_v16, %v5718_v36  ;;  %v4687_v5 = vadd.f32 %v4504_v22, %v5711_v57  ;;  %v2846_v21 = vpop.f32.mrb[31].mxu0 }
 0x23e   : > { %v3013_v18 = vmax.f32 %v2993_v30, %v2995_v9  ;;  %v2925_v28 = vmul.f32 %v4686_v32, %v5718_v36  ;;  %v4688_v0 = vadd.f32 %v2846_v21, %v5713_v59 }
 0x23f   : > { %v2966_v29 = vadd.f32 %v5724_v42, %v2927_v33  ;;  %v2928_v2 = vmul.f32 %v4687_v5, %v5718_v36 }
 0x240   : > { %v2964_v56 = vadd.f32 %v5724_v42, %v2925_v28  ;;  %v2926_v3 = vmul.f32 %v4688_v0, %v5718_v36  ;;  %v4617_v24 = vpack.c.bf16 %v3013_v18, %v3012_v27 }
 0x241   : > { %v2998_v20 = vmax.f32 %v2966_v29, 0.0  ;;  %v2967_v8 = vadd.f32 %v5724_v42, %v2928_v2 }
 0x242   : > { %v2996_v44 = vmax.f32 %v2964_v56, 0.0  ;;  %v2965_v57 = vadd.f32 %v5724_v42, %v2926_v3  ;;  %4618 = vmatprep.subr.bf16.mxu1 %v4617_v24 }
 0x243   : > { %v2999_v40 = vmax.f32 %v2967_v8, 0.0  ;;  %4620 = vmatpush3.bf16.msra.mxu1 %v4617_v24 }
 0x244   : > { %v3014_v53 = vmax.f32 %v2996_v44, %v2998_v20  ;;  %v2997_v59 = vmax.f32 %v2965_v57, 0.0 }
 0x246   : > { %v3015_v43 = vmax.f32 %v2997_v59, %v2999_v40 }
 0x248   : > { %v4621_v58 = vpack.c.bf16 %v3015_v43, %v3014_v53 }
 0x24a   : > { %4622 = vmatprep.subr.bf16.mxu1 %v4621_v58 }
 0x24b   : > { %4624 = vmatpush3.bf16.msra.mxu1 %v4621_v58 }
 0x24c   : > { %4626 = vmatprep.subr.bf16.mxu1 %v5747_v11 }
 0x24e   : > { %4538 = vmatmul.mubr.msk.f32.vlgmr.msra.gmra.mrb[32].mxu1 %vm5601_vm1, %v5934_v46 }
 0x24f   : > { %4628 = vmatpush3.bf16.msra.mxu1 %v5747_v11  ;;  %4540 = vmatprep.mubr.msk.f32.mxu1 %vm5622_vm2, %v5934_v46 }
 0x250   : > { %4630 = vmatprep.subr.bf16.mxu1 %v5763_v31 }
 0x252   : > { %4541 = vmatmul.mubr.msk.f32.gmra.mrb[34].mxu1 %vm5627_vm3, %v5934_v46 }
 0x253   : > { %4632 = vmatpush3.bf16.msra.mxu1 %v5763_v31  ;;  %4543 = vmatprep.mubr.msk.f32.mxu1 %vm5638_vm4, %v5934_v46 }
 0x254   : > { %4634 = vmatprep.subr.bf16.mxu1 %v5779_v54 }
 0x256   : > { %4544 = vmatmul.mubr.msk.f32.gmra.mrb[36].mxu1 %vm5645_vm5, %v5934_v46 }
 0x257   : > { %4636 = vmatpush3.bf16.msra.mxu1 %v5779_v54  ;;  %4546 = vmatprep.mubr.msk.f32.mxu1 %vm5650_vm6, %v5934_v46 }
 0x258   : > { %4638 = vmatprep.subr.bf16.mxu1 %v5795_v45 }
 0x25a   : > { %4547 = vmatmul.mubr.msk.f32.gmra.mrb[38].mxu1 %vm5655_vm7, %v5934_v46 }
 0x25b   : > { %4640 = vmatpush3.bf16.msra.mxu1 %v5795_v45  ;;  %4581 = vmatprep.mubr.msk.f32.mxu1 %vm3067_vm8, %v5934_v46 }
 0x25c   : > { %4642 = vmatprep.subr.bf16.mxu1 %v5811_v35 }
 0x25f   : > { %4644 = vmatpush3.bf16.msra.mxu1 %v5811_v35 }
 0x260   : > { %4646 = vmatprep.subr.bf16.mxu1 %v4613_v12 }
 0x263   : > { %4648 = vmatpush3.bf16.msra.mxu1 %v4613_v12 }
 0x264   : > { %4650 = vmatprep.subr.bf16.mxu1 %v4617_v24 }
 0x267   : > { %4652 = vmatpush3.bf16.msra.mxu1 %v4617_v24 }
 0x268   : > { %4654 = vmatprep.subr.bf16.mxu1 %v4621_v58 }
 0x26b   : > { %4656 = vmatpush3.bf16.msra.mxu1 %v4621_v58 }
 0x26e   : > { %4582 = vmatmul.mubr.msk.f32.vlgmr.msra.gmra.mrb[40].mxu1 %vm3068_vm9, %v5934_v46 }
 0x26f   : > { %4584 = vmatprep.mubr.msk.f32.mxu1 %vm3069_vm10, %v5934_v46 }
 0x272   : > { %4585 = vmatmul.mubr.msk.f32.gmra.mrb[42].mxu1 %vm3070_vm11, %v5934_v46 }
 0x273   : > { %4587 = vmatprep.mubr.msk.f32.mxu1 %vm3071_vm12, %v5934_v46 }
 0x276   : > { %4588 = vmatmul.mubr.msk.f32.gmra.mrb[44].mxu1 %vm3072_vm13, %v5934_v46 }
 0x277   : > { %4590 = vmatprep.mubr.msk.f32.mxu1 %vm3073_vm14, %v5934_v46 }
 0x27a   : > { %4591 = vmatmul.mubr.msk.f32.gmra.mrb[46].mxu1 %vm3074_vm15, %v5934_v46 }
 0x321   : > { %v4539_v34 = vpop.f32.mrb[32].mxu1 }
 0x322   : > { %v3157_v41 = vpop.f32.mrb[33].mxu1 }
 0x325   : > { %v4542_v10 = vpop.f32.mrb[34].mxu1 }
 0x326   : > { %v3167_v49 = vpop.f32.mrb[35].mxu1 }
 0x329   : > { %v4545_v61 = vpop.f32.mrb[36].mxu1 }
 0x32a   : > { %v3177_v62 = vpop.f32.mrb[37].mxu1 }
 0x32d   : > { %v4548_v63 = vpop.f32.mrb[38].mxu1 }
 0x32e   : > { %v3187_v1 = vpop.f32.mrb[39].mxu1 }
 0x341   : > { %v4583_v7 = vpop.f32.mrb[40].mxu1 }
 0x342   : > { %v3302_v37 = vmax.f32 %v4539_v34, %v4583_v7  ;;  %v3262_v13 = vpop.f32.mrb[41].mxu1 }
 0x343   : > { %v3301_v15 = vmax.f32 %v3157_v41, %v3262_v13 }
 0x344   : > { %3310 = vst [vmem:[%s197_s6 + $0x8] sm:$0xff] %v3302_v37 }
 0x345   : > { %3309 = vst [vmem:[%s197_s6] sm:$0xff] %v3301_v15  ;;  %v4586_v23 = vpop.f32.mrb[42].mxu1 }
 0x346   : > { %v3304_v17 = vmax.f32 %v4542_v10, %v4586_v23  ;;  %v3272_v36 = vpop.f32.mrb[43].mxu1 }
 0x347   : > { %v3303_v42 = vmax.f32 %v3167_v49, %v3272_v36 }
 0x348   : > { %3312 = vst [vmem:[%s197_s6 + $0x18] sm:$0xff] %v3304_v17 }
 0x349   : > { %3311 = vst [vmem:[%s197_s6 + $0x10] sm:$0xff] %v3303_v42  ;;  %v4589_v11 = vpop.f32.mrb[44].mxu1 }
 0x34a   : > { %v3306_v31 = vmax.f32 %v4545_v61, %v4589_v11  ;;  %v3282_v54 = vpop.f32.mrb[45].mxu1 }
 0x34b   : > { %v3305_v45 = vmax.f32 %v3177_v62, %v3282_v54 }
 0x34c   : > { %3314 = vst [vmem:[%s197_s6 + $0x28] sm:$0xff] %v3306_v31 }
 0x34d   : > { %3313 = vst [vmem:[%s197_s6 + $0x20] sm:$0xff] %v3305_v45  ;;  %v4592_v35 = vpop.f32.mrb[46].mxu1 }
 0x34e   : > { %v3308_v47 = vmax.f32 %v4548_v63, %v4592_v35  ;;  %v3292_v48 = vpop.f32.mrb[47].mxu1 }
 0x34f   : > { %v3307_v39 = vmax.f32 %v3187_v1, %v3292_v48 }
 0x350   : > { %3316 = vst [vmem:[%s197_s6 + $0x38] sm:$0xff] %v3308_v47 }
 0x351   : > { %3315 = vst [vmem:[%s197_s6 + $0x30] sm:$0xff] %v3307_v39 }
 0x352 PF: > { %s14_s15 = sadd.s32 1, %s5001_s15  }
 0x353   : > { %p11_p4 = scmp.ge.s32.totalorder %s14_s15, 4  }
 0x355   :  { %13 = sbr.rel (!%p11_p4) target bundleno = 1 (0x1), region = 76 }

// kernel: _lambda_.7
= control target key start
LH: loop header
LB: loop body
LE: loop exit
PB: predicated region body
PF: predicated region fallthrough
CT: control target
= control target key end

     0   :  { %vm2169_vm0 = vmmov 0   ;;  %s2720_s1 = inlined_call_operand.vmem [shape: bf16[2048,128], index: 1, kind: input, shape index: {}]   ;;  %s2721_s0 = inlined_call_operand.vmem [shape: f32[8,2048], index: 0, kind: input, shape index: {}]   ;;  %s2722_s3 = inlined_call_operand.vmem [shape: bf16[128,128], index: 3, kind: input, shape index: {}]   ;;  %s2723_s5 = inlined_call_operand.vmem [shape: bf16[128,128], index: 5, kind: input, shape index: {}]   ;;  %s2724_s2 = inlined_call_operand.vmem [shape: f32[1,128], index: 2, kind: input, shape index: {}]   ;;  %s2725_s4 = inlined_call_operand.vmem [shape: f32[1,128], index: 4, kind: input, shape index: {}]   ;;  %s2726_s6 = inlined_call_operand.vmem [shape: f32[1,128], index: 6, kind: input, shape index: {}]   ;;  %s2727_s7 = inlined_call_operand.vmem [shape: f32[8,128], index: 7, kind: output, shape index: {}]  }
   0x1   :  { %v2024_v0 = vld [vmem:[%s2720_s1 + $0x40] sm:$0xff]   ;;  %v2028_v4 = vld [vmem:[%s2720_s1 + $0x48] sm:$0xff]   ;;  %v2032_v8 = vld [vmem:[%s2720_s1 + $0x50] sm:$0xff]  }
   0x2   :  { %v2025_v1 = vld [vmem:[%s2720_s1 + $0xc0] sm:$0xff]   ;;  %1788 = vmatprep.subr.bf16.mxu0 %v2024_v0  ;;  %v2029_v5 = vld [vmem:[%s2720_s1 + $0xc8] sm:$0xff]   ;;  %v2033_v9 = vld [vmem:[%s2720_s1 + $0xd0] sm:$0xff]  }
   0x3   :  { %v2026_v2 = vld [vmem:[%s2720_s1] sm:$0xff]   ;;  %1810 = vmatprep.subr.bf16.mxu1 %v2025_v1  ;;  %v2030_v6 = vld [vmem:[%s2720_s1 + $0x8] sm:$0xff]   ;;  %v2034_v10 = vld [vmem:[%s2720_s1 + $0x10] sm:$0xff]  }
   0x4   :  { %v2027_v3 = vld [vmem:[%s2720_s1 + $0x80] sm:$0xff]   ;;  %1789 = vmatpush3.bf16.msra.mxu0 %v2026_v2  ;;  %v2031_v7 = vld [vmem:[%s2720_s1 + $0x88] sm:$0xff]   ;;  %v2035_v11 = vld [vmem:[%s2720_s1 + $0x90] sm:$0xff]  }
   0x5   :  { %1811 = vmatpush3.bf16.msra.mxu1 %v2027_v3  ;;  %1790 = vmatprep.subr.bf16.mxu0 %v2028_v4  ;;  %v2036_v12 = vld [vmem:[%s2720_s1 + $0x58] sm:$0xff]   ;;  %v2040_v16 = vld [vmem:[%s2720_s1 + $0x60] sm:$0xff]   ;;  %v2044_v20 = vld [vmem:[%s2720_s1 + $0x68] sm:$0xff]  }
   0x6   :  { %1812 = vmatprep.subr.bf16.mxu1 %v2029_v5  ;;  %v2037_v13 = vld [vmem:[%s2720_s1 + $0xd8] sm:$0xff]   ;;  %v2041_v17 = vld [vmem:[%s2720_s1 + $0xe0] sm:$0xff]   ;;  %v2045_v21 = vld [vmem:[%s2720_s1 + $0xe8] sm:$0xff]  }
   0x7   :  { %v2038_v14 = vld [vmem:[%s2720_s1 + $0x18] sm:$0xff]   ;;  %v2042_v18 = vld [vmem:[%s2720_s1 + $0x20] sm:$0xff]   ;;  %v2046_v22 = vld [vmem:[%s2720_s1 + $0x28] sm:$0xff]  }
   0x8   :  { %1791 = vmatpush3.bf16.msra.mxu0 %v2030_v6  ;;  %v2039_v15 = vld [vmem:[%s2720_s1 + $0x98] sm:$0xff]   ;;  %v2043_v19 = vld [vmem:[%s2720_s1 + $0xa0] sm:$0xff]   ;;  %v2047_v23 = vld [vmem:[%s2720_s1 + $0xa8] sm:$0xff]  }
   0x9   :  { %1813 = vmatpush3.bf16.msra.mxu1 %v2031_v7  ;;  %1792 = vmatprep.subr.bf16.mxu0 %v2032_v8  ;;  %v2048_v24 = vld [vmem:[%s2720_s1 + $0x70] sm:$0xff]   ;;  %v2052_v28 = vld [vmem:[%s2720_s1 + $0x78] sm:$0xff]   ;;  %v28_v32 = vld [vmem:[%s2721_s0 + $0x8] sm:$0xff] }
   0xa   :  { %1814 = vmatprep.subr.bf16.mxu1 %v2033_v9  ;;  %v2049_v25 = vld [vmem:[%s2720_s1 + $0xf0] sm:$0xff]   ;;  %v2053_v29 = vld [vmem:[%s2720_s1 + $0xf8] sm:$0xff]   ;;  %v27_v34 = vld [vmem:[%s2721_s0] sm:$0xff]  ;;  %v44_v35 = vpack.c.bf16 %v28_v32, %v28_v32 }
   0xb   :  { %v2050_v26 = vld [vmem:[%s2720_s1 + $0x30] sm:$0xff]   ;;  %v2054_v30 = vld [vmem:[%s2720_s1 + $0x38] sm:$0xff]   ;;  %v43_v37 = vpack.c.bf16 %v27_v34, %v27_v34  ;;  %v2056_v40 = vld [vmem:[%s2720_s1 + $0x140] sm:$0xff]  }
   0xc   :  { %1793 = vmatpush3.bf16.msra.mxu0 %v2034_v10  ;;  %v2051_v27 = vld [vmem:[%s2720_s1 + $0xb0] sm:$0xff]   ;;  %v2055_v31 = vld [vmem:[%s2720_s1 + $0xb8] sm:$0xff]   ;;  %1122 = vmatprep.mubr.bf16.mxu0 %v44_v35  ;;  %v2057_v41 = vld [vmem:[%s2720_s1 + $0x1c0] sm:$0xff]  }
   0xd   :  { %1815 = vmatpush3.bf16.msra.mxu1 %v2035_v11  ;;  %1794 = vmatprep.subr.bf16.mxu0 %v2036_v12  ;;  %v30_v33 = vld [vmem:[%s2721_s0 + $0x18] sm:$0xff]  ;;  %v29_v38 = vld [vmem:[%s2721_s0 + $0x10] sm:$0xff]  ;;  %v2058_v42 = vld [vmem:[%s2720_s1 + $0x100] sm:$0xff]  }
   0xe   :  { %1816 = vmatprep.subr.bf16.mxu1 %v2037_v13  ;;  %v46_v36 = vpack.c.bf16 %v30_v33, %v30_v33  ;;  %v45_v39 = vpack.c.bf16 %v29_v38, %v29_v38  ;;  %v2059_v43 = vld [vmem:[%s2720_s1 + $0x180] sm:$0xff]   ;;  %v2060_v44 = vld [vmem:[%s2720_s1 + $0x148] sm:$0xff]   ;;  %v2064_v48 = vld [vmem:[%s2720_s1 + $0x150] sm:$0xff]  }
   0xf   :  { %v2061_v45 = vld [vmem:[%s2720_s1 + $0x1c8] sm:$0xff]   ;;  %v2065_v49 = vld [vmem:[%s2720_s1 + $0x1d0] sm:$0xff]   ;;  %v2068_v52 = vld [vmem:[%s2720_s1 + $0x158] sm:$0xff]  }
  0x10   :  { %1795 = vmatpush3.bf16.msra.mxu0 %v2038_v14  ;;  %1162 = vmatprep.mubr.bf16.mxu1 %v46_v36  ;;  %v2062_v46 = vld [vmem:[%s2720_s1 + $0x108] sm:$0xff]   ;;  %v2066_v50 = vld [vmem:[%s2720_s1 + $0x110] sm:$0xff]   ;;  %v2069_v53 = vld [vmem:[%s2720_s1 + $0x1d8] sm:$0xff]  }
  0x11   :  { %1817 = vmatpush3.bf16.msra.mxu1 %v2039_v15  ;;  %1796 = vmatprep.subr.bf16.mxu0 %v2040_v16  ;;  %v2063_v47 = vld [vmem:[%s2720_s1 + $0x188] sm:$0xff]   ;;  %v2067_v51 = vld [vmem:[%s2720_s1 + $0x190] sm:$0xff]   ;;  %v2070_v54 = vld [vmem:[%s2720_s1 + $0x118] sm:$0xff]  }
  0x12   :  { %1818 = vmatprep.subr.bf16.mxu1 %v2041_v17  ;;  %v2071_v55 = vld [vmem:[%s2720_s1 + $0x198] sm:$0xff]   ;;  %v2072_v56 = vld [vmem:[%s2720_s1 + $0x160] sm:$0xff]   ;;  %v2076_v60 = vld [vmem:[%s2720_s1 + $0x168] sm:$0xff]  }
  0x13   :  { %v2073_v57 = vld [vmem:[%s2720_s1 + $0x1e0] sm:$0xff]   ;;  %v2077_v61 = vld [vmem:[%s2720_s1 + $0x1e8] sm:$0xff]   ;;  %v2080_v0 = vld [vmem:[%s2720_s1 + $0x170] sm:$0xff]  }
  0x14   :  { %1797 = vmatpush3.bf16.msra.mxu0 %v2042_v18  ;;  %v2074_v58 = vld [vmem:[%s2720_s1 + $0x120] sm:$0xff]   ;;  %v2078_v62 = vld [vmem:[%s2720_s1 + $0x128] sm:$0xff]   ;;  %v2081_v1 = vld [vmem:[%s2720_s1 + $0x1f0] sm:$0xff]  }
  0x15   :  { %1819 = vmatpush3.bf16.msra.mxu1 %v2043_v19  ;;  %1798 = vmatprep.subr.bf16.mxu0 %v2044_v20  ;;  %v2075_v59 = vld [vmem:[%s2720_s1 + $0x1a0] sm:$0xff]   ;;  %v2079_v63 = vld [vmem:[%s2720_s1 + $0x1a8] sm:$0xff]   ;;  %v2082_v2 = vld [vmem:[%s2720_s1 + $0x130] sm:$0xff]  }
  0x16   :  { %1820 = vmatprep.subr.bf16.mxu1 %v2045_v21  ;;  %v2083_v3 = vld [vmem:[%s2720_s1 + $0x1b0] sm:$0xff]   ;;  %v2084_v4 = vld [vmem:[%s2720_s1 + $0x178] sm:$0xff]   ;;  %v32_v8 = vld [vmem:[%s2721_s0 + $0x28] sm:$0xff] }
  0x17   :  { %v2085_v5 = vld [vmem:[%s2720_s1 + $0x1f8] sm:$0xff]   ;;  %v48_v10 = vpack.c.bf16 %v32_v8, %v32_v8  ;;  %v31_v12 = vld [vmem:[%s2721_s0 + $0x20] sm:$0xff]  ;;  %v33_v13 = vld [vmem:[%s2721_s0 + $0x30] sm:$0xff] }
  0x18   :  { %1799 = vmatpush3.bf16.msra.mxu0 %v2046_v22  ;;  %v2086_v6 = vld [vmem:[%s2720_s1 + $0x138] sm:$0xff]   ;;  %v47_v14 = vpack.c.bf16 %v31_v12, %v31_v12  ;;  %v49_v15 = vpack.c.bf16 %v33_v13, %v33_v13  ;;  %v2088_v16 = vld [vmem:[%s2720_s1 + $0x240] sm:$0xff]   ;;  %v2092_v20 = vld [vmem:[%s2720_s1 + $0x248] sm:$0xff]  }
  0x19   :  { %1821 = vmatpush3.bf16.msra.mxu1 %v2047_v23  ;;  %1800 = vmatprep.subr.bf16.mxu0 %v2048_v24  ;;  %v2087_v7 = vld [vmem:[%s2720_s1 + $0x1b8] sm:$0xff]   ;;  %v2089_v17 = vld [vmem:[%s2720_s1 + $0x2c0] sm:$0xff]   ;;  %v2093_v21 = vld [vmem:[%s2720_s1 + $0x2c8] sm:$0xff]  }
  0x1a   :  { %1822 = vmatprep.subr.bf16.mxu1 %v2049_v25  ;;  %v34_v9 = vld [vmem:[%s2721_s0 + $0x38] sm:$0xff]  ;;  %v2090_v18 = vld [vmem:[%s2720_s1 + $0x200] sm:$0xff]   ;;  %v2094_v22 = vld [vmem:[%s2720_s1 + $0x208] sm:$0xff]  }
  0x1b   :  { %v50_v11 = vpack.c.bf16 %v34_v9, %v34_v9  ;;  %v2091_v19 = vld [vmem:[%s2720_s1 + $0x280] sm:$0xff]   ;;  %v2095_v23 = vld [vmem:[%s2720_s1 + $0x288] sm:$0xff]   ;;  %v2096_v24 = vld [vmem:[%s2720_s1 + $0x250] sm:$0xff]  }
  0x1c   :  { %1801 = vmatpush3.bf16.msra.mxu0 %v2050_v26  ;;  %v2097_v25 = vld [vmem:[%s2720_s1 + $0x2d0] sm:$0xff]   ;;  %v2104_v32 = vld [vmem:[%s2720_s1 + $0x260] sm:$0xff]   ;;  %v2108_v36 = vld [vmem:[%s2720_s1 + $0x268] sm:$0xff]  }
  0x1d   :  { %1823 = vmatpush3.bf16.msra.mxu1 %v2051_v27  ;;  %1802 = vmatprep.subr.bf16.mxu0 %v2052_v28  ;;  %v2098_v26 = vld [vmem:[%s2720_s1 + $0x210] sm:$0xff]   ;;  %v2100_v28 = vld [vmem:[%s2720_s1 + $0x258] sm:$0xff]   ;;  %v2105_v33 = vld [vmem:[%s2720_s1 + $0x2e0] sm:$0xff]  }
  0x1e   :  { %1824 = vmatprep.subr.bf16.mxu1 %v2053_v29  ;;  %v2099_v27 = vld [vmem:[%s2720_s1 + $0x290] sm:$0xff]   ;;  %v2101_v29 = vld [vmem:[%s2720_s1 + $0x2d8] sm:$0xff]   ;;  %v2106_v34 = vld [vmem:[%s2720_s1 + $0x220] sm:$0xff]  }
  0x1f   :  { %v2107_v35 = vld [vmem:[%s2720_s1 + $0x2a0] sm:$0xff]   ;;  %v2110_v38 = vld [vmem:[%s2720_s1 + $0x228] sm:$0xff]  }
  0x20   :  { %1803 = vmatpush3.bf16.msra.mxu0 %v2054_v30  ;;  %v2102_v30 = vld [vmem:[%s2720_s1 + $0x218] sm:$0xff]   ;;  %v2136_v8 = vld [vmem:[%s2720_s1 + $0x360] sm:$0xff]   ;;  %v2140_v12 = vld [vmem:[%s2720_s1 + $0x368] sm:$0xff]  }
  0x21   :  { %1825 = vmatpush3.bf16.msra.mxu1 %v2055_v31  ;;  %1832 = vmatprep.subr.bf16.mxu0 %v2056_v40  ;;  %v2103_v31 = vld [vmem:[%s2720_s1 + $0x298] sm:$0xff]   ;;  %v2112_v40 = vld [vmem:[%s2720_s1 + $0x270] sm:$0xff]   ;;  %v2137_v9 = vld [vmem:[%s2720_s1 + $0x3e0] sm:$0xff]  }
  0x22   :  { %1854 = vmatprep.subr.bf16.mxu1 %v2057_v41  ;;  %v2113_v41 = vld [vmem:[%s2720_s1 + $0x2f0] sm:$0xff]   ;;  %v2141_v13 = vld [vmem:[%s2720_s1 + $0x3e8] sm:$0xff]  }
  0x23   :  { %1123 = vmatmul.mubr.bf16.vlgmr.msra.gmra.mrb[0].mxu0 %v43_v37  ;;  %v2109_v37 = vld [vmem:[%s2720_s1 + $0x2e8] sm:$0xff]  }
  0x24   :  { %1163 = vmatmul.mubr.bf16.vlgmr.msra.gmra.mrb[0].mxu1 %v45_v39  ;;  %1833 = vmatpush3.bf16.msra.mxu0 %v2058_v42  ;;  %v2111_v39 = vld [vmem:[%s2720_s1 + $0x2a8] sm:$0xff]   ;;  %v2114_v42 = vld [vmem:[%s2720_s1 + $0x230] sm:$0xff]  }
  0x25   :  { %1855 = vmatpush3.bf16.msra.mxu1 %v2059_v43  ;;  %1834 = vmatprep.subr.bf16.mxu0 %v2060_v44  ;;  %v2115_v43 = vld [vmem:[%s2720_s1 + $0x2b0] sm:$0xff]   ;;  %v2116_v44 = vld [vmem:[%s2720_s1 + $0x278] sm:$0xff]  }
  0x26   :  { %1856 = vmatprep.subr.bf16.mxu1 %v2061_v45  ;;  %1202 = vmatprep.mubr.bf16.mxu0 %v48_v10  ;;  %v2117_v45 = vld [vmem:[%s2720_s1 + $0x2f8] sm:$0xff]   ;;  %v2138_v10 = vld [vmem:[%s2720_s1 + $0x320] sm:$0xff]  }
  0x27   :  { %1242 = vmatprep.mubr.bf16.mxu1 %v50_v11  ;;  %v2139_v11 = vld [vmem:[%s2720_s1 + $0x3a0] sm:$0xff]  }
  0x28   :  { %1835 = vmatpush3.bf16.msra.mxu0 %v2062_v46  ;;  %v2118_v46 = vld [vmem:[%s2720_s1 + $0x238] sm:$0xff]  }
  0x29   :  { %1857 = vmatpush3.bf16.msra.mxu1 %v2063_v47  ;;  %1836 = vmatprep.subr.bf16.mxu0 %v2064_v48  ;;  %v2119_v47 = vld [vmem:[%s2720_s1 + $0x2b8] sm:$0xff]   ;;  %v36_v48 = vld [vmem:[%s2721_s0 + $0x48] sm:$0xff] }
  0x2a   :  { %1858 = vmatprep.subr.bf16.mxu1 %v2065_v49  ;;  %v52_v49 = vpack.c.bf16 %v36_v48, %v36_v48  ;;  %v1641_v48 = vld [vmem:[%s2724_s2] ss:$0 sm:$0xff] }
  0x2c   :  { %1837 = vmatpush3.bf16.msra.mxu0 %v2066_v50  ;;  %v38_v50 = vld [vmem:[%s2721_s0 + $0x58] sm:$0xff] }
  0x2d   :  { %1859 = vmatpush3.bf16.msra.mxu1 %v2067_v51  ;;  %1838 = vmatprep.subr.bf16.mxu0 %v2068_v52  ;;  %v35_v51 = vld [vmem:[%s2721_s0 + $0x40] sm:$0xff]  ;;  %v37_v52 = vld [vmem:[%s2721_s0 + $0x50] sm:$0xff] }
  0x2e   :  { %1860 = vmatprep.subr.bf16.mxu1 %v2069_v53  ;;  %v54_v53 = vpack.c.bf16 %v38_v50, %v38_v50 }
  0x30   :  { %1839 = vmatpush3.bf16.msra.mxu0 %v2070_v54  ;;  %v51_v54 = vpack.c.bf16 %v35_v51, %v35_v51 }
  0x31   :  { %1861 = vmatpush3.bf16.msra.mxu1 %v2071_v55  ;;  %1840 = vmatprep.subr.bf16.mxu0 %v2072_v56  ;;  %v53_v55 = vpack.c.bf16 %v37_v52, %v37_v52  ;;  %v2120_v56 = vld [vmem:[%s2720_s1 + $0x340] sm:$0xff]  }
  0x32   :  { %1862 = vmatprep.subr.bf16.mxu1 %v2073_v57  ;;  %v2121_v57 = vld [vmem:[%s2720_s1 + $0x3c0] sm:$0xff]  }
  0x34   :  { %1841 = vmatpush3.bf16.msra.mxu0 %v2074_v58  ;;  %v2122_v58 = vld [vmem:[%s2720_s1 + $0x300] sm:$0xff]  }
  0x35   :  { %1863 = vmatpush3.bf16.msra.mxu1 %v2075_v59  ;;  %1842 = vmatprep.subr.bf16.mxu0 %v2076_v60  ;;  %v2123_v59 = vld [vmem:[%s2720_s1 + $0x380] sm:$0xff]   ;;  %v2124_v60 = vld [vmem:[%s2720_s1 + $0x348] sm:$0xff]  }
  0x36   :  { %1864 = vmatprep.subr.bf16.mxu1 %v2077_v61  ;;  %v2125_v61 = vld [vmem:[%s2720_s1 + $0x3c8] sm:$0xff]  }
  0x38   :  { %1843 = vmatpush3.bf16.msra.mxu0 %v2078_v62  ;;  %v2126_v62 = vld [vmem:[%s2720_s1 + $0x308] sm:$0xff]  }
  0x39   :  { %1865 = vmatpush3.bf16.msra.mxu1 %v2079_v63  ;;  %1844 = vmatprep.subr.bf16.mxu0 %v2080_v0  ;;  %v2127_v63 = vld [vmem:[%s2720_s1 + $0x388] sm:$0xff]   ;;  %v2128_v0 = vld [vmem:[%s2720_s1 + $0x350] sm:$0xff]  }
  0x3a   :  { %1866 = vmatprep.subr.bf16.mxu1 %v2081_v1  ;;  %v2129_v1 = vld [vmem:[%s2720_s1 + $0x3d0] sm:$0xff]  }
  0x3c   :  { %1845 = vmatpush3.bf16.msra.mxu0 %v2082_v2  ;;  %v2130_v2 = vld [vmem:[%s2720_s1 + $0x310] sm:$0xff]  }
  0x3d   :  { %1867 = vmatpush3.bf16.msra.mxu1 %v2083_v3  ;;  %1846 = vmatprep.subr.bf16.mxu0 %v2084_v4  ;;  %v2131_v3 = vld [vmem:[%s2720_s1 + $0x390] sm:$0xff]   ;;  %v2132_v4 = vld [vmem:[%s2720_s1 + $0x358] sm:$0xff]  }
  0x3e   :  { %1868 = vmatprep.subr.bf16.mxu1 %v2085_v5  ;;  %v2133_v5 = vld [vmem:[%s2720_s1 + $0x3d8] sm:$0xff]  }
  0x40   :  { %1847 = vmatpush3.bf16.msra.mxu0 %v2086_v6  ;;  %v2134_v6 = vld [vmem:[%s2720_s1 + $0x318] sm:$0xff]  }
  0x41   :  { %1869 = vmatpush3.bf16.msra.mxu1 %v2087_v7  ;;  %1876 = vmatprep.subr.bf16.mxu0 %v2088_v16  ;;  %v2135_v7 = vld [vmem:[%s2720_s1 + $0x398] sm:$0xff]   ;;  %v2144_v16 = vld [vmem:[%s2720_s1 + $0x370] sm:$0xff]  }
  0x42   :  { %1898 = vmatprep.subr.bf16.mxu1 %v2089_v17  ;;  %v2145_v17 = vld [vmem:[%s2720_s1 + $0x3f0] sm:$0xff]  }
  0x43   :  { %1203 = vmatmul.mubr.bf16.vlgmr.msra.gmra.mrb[4].mxu0 %v47_v14  ;;  %v2142_v14 = vld [vmem:[%s2720_s1 + $0x328] sm:$0xff]  }
  0x44   :  { %1243 = vmatmul.mubr.bf16.vlgmr.msra.gmra.mrb[4].mxu1 %v49_v15  ;;  %1877 = vmatpush3.bf16.msra.mxu0 %v2090_v18  ;;  %v2143_v15 = vld [vmem:[%s2720_s1 + $0x3a8] sm:$0xff]   ;;  %v2146_v18 = vld [vmem:[%s2720_s1 + $0x330] sm:$0xff]  }
  0x45   :  { %1899 = vmatpush3.bf16.msra.mxu1 %v2091_v19  ;;  %1878 = vmatprep.subr.bf16.mxu0 %v2092_v20  ;;  %v2147_v19 = vld [vmem:[%s2720_s1 + $0x3b0] sm:$0xff]   ;;  %v2148_v20 = vld [vmem:[%s2720_s1 + $0x378] sm:$0xff]  }
  0x46   :  { %1900 = vmatprep.subr.bf16.mxu1 %v2093_v21  ;;  %1282 = vmatprep.mubr.bf16.mxu0 %v52_v49  ;;  %v2149_v21 = vld [vmem:[%s2720_s1 + $0x3f8] sm:$0xff]  }
  0x47   :  { %1322 = vmatprep.mubr.bf16.mxu1 %v54_v53 }
  0x48   :  { %1879 = vmatpush3.bf16.msra.mxu0 %v2094_v22  ;;  %v2150_v22 = vld [vmem:[%s2720_s1 + $0x338] sm:$0xff]  }
  0x49   :  { %1901 = vmatpush3.bf16.msra.mxu1 %v2095_v23  ;;  %1880 = vmatprep.subr.bf16.mxu0 %v2096_v24  ;;  %v2151_v23 = vld [vmem:[%s2720_s1 + $0x3b8] sm:$0xff]   ;;  %v40_v24 = vld [vmem:[%s2721_s0 + $0x68] sm:$0xff] }
  0x4a   :  { %1902 = vmatprep.subr.bf16.mxu1 %v2097_v25  ;;  %v42_v25 = vld [vmem:[%s2721_s0 + $0x78] sm:$0xff] }
  0x4c   :  { %1881 = vmatpush3.bf16.msra.mxu0 %v2098_v26  ;;  %v39_v26 = vld [vmem:[%s2721_s0 + $0x60] sm:$0xff] }
  0x4d   :  { %1903 = vmatpush3.bf16.msra.mxu1 %v2099_v27  ;;  %1882 = vmatprep.subr.bf16.mxu0 %v2100_v28  ;;  %v56_v27 = vpack.c.bf16 %v40_v24, %v40_v24  ;;  %v58_v28 = vpack.c.bf16 %v42_v25, %v42_v25 }
  0x4e   :  { %1904 = vmatprep.subr.bf16.mxu1 %v2101_v29  ;;  %v55_v29 = vpack.c.bf16 %v39_v26, %v39_v26 }
  0x50   :  { %1883 = vmatpush3.bf16.msra.mxu0 %v2102_v30  ;;  %v41_v30 = vld [vmem:[%s2721_s0 + $0x70] sm:$0xff] }
  0x51   :  { %1905 = vmatpush3.bf16.msra.mxu1 %v2103_v31  ;;  %1884 = vmatprep.subr.bf16.mxu0 %v2104_v32  ;;  %v57_v31 = vpack.c.bf16 %v41_v30, %v41_v30  ;;  %v2168_v32 = vmov 0.0  }
  0x52   :  { %1906 = vmatprep.subr.bf16.mxu1 %v2105_v33  ;;  %v2152_v33 = vld [vmem:[%s2722_s3] sm:$0xff]  }
  0x54   :  { %1885 = vmatpush3.bf16.msra.mxu0 %v2106_v34  ;;  %v2153_v34 = vld [vmem:[%s2722_s3 + $0x8] sm:$0xff]  }
  0x55   :  { %1907 = vmatpush3.bf16.msra.mxu1 %v2107_v35  ;;  %1886 = vmatprep.subr.bf16.mxu0 %v2108_v36  ;;  %v2154_v35 = vld [vmem:[%s2722_s3 + $0x10] sm:$0xff]   ;;  %v2155_v36 = vld [vmem:[%s2722_s3 + $0x18] sm:$0xff]  }
  0x56   :  { %1908 = vmatprep.subr.bf16.mxu1 %v2109_v37  ;;  %v2156_v37 = vld [vmem:[%s2722_s3 + $0x20] sm:$0xff]  }
  0x58   :  { %1887 = vmatpush3.bf16.msra.mxu0 %v2110_v38  ;;  %v2157_v38 = vld [vmem:[%s2722_s3 + $0x28] sm:$0xff]  }
  0x59   :  { %1909 = vmatpush3.bf16.msra.mxu1 %v2111_v39  ;;  %1888 = vmatprep.subr.bf16.mxu0 %v2112_v40  ;;  %v2158_v39 = vld [vmem:[%s2722_s3 + $0x30] sm:$0xff]   ;;  %v2159_v40 = vld [vmem:[%s2722_s3 + $0x38] sm:$0xff]  }
  0x5a   :  { %1910 = vmatprep.subr.bf16.mxu1 %v2113_v41  ;;  %v2160_v41 = vld [vmem:[%s2723_s5] sm:$0xff]  }
  0x5c   :  { %1889 = vmatpush3.bf16.msra.mxu0 %v2114_v42  ;;  %v2161_v42 = vld [vmem:[%s2723_s5 + $0x8] sm:$0xff]  }
  0x5d   :  { %1911 = vmatpush3.bf16.msra.mxu1 %v2115_v43  ;;  %1890 = vmatprep.subr.bf16.mxu0 %v2116_v44  ;;  %v2162_v43 = vld [vmem:[%s2723_s5 + $0x10] sm:$0xff]   ;;  %v2163_v44 = vld [vmem:[%s2723_s5 + $0x18] sm:$0xff]  }
  0x5e   :  { %1912 = vmatprep.subr.bf16.mxu1 %v2117_v45  ;;  %v2164_v45 = vld [vmem:[%s2723_s5 + $0x20] sm:$0xff]  }
  0x60   :  { %1891 = vmatpush3.bf16.msra.mxu0 %v2118_v46 }
  0x61   :  { %1913 = vmatpush3.bf16.msra.mxu1 %v2119_v47  ;;  %1920 = vmatprep.subr.bf16.mxu0 %v2120_v56 }
  0x62   :  { %1942 = vmatprep.subr.bf16.mxu1 %v2121_v57  ;;  %v2165_v57 = vld [vmem:[%s2723_s5 + $0x28] sm:$0xff]  }
  0x63   :  { %1283 = vmatmul.mubr.bf16.vlgmr.msra.gmra.mrb[8].mxu0 %v51_v54 }
  0x64   :  { %1323 = vmatmul.mubr.bf16.vlgmr.msra.gmra.mrb[8].mxu1 %v53_v55  ;;  %1921 = vmatpush3.bf16.msra.mxu0 %v2122_v58 }
  0x65   :  { %1943 = vmatpush3.bf16.msra.mxu1 %v2123_v59  ;;  %1922 = vmatprep.subr.bf16.mxu0 %v2124_v60 }
  0x66   :  { %1944 = vmatprep.subr.bf16.mxu1 %v2125_v61  ;;  %1362 = vmatprep.mubr.bf16.mxu0 %v56_v27 }
  0x67   :  { %1402 = vmatprep.mubr.bf16.mxu1 %v58_v28 }
  0x68   :  { %1923 = vmatpush3.bf16.msra.mxu0 %v2126_v62 }
  0x69   :  { %1945 = vmatpush3.bf16.msra.mxu1 %v2127_v63  ;;  %1924 = vmatprep.subr.bf16.mxu0 %v2128_v0 }
  0x6a   :  { %1946 = vmatprep.subr.bf16.mxu1 %v2129_v1 }
  0x6c   :  { %1925 = vmatpush3.bf16.msra.mxu0 %v2130_v2 }
  0x6d   :  { %1947 = vmatpush3.bf16.msra.mxu1 %v2131_v3  ;;  %1926 = vmatprep.subr.bf16.mxu0 %v2132_v4 }
  0x6e   :  { %1948 = vmatprep.subr.bf16.mxu1 %v2133_v5 }
  0x70   :  { %1927 = vmatpush3.bf16.msra.mxu0 %v2134_v6 }
  0x71   :  { %1949 = vmatpush3.bf16.msra.mxu1 %v2135_v7  ;;  %1928 = vmatprep.subr.bf16.mxu0 %v2136_v8 }
  0x72   :  { %1950 = vmatprep.subr.bf16.mxu1 %v2137_v9 }
  0x74   :  { %1929 = vmatpush3.bf16.msra.mxu0 %v2138_v10 }
  0x75   :  { %1951 = vmatpush3.bf16.msra.mxu1 %v2139_v11  ;;  %1930 = vmatprep.subr.bf16.mxu0 %v2140_v12 }
  0x76   :  { %1952 = vmatprep.subr.bf16.mxu1 %v2141_v13 }
  0x78   :  { %1931 = vmatpush3.bf16.msra.mxu0 %v2142_v14 }
  0x79   :  { %1953 = vmatpush3.bf16.msra.mxu1 %v2143_v15  ;;  %1932 = vmatprep.subr.bf16.mxu0 %v2144_v16 }
  0x7a   :  { %1954 = vmatprep.subr.bf16.mxu1 %v2145_v17 }
  0x7c   :  { %1933 = vmatpush3.bf16.msra.mxu0 %v2146_v18 }
  0x7d   :  { %1955 = vmatpush3.bf16.msra.mxu1 %v2147_v19  ;;  %1934 = vmatprep.subr.bf16.mxu0 %v2148_v20 }
  0x7e   :  { %1956 = vmatprep.subr.bf16.mxu1 %v2149_v21 }
  0x80   :  { %1935 = vmatpush3.bf16.msra.mxu0 %v2150_v22 }
  0x81   :  { %1957 = vmatpush3.bf16.msra.mxu1 %v2151_v23  ;;  %1982 = vmatprep.subr.bf16.mxu0 %v2168_v32 }
  0x82   :  { %2002 = vmatprep.subr.bf16.mxu1 %v2168_v32 }
  0x83   :  { %1363 = vmatmul.mubr.bf16.vlgmr.msra.gmra.mrb[12].mxu0 %v55_v29 }
  0x84   :  { %1403 = vmatmul.mubr.bf16.vlgmr.msra.gmra.mrb[12].mxu1 %v57_v31  ;;  %1983 = vmatpush3.bf16.msra.mxu0 %v2152_v33 }
  0x85   :  { %1984 = vmatprep.subr.bf16.mxu0 %v2168_v32  ;;  %1998 = vmatprep.mubr.msk.bf16.mxu0 %vm2169_vm0, %v2168_v32 }
  0x86   :  { %2018 = vmatprep.mubr.msk.bf16.mxu1 %vm2169_vm0, %v2168_v32  ;;  %2003 = vmatpush3.bf16.msra.mxu1 %v2160_v41 }
  0x87   :  { %2004 = vmatprep.subr.bf16.mxu1 %v2168_v32 }
  0x88   :  { %1985 = vmatpush3.bf16.msra.mxu0 %v2153_v34 }
  0x89   :  { %1986 = vmatprep.subr.bf16.mxu0 %v2168_v32 }
  0x8a   :  { %2005 = vmatpush3.bf16.msra.mxu1 %v2161_v42 }
  0x8b   :  { %2006 = vmatprep.subr.bf16.mxu1 %v2168_v32 }
  0x8c   :  { %1987 = vmatpush3.bf16.msra.mxu0 %v2154_v35  ;;  %v2166_v35 = vld [vmem:[%s2723_s5 + $0x30] sm:$0xff]  }
  0x8d   :  { %1988 = vmatprep.subr.bf16.mxu0 %v2168_v32 }
  0x8e   :  { %2007 = vmatpush3.bf16.msra.mxu1 %v2162_v43 }
  0x8f   :  { %2008 = vmatprep.subr.bf16.mxu1 %v2168_v32 }
  0x90   :  { %1989 = vmatpush3.bf16.msra.mxu0 %v2155_v36  ;;  %v2167_v36 = vld [vmem:[%s2723_s5 + $0x38] sm:$0xff]  }
  0x91   :  { %1990 = vmatprep.subr.bf16.mxu0 %v2168_v32 }
  0x92   :  { %2009 = vmatpush3.bf16.msra.mxu1 %v2163_v44 }
  0x93   :  { %2010 = vmatprep.subr.bf16.mxu1 %v2168_v32 }
  0x94   :  { %1991 = vmatpush3.bf16.msra.mxu0 %v2156_v37  ;;  %v1770_v37 = vld [vmem:[%s2725_s4] ss:$0 sm:$0xff] }
  0x95   :  { %1992 = vmatprep.subr.bf16.mxu0 %v2168_v32 }
  0x96   :  { %2011 = vmatpush3.bf16.msra.mxu1 %v2164_v45 }
  0x97   :  { %2012 = vmatprep.subr.bf16.mxu1 %v2168_v32 }
  0x98   :  { %1993 = vmatpush3.bf16.msra.mxu0 %v2157_v38 }
  0x99   :  { %1994 = vmatprep.subr.bf16.mxu0 %v2168_v32 }
  0x9a   :  { %2013 = vmatpush3.bf16.msra.mxu1 %v2165_v57 }
  0x9b   :  { %2014 = vmatprep.subr.bf16.mxu1 %v2168_v32 }
  0x9c   :  { %1995 = vmatpush3.bf16.msra.mxu0 %v2158_v39 }
  0x9d   :  { %1996 = vmatprep.subr.bf16.mxu0 %v2168_v32 }
  0x9e   :  { %2015 = vmatpush3.bf16.msra.mxu1 %v2166_v35 }
  0x9f   :  { %2016 = vmatprep.subr.bf16.mxu1 %v2168_v32  ;;  %v1779_v32 = vld [vmem:[%s2726_s6] ss:$0 sm:$0xff] }
  0xa0   :  { %1997 = vmatpush3.bf16.msra.mxu0 %v2159_v40 }
  0xa2   :  { %2017 = vmatpush3.bf16.msra.mxu1 %v2167_v36 }
  0xf6   :  { %v1804_v46 = vpop.f32.mrb[0].mxu0 }
  0xf7   :  { %v1826_v47 = vpop.f32.mrb[0].mxu1  ;;  %v1805_v49 = vpop.f32.mrb[1].mxu0 }
  0xf8   :  { %v1827_v50 = vpop.f32.mrb[1].mxu1  ;;  %v1806_v51 = vadd.f32 %v1805_v49, %v1804_v46  ;;  %v1807_v53 = vpop.f32.mrb[2].mxu0 }
  0xf9   :  { %v1828_v52 = vadd.f32 %v1827_v50, %v1826_v47  ;;  %v1829_v54 = vpop.f32.mrb[2].mxu1  ;;  %v1808_v55 = vpop.f32.mrb[3].mxu0 }
  0xfa   :  { %v1830_v56 = vpop.f32.mrb[3].mxu1  ;;  %v1125_v58 = vadd.f32 %v1806_v51, %v1641_v48 }
  0xfc   :  { %v1165_v59 = vadd.f32 %v1828_v52, %v1125_v58 }
 0x116   :  { %v1848_v60 = vpop.f32.mrb[4].mxu0 }
 0x117   :  { %v1870_v61 = vpop.f32.mrb[4].mxu1  ;;  %v1849_v62 = vpop.f32.mrb[5].mxu0 }
 0x118   :  { %v1850_v63 = vadd.f32 %v1849_v62, %v1848_v60  ;;  %v1871_v0 = vpop.f32.mrb[5].mxu1  ;;  %v1851_v1 = vpop.f32.mrb[6].mxu0 }
 0x119   :  { %v1872_v2 = vadd.f32 %v1871_v0, %v1870_v61  ;;  %v1873_v3 = vpop.f32.mrb[6].mxu1  ;;  %v1852_v4 = vpop.f32.mrb[7].mxu0 }
 0x11a   :  { %v1205_v5 = vadd.f32 %v1850_v63, %v1165_v59  ;;  %v1874_v6 = vpop.f32.mrb[7].mxu1 }
 0x11c   :  { %v1245_v7 = vadd.f32 %v1872_v2, %v1205_v5 }
 0x136   :  { %v1892_v8 = vpop.f32.mrb[8].mxu0 }
 0x137   :  { %v1914_v9 = vpop.f32.mrb[8].mxu1  ;;  %v1893_v10 = vpop.f32.mrb[9].mxu0 }
 0x138   :  { %v1894_v11 = vadd.f32 %v1893_v10, %v1892_v8  ;;  %v1915_v12 = vpop.f32.mrb[9].mxu1  ;;  %v1895_v13 = vpop.f32.mrb[10].mxu0 }
 0x139   :  { %v1916_v14 = vadd.f32 %v1915_v12, %v1914_v9  ;;  %v1917_v15 = vpop.f32.mrb[10].mxu1  ;;  %v1896_v16 = vpop.f32.mrb[11].mxu0 }
 0x13a   :  { %v1285_v17 = vadd.f32 %v1894_v11, %v1245_v7  ;;  %v1918_v18 = vpop.f32.mrb[11].mxu1 }
 0x13c   :  { %v1325_v19 = vadd.f32 %v1916_v14, %v1285_v17 }
 0x156   :  { %v1936_v20 = vpop.f32.mrb[12].mxu0 }
 0x157   :  { %v1958_v21 = vpop.f32.mrb[12].mxu1  ;;  %v1937_v22 = vpop.f32.mrb[13].mxu0 }
 0x158   :  { %v1959_v23 = vpop.f32.mrb[13].mxu1  ;;  %v1938_v24 = vadd.f32 %v1937_v22, %v1936_v20  ;;  %v1939_v26 = vpop.f32.mrb[14].mxu0 }
 0x159   :  { %v1960_v25 = vadd.f32 %v1959_v23, %v1958_v21  ;;  %v1961_v27 = vpop.f32.mrb[14].mxu1  ;;  %v1940_v28 = vpop.f32.mrb[15].mxu0 }
 0x15a   :  { %v1962_v29 = vpop.f32.mrb[15].mxu1  ;;  %v1365_v30 = vadd.f32 %v1938_v24, %v1325_v19 }
 0x15c   :  { %v1405_v31 = vadd.f32 %v1960_v25, %v1365_v30 }
 0x15e   :  { %v1410_v33 = vmax.f32 %v1405_v31, 0.0 }
 0x160   :  { %v1411_v34 = vpack.c.bf16 %v1410_v33, %v1410_v33 }
 0x162   :  { %1999 = vmatmul.mubr.bf16.vlgmr.msra.gmra.mrb[16].mxu0 %v1411_v34 }
 0x235   :  { %v1517_v38 = vpop.f32.mrb[16].mxu0 }
 0x236   :  { %v1518_v39 = vadd.f32 %v1770_v37, %v1517_v38  ;;  %v2000_v40 = vpop.f32.mrb[17].mxu0 }
 0x237   :  { %v1520_v41 = vpop.f32.mrb[18].mxu0 }
 0x238   :  { %v1523_v42 = vmax.f32 %v1518_v39, 0.0  ;;  %v2001_v43 = vpop.f32.mrb[19].mxu0 }
 0x23a   :  { %v1524_v44 = vpack.c.bf16 %v1523_v42, %v1523_v42 }
 0x23c   :  { %2019 = vmatmul.mubr.bf16.vlgmr.msra.gmra.mrb[16].mxu1 %v1524_v44 }
 0x30f   :  { %v1630_v45 = vpop.f32.mrb[16].mxu1 }
 0x310   :  { %v1631_v46 = vadd.f32 %v1779_v32, %v1630_v45  ;;  %v2020_v47 = vpop.f32.mrb[17].mxu1 }
 0x311   :  { %v1633_v48 = vpop.f32.mrb[18].mxu1 }
 0x312   :  { %1636 = vst [vmem:[%s2727_s7] sm:$0xff] %v1631_v46  ;;  %v2021_v49 = vpop.f32.mrb[19].mxu1 }

// kernel: _lambda_.4
= control target key start
LH: loop header
LB: loop body
LE: loop exit
PB: predicated region body
PF: predicated region fallthrough
CT: control target
= control target key end

     0   :  { %s16892_s15 = smov 0   ;;  %s20977_s0 = inlined_call_operand.vmem [shape: f32[2,34,34,8], index: 0, kind: input, shape index: {}]   ;;  %s20978_s1 = inlined_call_operand.vmem [shape: bf16[9,8,128], index: 1, kind: input, shape index: {}]   ;;  %s20979_s2 = inlined_call_operand.vmem [shape: f32[1,128], index: 2, kind: input, shape index: {}]   ;;  %s20980_s3 = inlined_call_operand.vmem [shape: f32[1,128], index: 3, kind: input, shape index: {}]   ;;  %s20981_s4 = inlined_call_operand.vmem [shape: f32[2,256,128], index: 4, kind: output, shape index: {}]  }
   0x1 LB: > { %s11855_s16 = sadd.s32 4294967295, %s16863_s15   ;;  %p11859_p0 = scmp.ge.s32.totalorder %s16863_s15, 1  ;;  %s16863_s15 = sphi %s16892_s15, %s14_s15  }
   0x2   : > { %p162_p1 = scmp.lt.s32.totalorder %s16863_s15, 3 }
   0x4   : > { %p163_p2 = pnand %p11859_p0, %p162_p1 }
   0x6   : > { %166 = sbr.rel (%p163_p2) target bundleno = 2253 (0x8cd), region = 36 }
   0xd   : > { %v11863_v0 = vld [vmem:[%s20978_s1 + $0x4] sm:$0xf]  ;;  %vm779_vm0 = vcmask 1043456   ;;  %v12185_v1 = vld [vmem:[%s20978_s1 + $0xc] sm:$0xf]  ;;  %p188_p3 = scmp.lt.s32.totalorder %s11855_s16, 1 }
   0xe   : > { %16833 = vmatprep.subr.msk.bf16.mxu1 %vm779_vm0, %v11863_v0  ;;  %16836 = vmatprep.subr.msk.bf16.mxu0 %vm779_vm0, %v12185_v1  ;;  %v781_v2 = vsel %vm779_vm0, %v11863_v0, 0  ;;  %v16910_v3 = vsel %vm779_vm0, %v12185_v1, 0  ;;  %v12378_v4 = vld [vmem:[%s20978_s1 + $0x10] sm:$0xf]  ;;  %vm586_vm1 = vcmask 64512  }
   0xf   : > { %14318 = vmatpush3.bf16.msra.mxu1 %v781_v2  ;;  %14708 = vmatpush3.bf16.msra.mxu0 %v16910_v3  ;;  %s21260_s16 = smov (!%p188_p3, %s11855_s16), 1  ;;  %v4580_v23 = vsel %vm779_vm0, %v12378_v4, 0 }
  0x10   : > { %16838 = vmatprep.subr.msk.bf16.mxu0 %vm779_vm0, %v12378_v4  ;;  %s16843_s23 = smul.u32 1360, %s21260_s16  ;;  %s13731_s25 = sshll.u32 %s21260_s16, 8 }
  0x11   : > { %s20908_s28 = scalar_lea.vmem %s20981_s4, %s13731_s25 }
  0x12   : > { %s16923_s26 = scalar_lea.vmem %s20977_s0, %s16843_s23 }
  0x13   : > { %v392_v5 = vld [vmem:[%s16923_s26 + $0x1] sm:$0xff]  ;;  %v393_v6 = vld [vmem:[%s16923_s26 + $0x9] sm:$0xff]  ;;  %v394_v10 = vld [vmem:[%s16923_s26 + $0x11] sm:$0xff] }
  0x14   : > { %v12057_v7 = vld [vmem:[%s16923_s26 + $0x28] sm:$0xff]  ;;  %v520_v8 = vpack.c.bf16 %v393_v6, %v392_v5  ;;  %v12058_v9 = vld [vmem:[%s16923_s26 + $0x30] sm:$0xff]  ;;  %v395_v11 = vld [vmem:[%s16923_s26 + $0x19] sm:$0xff] }
  0x15   : > { %v3259_v12 = vpack.c.bf16 %v12058_v9, %v12057_v7  ;;  %v521_v13 = vpack.c.bf16 %v395_v11, %v394_v10  ;;  %v12059_v14 = vld [vmem:[%s16923_s26 + $0x38] sm:$0xff]  ;;  %v12060_v15 = vld [vmem:[%s16923_s26 + $0x40] sm:$0xff]  ;;  %v396_v16 = vld [vmem:[%s16923_s26 + $0x29] sm:$0xff] }
  0x16   : > { %14319 = vmatprep.mubr.msk.bf16.mxu1 %vm586_vm1, %v520_v8  ;;  %v3260_v17 = vpack.c.bf16 %v12060_v15, %v12059_v14  ;;  %v397_v18 = vld [vmem:[%s16923_s26 + $0x31] sm:$0xff]  ;;  %v398_v24 = vld [vmem:[%s16923_s26 + $0x39] sm:$0xff]  ;;  %v399_v25 = vld [vmem:[%s16923_s26 + $0x41] sm:$0xff] }
  0x17   : > { %v12061_v19 = vld [vmem:[%s16923_s26 + $0x50] sm:$0xff]  ;;  %v12062_v20 = vld [vmem:[%s16923_s26 + $0x58] sm:$0xff]  ;;  %14709 = vmatprep.mubr.msk.bf16.mxu0 %vm586_vm1, %v3259_v12  ;;  %14320 = vmatmul.mubr.msk.bf16.vlgmr.msra.gmra.mrb[0].mxu1 %vm586_vm1, %v521_v13  ;;  %v16940_v21 = vpack.c.bf16 %v397_v18, %v396_v16  ;;  %v12063_v26 = vld [vmem:[%s16923_s26 + $0x60] sm:$0xff]  ;;  %v16955_v32 = vpack.c.bf16 %v399_v25, %v398_v24 }
  0x18   : > { %v3261_v22 = vpack.c.bf16 %v12062_v20, %v12061_v19  ;;  %14710 = vmatmul.mubr.msk.bf16.vlgmr.msra.gmra.mrb[0].mxu0 %vm586_vm1, %v3260_v17  ;;  %v12064_v27 = vld [vmem:[%s16923_s26 + $0x68] sm:$0xff]  ;;  %v400_v28 = vld [vmem:[%s16923_s26 + $0x51] sm:$0xff]  ;;  %v401_v29 = vld [vmem:[%s16923_s26 + $0x59] sm:$0xff] }
  0x19   : > { %14323 = vmatprep.mubr.msk.bf16.mxu1 %vm586_vm1, %v16940_v21  ;;  %14838 = vmatpush3.bf16.msra.mxu0 %v4580_v23  ;;  %v12065_v30 = vld [vmem:[%s16923_s26 + $0x78] sm:$0xff]  ;;  %v12066_v31 = vld [vmem:[%s16923_s26 + $0x80] sm:$0xff]  ;;  %v3262_v33 = vpack.c.bf16 %v12064_v27, %v12063_v26  ;;  %v16957_v34 = vpack.c.bf16 %v401_v29, %v400_v28  ;;  %v403_v37 = vld [vmem:[%s16923_s26 + $0x69] sm:$0xff] }
  0x1a   : > { %14713 = vmatprep.mubr.msk.bf16.mxu0 %vm586_vm1, %v3261_v22  ;;  %v3263_v35 = vpack.c.bf16 %v12066_v31, %v12065_v30  ;;  %v402_v36 = vld [vmem:[%s16923_s26 + $0x61] sm:$0xff]  ;;  %v12068_v39 = vld [vmem:[%s16923_s26 + $0x90] sm:$0xff]  ;;  %v404_v40 = vld [vmem:[%s16923_s26 + $0x79] sm:$0xff] }
  0x1b   : > { %v12067_v38 = vld [vmem:[%s16923_s26 + $0x88] sm:$0xff]  ;;  %v12069_v42 = vld [vmem:[%s16923_s26 + $0xa0] sm:$0xff]  ;;  %v16973_v44 = vpack.c.bf16 %v403_v37, %v402_v36  ;;  %v407_v49 = vld [vmem:[%s16923_s26 + $0x91] sm:$0xff] }
  0x1c   : > { %v405_v41 = vld [vmem:[%s16923_s26 + $0x81] sm:$0xff]  ;;  %v3264_v45 = vpack.c.bf16 %v12068_v39, %v12067_v38  ;;  %v406_v48 = vld [vmem:[%s16923_s26 + $0x89] sm:$0xff]  ;;  %v12072_v51 = vld [vmem:[%s16923_s26 + $0xb8] sm:$0xff] }
  0x1d   : > { %v12070_v43 = vld [vmem:[%s16923_s26 + $0xa8] sm:$0xff]  ;;  %v16975_v46 = vpack.c.bf16 %v405_v41, %v404_v40  ;;  %v12071_v50 = vld [vmem:[%s16923_s26 + $0xb0] sm:$0xff]  ;;  %v16991_v56 = vpack.c.bf16 %v407_v49, %v406_v48  ;;  %v411_v61 = vld [vmem:[%s16923_s26 + $0xb9] sm:$0xff] }
  0x1e   : > { %v3265_v47 = vpack.c.bf16 %v12070_v43, %v12069_v42  ;;  %v408_v52 = vld [vmem:[%s16923_s26 + $0xa1] sm:$0xff]  ;;  %v409_v53 = vld [vmem:[%s16923_s26 + $0xa9] sm:$0xff]  ;;  %v3266_v57 = vpack.c.bf16 %v12072_v51, %v12071_v50  ;;  %v410_v60 = vld [vmem:[%s16923_s26 + $0xb1] sm:$0xff] }
  0x1f   : > { %14324 = vmatmul.mubr.msk.bf16.gmra.mrb[4].mxu1 %vm586_vm1, %v16955_v32  ;;  %v12073_v54 = vld [vmem:[%s16923_s26 + $0xc8] sm:$0xff]  ;;  %v12074_v55 = vld [vmem:[%s16923_s26 + $0xd0] sm:$0xff]  ;;  %v16993_v58 = vpack.c.bf16 %v409_v53, %v408_v52  ;;  %v12075_v62 = vld [vmem:[%s16923_s26 + $0xd8] sm:$0xff]  ;;  %v17009_v5 = vpack.c.bf16 %v411_v61, %v410_v60 }
  0x20   : > { %14714 = vmatmul.mubr.msk.bf16.gmra.mrb[4].mxu0 %vm586_vm1, %v3262_v33  ;;  %14327 = vmatprep.mubr.msk.bf16.mxu1 %vm586_vm1, %v16957_v34  ;;  %v3267_v59 = vpack.c.bf16 %v12074_v55, %v12073_v54  ;;  %v12076_v63 = vld [vmem:[%s16923_s26 + $0xe0] sm:$0xff]  ;;  %v412_v0 = vld [vmem:[%s16923_s26 + $0xc9] sm:$0xff]  ;;  %v413_v1 = vld [vmem:[%s16923_s26 + $0xd1] sm:$0xff] }
  0x21   : > { %14717 = vmatprep.mubr.msk.bf16.mxu0 %vm586_vm1, %v3263_v35  ;;  %v12077_v2 = vld [vmem:[%s16923_s26 + $0xf0] sm:$0xff]  ;;  %v12078_v4 = vld [vmem:[%s16923_s26 + $0xf8] sm:$0xff]  ;;  %v3268_v6 = vpack.c.bf16 %v12076_v63, %v12075_v62  ;;  %v17011_v7 = vpack.c.bf16 %v413_v1, %v412_v0  ;;  %v415_v10 = vld [vmem:[%s16923_s26 + $0xe1] sm:$0xff] }
  0x22   : > { %v3269_v8 = vpack.c.bf16 %v12078_v4, %v12077_v2  ;;  %v414_v9 = vld [vmem:[%s16923_s26 + $0xd9] sm:$0xff]  ;;  %v12080_v12 = vld [vmem:[%s16923_s26 + $0x108] sm:$0xff]  ;;  %v416_v13 = vld [vmem:[%s16923_s26 + $0xf1] sm:$0xff] }
  0x23   : > { %v12079_v11 = vld [vmem:[%s16923_s26 + $0x100] sm:$0xff]  ;;  %v12081_v15 = vld [vmem:[%s16923_s26 + $0x118] sm:$0xff]  ;;  %v17027_v17 = vpack.c.bf16 %v415_v10, %v414_v9  ;;  %v419_v23 = vld [vmem:[%s16923_s26 + $0x109] sm:$0xff] }
  0x24   : > { %v417_v14 = vld [vmem:[%s16923_s26 + $0xf9] sm:$0xff]  ;;  %v3270_v18 = vpack.c.bf16 %v12080_v12, %v12079_v11  ;;  %v418_v22 = vld [vmem:[%s16923_s26 + $0x101] sm:$0xff]  ;;  %v17042_v25 = vld [vmem:[%s20978_s1 + $0x14] sm:$0xf] }
  0x25   : > { %v12082_v16 = vld [vmem:[%s16923_s26 + $0x120] sm:$0xff]  ;;  %v17029_v19 = vpack.c.bf16 %v417_v14, %v416_v13  ;;  %v12083_v24 = vld [vmem:[%s16923_s26 + $0x128] sm:$0xff]  ;;  %v12084_v26 = vld [vmem:[%s16923_s26 + $0x130] sm:$0xff]  ;;  %16839 = vmatprep.subr.msk.bf16.mxu0 %vm779_vm0, %v17042_v25  ;;  %v17052_v31 = vpack.c.bf16 %v419_v23, %v418_v22 }
  0x26   : > { %v3271_v20 = vpack.c.bf16 %v12082_v16, %v12081_v15  ;;  %v420_v27 = vld [vmem:[%s16923_s26 + $0x119] sm:$0xff]  ;;  %v421_v28 = vld [vmem:[%s16923_s26 + $0x121] sm:$0xff]  ;;  %v3272_v33 = vpack.c.bf16 %v12084_v26, %v12083_v24  ;;  %v422_v37 = vld [vmem:[%s16923_s26 + $0x129] sm:$0xff] }
  0x27   : > { %14328 = vmatmul.mubr.msk.bf16.gmra.mrb[8].mxu1 %vm586_vm1, %v16973_v44  ;;  %v12085_v29 = vld [vmem:[%s16923_s26 + $0x140] sm:$0xff]  ;;  %v12086_v30 = vld [vmem:[%s16923_s26 + $0x148] sm:$0xff]  ;;  %v17054_v35 = vpack.c.bf16 %v421_v28, %v420_v27  ;;  %v423_v38 = vld [vmem:[%s16923_s26 + $0x131] sm:$0xff] }
  0x28   : > { %14718 = vmatmul.mubr.msk.bf16.gmra.mrb[8].mxu0 %vm586_vm1, %v3264_v45  ;;  %14331 = vmatprep.mubr.msk.bf16.mxu1 %vm586_vm1, %v16975_v46  ;;  %v3273_v36 = vpack.c.bf16 %v12086_v30, %v12085_v29  ;;  %v12087_v39 = vld [vmem:[%s16923_s26 + $0x150] sm:$0xff]  ;;  %v12088_v40 = vld [vmem:[%s16923_s26 + $0x158] sm:$0xff]  ;;  %v424_v41 = vld [vmem:[%s16923_s26 + $0x141] sm:$0xff] }
  0x29   : > { %14721 = vmatprep.mubr.msk.bf16.mxu0 %vm586_vm1, %v3265_v47  ;;  %v425_v42 = vld [vmem:[%s16923_s26 + $0x149] sm:$0xff]  ;;  %v17070_v47 = vpack.c.bf16 %v423_v38, %v422_v37  ;;  %v3274_v48 = vpack.c.bf16 %v12088_v40, %v12087_v39  ;;  %v426_v51 = vld [vmem:[%s16923_s26 + $0x151] sm:$0xff]  ;;  %v427_v52 = vld [vmem:[%s16923_s26 + $0x159] sm:$0xff] }
  0x2a   : > { %v12089_v43 = vld [vmem:[%s16923_s26 + $0x168] sm:$0xff]  ;;  %v12090_v45 = vld [vmem:[%s16923_s26 + $0x170] sm:$0xff]  ;;  %v17072_v49 = vpack.c.bf16 %v425_v42, %v424_v41  ;;  %v12091_v53 = vld [vmem:[%s16923_s26 + $0x178] sm:$0xff]  ;;  %v17088_v61 = vpack.c.bf16 %v427_v52, %v426_v51 }
  0x2b   : > { %v3275_v50 = vpack.c.bf16 %v12090_v45, %v12089_v43  ;;  %v12092_v54 = vld [vmem:[%s16923_s26 + $0x180] sm:$0xff]  ;;  %v428_v55 = vld [vmem:[%s16923_s26 + $0x169] sm:$0xff]  ;;  %v12094_v60 = vld [vmem:[%s16923_s26 + $0x198] sm:$0xff] }
  0x2c   : > { %v3276_v62 = vpack.c.bf16 %v12092_v54, %v12091_v53  ;;  %v430_v1 = vld [vmem:[%s16923_s26 + $0x179] sm:$0xff]  ;;  %v431_v2 = vld [vmem:[%s16923_s26 + $0x181] sm:$0xff]  ;;  %v12100_v22 = vld [vmem:[%s16923_s26 + $0x1d0] sm:$0xff] }
  0x2d   : > { %v12095_v4 = vld [vmem:[%s16923_s26 + $0x1a0] sm:$0xff]  ;;  %v12097_v10 = vld [vmem:[%s16923_s26 + $0x1b8] sm:$0xff]  ;;  %v17106_v12 = vpack.c.bf16 %v431_v2, %v430_v1  ;;  %v12102_v27 = vld [vmem:[%s16923_s26 + $0x1e8] sm:$0xff] }
  0x2e   : > { %v433_v9 = vld [vmem:[%s16923_s26 + $0x199] sm:$0xff]  ;;  %v434_v16 = vld [vmem:[%s16923_s26 + $0x1a1] sm:$0xff]  ;;  %v439_v37 = vld [vmem:[%s16923_s26 + $0x1d1] sm:$0xff] }
  0x2f   : > { %14332 = vmatmul.mubr.msk.bf16.gmra.mrb[12].mxu1 %vm586_vm1, %v16991_v56  ;;  %v12098_v11 = vld [vmem:[%s16923_s26 + $0x1c0] sm:$0xff]  ;;  %v12103_v38 = vld [vmem:[%s16923_s26 + $0x1f0] sm:$0xff]  ;;  %v12104_v39 = vld [vmem:[%s16923_s26 + $0x1f8] sm:$0xff] }
  0x30   : > { %14722 = vmatmul.mubr.msk.bf16.gmra.mrb[12].mxu0 %vm586_vm1, %v3266_v57  ;;  %14335 = vmatprep.mubr.msk.bf16.mxu1 %vm586_vm1, %v16993_v58  ;;  %v429_v57 = vld [vmem:[%s16923_s26 + $0x171] sm:$0xff]  ;;  %v3279_v15 = vpack.c.bf16 %v12098_v11, %v12097_v10  ;;  %v436_v23 = vld [vmem:[%s16923_s26 + $0x1b9] sm:$0xff]  ;;  %v437_v24 = vld [vmem:[%s16923_s26 + $0x1c1] sm:$0xff] }
  0x31   : > { %14725 = vmatprep.mubr.msk.bf16.mxu0 %vm586_vm1, %v3267_v59  ;;  %v12093_v59 = vld [vmem:[%s16923_s26 + $0x190] sm:$0xff]  ;;  %v17090_v63 = vpack.c.bf16 %v429_v57, %v428_v55  ;;  %v12101_v26 = vld [vmem:[%s16923_s26 + $0x1e0] sm:$0xff]  ;;  %v17126_v30 = vpack.c.bf16 %v437_v24, %v436_v23  ;;  %v12105_v42 = vld [vmem:[%s16923_s26 + $0x208] sm:$0xff] }
  0x32   : > { %v3277_v0 = vpack.c.bf16 %v12094_v60, %v12093_v59  ;;  %v440_v40 = vld [vmem:[%s16923_s26 + $0x1e1] sm:$0xff]  ;;  %v441_v41 = vld [vmem:[%s16923_s26 + $0x1e9] sm:$0xff]  ;;  %v442_v52 = vld [vmem:[%s16923_s26 + $0x1f1] sm:$0xff] }
  0x33   : > { %v12106_v43 = vld [vmem:[%s16923_s26 + $0x210] sm:$0xff]  ;;  %v443_v53 = vld [vmem:[%s16923_s26 + $0x1f9] sm:$0xff]  ;;  %v12112_v10 = vld [vmem:[%s16923_s26 + $0x248] sm:$0xff] }
  0x34   : > { %v3283_v51 = vpack.c.bf16 %v12106_v43, %v12105_v42  ;;  %v12107_v54 = vld [vmem:[%s16923_s26 + $0x218] sm:$0xff]  ;;  %v12108_v55 = vld [vmem:[%s16923_s26 + $0x220] sm:$0xff]  ;;  %v444_v57 = vld [vmem:[%s16923_s26 + $0x209] sm:$0xff] }
  0x35   : > { %v445_v59 = vld [vmem:[%s16923_s26 + $0x211] sm:$0xff]  ;;  %v3284_v1 = vpack.c.bf16 %v12108_v55, %v12107_v54  ;;  %v450_v24 = vld [vmem:[%s16923_s26 + $0x241] sm:$0xff]  ;;  %v454_v43 = vld [vmem:[%s16923_s26 + $0x269] sm:$0xff] }
  0x36   : > { %v12109_v60 = vld [vmem:[%s16923_s26 + $0x230] sm:$0xff]  ;;  %v17162_v2 = vpack.c.bf16 %v445_v59, %v444_v57 }
  0x37   : > { %14336 = vmatmul.mubr.msk.bf16.gmra.mrb[16].mxu1 %vm586_vm1, %v17009_v5  ;;  %v448_v11 = vld [vmem:[%s16923_s26 + $0x231] sm:$0xff]  ;;  %v457_v54 = vld [vmem:[%s16923_s26 + $0x289] sm:$0xff] }
  0x38   : > { %14726 = vmatmul.mubr.msk.bf16.gmra.mrb[16].mxu0 %vm586_vm1, %v3268_v6  ;;  %14339 = vmatprep.mubr.msk.bf16.mxu1 %vm586_vm1, %v17011_v7  ;;  %v12096_v6 = vld [vmem:[%s16923_s26 + $0x1a8] sm:$0xff] }
  0x39   : > { %14729 = vmatprep.mubr.msk.bf16.mxu0 %vm586_vm1, %v3269_v8  ;;  %v432_v8 = vld [vmem:[%s16923_s26 + $0x191] sm:$0xff]  ;;  %v3278_v13 = vpack.c.bf16 %v12096_v6, %v12095_v4  ;;  %v446_v6 = vld [vmem:[%s16923_s26 + $0x219] sm:$0xff] }
  0x3a   : > { %v17108_v14 = vpack.c.bf16 %v433_v9, %v432_v8  ;;  %v447_v8 = vld [vmem:[%s16923_s26 + $0x221] sm:$0xff] }
  0x3b   : > { %v12111_v9 = vld [vmem:[%s16923_s26 + $0x240] sm:$0xff] }
  0x3f   : > { %14340 = vmatmul.mubr.msk.bf16.gmra.mrb[20].mxu1 %vm586_vm1, %v17027_v17 }
  0x40   : > { %14730 = vmatmul.mubr.msk.bf16.gmra.mrb[20].mxu0 %vm586_vm1, %v3270_v18  ;;  %14343 = vmatprep.mubr.msk.bf16.mxu1 %vm586_vm1, %v17029_v19  ;;  %v435_v18 = vld [vmem:[%s16923_s26 + $0x1a9] sm:$0xff] }
  0x41   : > { %14733 = vmatprep.mubr.msk.bf16.mxu0 %vm586_vm1, %v3271_v20  ;;  %v12099_v20 = vld [vmem:[%s16923_s26 + $0x1c8] sm:$0xff]  ;;  %v17124_v28 = vpack.c.bf16 %v435_v18, %v434_v16  ;;  %v12114_v16 = vld [vmem:[%s16923_s26 + $0x260] sm:$0xff]  ;;  %v17178_v18 = vpack.c.bf16 %v447_v8, %v446_v6  ;;  %v461_v6 = vld [vmem:[%s16923_s26 + $0x2b1] sm:$0xff] }
  0x42   : > { %v3280_v29 = vpack.c.bf16 %v12100_v22, %v12099_v20  ;;  %v3286_v20 = vpack.c.bf16 %v12112_v10, %v12111_v9 }
  0x47   : > { %14344 = vmatmul.mubr.msk.bf16.gmra.mrb[24].mxu1 %vm586_vm1, %v17052_v31 }
  0x48   : > { %14734 = vmatmul.mubr.msk.bf16.gmra.mrb[24].mxu0 %vm586_vm1, %v3272_v33  ;;  %14347 = vmatprep.mubr.msk.bf16.mxu1 %vm586_vm1, %v17054_v35  ;;  %v3281_v33 = vpack.c.bf16 %v12102_v27, %v12101_v26  ;;  %v451_v26 = vld [vmem:[%s16923_s26 + $0x249] sm:$0xff] }
  0x49   : > { %14737 = vmatprep.mubr.msk.bf16.mxu0 %vm586_vm1, %v3273_v36  ;;  %v438_v36 = vld [vmem:[%s16923_s26 + $0x1c9] sm:$0xff] }
  0x4a   : > { %v17142_v45 = vpack.c.bf16 %v439_v37, %v438_v36  ;;  %v12115_v27 = vld [vmem:[%s16923_s26 + $0x268] sm:$0xff]  ;;  %v12117_v37 = vld [vmem:[%s16923_s26 + $0x280] sm:$0xff] }
  0x4b   : > { %v453_v36 = vld [vmem:[%s16923_s26 + $0x261] sm:$0xff] }
  0x4f   : > { %14348 = vmatmul.mubr.msk.bf16.gmra.mrb[28].mxu1 %vm586_vm1, %v17070_v47 }
  0x50   : > { %14738 = vmatmul.mubr.msk.bf16.gmra.mrb[28].mxu0 %vm586_vm1, %v3274_v48  ;;  %14351 = vmatprep.mubr.msk.bf16.mxu1 %vm586_vm1, %v17072_v49  ;;  %v3282_v48 = vpack.c.bf16 %v12104_v39, %v12103_v38  ;;  %v12118_v38 = vld [vmem:[%s16923_s26 + $0x288] sm:$0xff]  ;;  %v17196_v39 = vpack.c.bf16 %v451_v26, %v450_v24 }
  0x51   : > { %14741 = vmatprep.mubr.msk.bf16.mxu0 %vm586_vm1, %v3275_v50  ;;  %v17144_v50 = vpack.c.bf16 %v441_v41, %v440_v40  ;;  %v3289_v42 = vpack.c.bf16 %v12118_v38, %v12117_v37  ;;  %v469_v24 = vld [vmem:[%s16923_s26 + $0x301] sm:$0xff]  ;;  %v476_v38 = vld [vmem:[%s16923_s26 + $0x349] sm:$0xff] }
  0x57   : > { %14352 = vmatmul.mubr.msk.bf16.gmra.mrb[32].mxu1 %vm586_vm1, %v17088_v61 }
  0x58   : > { %14742 = vmatmul.mubr.msk.bf16.gmra.mrb[32].mxu0 %vm586_vm1, %v3276_v62  ;;  %14355 = vmatprep.mubr.msk.bf16.mxu1 %vm586_vm1, %v17090_v63  ;;  %v12110_v62 = vld [vmem:[%s16923_s26 + $0x238] sm:$0xff] }
  0x59   : > { %14745 = vmatprep.mubr.msk.bf16.mxu0 %vm586_vm1, %v3277_v0  ;;  %v17160_v0 = vpack.c.bf16 %v443_v53, %v442_v52  ;;  %v3285_v4 = vpack.c.bf16 %v12110_v62, %v12109_v60  ;;  %v12120_v52 = vld [vmem:[%s16923_s26 + $0x298] sm:$0xff]  ;;  %v456_v53 = vld [vmem:[%s16923_s26 + $0x281] sm:$0xff] }
  0x5a   : > { %v17214_v59 = vpack.c.bf16 %v457_v54, %v456_v53  ;;  %v458_v60 = vld [vmem:[%s16923_s26 + $0x291] sm:$0xff]  ;;  %v459_v62 = vld [vmem:[%s16923_s26 + $0x299] sm:$0xff] }
  0x5b   : > { %v17232_v9 = vpack.c.bf16 %v459_v62, %v458_v60  ;;  %v484_v54 = vld [vmem:[%s16923_s26 + $0x399] sm:$0xff] }
  0x5f   : > { %14356 = vmatmul.mubr.msk.bf16.gmra.mrb[36].mxu1 %vm586_vm1, %v17106_v12 }
  0x60   : > { %14746 = vmatmul.mubr.msk.bf16.gmra.mrb[36].mxu0 %vm586_vm1, %v3278_v13  ;;  %14359 = vmatprep.mubr.msk.bf16.mxu1 %vm586_vm1, %v17108_v14  ;;  %v449_v13 = vld [vmem:[%s16923_s26 + $0x239] sm:$0xff] }
  0x61   : > { %14749 = vmatprep.mubr.msk.bf16.mxu0 %vm586_vm1, %v3279_v15  ;;  %v12113_v15 = vld [vmem:[%s16923_s26 + $0x258] sm:$0xff]  ;;  %v17180_v22 = vpack.c.bf16 %v449_v13, %v448_v11  ;;  %v5642_v11 = vsel %vm779_vm0, %v17042_v25, 0  ;;  %v463_v13 = vld [vmem:[%s16923_s26 + $0x2c1] sm:$0xff] }
  0x62   : > { %v3287_v23 = vpack.c.bf16 %v12114_v16, %v12113_v15  ;;  %v464_v15 = vld [vmem:[%s16923_s26 + $0x2d1] sm:$0xff]  ;;  %v465_v25 = vld [vmem:[%s16923_s26 + $0x2d9] sm:$0xff] }
  0x67   : > { %14360 = vmatmul.mubr.msk.bf16.gmra.mrb[40].mxu1 %vm586_vm1, %v17124_v28 }
  0x68   : > { %14750 = vmatmul.mubr.msk.bf16.gmra.mrb[40].mxu0 %vm586_vm1, %v3280_v29  ;;  %14363 = vmatprep.mubr.msk.bf16.mxu1 %vm586_vm1, %v17126_v30  ;;  %v12116_v29 = vld [vmem:[%s16923_s26 + $0x270] sm:$0xff] }
  0x69   : > { %14753 = vmatprep.mubr.msk.bf16.mxu0 %vm586_vm1, %v3281_v33  ;;  %v452_v33 = vld [vmem:[%s16923_s26 + $0x259] sm:$0xff]  ;;  %v3288_v40 = vpack.c.bf16 %v12116_v29, %v12115_v27  ;;  %v472_v29 = vld [vmem:[%s16923_s26 + $0x321] sm:$0xff] }
  0x6a   : > { %v17198_v41 = vpack.c.bf16 %v453_v36, %v452_v33  ;;  %v473_v33 = vld [vmem:[%s16923_s26 + $0x329] sm:$0xff] }
  0x6b   : > { %v17284_v37 = vpack.c.bf16 %v473_v33, %v472_v29  ;;  %v504_v33 = vld [vmem:[%s16923_s26 + $0x461] sm:$0xff] }
  0x6f   : > { %14364 = vmatmul.mubr.msk.bf16.gmra.mrb[44].mxu1 %vm586_vm1, %v17142_v45 }
  0x70   : > { %14754 = vmatmul.mubr.msk.bf16.gmra.mrb[44].mxu0 %vm586_vm1, %v3282_v48  ;;  %14367 = vmatprep.mubr.msk.bf16.mxu1 %vm586_vm1, %v17144_v50  ;;  %v455_v48 = vld [vmem:[%s16923_s26 + $0x271] sm:$0xff] }
  0x71   : > { %14757 = vmatprep.mubr.msk.bf16.mxu0 %vm586_vm1, %v3283_v51  ;;  %v12119_v51 = vld [vmem:[%s16923_s26 + $0x290] sm:$0xff]  ;;  %v17212_v55 = vpack.c.bf16 %v455_v48, %v454_v43 }
  0x72   : > { %v3290_v57 = vpack.c.bf16 %v12120_v52, %v12119_v51  ;;  %v480_v48 = vld [vmem:[%s16923_s26 + $0x371] sm:$0xff]  ;;  %v481_v51 = vld [vmem:[%s16923_s26 + $0x379] sm:$0xff] }
  0x73   : > { %v17316_v53 = vpack.c.bf16 %v481_v51, %v480_v48  ;;  %v512_v51 = vld [vmem:[%s16923_s26 + $0x4b1] sm:$0xff] }
  0x77   : > { %14368 = vmatmul.mubr.msk.bf16.gmra.mrb[48].mxu1 %vm586_vm1, %v17160_v0 }
  0x78   : > { %14758 = vmatmul.mubr.msk.bf16.gmra.mrb[48].mxu0 %vm586_vm1, %v3284_v1  ;;  %14371 = vmatprep.mubr.msk.bf16.mxu1 %vm586_vm1, %v17162_v2  ;;  %v391_v1 = vld [vmem:[%s20978_s1] sm:$0xf] }
  0x79   : > { %14761 = vmatprep.mubr.msk.bf16.mxu0 %vm586_vm1, %v3285_v4  ;;  %v460_v4 = vld [vmem:[%s16923_s26 + $0x2a9] sm:$0xff]  ;;  %16834 = vmatprep.subr.msk.bf16.mxu1 %vm779_vm0, %v391_v1  ;;  %v1521_v8 = vsel %vm779_vm0, %v391_v1, 0  ;;  %v488_v1 = vld [vmem:[%s16923_s26 + $0x3c1] sm:$0xff] }
  0x7a   : > { %14448 = vmatpush3.bf16.msra.mxu1 %v1521_v8  ;;  %v17234_v10 = vpack.c.bf16 %v461_v6, %v460_v4  ;;  %v489_v4 = vld [vmem:[%s16923_s26 + $0x3c9] sm:$0xff] }
  0x7b   : > { %v17348_v8 = vpack.c.bf16 %v489_v4, %v488_v1  ;;  %v199_v4 = vld [vmem:[%s16923_s26] sm:$0xff] }
  0x7f   : > { %14372 = vmatmul.mubr.msk.bf16.gmra.mrb[52].mxu1 %vm586_vm1, %v17178_v18 }
  0x80   : > { %14762 = vmatmul.mubr.msk.bf16.gmra.mrb[52].mxu0 %vm586_vm1, %v3286_v20  ;;  %14375 = vmatprep.mubr.msk.bf16.mxu1 %vm586_vm1, %v17180_v22  ;;  %v17252_v20 = vpack.c.bf16 %v465_v25, %v464_v15  ;;  %v496_v25 = vld [vmem:[%s16923_s26 + $0x411] sm:$0xff] }
  0x81   : > { %14765 = vmatprep.mubr.msk.bf16.mxu0 %vm586_vm1, %v3287_v23  ;;  %v468_v23 = vld [vmem:[%s16923_s26 + $0x2f9] sm:$0xff] }
  0x82   : > { %v17268_v27 = vpack.c.bf16 %v469_v24, %v468_v23  ;;  %v500_v24 = vld [vmem:[%s16923_s26 + $0x439] sm:$0xff] }
  0x87   : > { %14376 = vmatmul.mubr.msk.bf16.gmra.mrb[56].mxu1 %vm586_vm1, %v17196_v39 }
  0x88   : > { %14766 = vmatmul.mubr.msk.bf16.gmra.mrb[56].mxu0 %vm586_vm1, %v3288_v40  ;;  %14379 = vmatprep.mubr.msk.bf16.mxu1 %vm586_vm1, %v17198_v41  ;;  %v477_v40 = vld [vmem:[%s16923_s26 + $0x351] sm:$0xff] }
  0x89   : > { %14769 = vmatprep.mubr.msk.bf16.mxu0 %vm586_vm1, %v3289_v42  ;;  %v17300_v43 = vpack.c.bf16 %v477_v40, %v476_v38  ;;  %v508_v40 = vld [vmem:[%s16923_s26 + $0x489] sm:$0xff] }
  0x8f   : > { %14380 = vmatmul.mubr.msk.bf16.gmra.mrb[60].mxu1 %vm586_vm1, %v17212_v55 }
  0x90   : > { %14770 = vmatmul.mubr.msk.bf16.gmra.mrb[60].mxu0 %vm586_vm1, %v3290_v57  ;;  %14383 = vmatprep.mubr.msk.bf16.mxu1 %vm586_vm1, %v17214_v59  ;;  %v485_v57 = vld [vmem:[%s16923_s26 + $0x3a1] sm:$0xff] }
  0x91   : > { %14839 = vmatprep.mubr.msk.bf16.mxu0 %vm586_vm1, %v16940_v21  ;;  %v462_v21 = vld [vmem:[%s16923_s26 + $0x2b9] sm:$0xff]  ;;  %v17332_v62 = vpack.c.bf16 %v485_v57, %v484_v54 }
  0x92   : > { %v17250_v16 = vpack.c.bf16 %v463_v13, %v462_v21  ;;  %v493_v21 = vld [vmem:[%s16923_s26 + $0x3f1] sm:$0xff]  ;;  %v516_v57 = vld [vmem:[%s16923_s26 + $0x4d9] sm:$0xff] }
  0x97   : > { %14384 = vmatmul.mubr.msk.bf16.gmra.mrb[64].mxu1 %vm586_vm1, %v17232_v9 }
  0x98   : > { %14840 = vmatmul.mubr.msk.bf16.vlgmr.msra.gmra.mrb[0].mxu0 %vm586_vm1, %v16955_v32  ;;  %14387 = vmatprep.mubr.msk.bf16.mxu1 %vm586_vm1, %v17234_v10  ;;  %v466_v32 = vld [vmem:[%s16923_s26 + $0x2e1] sm:$0xff] }
  0x99   : > { %14843 = vmatprep.mubr.msk.bf16.mxu0 %vm586_vm1, %v16957_v34  ;;  %14968 = vmatpush3.bf16.msra.mxu0 %v5642_v11  ;;  %v467_v34 = vld [vmem:[%s16923_s26 + $0x2e9] sm:$0xff] }
  0x9a   : > { %v17266_v26 = vpack.c.bf16 %v467_v34, %v466_v32  ;;  %v492_v11 = vld [vmem:[%s16923_s26 + $0x3e9] sm:$0xff]  ;;  %v497_v32 = vld [vmem:[%s16923_s26 + $0x419] sm:$0xff] }
  0x9b   : > { %v17364_v15 = vpack.c.bf16 %v493_v21, %v492_v11  ;;  %v17380_v23 = vpack.c.bf16 %v497_v32, %v496_v25  ;;  %v202_v21 = vld [vmem:[%s16923_s26 + $0x18] sm:$0xff]  ;;  %v206_v32 = vld [vmem:[%s16923_s26 + $0x40] sm:$0xff] }
  0x9f   : > { %14388 = vmatmul.mubr.msk.bf16.gmra.mrb[68].mxu1 %vm586_vm1, %v17250_v16 }
  0xa0   : > { %14844 = vmatmul.mubr.msk.bf16.gmra.mrb[4].mxu0 %vm586_vm1, %v16973_v44  ;;  %14391 = vmatprep.mubr.msk.bf16.mxu1 %vm586_vm1, %v17252_v20  ;;  %v470_v44 = vld [vmem:[%s16923_s26 + $0x309] sm:$0xff] }
  0xa1   : > { %14847 = vmatprep.mubr.msk.bf16.mxu0 %vm586_vm1, %v16975_v46  ;;  %v471_v46 = vld [vmem:[%s16923_s26 + $0x311] sm:$0xff] }
  0xa2   : > { %v17282_v36 = vpack.c.bf16 %v471_v46, %v470_v44  ;;  %v501_v44 = vld [vmem:[%s16923_s26 + $0x441] sm:$0xff] }
  0xa3   : > { %v17396_v29 = vpack.c.bf16 %v501_v44, %v500_v24  ;;  %v210_v44 = vld [vmem:[%s16923_s26 + $0x68] sm:$0xff] }
  0xa7   : > { %14392 = vmatmul.mubr.msk.bf16.gmra.mrb[72].mxu1 %vm586_vm1, %v17266_v26 }
  0xa8   : > { %14848 = vmatmul.mubr.msk.bf16.gmra.mrb[8].mxu0 %vm586_vm1, %v16991_v56  ;;  %14395 = vmatprep.mubr.msk.bf16.mxu1 %vm586_vm1, %v17268_v27  ;;  %v474_v56 = vld [vmem:[%s16923_s26 + $0x331] sm:$0xff] }
  0xa9   : > { %14851 = vmatprep.mubr.msk.bf16.mxu0 %vm586_vm1, %v16993_v58  ;;  %v475_v58 = vld [vmem:[%s16923_s26 + $0x339] sm:$0xff] }
  0xaa   : > { %v17298_v42 = vpack.c.bf16 %v475_v58, %v474_v56  ;;  %v505_v56 = vld [vmem:[%s16923_s26 + $0x469] sm:$0xff] }
  0xab   : > { %v17412_v38 = vpack.c.bf16 %v505_v56, %v504_v33  ;;  %v213_v56 = vld [vmem:[%s16923_s26 + $0x88] sm:$0xff] }
  0xaf   : > { %14396 = vmatmul.mubr.msk.bf16.gmra.mrb[76].mxu1 %vm586_vm1, %v17282_v36 }
  0xb0   : > { %14852 = vmatmul.mubr.msk.bf16.gmra.mrb[12].mxu0 %vm586_vm1, %v17009_v5  ;;  %14399 = vmatprep.mubr.msk.bf16.mxu1 %vm586_vm1, %v17284_v37  ;;  %v478_v5 = vld [vmem:[%s16923_s26 + $0x359] sm:$0xff] }
  0xb1   : > { %14855 = vmatprep.mubr.msk.bf16.mxu0 %vm586_vm1, %v17011_v7  ;;  %v479_v7 = vld [vmem:[%s16923_s26 + $0x361] sm:$0xff] }
  0xb2   : > { %v17314_v52 = vpack.c.bf16 %v479_v7, %v478_v5  ;;  %v509_v5 = vld [vmem:[%s16923_s26 + $0x491] sm:$0xff] }
  0xb3   : > { %v17428_v48 = vpack.c.bf16 %v509_v5, %v508_v40 }
  0xb7   : > { %14400 = vmatmul.mubr.msk.bf16.gmra.mrb[80].mxu1 %vm586_vm1, %v17298_v42 }
  0xb8   : > { %14856 = vmatmul.mubr.msk.bf16.gmra.mrb[16].mxu0 %vm586_vm1, %v17027_v17  ;;  %14403 = vmatprep.mubr.msk.bf16.mxu1 %vm586_vm1, %v17300_v43  ;;  %v482_v17 = vld [vmem:[%s16923_s26 + $0x381] sm:$0xff] }
  0xb9   : > { %14859 = vmatprep.mubr.msk.bf16.mxu0 %vm586_vm1, %v17029_v19  ;;  %v483_v19 = vld [vmem:[%s16923_s26 + $0x389] sm:$0xff] }
  0xba   : > { %v17330_v60 = vpack.c.bf16 %v483_v19, %v482_v17  ;;  %v513_v17 = vld [vmem:[%s16923_s26 + $0x4b9] sm:$0xff] }
  0xbb   : > { %v17444_v54 = vpack.c.bf16 %v513_v17, %v512_v51 }
  0xbf   : > { %14404 = vmatmul.mubr.msk.bf16.gmra.mrb[84].mxu1 %vm586_vm1, %v17314_v52 }
  0xc0   : > { %14860 = vmatmul.mubr.msk.bf16.gmra.mrb[20].mxu0 %vm586_vm1, %v17052_v31  ;;  %14407 = vmatprep.mubr.msk.bf16.mxu1 %vm586_vm1, %v17316_v53  ;;  %v486_v31 = vld [vmem:[%s16923_s26 + $0x3a9] sm:$0xff] }
  0xc1   : > { %14863 = vmatprep.mubr.msk.bf16.mxu0 %vm586_vm1, %v17054_v35  ;;  %v487_v35 = vld [vmem:[%s16923_s26 + $0x3b1] sm:$0xff] }
  0xc2   : > { %v17346_v6 = vpack.c.bf16 %v487_v35, %v486_v31  ;;  %v517_v31 = vld [vmem:[%s16923_s26 + $0x4e1] sm:$0xff] }
  0xc3   : > { %v17460_v1 = vpack.c.bf16 %v517_v31, %v516_v57 }
  0xc7   : > { %14408 = vmatmul.mubr.msk.bf16.gmra.mrb[88].mxu1 %vm586_vm1, %v17330_v60 }
  0xc8   : > { %14864 = vmatmul.mubr.msk.bf16.gmra.mrb[24].mxu0 %vm586_vm1, %v17070_v47  ;;  %14411 = vmatprep.mubr.msk.bf16.mxu1 %vm586_vm1, %v17332_v62  ;;  %v490_v47 = vld [vmem:[%s16923_s26 + $0x3d1] sm:$0xff] }
  0xc9   : > { %14867 = vmatprep.mubr.msk.bf16.mxu0 %vm586_vm1, %v17072_v49  ;;  %v491_v49 = vld [vmem:[%s16923_s26 + $0x3d9] sm:$0xff] }
  0xca   : > { %v17362_v13 = vpack.c.bf16 %v491_v49, %v490_v47  ;;  %v200_v47 = vld [vmem:[%s16923_s26 + $0x8] sm:$0xff] }
  0xcb   : > { %v327_v11 = vpack.c.bf16 %v200_v47, %v199_v4 }
  0xcf   : > { %14412 = vmatmul.mubr.msk.bf16.gmra.mrb[92].mxu1 %vm586_vm1, %v17346_v6 }
  0xd0   : > { %14868 = vmatmul.mubr.msk.bf16.gmra.mrb[28].mxu0 %vm586_vm1, %v17088_v61  ;;  %14415 = vmatprep.mubr.msk.bf16.mxu1 %vm586_vm1, %v17348_v8  ;;  %v494_v61 = vld [vmem:[%s16923_s26 + $0x3f9] sm:$0xff] }
  0xd1   : > { %14871 = vmatprep.mubr.msk.bf16.mxu0 %vm586_vm1, %v17090_v63  ;;  %v495_v63 = vld [vmem:[%s16923_s26 + $0x401] sm:$0xff] }
  0xd2   : > { %v17378_v34 = vpack.c.bf16 %v495_v63, %v494_v61  ;;  %v204_v61 = vld [vmem:[%s16923_s26 + $0x30] sm:$0xff] }
  0xd7   : > { %14416 = vmatmul.mubr.msk.bf16.gmra.mrb[96].mxu1 %vm586_vm1, %v17362_v13 }
  0xd8   : > { %14872 = vmatmul.mubr.msk.bf16.gmra.mrb[32].mxu0 %vm586_vm1, %v17106_v12  ;;  %14419 = vmatprep.mubr.msk.bf16.mxu1 %vm586_vm1, %v17364_v15  ;;  %v498_v12 = vld [vmem:[%s16923_s26 + $0x421] sm:$0xff] }
  0xd9   : > { %14875 = vmatprep.mubr.msk.bf16.mxu0 %vm586_vm1, %v17108_v14  ;;  %v499_v14 = vld [vmem:[%s16923_s26 + $0x429] sm:$0xff] }
  0xda   : > { %v17394_v46 = vpack.c.bf16 %v499_v14, %v498_v12  ;;  %v208_v12 = vld [vmem:[%s16923_s26 + $0x58] sm:$0xff] }
  0xdf   : > { %14420 = vmatmul.mubr.msk.bf16.gmra.mrb[100].mxu1 %vm586_vm1, %v17378_v34 }
  0xe0   : > { %14876 = vmatmul.mubr.msk.bf16.gmra.mrb[36].mxu0 %vm586_vm1, %v17124_v28  ;;  %14423 = vmatprep.mubr.msk.bf16.mxu1 %vm586_vm1, %v17380_v23  ;;  %v502_v28 = vld [vmem:[%s16923_s26 + $0x449] sm:$0xff] }
  0xe1   : > { %14879 = vmatprep.mubr.msk.bf16.mxu0 %vm586_vm1, %v17126_v30  ;;  %v503_v30 = vld [vmem:[%s16923_s26 + $0x451] sm:$0xff] }
  0xe2   : > { %v17410_v58 = vpack.c.bf16 %v503_v30, %v502_v28  ;;  %v211_v28 = vld [vmem:[%s16923_s26 + $0x78] sm:$0xff]  ;;  %v212_v30 = vld [vmem:[%s16923_s26 + $0x80] sm:$0xff] }
  0xe3   : > { %v333_v33 = vpack.c.bf16 %v212_v30, %v211_v28  ;;  %v246_v30 = vld [vmem:[%s16923_s26 + $0x1d0] sm:$0xff] }
  0xe7   : > { %14424 = vmatmul.mubr.msk.bf16.gmra.mrb[104].mxu1 %vm586_vm1, %v17394_v46 }
  0xe8   : > { %14880 = vmatmul.mubr.msk.bf16.gmra.mrb[40].mxu0 %vm586_vm1, %v17142_v45  ;;  %14427 = vmatprep.mubr.msk.bf16.mxu1 %vm586_vm1, %v17396_v29  ;;  %v506_v45 = vld [vmem:[%s16923_s26 + $0x471] sm:$0xff] }
  0xe9   : > { %14883 = vmatprep.mubr.msk.bf16.mxu0 %vm586_vm1, %v17144_v50  ;;  %v507_v50 = vld [vmem:[%s16923_s26 + $0x479] sm:$0xff] }
  0xea   : > { %v17426_v7 = vpack.c.bf16 %v507_v50, %v506_v45  ;;  %v215_v45 = vld [vmem:[%s16923_s26 + $0xa0] sm:$0xff]  ;;  %v216_v50 = vld [vmem:[%s16923_s26 + $0xa8] sm:$0xff] }
  0xeb   : > { %v335_v5 = vpack.c.bf16 %v216_v50, %v215_v45  ;;  %v252_v45 = vld [vmem:[%s16923_s26 + $0x210] sm:$0xff] }
  0xef   : > { %14428 = vmatmul.mubr.msk.bf16.gmra.mrb[108].mxu1 %vm586_vm1, %v17410_v58 }
  0xf0   : > { %14884 = vmatmul.mubr.msk.bf16.gmra.mrb[44].mxu0 %vm586_vm1, %v17160_v0  ;;  %14431 = vmatprep.mubr.msk.bf16.mxu1 %vm586_vm1, %v17412_v38  ;;  %v510_v0 = vld [vmem:[%s16923_s26 + $0x499] sm:$0xff] }
  0xf1   : > { %14887 = vmatprep.mubr.msk.bf16.mxu0 %vm586_vm1, %v17162_v2  ;;  %v511_v2 = vld [vmem:[%s16923_s26 + $0x4a1] sm:$0xff] }
  0xf2   : > { %v17442_v19 = vpack.c.bf16 %v511_v2, %v510_v0  ;;  %v218_v0 = vld [vmem:[%s16923_s26 + $0xb8] sm:$0xff]  ;;  %v220_v2 = vld [vmem:[%s16923_s26 + $0xd0] sm:$0xff] }
  0xf7   : > { %14432 = vmatmul.mubr.msk.bf16.gmra.mrb[112].mxu1 %vm586_vm1, %v17426_v7 }
  0xf8   : > { %14888 = vmatmul.mubr.msk.bf16.gmra.mrb[48].mxu0 %vm586_vm1, %v17178_v18  ;;  %14435 = vmatprep.mubr.msk.bf16.mxu1 %vm586_vm1, %v17428_v48  ;;  %v514_v18 = vld [vmem:[%s16923_s26 + $0x4c1] sm:$0xff] }
  0xf9   : > { %14891 = vmatprep.mubr.msk.bf16.mxu0 %vm586_vm1, %v17180_v22  ;;  %v515_v22 = vld [vmem:[%s16923_s26 + $0x4c9] sm:$0xff] }
  0xfa   : > { %v17458_v35 = vpack.c.bf16 %v515_v22, %v514_v18  ;;  %v222_v18 = vld [vmem:[%s16923_s26 + $0xe0] sm:$0xff]  ;;  %v224_v22 = vld [vmem:[%s16923_s26 + $0xf8] sm:$0xff] }
  0xff   : > { %14436 = vmatmul.mubr.msk.bf16.gmra.mrb[116].mxu1 %vm586_vm1, %v17442_v19 }
 0x100   : > { %14892 = vmatmul.mubr.msk.bf16.gmra.mrb[52].mxu0 %vm586_vm1, %v17196_v39  ;;  %14439 = vmatprep.mubr.msk.bf16.mxu1 %vm586_vm1, %v17444_v54  ;;  %v518_v39 = vld [vmem:[%s16923_s26 + $0x4e9] sm:$0xff] }
 0x101   : > { %14895 = vmatprep.mubr.msk.bf16.mxu0 %vm586_vm1, %v17198_v41  ;;  %v519_v41 = vld [vmem:[%s16923_s26 + $0x4f1] sm:$0xff] }
 0x102   : > { %v17474_v49 = vpack.c.bf16 %v519_v41, %v518_v39  ;;  %v226_v39 = vld [vmem:[%s16923_s26 + $0x108] sm:$0xff]  ;;  %v228_v41 = vld [vmem:[%s16923_s26 + $0x120] sm:$0xff] }
 0x107   : > { %14440 = vmatmul.mubr.msk.bf16.gmra.mrb[120].mxu1 %vm586_vm1, %v17458_v35 }
 0x108   : > { %14896 = vmatmul.mubr.msk.bf16.gmra.mrb[56].mxu0 %vm586_vm1, %v17212_v55  ;;  %14443 = vmatprep.mubr.msk.bf16.mxu1 %vm586_vm1, %v17460_v1  ;;  %v201_v55 = vld [vmem:[%s16923_s26 + $0x10] sm:$0xff] }
 0x109   : > { %14899 = vmatprep.mubr.msk.bf16.mxu0 %vm586_vm1, %v17214_v59  ;;  %v203_v59 = vld [vmem:[%s16923_s26 + $0x28] sm:$0xff]  ;;  %v328_v63 = vpack.c.bf16 %v202_v21, %v201_v55 }
 0x10a   : > { %v329_v25 = vpack.c.bf16 %v204_v61, %v203_v59  ;;  %v232_v55 = vld [vmem:[%s16923_s26 + $0x148] sm:$0xff]  ;;  %v234_v61 = vld [vmem:[%s16923_s26 + $0x158] sm:$0xff] }
 0x10f   : > { %14444 = vmatmul.mubr.msk.bf16.gmra.mrb[124].mxu1 %vm586_vm1, %v17474_v49 }
 0x110   : > { %14900 = vmatmul.mubr.msk.bf16.gmra.mrb[60].mxu0 %vm586_vm1, %v17232_v9  ;;  %14449 = vmatprep.mubr.msk.bf16.mxu1 %vm586_vm1, %v327_v11  ;;  %v205_v9 = vld [vmem:[%s16923_s26 + $0x38] sm:$0xff]  ;;  %v230_v11 = vld [vmem:[%s16923_s26 + $0x130] sm:$0xff] }
 0x111   : > { %14903 = vmatprep.mubr.msk.bf16.mxu0 %vm586_vm1, %v17234_v10  ;;  %v207_v10 = vld [vmem:[%s16923_s26 + $0x50] sm:$0xff]  ;;  %v330_v14 = vpack.c.bf16 %v206_v32, %v205_v9  ;;  %v238_v32 = vld [vmem:[%s16923_s26 + $0x180] sm:$0xff] }
 0x112   : > { %v331_v24 = vpack.c.bf16 %v208_v12, %v207_v10  ;;  %v240_v10 = vld [vmem:[%s16923_s26 + $0x198] sm:$0xff] }
 0x117   : > { %14450 = vmatmul.mubr.msk.bf16.vlgmr.msra.gmra.mrb[0].mxu1 %vm586_vm1, %v328_v63  ;;  %v236_v63 = vld [vmem:[%s16923_s26 + $0x170] sm:$0xff] }
 0x118   : > { %14904 = vmatmul.mubr.msk.bf16.gmra.mrb[64].mxu0 %vm586_vm1, %v17250_v16  ;;  %14453 = vmatprep.mubr.msk.bf16.mxu1 %vm586_vm1, %v329_v25  ;;  %v209_v16 = vld [vmem:[%s16923_s26 + $0x60] sm:$0xff] }
 0x119   : > { %14907 = vmatprep.mubr.msk.bf16.mxu0 %vm586_vm1, %v17252_v20  ;;  %v17506_v20 = vld [vmem:[%s20978_s1 + $0x18] sm:$0xf] }
 0x11a   : > { %16840 = vmatprep.subr.msk.bf16.mxu0 %vm779_vm0, %v17506_v20 }
 0x11f   : > { %14454 = vmatmul.mubr.msk.bf16.gmra.mrb[4].mxu1 %vm586_vm1, %v330_v14 }
 0x120   : > { %14908 = vmatmul.mubr.msk.bf16.gmra.mrb[68].mxu0 %vm586_vm1, %v17266_v26  ;;  %14457 = vmatprep.mubr.msk.bf16.mxu1 %vm586_vm1, %v331_v24  ;;  %v332_v26 = vpack.c.bf16 %v210_v44, %v209_v16  ;;  %v242_v24 = vld [vmem:[%s16923_s26 + $0x1a8] sm:$0xff]  ;;  %v244_v16 = vld [vmem:[%s16923_s26 + $0x1c0] sm:$0xff] }
 0x121   : > { %14911 = vmatprep.mubr.msk.bf16.mxu0 %vm586_vm1, %v17268_v27  ;;  %v214_v27 = vld [vmem:[%s16923_s26 + $0x90] sm:$0xff] }
 0x122   : > { %v334_v40 = vpack.c.bf16 %v214_v27, %v213_v56  ;;  %v250_v27 = vld [vmem:[%s16923_s26 + $0x1f8] sm:$0xff] }
 0x127   : > { %14458 = vmatmul.mubr.msk.bf16.gmra.mrb[8].mxu1 %vm586_vm1, %v332_v26  ;;  %v248_v26 = vld [vmem:[%s16923_s26 + $0x1e8] sm:$0xff] }
 0x128   : > { %14912 = vmatmul.mubr.msk.bf16.gmra.mrb[72].mxu0 %vm586_vm1, %v17282_v36  ;;  %14461 = vmatprep.mubr.msk.bf16.mxu1 %vm586_vm1, %v333_v33  ;;  %v217_v36 = vld [vmem:[%s16923_s26 + $0xb0] sm:$0xff] }
 0x129   : > { %14915 = vmatprep.mubr.msk.bf16.mxu0 %vm586_vm1, %v17284_v37  ;;  %v219_v37 = vld [vmem:[%s16923_s26 + $0xc8] sm:$0xff]  ;;  %v336_v51 = vpack.c.bf16 %v218_v0, %v217_v36  ;;  %v256_v36 = vld [vmem:[%s16923_s26 + $0x238] sm:$0xff] }
 0x12a   : > { %v337_v17 = vpack.c.bf16 %v220_v2, %v219_v37  ;;  %v258_v2 = vld [vmem:[%s16923_s26 + $0x248] sm:$0xff] }
 0x12f   : > { %14462 = vmatmul.mubr.msk.bf16.gmra.mrb[12].mxu1 %vm586_vm1, %v334_v40 }
 0x130   : > { %14916 = vmatmul.mubr.msk.bf16.gmra.mrb[76].mxu0 %vm586_vm1, %v17298_v42  ;;  %14465 = vmatprep.mubr.msk.bf16.mxu1 %vm586_vm1, %v335_v5  ;;  %v221_v42 = vld [vmem:[%s16923_s26 + $0xd8] sm:$0xff]  ;;  %v254_v5 = vld [vmem:[%s16923_s26 + $0x220] sm:$0xff] }
 0x131   : > { %14919 = vmatprep.mubr.msk.bf16.mxu0 %vm586_vm1, %v17300_v43  ;;  %v223_v43 = vld [vmem:[%s16923_s26 + $0xf0] sm:$0xff]  ;;  %v338_v57 = vpack.c.bf16 %v222_v18, %v221_v42 }
 0x132   : > { %v339_v31 = vpack.c.bf16 %v224_v22, %v223_v43  ;;  %v12375_v42 = vld [vmem:[%s16923_s26 + $0x509] sm:$0xff] }
 0x133   : > { %v262_v22 = vld [vmem:[%s16923_s26 + $0x270] sm:$0xff] }
 0x137   : > { %14466 = vmatmul.mubr.msk.bf16.gmra.mrb[16].mxu1 %vm586_vm1, %v336_v51  ;;  %v260_v51 = vld [vmem:[%s16923_s26 + $0x260] sm:$0xff] }
 0x138   : > { %14920 = vmatmul.mubr.msk.bf16.gmra.mrb[80].mxu0 %vm586_vm1, %v17314_v52  ;;  %14469 = vmatprep.mubr.msk.bf16.mxu1 %vm586_vm1, %v337_v17  ;;  %v225_v52 = vld [vmem:[%s16923_s26 + $0x100] sm:$0xff] }
 0x139   : > { %14923 = vmatprep.mubr.msk.bf16.mxu0 %vm586_vm1, %v17316_v53  ;;  %v227_v53 = vld [vmem:[%s16923_s26 + $0x118] sm:$0xff]  ;;  %v340_v4 = vpack.c.bf16 %v226_v39, %v225_v52  ;;  %v12374_v17 = vld [vmem:[%s16923_s26 + $0x501] sm:$0xff] }
 0x13a   : > { %v341_v47 = vpack.c.bf16 %v228_v41, %v227_v53  ;;  %v4383_v43 = vpack.c.bf16 %v12375_v42, %v12374_v17  ;;  %v263_v52 = vld [vmem:[%s16923_s26 + $0x280] sm:$0xff]  ;;  %v264_v39 = vld [vmem:[%s16923_s26 + $0x288] sm:$0xff]  ;;  %v12444_v41 = vld [vmem:[%s16923_s26 + $0x32] sm:$0xff] }
 0x13b   : > { %v12443_v53 = vld [vmem:[%s16923_s26 + $0x2a] sm:$0xff]  ;;  %v12460_v42 = vld [vmem:[%s16923_s26 + $0xd2] sm:$0xff] }
 0x13c   : > { %v12459_v17 = vld [vmem:[%s16923_s26 + $0xca] sm:$0xff] }
 0x13f   : > { %14470 = vmatmul.mubr.msk.bf16.gmra.mrb[20].mxu1 %vm586_vm1, %v338_v57  ;;  %v12376_v57 = vld [vmem:[%s16923_s26 + $0x511] sm:$0xff] }
 0x140   : > { %14924 = vmatmul.mubr.msk.bf16.gmra.mrb[84].mxu0 %vm586_vm1, %v17330_v60  ;;  %14473 = vmatprep.mubr.msk.bf16.mxu1 %vm586_vm1, %v339_v31  ;;  %v229_v60 = vld [vmem:[%s16923_s26 + $0x128] sm:$0xff]  ;;  %v12377_v31 = vld [vmem:[%s16923_s26 + $0x519] sm:$0xff] }
 0x141   : > { %14927 = vmatprep.mubr.msk.bf16.mxu0 %vm586_vm1, %v17332_v62  ;;  %v231_v62 = vld [vmem:[%s16923_s26 + $0x140] sm:$0xff]  ;;  %v342_v21 = vpack.c.bf16 %v230_v11, %v229_v60  ;;  %v17649_v60 = vpack.c.bf16 %v12444_v41, %v12443_v53  ;;  %v265_v11 = vld [vmem:[%s16923_s26 + $0x290] sm:$0xff] }
 0x142   : > { %v343_v59 = vpack.c.bf16 %v232_v55, %v231_v62  ;;  %v266_v62 = vld [vmem:[%s16923_s26 + $0x298] sm:$0xff]  ;;  %v284_v53 = vld [vmem:[%s16923_s26 + $0x350] sm:$0xff] }
 0x143   : > { %v12445_v55 = vld [vmem:[%s16923_s26 + $0x3a] sm:$0xff]  ;;  %v12463_v41 = vld [vmem:[%s16923_s26 + $0xf2] sm:$0xff] }
 0x147   : > { %14474 = vmatmul.mubr.msk.bf16.gmra.mrb[24].mxu1 %vm586_vm1, %v340_v4 }
 0x148   : > { %14928 = vmatmul.mubr.msk.bf16.gmra.mrb[88].mxu0 %vm586_vm1, %v17346_v6  ;;  %14477 = vmatprep.mubr.msk.bf16.mxu1 %vm586_vm1, %v341_v47  ;;  %v233_v6 = vld [vmem:[%s16923_s26 + $0x150] sm:$0xff]  ;;  %v359_v47 = vpack.c.bf16 %v264_v39, %v263_v52  ;;  %v12462_v52 = vld [vmem:[%s16923_s26 + $0xe2] sm:$0xff] }
 0x149   : > { %14931 = vmatprep.mubr.msk.bf16.mxu0 %vm586_vm1, %v17348_v8  ;;  %v235_v8 = vld [vmem:[%s16923_s26 + $0x168] sm:$0xff]  ;;  %v344_v25 = vpack.c.bf16 %v234_v61, %v233_v6  ;;  %v268_v61 = vld [vmem:[%s16923_s26 + $0x2b0] sm:$0xff] }
 0x14a   : > { %v345_v9 = vpack.c.bf16 %v236_v63, %v235_v8  ;;  %v267_v6 = vld [vmem:[%s16923_s26 + $0x2a8] sm:$0xff]  ;;  %v12447_v63 = vld [vmem:[%s16923_s26 + $0x52] sm:$0xff] }
 0x14b   : > { %v283_v39 = vld [vmem:[%s16923_s26 + $0x348] sm:$0xff] }
 0x14f   : > { %14478 = vmatmul.mubr.msk.bf16.gmra.mrb[28].mxu1 %vm586_vm1, %v342_v21  ;;  %v11992_v21 = vld [vmem:[%s20978_s1 + $0x8] sm:$0xf] }
 0x150   : > { %14932 = vmatmul.mubr.msk.bf16.gmra.mrb[92].mxu0 %vm586_vm1, %v17362_v13  ;;  %14481 = vmatprep.mubr.msk.bf16.mxu1 %vm586_vm1, %v343_v59  ;;  %v237_v13 = vld [vmem:[%s16923_s26 + $0x178] sm:$0xff]  ;;  %v12446_v59 = vld [vmem:[%s16923_s26 + $0x42] sm:$0xff]  ;;  %v2455_v8 = vsel %vm779_vm0, %v11992_v21, 0 }
 0x151   : > { %14935 = vmatprep.mubr.msk.bf16.mxu0 %vm586_vm1, %v17364_v15  ;;  %v239_v15 = vld [vmem:[%s16923_s26 + $0x190] sm:$0xff]  ;;  %v346_v12 = vpack.c.bf16 %v238_v32, %v237_v13  ;;  %16835 = vmatprep.subr.msk.bf16.mxu1 %vm779_vm0, %v11992_v21  ;;  %v16854_v13 = vld [vmem:[%s20978_s1 + $0xc] sm:$0xf]  ;;  %v17673_v32 = vpack.c.bf16 %v12446_v59, %v12445_v55  ;;  %v285_v55 = vld [vmem:[%s16923_s26 + $0x358] sm:$0xff] }
 0x152   : > { %v347_v14 = vpack.c.bf16 %v240_v10, %v239_v15  ;;  %14578 = vmatpush3.bf16.msra.mxu1 %v2455_v8  ;;  %v361_v15 = vpack.c.bf16 %v268_v61, %v267_v6  ;;  %v286_v21 = vld [vmem:[%s16923_s26 + $0x360] sm:$0xff]  ;;  %v12466_v6 = vld [vmem:[%s16923_s26 + $0x10a] sm:$0xff]  ;;  %v288_v8 = vld [vmem:[%s16923_s26 + $0x378] sm:$0xff] }
 0x153   : > { %16837 = vmatprep.subr.msk.bf16.mxu1 %vm779_vm0, %v16854_v13  ;;  %v12465_v59 = vld [vmem:[%s16923_s26 + $0x102] sm:$0xff]  ;;  %v287_v61 = vld [vmem:[%s16923_s26 + $0x370] sm:$0xff] }
 0x154   : > { %v17765_v13 = vpack.c.bf16 %v12466_v6, %v12465_v59  ;;  %v12483_v59 = vld [vmem:[%s16923_s26 + $0x1ba] sm:$0xff]  ;;  %v12484_v6 = vld [vmem:[%s16923_s26 + $0x1c2] sm:$0xff] }
 0x157   : > { %14482 = vmatmul.mubr.msk.bf16.gmra.mrb[32].mxu1 %vm586_vm1, %v344_v25  ;;  %v12448_v25 = vld [vmem:[%s16923_s26 + $0x5a] sm:$0xff] }
 0x158   : > { %14936 = vmatmul.mubr.msk.bf16.gmra.mrb[96].mxu0 %vm586_vm1, %v17378_v34  ;;  %14485 = vmatprep.mubr.msk.bf16.mxu1 %vm586_vm1, %v345_v9  ;;  %v241_v34 = vld [vmem:[%s16923_s26 + $0x1a0] sm:$0xff]  ;;  %v360_v9 = vpack.c.bf16 %v266_v62, %v265_v11  ;;  %v17675_v10 = vpack.c.bf16 %v12448_v25, %v12447_v63  ;;  %v369_v11 = vpack.c.bf16 %v284_v53, %v283_v39 }
 0x159   : > { %14939 = vmatprep.mubr.msk.bf16.mxu0 %vm586_vm1, %v17380_v23  ;;  %v243_v23 = vld [vmem:[%s16923_s26 + $0x1b8] sm:$0xff]  ;;  %v348_v44 = vpack.c.bf16 %v242_v24, %v241_v34  ;;  %v270_v34 = vld [vmem:[%s16923_s26 + $0x2c0] sm:$0xff] }
 0x15a   : > { %v349_v28 = vpack.c.bf16 %v244_v16, %v243_v23  ;;  %v12449_v24 = vld [vmem:[%s16923_s26 + $0x62] sm:$0xff]  ;;  %v12450_v23 = vld [vmem:[%s16923_s26 + $0x6a] sm:$0xff]  ;;  %v272_v16 = vld [vmem:[%s16923_s26 + $0x2d8] sm:$0xff] }
 0x15b   : > { %v12467_v63 = vld [vmem:[%s16923_s26 + $0x11a] sm:$0xff]  ;;  %v12468_v25 = vld [vmem:[%s16923_s26 + $0x122] sm:$0xff] }
 0x15f   : > { %14486 = vmatmul.mubr.msk.bf16.gmra.mrb[36].mxu1 %vm586_vm1, %v346_v12  ;;  %v6705_v12 = vsel %vm779_vm0, %v17506_v20, 0  ;;  %v271_v20 = vld [vmem:[%s16923_s26 + $0x2d0] sm:$0xff] }
 0x160   : > { %14940 = vmatmul.mubr.msk.bf16.gmra.mrb[100].mxu0 %vm586_vm1, %v17394_v46  ;;  %14489 = vmatprep.mubr.msk.bf16.mxu1 %vm586_vm1, %v347_v14  ;;  %v245_v46 = vld [vmem:[%s16923_s26 + $0x1c8] sm:$0xff]  ;;  %v269_v14 = vld [vmem:[%s16923_s26 + $0x2b8] sm:$0xff] }
 0x161   : > { %14943 = vmatprep.mubr.msk.bf16.mxu0 %vm586_vm1, %v17396_v29  ;;  %v247_v29 = vld [vmem:[%s16923_s26 + $0x1e0] sm:$0xff]  ;;  %v350_v33 = vpack.c.bf16 %v246_v30, %v245_v46  ;;  %v362_v46 = vpack.c.bf16 %v270_v34, %v269_v14  ;;  %v17693_v30 = vpack.c.bf16 %v12450_v23, %v12449_v24  ;;  %v290_v34 = vld [vmem:[%s16923_s26 + $0x388] sm:$0xff]  ;;  %v12470_v23 = vld [vmem:[%s16923_s26 + $0x132] sm:$0xff] }
 0x162   : > { %v351_v56 = vpack.c.bf16 %v248_v26, %v247_v29  ;;  %v363_v29 = vpack.c.bf16 %v272_v16, %v271_v20  ;;  %v289_v14 = vld [vmem:[%s16923_s26 + $0x380] sm:$0xff]  ;;  %v12469_v24 = vld [vmem:[%s16923_s26 + $0x12a] sm:$0xff]  ;;  %v291_v20 = vld [vmem:[%s16923_s26 + $0x398] sm:$0xff] }
 0x163   : > { %v292_v16 = vld [vmem:[%s16923_s26 + $0x3a0] sm:$0xff] }
 0x167   : > { %14490 = vmatmul.mubr.msk.bf16.gmra.mrb[40].mxu1 %vm586_vm1, %v348_v44  ;;  %v12451_v44 = vld [vmem:[%s16923_s26 + $0x7a] sm:$0xff] }
 0x168   : > { %14944 = vmatmul.mubr.msk.bf16.gmra.mrb[104].mxu0 %vm586_vm1, %v17410_v58  ;;  %14493 = vmatprep.mubr.msk.bf16.mxu1 %vm586_vm1, %v349_v28  ;;  %v249_v58 = vld [vmem:[%s16923_s26 + $0x1f0] sm:$0xff]  ;;  %v12452_v28 = vld [vmem:[%s16923_s26 + $0x82] sm:$0xff] }
 0x169   : > { %14947 = vmatprep.mubr.msk.bf16.mxu0 %vm586_vm1, %v17412_v38  ;;  %v251_v38 = vld [vmem:[%s16923_s26 + $0x208] sm:$0xff]  ;;  %v352_v50 = vpack.c.bf16 %v250_v27, %v249_v58  ;;  %v17695_v26 = vpack.c.bf16 %v12452_v28, %v12451_v44  ;;  %v12454_v27 = vld [vmem:[%s16923_s26 + $0x92] sm:$0xff] }
 0x16a   : > { %v353_v40 = vpack.c.bf16 %v252_v45, %v251_v38  ;;  %v12453_v58 = vld [vmem:[%s16923_s26 + $0x8a] sm:$0xff]  ;;  %v275_v38 = vld [vmem:[%s16923_s26 + $0x2f8] sm:$0xff]  ;;  %v276_v45 = vld [vmem:[%s16923_s26 + $0x300] sm:$0xff] }
 0x16b   : > { %v12471_v44 = vld [vmem:[%s16923_s26 + $0x142] sm:$0xff]  ;;  %v12472_v28 = vld [vmem:[%s16923_s26 + $0x14a] sm:$0xff] }
 0x16f   : > { %14494 = vmatmul.mubr.msk.bf16.gmra.mrb[44].mxu1 %vm586_vm1, %v350_v33  ;;  %v273_v33 = vld [vmem:[%s16923_s26 + $0x2e0] sm:$0xff] }
 0x170   : > { %14948 = vmatmul.mubr.msk.bf16.gmra.mrb[108].mxu0 %vm586_vm1, %v17426_v7  ;;  %14497 = vmatprep.mubr.msk.bf16.mxu1 %vm586_vm1, %v351_v56  ;;  %v253_v7 = vld [vmem:[%s16923_s26 + $0x218] sm:$0xff]  ;;  %v274_v56 = vld [vmem:[%s16923_s26 + $0x2e8] sm:$0xff] }
 0x171   : > { %14951 = vmatprep.mubr.msk.bf16.mxu0 %vm586_vm1, %v17428_v48  ;;  %v255_v48 = vld [vmem:[%s16923_s26 + $0x230] sm:$0xff]  ;;  %v354_v0 = vpack.c.bf16 %v254_v5, %v253_v7  ;;  %v364_v7 = vpack.c.bf16 %v274_v56, %v273_v33  ;;  %v17711_v5 = vpack.c.bf16 %v12454_v27, %v12453_v58  ;;  %v373_v33 = vpack.c.bf16 %v292_v16, %v291_v20  ;;  %v293_v58 = vld [vmem:[%s16923_s26 + $0x3a8] sm:$0xff] }
 0x172   : > { %v355_v37 = vpack.c.bf16 %v256_v36, %v255_v48  ;;  %v365_v48 = vpack.c.bf16 %v276_v45, %v275_v38  ;;  %v17785_v56 = vpack.c.bf16 %v12472_v28, %v12471_v44  ;;  %v294_v27 = vld [vmem:[%s16923_s26 + $0x3b0] sm:$0xff]  ;;  %v12474_v45 = vld [vmem:[%s16923_s26 + $0x15a] sm:$0xff]  ;;  %v12487_v20 = vld [vmem:[%s16923_s26 + $0x1e2] sm:$0xff] }
 0x173   : > { %v12473_v38 = vld [vmem:[%s16923_s26 + $0x152] sm:$0xff]  ;;  %v12488_v16 = vld [vmem:[%s16923_s26 + $0x1ea] sm:$0xff] }
 0x177   : > { %14498 = vmatmul.mubr.msk.bf16.gmra.mrb[48].mxu1 %vm586_vm1, %v352_v50  ;;  %v12455_v50 = vld [vmem:[%s16923_s26 + $0xa2] sm:$0xff] }
 0x178   : > { %14952 = vmatmul.mubr.msk.bf16.gmra.mrb[112].mxu0 %vm586_vm1, %v17442_v19  ;;  %14501 = vmatprep.mubr.msk.bf16.mxu1 %vm586_vm1, %v353_v40  ;;  %v257_v19 = vld [vmem:[%s16923_s26 + $0x240] sm:$0xff]  ;;  %v12456_v40 = vld [vmem:[%s16923_s26 + $0xaa] sm:$0xff] }
 0x179   : > { %14955 = vmatprep.mubr.msk.bf16.mxu0 %vm586_vm1, %v17444_v54  ;;  %v259_v54 = vld [vmem:[%s16923_s26 + $0x258] sm:$0xff]  ;;  %v356_v18 = vpack.c.bf16 %v258_v2, %v257_v19  ;;  %v17713_v36 = vpack.c.bf16 %v12456_v40, %v12455_v50  ;;  %v295_v50 = vld [vmem:[%s16923_s26 + $0x3c0] sm:$0xff]  ;;  %v296_v40 = vld [vmem:[%s16923_s26 + $0x3c8] sm:$0xff] }
 0x17a   : > { %v12457_v19 = vld [vmem:[%s16923_s26 + $0xb2] sm:$0xff]  ;;  %v12458_v2 = vld [vmem:[%s16923_s26 + $0xba] sm:$0xff] }
 0x17f   : > { %14502 = vmatmul.mubr.msk.bf16.gmra.mrb[52].mxu1 %vm586_vm1, %v354_v0  ;;  %v277_v0 = vld [vmem:[%s16923_s26 + $0x308] sm:$0xff] }
 0x180   : > { %14956 = vmatmul.mubr.msk.bf16.gmra.mrb[116].mxu0 %vm586_vm1, %v17458_v35  ;;  %14505 = vmatprep.mubr.msk.bf16.mxu1 %vm586_vm1, %v355_v37  ;;  %v357_v35 = vpack.c.bf16 %v260_v51, %v259_v54  ;;  %v278_v37 = vld [vmem:[%s16923_s26 + $0x310] sm:$0xff]  ;;  %v279_v54 = vld [vmem:[%s16923_s26 + $0x320] sm:$0xff]  ;;  %v280_v51 = vld [vmem:[%s16923_s26 + $0x328] sm:$0xff] }
 0x181   : > { %14959 = vmatprep.mubr.msk.bf16.mxu0 %vm586_vm1, %v17460_v1  ;;  %v261_v1 = vld [vmem:[%s16923_s26 + $0x268] sm:$0xff] }
 0x182   : > { %v358_v4 = vpack.c.bf16 %v262_v22, %v261_v1  ;;  %v17731_v1 = vpack.c.bf16 %v12460_v42, %v12459_v17  ;;  %v281_v22 = vld [vmem:[%s16923_s26 + $0x330] sm:$0xff]  ;;  %v12477_v17 = vld [vmem:[%s16923_s26 + $0x17a] sm:$0xff]  ;;  %v12478_v42 = vld [vmem:[%s16923_s26 + $0x182] sm:$0xff] }
 0x187   : > { %14506 = vmatmul.mubr.msk.bf16.gmra.mrb[56].mxu1 %vm586_vm1, %v356_v18  ;;  %v366_v18 = vpack.c.bf16 %v278_v37, %v277_v0  ;;  %v374_v0 = vpack.c.bf16 %v294_v27, %v293_v58  ;;  %v17801_v37 = vpack.c.bf16 %v12474_v45, %v12473_v38  ;;  %v309_v58 = vld [vmem:[%s16923_s26 + $0x448] sm:$0xff]  ;;  %v310_v27 = vld [vmem:[%s16923_s26 + $0x450] sm:$0xff]  ;;  %v12490_v45 = vld [vmem:[%s16923_s26 + $0x1fa] sm:$0xff] }
 0x188   : > { %14960 = vmatmul.mubr.msk.bf16.gmra.mrb[120].mxu0 %vm586_vm1, %v17474_v49  ;;  %14509 = vmatprep.mubr.msk.bf16.mxu1 %vm586_vm1, %v357_v35  ;;  %v4384_v49 = vpack.c.bf16 %v12377_v31, %v12376_v57  ;;  %v17729_v35 = vpack.c.bf16 %v12458_v2, %v12457_v19  ;;  %v282_v57 = vld [vmem:[%s16923_s26 + $0x338] sm:$0xff]  ;;  %v375_v19 = vpack.c.bf16 %v296_v40, %v295_v50  ;;  %v311_v50 = vld [vmem:[%s16923_s26 + $0x460] sm:$0xff]  ;;  %v312_v40 = vld [vmem:[%s16923_s26 + $0x468] sm:$0xff] }
 0x189   : > { %14963 = vmatprep.mubr.msk.bf16.mxu0 %vm586_vm1, %v4383_v43  ;;  %v367_v43 = vpack.c.bf16 %v280_v51, %v279_v54  ;;  %v12461_v31 = vld [vmem:[%s16923_s26 + $0xda] sm:$0xff]  ;;  %v297_v54 = vld [vmem:[%s16923_s26 + $0x3d0] sm:$0xff] }
 0x18a   : > { %v298_v51 = vld [vmem:[%s16923_s26 + $0x3d8] sm:$0xff] }
 0x18b   : > { %v12489_v38 = vld [vmem:[%s16923_s26 + $0x1f2] sm:$0xff] }
 0x18f   : > { %14510 = vmatmul.mubr.msk.bf16.gmra.mrb[60].mxu1 %vm586_vm1, %v358_v4  ;;  %v12464_v4 = vld [vmem:[%s16923_s26 + $0xfa] sm:$0xff] }
 0x190   : > { %14964 = vmatmul.mubr.msk.bf16.gmra.mrb[124].mxu0 %vm586_vm1, %v4384_v49  ;;  %14513 = vmatprep.mubr.msk.bf16.mxu1 %vm586_vm1, %v359_v47  ;;  %v368_v49 = vpack.c.bf16 %v282_v57, %v281_v22  ;;  %v17747_v47 = vpack.c.bf16 %v12462_v52, %v12461_v31  ;;  %v17749_v62 = vpack.c.bf16 %v12464_v4, %v12463_v41  ;;  %v12479_v22 = vld [vmem:[%s16923_s26 + $0x192] sm:$0xff]  ;;  %v12480_v57 = vld [vmem:[%s16923_s26 + $0x19a] sm:$0xff] }
 0x191   : > { %14969 = vmatprep.mubr.msk.bf16.mxu0 %vm586_vm1, %v17649_v60  ;;  %v376_v31 = vpack.c.bf16 %v298_v51, %v297_v54  ;;  %v17819_v52 = vpack.c.bf16 %v12478_v42, %v12477_v17  ;;  %v17821_v53 = vpack.c.bf16 %v12480_v57, %v12479_v22  ;;  %v301_v41 = vld [vmem:[%s16923_s26 + $0x3f8] sm:$0xff]  ;;  %v302_v4 = vld [vmem:[%s16923_s26 + $0x400] sm:$0xff]  ;;  %v383_v54 = vpack.c.bf16 %v312_v40, %v311_v50  ;;  %v313_v17 = vld [vmem:[%s16923_s26 + $0x470] sm:$0xff] }
 0x192   : > { %v314_v42 = vld [vmem:[%s16923_s26 + $0x478] sm:$0xff]  ;;  %v315_v22 = vld [vmem:[%s16923_s26 + $0x488] sm:$0xff]  ;;  %v316_v57 = vld [vmem:[%s16923_s26 + $0x490] sm:$0xff] }
 0x197   : > { %14514 = vmatmul.mubr.msk.bf16.gmra.mrb[64].mxu1 %vm586_vm1, %v360_v9  ;;  %v370_v9 = vpack.c.bf16 %v286_v21, %v285_v55  ;;  %v303_v55 = vld [vmem:[%s16923_s26 + $0x410] sm:$0xff]  ;;  %v304_v21 = vld [vmem:[%s16923_s26 + $0x418] sm:$0xff] }
 0x198   : > { %14970 = vmatmul.mubr.msk.bf16.vlgmr.msra.gmra.mrb[0].mxu0 %vm586_vm1, %v17673_v32  ;;  %14517 = vmatprep.mubr.msk.bf16.mxu1 %vm586_vm1, %v361_v15  ;;  %v371_v15 = vpack.c.bf16 %v288_v8, %v287_v61  ;;  %v378_v61 = vpack.c.bf16 %v302_v4, %v301_v41  ;;  %v384_v41 = vpack.c.bf16 %v314_v42, %v313_v17  ;;  %v12505_v17 = vld [vmem:[%s16923_s26 + $0x292] sm:$0xff]  ;;  %v12506_v42 = vld [vmem:[%s16923_s26 + $0x29a] sm:$0xff] }
 0x199   : > { %14973 = vmatprep.mubr.msk.bf16.mxu0 %vm586_vm1, %v17675_v10  ;;  %15098 = vmatpush3.bf16.msra.mxu0 %v6705_v12  ;;  %v17767_v12 = vpack.c.bf16 %v12468_v25, %v12467_v63  ;;  %v379_v63 = vpack.c.bf16 %v304_v21, %v303_v55  ;;  %v17839_v25 = vpack.c.bf16 %v12484_v6, %v12483_v59  ;;  %v317_v55 = vld [vmem:[%s16923_s26 + $0x498] sm:$0xff]  ;;  %v318_v21 = vld [vmem:[%s16923_s26 + $0x4a0] sm:$0xff]  ;;  %v12498_v6 = vld [vmem:[%s16923_s26 + $0x24a] sm:$0xff] }
 0x19a   : > { %v12497_v59 = vld [vmem:[%s16923_s26 + $0x242] sm:$0xff] }
 0x19f   : > { %14518 = vmatmul.mubr.msk.bf16.gmra.mrb[68].mxu1 %vm586_vm1, %v362_v46  ;;  %v372_v46 = vpack.c.bf16 %v290_v34, %v289_v14  ;;  %v12485_v14 = vld [vmem:[%s16923_s26 + $0x1ca] sm:$0xff]  ;;  %v12486_v34 = vld [vmem:[%s16923_s26 + $0x1d2] sm:$0xff] }
 0x1a0   : > { %14974 = vmatmul.mubr.msk.bf16.gmra.mrb[4].mxu0 %vm586_vm1, %v17693_v30  ;;  %14521 = vmatprep.mubr.msk.bf16.mxu1 %vm586_vm1, %v363_v29  ;;  %v17783_v29 = vpack.c.bf16 %v12470_v23, %v12469_v24  ;;  %v307_v24 = vld [vmem:[%s16923_s26 + $0x438] sm:$0xff]  ;;  %v308_v23 = vld [vmem:[%s16923_s26 + $0x440] sm:$0xff]  ;;  %v17855_v28 = vpack.c.bf16 %v12486_v34, %v12485_v14  ;;  %v386_v14 = vpack.c.bf16 %v318_v21, %v317_v55 }
 0x1a1   : > { %14977 = vmatprep.mubr.msk.bf16.mxu0 %vm586_vm1, %v17695_v26  ;;  %v17909_v34 = vpack.c.bf16 %v12498_v6, %v12497_v59  ;;  %v2070_v55 = vld [vmem:[%s16923_s26 + $0x12] sm:$0xff]  ;;  %v2071_v21 = vld [vmem:[%s16923_s26 + $0x1a] sm:$0xff]  ;;  %v12510_v6 = vld [vmem:[%s16923_s26 + $0x2c2] sm:$0xff] }
 0x1a2   : > { %v12509_v59 = vld [vmem:[%s16923_s26 + $0x2ba] sm:$0xff] }
 0x1a7   : > { %14522 = vmatmul.mubr.msk.bf16.gmra.mrb[72].mxu1 %vm586_vm1, %v364_v7  ;;  %v12475_v7 = vld [vmem:[%s16923_s26 + $0x16a] sm:$0xff] }
 0x1a8   : > { %14978 = vmatmul.mubr.msk.bf16.gmra.mrb[8].mxu0 %vm586_vm1, %v17711_v5  ;;  %14525 = vmatprep.mubr.msk.bf16.mxu1 %vm586_vm1, %v365_v48  ;;  %v12476_v48 = vld [vmem:[%s16923_s26 + $0x172] sm:$0xff] }
 0x1a9   : > { %14981 = vmatprep.mubr.msk.bf16.mxu0 %vm586_vm1, %v17713_v36  ;;  %v17803_v2 = vpack.c.bf16 %v12476_v48, %v12475_v7  ;;  %v12491_v7 = vld [vmem:[%s16923_s26 + $0x20a] sm:$0xff]  ;;  %v12492_v48 = vld [vmem:[%s16923_s26 + $0x212] sm:$0xff] }
 0x1aa   : > { %v17875_v51 = vpack.c.bf16 %v12492_v48, %v12491_v7 }
 0x1af   : > { %14526 = vmatmul.mubr.msk.bf16.gmra.mrb[76].mxu1 %vm586_vm1, %v366_v18  ;;  %v299_v18 = vld [vmem:[%s16923_s26 + $0x3e8] sm:$0xff] }
 0x1b0   : > { %14982 = vmatmul.mubr.msk.bf16.gmra.mrb[12].mxu0 %vm586_vm1, %v17729_v35  ;;  %14529 = vmatprep.mubr.msk.bf16.mxu1 %vm586_vm1, %v367_v43  ;;  %v300_v43 = vld [vmem:[%s16923_s26 + $0x3f0] sm:$0xff] }
 0x1b1   : > { %14985 = vmatprep.mubr.msk.bf16.mxu0 %vm586_vm1, %v17731_v1  ;;  %v377_v39 = vpack.c.bf16 %v300_v43, %v299_v18  ;;  %v12493_v18 = vld [vmem:[%s16923_s26 + $0x21a] sm:$0xff]  ;;  %v12494_v43 = vld [vmem:[%s16923_s26 + $0x222] sm:$0xff] }
 0x1b2   : > { %v17891_v4 = vpack.c.bf16 %v12494_v43, %v12493_v18  ;;  %v2068_v18 = vld [vmem:[%s16923_s26 + $0x2] sm:$0xff]  ;;  %v2069_v43 = vld [vmem:[%s16923_s26 + $0xa] sm:$0xff] }
 0x1b7   : > { %14530 = vmatmul.mubr.msk.bf16.gmra.mrb[80].mxu1 %vm586_vm1, %v368_v49  ;;  %v12481_v49 = vld [vmem:[%s16923_s26 + $0x1a2] sm:$0xff] }
 0x1b8   : > { %14986 = vmatmul.mubr.msk.bf16.gmra.mrb[16].mxu0 %vm586_vm1, %v17747_v47  ;;  %14533 = vmatprep.mubr.msk.bf16.mxu1 %vm586_vm1, %v369_v11  ;;  %v12482_v11 = vld [vmem:[%s16923_s26 + $0x1aa] sm:$0xff] }
 0x1b9   : > { %14989 = vmatprep.mubr.msk.bf16.mxu0 %vm586_vm1, %v17749_v62  ;;  %v17837_v8 = vpack.c.bf16 %v12482_v11, %v12481_v49  ;;  %v385_v49 = vpack.c.bf16 %v316_v57, %v315_v22  ;;  %v12507_v22 = vld [vmem:[%s16923_s26 + $0x2aa] sm:$0xff]  ;;  %v12508_v57 = vld [vmem:[%s16923_s26 + $0x2b2] sm:$0xff] }
 0x1bf   : > { %14534 = vmatmul.mubr.msk.bf16.gmra.mrb[84].mxu1 %vm586_vm1, %v370_v9  ;;  %v305_v9 = vld [vmem:[%s16923_s26 + $0x420] sm:$0xff] }
 0x1c0   : > { %14990 = vmatmul.mubr.msk.bf16.gmra.mrb[20].mxu0 %vm586_vm1, %v17765_v13  ;;  %14537 = vmatprep.mubr.msk.bf16.mxu1 %vm586_vm1, %v371_v15  ;;  %v306_v15 = vld [vmem:[%s16923_s26 + $0x428] sm:$0xff] }
 0x1c1   : > { %14993 = vmatprep.mubr.msk.bf16.mxu0 %vm586_vm1, %v17767_v12  ;;  %v380_v44 = vpack.c.bf16 %v306_v15, %v305_v9  ;;  %v12499_v9 = vld [vmem:[%s16923_s26 + $0x25a] sm:$0xff]  ;;  %v12500_v15 = vld [vmem:[%s16923_s26 + $0x262] sm:$0xff] }
 0x1c7   : > { %14538 = vmatmul.mubr.msk.bf16.gmra.mrb[88].mxu1 %vm586_vm1, %v372_v46  ;;  %v381_v46 = vpack.c.bf16 %v308_v23, %v307_v24  ;;  %v17911_v23 = vpack.c.bf16 %v12500_v15, %v12499_v9  ;;  %v2197_v9 = vpack.c.bf16 %v2071_v21, %v2070_v55  ;;  %v17961_v15 = vpack.c.bf16 %v12510_v6, %v12509_v59  ;;  %v12535_v59 = vld [vmem:[%s16923_s26 + $0x3c2] sm:$0xff]  ;;  %v12536_v6 = vld [vmem:[%s16923_s26 + $0x3ca] sm:$0xff] }
 0x1c8   : > { %14994 = vmatmul.mubr.msk.bf16.gmra.mrb[24].mxu0 %vm586_vm1, %v17783_v29  ;;  %14541 = vmatprep.mubr.msk.bf16.mxu1 %vm586_vm1, %v373_v33  ;;  %v17857_v33 = vpack.c.bf16 %v12488_v16, %v12487_v20  ;;  %v321_v20 = vld [vmem:[%s16923_s26 + $0x4c0] sm:$0xff]  ;;  %v322_v16 = vld [vmem:[%s16923_s26 + $0x4c8] sm:$0xff] }
 0x1c9   : > { %14997 = vmatprep.mubr.msk.bf16.mxu0 %vm586_vm1, %v17785_v56  ;;  %v388_v50 = vpack.c.bf16 %v322_v16, %v321_v20  ;;  %v12514_v20 = vld [vmem:[%s16923_s26 + $0x2ea] sm:$0xff]  ;;  %v12515_v16 = vld [vmem:[%s16923_s26 + $0x2fa] sm:$0xff] }
 0x1cf   : > { %14542 = vmatmul.mubr.msk.bf16.gmra.mrb[92].mxu1 %vm586_vm1, %v374_v0  ;;  %v382_v0 = vpack.c.bf16 %v310_v27, %v309_v58  ;;  %v323_v58 = vld [vmem:[%s16923_s26 + $0x4d8] sm:$0xff]  ;;  %v324_v27 = vld [vmem:[%s16923_s26 + $0x4e0] sm:$0xff] }
 0x1d0   : > { %14998 = vmatmul.mubr.msk.bf16.gmra.mrb[28].mxu0 %vm586_vm1, %v17801_v37  ;;  %14545 = vmatprep.mubr.msk.bf16.mxu1 %vm586_vm1, %v375_v19  ;;  %v17873_v19 = vpack.c.bf16 %v12490_v45, %v12489_v38  ;;  %v12503_v38 = vld [vmem:[%s16923_s26 + $0x282] sm:$0xff]  ;;  %v12504_v45 = vld [vmem:[%s16923_s26 + $0x28a] sm:$0xff]  ;;  %v389_v7 = vpack.c.bf16 %v324_v27, %v323_v58 }
 0x1d1   : > { %15001 = vmatprep.mubr.msk.bf16.mxu0 %vm586_vm1, %v17803_v2  ;;  %v17929_v48 = vpack.c.bf16 %v12504_v45, %v12503_v38  ;;  %v12519_v27 = vld [vmem:[%s16923_s26 + $0x322] sm:$0xff]  ;;  %v12520_v38 = vld [vmem:[%s16923_s26 + $0x32a] sm:$0xff] }
 0x1d7   : > { %14546 = vmatmul.mubr.msk.bf16.gmra.mrb[96].mxu1 %vm586_vm1, %v376_v31  ;;  %v12495_v31 = vld [vmem:[%s16923_s26 + $0x232] sm:$0xff] }
 0x1d8   : > { %15002 = vmatmul.mubr.msk.bf16.gmra.mrb[32].mxu0 %vm586_vm1, %v17819_v52  ;;  %14549 = vmatprep.mubr.msk.bf16.mxu1 %vm586_vm1, %v377_v39  ;;  %v12496_v39 = vld [vmem:[%s16923_s26 + $0x23a] sm:$0xff] }
 0x1d9   : > { %15005 = vmatprep.mubr.msk.bf16.mxu0 %vm586_vm1, %v17821_v53  ;;  %v17893_v11 = vpack.c.bf16 %v12496_v39, %v12495_v31  ;;  %v17945_v39 = vpack.c.bf16 %v12506_v42, %v12505_v17 }
 0x1df   : > { %14550 = vmatmul.mubr.msk.bf16.gmra.mrb[100].mxu1 %vm586_vm1, %v378_v61  ;;  %v319_v61 = vld [vmem:[%s16923_s26 + $0x4b0] sm:$0xff] }
 0x1e0   : > { %15006 = vmatmul.mubr.msk.bf16.gmra.mrb[36].mxu0 %vm586_vm1, %v17837_v8  ;;  %14553 = vmatprep.mubr.msk.bf16.mxu1 %vm586_vm1, %v379_v63  ;;  %v320_v63 = vld [vmem:[%s16923_s26 + $0x4b8] sm:$0xff] }
 0x1e1   : > { %15009 = vmatprep.mubr.msk.bf16.mxu0 %vm586_vm1, %v17839_v25  ;;  %v387_v24 = vpack.c.bf16 %v320_v63, %v319_v61  ;;  %v12511_v61 = vld [vmem:[%s16923_s26 + $0x2d2] sm:$0xff]  ;;  %v12512_v63 = vld [vmem:[%s16923_s26 + $0x2da] sm:$0xff] }
 0x1e7   : > { %14554 = vmatmul.mubr.msk.bf16.gmra.mrb[104].mxu1 %vm586_vm1, %v380_v44  ;;  %v12501_v44 = vld [vmem:[%s16923_s26 + $0x26a] sm:$0xff] }
 0x1e8   : > { %15010 = vmatmul.mubr.msk.bf16.gmra.mrb[40].mxu0 %vm586_vm1, %v17855_v28  ;;  %14557 = vmatprep.mubr.msk.bf16.mxu1 %vm586_vm1, %v381_v46  ;;  %v12502_v46 = vld [vmem:[%s16923_s26 + $0x272] sm:$0xff] }
 0x1e9   : > { %15013 = vmatprep.mubr.msk.bf16.mxu0 %vm586_vm1, %v17857_v33  ;;  %v17927_v40 = vpack.c.bf16 %v12502_v46, %v12501_v44  ;;  %v12516_v44 = vld [vmem:[%s16923_s26 + $0x302] sm:$0xff] }
 0x1ea   : > { %v17979_v58 = vpack.c.bf16 %v12516_v44, %v12515_v16  ;;  %v12543_v44 = vld [vmem:[%s16923_s26 + $0x412] sm:$0xff] }
 0x1ef   : > { %14558 = vmatmul.mubr.msk.bf16.gmra.mrb[108].mxu1 %vm586_vm1, %v382_v0  ;;  %v325_v0 = vld [vmem:[%s16923_s26 + $0x4e8] sm:$0xff] }
 0x1f0   : > { %15014 = vmatmul.mubr.msk.bf16.gmra.mrb[44].mxu0 %vm586_vm1, %v17873_v19  ;;  %14561 = vmatprep.mubr.msk.bf16.mxu1 %vm586_vm1, %v383_v54  ;;  %v326_v54 = vld [vmem:[%s16923_s26 + $0x4f0] sm:$0xff] }
 0x1f1   : > { %15017 = vmatprep.mubr.msk.bf16.mxu0 %vm586_vm1, %v17875_v51  ;;  %v390_v31 = vpack.c.bf16 %v326_v54, %v325_v0  ;;  %v12523_v0 = vld [vmem:[%s16923_s26 + $0x34a] sm:$0xff]  ;;  %v12524_v54 = vld [vmem:[%s16923_s26 + $0x352] sm:$0xff] }
 0x1f2   : > { %v18018_v42 = vpack.c.bf16 %v12524_v54, %v12523_v0  ;;  %v12551_v54 = vld [vmem:[%s16923_s26 + $0x462] sm:$0xff] }
 0x1f7   : > { %14562 = vmatmul.mubr.msk.bf16.gmra.mrb[112].mxu1 %vm586_vm1, %v384_v41  ;;  %v2196_v41 = vpack.c.bf16 %v2069_v43, %v2068_v18  ;;  %v12527_v18 = vld [vmem:[%s16923_s26 + $0x372] sm:$0xff]  ;;  %v12528_v43 = vld [vmem:[%s16923_s26 + $0x37a] sm:$0xff] }
 0x1f8   : > { %15018 = vmatmul.mubr.msk.bf16.gmra.mrb[48].mxu0 %vm586_vm1, %v17891_v4  ;;  %14565 = vmatprep.mubr.msk.bf16.mxu1 %vm586_vm1, %v385_v49  ;;  %v17947_v49 = vpack.c.bf16 %v12508_v57, %v12507_v22  ;;  %v18034_v57 = vpack.c.bf16 %v12528_v43, %v12527_v18  ;;  %v12555_v43 = vld [vmem:[%s16923_s26 + $0x48a] sm:$0xff] }
 0x1f9   : > { %15021 = vmatprep.mubr.msk.bf16.mxu0 %vm586_vm1, %v17893_v11 }
 0x1ff   : > { %14566 = vmatmul.mubr.msk.bf16.gmra.mrb[116].mxu1 %vm586_vm1, %v386_v14  ;;  %v17963_v14 = vpack.c.bf16 %v12512_v63, %v12511_v61  ;;  %v18066_v63 = vpack.c.bf16 %v12536_v6, %v12535_v59  ;;  %v12563_v6 = vld [vmem:[%s16923_s26 + $0x4da] sm:$0xff] }
 0x200   : > { %15022 = vmatmul.mubr.msk.bf16.gmra.mrb[52].mxu0 %vm586_vm1, %v17909_v34  ;;  %14569 = vmatprep.mubr.msk.bf16.mxu1 %vm586_vm1, %v387_v24  ;;  %v12513_v24 = vld [vmem:[%s16923_s26 + $0x2e2] sm:$0xff] }
 0x201   : > { %15025 = vmatprep.mubr.msk.bf16.mxu0 %vm586_vm1, %v17911_v23  ;;  %v17977_v46 = vpack.c.bf16 %v12514_v20, %v12513_v24  ;;  %v12540_v24 = vld [vmem:[%s16923_s26 + $0x3f2] sm:$0xff] }
 0x207   : > { %14570 = vmatmul.mubr.msk.bf16.gmra.mrb[120].mxu1 %vm586_vm1, %v388_v50  ;;  %v12521_v50 = vld [vmem:[%s16923_s26 + $0x332] sm:$0xff] }
 0x208   : > { %15026 = vmatmul.mubr.msk.bf16.gmra.mrb[56].mxu0 %vm586_vm1, %v17927_v40  ;;  %14573 = vmatprep.mubr.msk.bf16.mxu1 %vm586_vm1, %v389_v7  ;;  %v12522_v7 = vld [vmem:[%s16923_s26 + $0x33a] sm:$0xff] }
 0x209   : > { %15029 = vmatprep.mubr.msk.bf16.mxu0 %vm586_vm1, %v17929_v48  ;;  %v18016_v17 = vpack.c.bf16 %v12522_v7, %v12521_v50  ;;  %v12548_v50 = vld [vmem:[%s16923_s26 + $0x442] sm:$0xff] }
 0x20f   : > { %14574 = vmatmul.mubr.msk.bf16.gmra.mrb[124].mxu1 %vm586_vm1, %v390_v31  ;;  %v12531_v31 = vld [vmem:[%s16923_s26 + $0x39a] sm:$0xff] }
 0x210   : > { %15030 = vmatmul.mubr.msk.bf16.gmra.mrb[60].mxu0 %vm586_vm1, %v17945_v39  ;;  %14579 = vmatprep.mubr.msk.bf16.mxu1 %vm586_vm1, %v2196_v41  ;;  %v12532_v41 = vld [vmem:[%s16923_s26 + $0x3a2] sm:$0xff] }
 0x211   : > { %15033 = vmatprep.mubr.msk.bf16.mxu0 %vm586_vm1, %v17947_v49  ;;  %v18050_v21 = vpack.c.bf16 %v12532_v41, %v12531_v31  ;;  %v12559_v41 = vld [vmem:[%s16923_s26 + $0x4b2] sm:$0xff] }
 0x217   : > { %14580 = vmatmul.mubr.msk.bf16.vlgmr.msra.gmra.mrb[0].mxu1 %vm586_vm1, %v2197_v9  ;;  %v12539_v9 = vld [vmem:[%s16923_s26 + $0x3ea] sm:$0xff] }
 0x218   : > { %15034 = vmatmul.mubr.msk.bf16.gmra.mrb[64].mxu0 %vm586_vm1, %v17961_v15  ;;  %14583 = vmatprep.mubr.msk.bf16.mxu1 %vm586_vm1, %v17649_v60  ;;  %v12517_v60 = vld [vmem:[%s16923_s26 + $0x30a] sm:$0xff]  ;;  %v18082_v16 = vpack.c.bf16 %v12540_v24, %v12539_v9  ;;  %v12567_v24 = vld [vmem:[%s16923_s26 + $0x502] sm:$0xff] }
 0x219   : > { %15037 = vmatprep.mubr.msk.bf16.mxu0 %vm586_vm1, %v17963_v14  ;;  %15680 = vmatpush3.bf16.msra.mxu1 %v16910_v3  ;;  %v17990_v3 = vld [vmem:[%s20978_s1 + $0x1c] sm:$0xf] }
 0x21a   : > { %16841 = vmatprep.subr.msk.bf16.mxu0 %vm779_vm0, %v17990_v3 }
 0x21f   : > { %14584 = vmatmul.mubr.msk.bf16.gmra.mrb[4].mxu1 %vm586_vm1, %v17673_v32  ;;  %v12518_v32 = vld [vmem:[%s16923_s26 + $0x312] sm:$0xff] }
 0x220   : > { %15038 = vmatmul.mubr.msk.bf16.gmra.mrb[68].mxu0 %vm586_vm1, %v17977_v46  ;;  %14587 = vmatprep.mubr.msk.bf16.mxu1 %vm586_vm1, %v17675_v10  ;;  %v18000_v45 = vpack.c.bf16 %v12518_v32, %v12517_v60  ;;  %v18002_v10 = vpack.c.bf16 %v12520_v38, %v12519_v27  ;;  %v12544_v60 = vld [vmem:[%s16923_s26 + $0x41a] sm:$0xff] }
 0x221   : > { %15041 = vmatprep.mubr.msk.bf16.mxu0 %vm586_vm1, %v17979_v58  ;;  %v18098_v27 = vpack.c.bf16 %v12544_v60, %v12543_v44  ;;  %v12547_v38 = vld [vmem:[%s16923_s26 + $0x43a] sm:$0xff]  ;;  %v12636_v60 = vld [vmem:[%s16923_s26 + $0x50] sm:$0xff] }
 0x222   : > { %v18114_v0 = vpack.c.bf16 %v12548_v50, %v12547_v38  ;;  %v12640_v50 = vld [vmem:[%s16923_s26 + $0x78] sm:$0xff] }
 0x227   : > { %14588 = vmatmul.mubr.msk.bf16.gmra.mrb[8].mxu1 %vm586_vm1, %v17693_v30  ;;  %v12525_v30 = vld [vmem:[%s16923_s26 + $0x35a] sm:$0xff] }
 0x228   : > { %15042 = vmatmul.mubr.msk.bf16.gmra.mrb[72].mxu0 %vm586_vm1, %v18000_v45  ;;  %14591 = vmatprep.mubr.msk.bf16.mxu1 %vm586_vm1, %v17695_v26  ;;  %v12526_v26 = vld [vmem:[%s16923_s26 + $0x362] sm:$0xff] }
 0x229   : > { %15045 = vmatprep.mubr.msk.bf16.mxu0 %vm586_vm1, %v18002_v10  ;;  %v18032_v22 = vpack.c.bf16 %v12526_v26, %v12525_v30  ;;  %v12552_v30 = vld [vmem:[%s16923_s26 + $0x46a] sm:$0xff] }
 0x22a   : > { %v18130_v18 = vpack.c.bf16 %v12552_v30, %v12551_v54  ;;  %v7767_v30 = vsel %vm779_vm0, %v17990_v3, 0 }
 0x22f   : > { %14592 = vmatmul.mubr.msk.bf16.gmra.mrb[12].mxu1 %vm586_vm1, %v17711_v5  ;;  %v12529_v5 = vld [vmem:[%s16923_s26 + $0x382] sm:$0xff] }
 0x230   : > { %15046 = vmatmul.mubr.msk.bf16.gmra.mrb[76].mxu0 %vm586_vm1, %v18016_v17  ;;  %14595 = vmatprep.mubr.msk.bf16.mxu1 %vm586_vm1, %v17713_v36  ;;  %v12530_v36 = vld [vmem:[%s16923_s26 + $0x38a] sm:$0xff] }
 0x231   : > { %15049 = vmatprep.mubr.msk.bf16.mxu0 %vm586_vm1, %v18018_v42  ;;  %v18048_v55 = vpack.c.bf16 %v12530_v36, %v12529_v5  ;;  %v12556_v5 = vld [vmem:[%s16923_s26 + $0x492] sm:$0xff] }
 0x232   : > { %v18146_v31 = vpack.c.bf16 %v12556_v5, %v12555_v43  ;;  %v12648_v5 = vld [vmem:[%s16923_s26 + $0xc8] sm:$0xff] }
 0x237   : > { %14596 = vmatmul.mubr.msk.bf16.gmra.mrb[16].mxu1 %vm586_vm1, %v17729_v35  ;;  %v12533_v35 = vld [vmem:[%s16923_s26 + $0x3aa] sm:$0xff] }
 0x238   : > { %15050 = vmatmul.mubr.msk.bf16.gmra.mrb[80].mxu0 %vm586_vm1, %v18032_v22  ;;  %14599 = vmatprep.mubr.msk.bf16.mxu1 %vm586_vm1, %v17731_v1  ;;  %v12534_v1 = vld [vmem:[%s16923_s26 + $0x3b2] sm:$0xff] }
 0x239   : > { %15053 = vmatprep.mubr.msk.bf16.mxu0 %vm586_vm1, %v18034_v57  ;;  %v18064_v61 = vpack.c.bf16 %v12534_v1, %v12533_v35  ;;  %v12560_v35 = vld [vmem:[%s16923_s26 + $0x4ba] sm:$0xff] }
 0x23a   : > { %v18162_v59 = vpack.c.bf16 %v12560_v35, %v12559_v41  ;;  %v12652_v35 = vld [vmem:[%s16923_s26 + $0xf0] sm:$0xff] }
 0x23f   : > { %14600 = vmatmul.mubr.msk.bf16.gmra.mrb[20].mxu1 %vm586_vm1, %v17747_v47  ;;  %v12537_v47 = vld [vmem:[%s16923_s26 + $0x3d2] sm:$0xff] }
 0x240   : > { %15054 = vmatmul.mubr.msk.bf16.gmra.mrb[84].mxu0 %vm586_vm1, %v18048_v55  ;;  %14603 = vmatprep.mubr.msk.bf16.mxu1 %vm586_vm1, %v17749_v62  ;;  %v12538_v62 = vld [vmem:[%s16923_s26 + $0x3da] sm:$0xff] }
 0x241   : > { %15057 = vmatprep.mubr.msk.bf16.mxu0 %vm586_vm1, %v18050_v21  ;;  %v18080_v20 = vpack.c.bf16 %v12538_v62, %v12537_v47  ;;  %v12564_v47 = vld [vmem:[%s16923_s26 + $0x4e2] sm:$0xff] }
 0x242   : > { %v18178_v9 = vpack.c.bf16 %v12564_v47, %v12563_v6  ;;  %v12656_v47 = vld [vmem:[%s16923_s26 + $0x118] sm:$0xff] }
 0x247   : > { %14604 = vmatmul.mubr.msk.bf16.gmra.mrb[24].mxu1 %vm586_vm1, %v17765_v13  ;;  %v12541_v13 = vld [vmem:[%s16923_s26 + $0x3fa] sm:$0xff] }
 0x248   : > { %15058 = vmatmul.mubr.msk.bf16.gmra.mrb[88].mxu0 %vm586_vm1, %v18064_v61  ;;  %14607 = vmatprep.mubr.msk.bf16.mxu1 %vm586_vm1, %v17767_v12  ;;  %v12542_v12 = vld [vmem:[%s16923_s26 + $0x402] sm:$0xff] }
 0x249   : > { %15061 = vmatprep.mubr.msk.bf16.mxu0 %vm586_vm1, %v18066_v63  ;;  %v18096_v32 = vpack.c.bf16 %v12542_v12, %v12541_v13  ;;  %v12568_v13 = vld [vmem:[%s16923_s26 + $0x50a] sm:$0xff] }
 0x24a   : > { %v5445_v44 = vpack.c.bf16 %v12568_v13, %v12567_v24  ;;  %v12660_v13 = vld [vmem:[%s16923_s26 + $0x140] sm:$0xff] }
 0x24f   : > { %14608 = vmatmul.mubr.msk.bf16.gmra.mrb[28].mxu1 %vm586_vm1, %v17783_v29  ;;  %v12545_v29 = vld [vmem:[%s16923_s26 + $0x422] sm:$0xff] }
 0x250   : > { %15062 = vmatmul.mubr.msk.bf16.gmra.mrb[92].mxu0 %vm586_vm1, %v18080_v20  ;;  %14611 = vmatprep.mubr.msk.bf16.mxu1 %vm586_vm1, %v17785_v56  ;;  %v12546_v56 = vld [vmem:[%s16923_s26 + $0x42a] sm:$0xff] }
 0x251   : > { %15065 = vmatprep.mubr.msk.bf16.mxu0 %vm586_vm1, %v18082_v16  ;;  %v18112_v7 = vpack.c.bf16 %v12546_v56, %v12545_v29  ;;  %v12637_v29 = vld [vmem:[%s16923_s26 + $0x58] sm:$0xff] }
 0x252   : > { %v6446_v38 = vpack.c.bf16 %v12637_v29, %v12636_v60  ;;  %v12664_v60 = vld [vmem:[%s16923_s26 + $0x168] sm:$0xff]  ;;  %v12665_v29 = vld [vmem:[%s16923_s26 + $0x170] sm:$0xff] }
 0x257   : > { %14612 = vmatmul.mubr.msk.bf16.gmra.mrb[32].mxu1 %vm586_vm1, %v17801_v37  ;;  %v12549_v37 = vld [vmem:[%s16923_s26 + $0x44a] sm:$0xff] }
 0x258   : > { %15066 = vmatmul.mubr.msk.bf16.gmra.mrb[96].mxu0 %vm586_vm1, %v18096_v32  ;;  %14615 = vmatprep.mubr.msk.bf16.mxu1 %vm586_vm1, %v17803_v2  ;;  %v12550_v2 = vld [vmem:[%s16923_s26 + $0x452] sm:$0xff] }
 0x259   : > { %15069 = vmatprep.mubr.msk.bf16.mxu0 %vm586_vm1, %v18098_v27  ;;  %v18128_v26 = vpack.c.bf16 %v12550_v2, %v12549_v37  ;;  %v12641_v37 = vld [vmem:[%s16923_s26 + $0x80] sm:$0xff] }
 0x25a   : > { %v6448_v54 = vpack.c.bf16 %v12641_v37, %v12640_v50 }
 0x25f   : > { %14616 = vmatmul.mubr.msk.bf16.gmra.mrb[36].mxu1 %vm586_vm1, %v17819_v52  ;;  %v12553_v52 = vld [vmem:[%s16923_s26 + $0x472] sm:$0xff] }
 0x260   : > { %15070 = vmatmul.mubr.msk.bf16.gmra.mrb[100].mxu0 %vm586_vm1, %v18112_v7  ;;  %14619 = vmatprep.mubr.msk.bf16.mxu1 %vm586_vm1, %v17821_v53  ;;  %v12554_v53 = vld [vmem:[%s16923_s26 + $0x47a] sm:$0xff] }
 0x261   : > { %15073 = vmatprep.mubr.msk.bf16.mxu0 %vm586_vm1, %v18114_v0  ;;  %v18144_v36 = vpack.c.bf16 %v12554_v53, %v12553_v52  ;;  %v12644_v52 = vld [vmem:[%s16923_s26 + $0xa0] sm:$0xff]  ;;  %v12645_v53 = vld [vmem:[%s16923_s26 + $0xa8] sm:$0xff] }
 0x262   : > { %v6450_v43 = vpack.c.bf16 %v12645_v53, %v12644_v52  ;;  %v12677_v52 = vld [vmem:[%s16923_s26 + $0x1e8] sm:$0xff] }
 0x267   : > { %14620 = vmatmul.mubr.msk.bf16.gmra.mrb[40].mxu1 %vm586_vm1, %v17837_v8  ;;  %v12557_v8 = vld [vmem:[%s16923_s26 + $0x49a] sm:$0xff] }
 0x268   : > { %15074 = vmatmul.mubr.msk.bf16.gmra.mrb[104].mxu0 %vm586_vm1, %v18128_v26  ;;  %14623 = vmatprep.mubr.msk.bf16.mxu1 %vm586_vm1, %v17839_v25  ;;  %v12558_v25 = vld [vmem:[%s16923_s26 + $0x4a2] sm:$0xff] }
 0x269   : > { %15077 = vmatprep.mubr.msk.bf16.mxu0 %vm586_vm1, %v18130_v18  ;;  %v18160_v1 = vpack.c.bf16 %v12558_v25, %v12557_v8  ;;  %v12649_v8 = vld [vmem:[%s16923_s26 + $0xd0] sm:$0xff] }
 0x26a   : > { %v6452_v41 = vpack.c.bf16 %v12649_v8, %v12648_v5 }
 0x26f   : > { %14624 = vmatmul.mubr.msk.bf16.gmra.mrb[44].mxu1 %vm586_vm1, %v17855_v28  ;;  %v12561_v28 = vld [vmem:[%s16923_s26 + $0x4c2] sm:$0xff] }
 0x270   : > { %15078 = vmatmul.mubr.msk.bf16.gmra.mrb[108].mxu0 %vm586_vm1, %v18144_v36  ;;  %14627 = vmatprep.mubr.msk.bf16.mxu1 %vm586_vm1, %v17857_v33  ;;  %v12562_v33 = vld [vmem:[%s16923_s26 + $0x4ca] sm:$0xff] }
 0x271   : > { %15081 = vmatprep.mubr.msk.bf16.mxu0 %vm586_vm1, %v18146_v31  ;;  %v18176_v62 = vpack.c.bf16 %v12562_v33, %v12561_v28  ;;  %v12653_v28 = vld [vmem:[%s16923_s26 + $0xf8] sm:$0xff] }
 0x272   : > { %v6454_v6 = vpack.c.bf16 %v12653_v28, %v12652_v35  ;;  %v12686_v28 = vld [vmem:[%s16923_s26 + $0x240] sm:$0xff] }
 0x277   : > { %14628 = vmatmul.mubr.msk.bf16.gmra.mrb[48].mxu1 %vm586_vm1, %v17873_v19  ;;  %v12565_v19 = vld [vmem:[%s16923_s26 + $0x4ea] sm:$0xff] }
 0x278   : > { %15082 = vmatmul.mubr.msk.bf16.gmra.mrb[112].mxu0 %vm586_vm1, %v18160_v1  ;;  %14631 = vmatprep.mubr.msk.bf16.mxu1 %vm586_vm1, %v17875_v51  ;;  %v12566_v51 = vld [vmem:[%s16923_s26 + $0x4f2] sm:$0xff] }
 0x279   : > { %15085 = vmatprep.mubr.msk.bf16.mxu0 %vm586_vm1, %v18162_v59  ;;  %v18192_v12 = vpack.c.bf16 %v12566_v51, %v12565_v19  ;;  %v12657_v19 = vld [vmem:[%s16923_s26 + $0x120] sm:$0xff] }
 0x27a   : > { %v6456_v24 = vpack.c.bf16 %v12657_v19, %v12656_v47 }
 0x27f   : > { %14632 = vmatmul.mubr.msk.bf16.gmra.mrb[52].mxu1 %vm586_vm1, %v17891_v4  ;;  %v12569_v4 = vld [vmem:[%s16923_s26 + $0x512] sm:$0xff] }
 0x280   : > { %15086 = vmatmul.mubr.msk.bf16.gmra.mrb[116].mxu0 %vm586_vm1, %v18176_v62  ;;  %14635 = vmatprep.mubr.msk.bf16.mxu1 %vm586_vm1, %v17893_v11  ;;  %v12570_v11 = vld [vmem:[%s16923_s26 + $0x51a] sm:$0xff] }
 0x281   : > { %15089 = vmatprep.mubr.msk.bf16.mxu0 %vm586_vm1, %v18178_v9  ;;  %v5446_v56 = vpack.c.bf16 %v12570_v11, %v12569_v4 }
 0x287   : > { %14636 = vmatmul.mubr.msk.bf16.gmra.mrb[56].mxu1 %vm586_vm1, %v17909_v34  ;;  %v12638_v34 = vld [vmem:[%s16923_s26 + $0x60] sm:$0xff] }
 0x288   : > { %15090 = vmatmul.mubr.msk.bf16.gmra.mrb[120].mxu0 %vm586_vm1, %v18192_v12  ;;  %14639 = vmatprep.mubr.msk.bf16.mxu1 %vm586_vm1, %v17911_v23  ;;  %v12639_v23 = vld [vmem:[%s16923_s26 + $0x68] sm:$0xff] }
 0x289   : > { %15093 = vmatprep.mubr.msk.bf16.mxu0 %vm586_vm1, %v5445_v44  ;;  %v6447_v2 = vpack.c.bf16 %v12639_v23, %v12638_v34  ;;  %v12661_v44 = vld [vmem:[%s16923_s26 + $0x148] sm:$0xff]  ;;  %v12668_v34 = vld [vmem:[%s16923_s26 + $0x190] sm:$0xff]  ;;  %v12669_v23 = vld [vmem:[%s16923_s26 + $0x198] sm:$0xff] }
 0x28a   : > { %v6458_v11 = vpack.c.bf16 %v12661_v44, %v12660_v13  ;;  %v6462_v37 = vpack.c.bf16 %v12669_v23, %v12668_v34  ;;  %v12692_v13 = vld [vmem:[%s16923_s26 + $0x280] sm:$0xff]  ;;  %v12693_v44 = vld [vmem:[%s16923_s26 + $0x288] sm:$0xff]  ;;  %v12698_v23 = vld [vmem:[%s16923_s26 + $0x2b8] sm:$0xff] }
 0x28f   : > { %14640 = vmatmul.mubr.msk.bf16.gmra.mrb[60].mxu1 %vm586_vm1, %v17927_v40  ;;  %v12642_v40 = vld [vmem:[%s16923_s26 + $0x88] sm:$0xff] }
 0x290   : > { %15094 = vmatmul.mubr.msk.bf16.gmra.mrb[124].mxu0 %vm586_vm1, %v5446_v56  ;;  %14643 = vmatprep.mubr.msk.bf16.mxu1 %vm586_vm1, %v17929_v48  ;;  %v12643_v48 = vld [vmem:[%s16923_s26 + $0x90] sm:$0xff] }
 0x291   : > { %15099 = vmatprep.mubr.msk.bf16.mxu0 %vm586_vm1, %v6446_v38  ;;  %v6449_v3 = vpack.c.bf16 %v12643_v48, %v12642_v40  ;;  %v6460_v38 = vpack.c.bf16 %v12665_v29, %v12664_v60  ;;  %v12676_v48 = vld [vmem:[%s16923_s26 + $0x1e0] sm:$0xff]  ;;  %v12695_v60 = vld [vmem:[%s16923_s26 + $0x298] sm:$0xff] }
 0x297   : > { %14644 = vmatmul.mubr.msk.bf16.gmra.mrb[64].mxu1 %vm586_vm1, %v17945_v39  ;;  %v12646_v39 = vld [vmem:[%s16923_s26 + $0xb0] sm:$0xff] }
 0x298   : > { %15100 = vmatmul.mubr.msk.bf16.vlgmr.msra.gmra.mrb[0].mxu0 %vm586_vm1, %v6447_v2  ;;  %14647 = vmatprep.mubr.msk.bf16.mxu1 %vm586_vm1, %v17947_v49  ;;  %v12647_v49 = vld [vmem:[%s16923_s26 + $0xb8] sm:$0xff] }
 0x299   : > { %15103 = vmatprep.mubr.msk.bf16.mxu0 %vm586_vm1, %v6448_v54  ;;  %15228 = vmatpush3.bf16.msra.mxu0 %v7767_v30  ;;  %v6451_v25 = vpack.c.bf16 %v12647_v49, %v12646_v39  ;;  %v12672_v2 = vld [vmem:[%s16923_s26 + $0x1b8] sm:$0xff]  ;;  %v12673_v54 = vld [vmem:[%s16923_s26 + $0x1c0] sm:$0xff]  ;;  %v12681_v39 = vld [vmem:[%s16923_s26 + $0x210] sm:$0xff] }
 0x29a   : > { %v6464_v40 = vpack.c.bf16 %v12673_v54, %v12672_v2 }
 0x29f   : > { %14648 = vmatmul.mubr.msk.bf16.gmra.mrb[68].mxu1 %vm586_vm1, %v17961_v15  ;;  %v12650_v15 = vld [vmem:[%s16923_s26 + $0xd8] sm:$0xff] }
 0x2a0   : > { %15104 = vmatmul.mubr.msk.bf16.gmra.mrb[4].mxu0 %vm586_vm1, %v6449_v3  ;;  %14651 = vmatprep.mubr.msk.bf16.mxu1 %vm586_vm1, %v17963_v14  ;;  %v12651_v14 = vld [vmem:[%s16923_s26 + $0xe0] sm:$0xff]  ;;  %v6466_v3 = vpack.c.bf16 %v12677_v52, %v12676_v48  ;;  %v12704_v48 = vld [vmem:[%s16923_s26 + $0x2f8] sm:$0xff] }
 0x2a1   : > { %15107 = vmatprep.mubr.msk.bf16.mxu0 %vm586_vm1, %v6450_v43  ;;  %v6453_v33 = vpack.c.bf16 %v12651_v14, %v12650_v15  ;;  %v12680_v43 = vld [vmem:[%s16923_s26 + $0x208] sm:$0xff]  ;;  %v12705_v52 = vld [vmem:[%s16923_s26 + $0x300] sm:$0xff] }
 0x2a2   : > { %v6468_v5 = vpack.c.bf16 %v12681_v39, %v12680_v43  ;;  %v12706_v43 = vld [vmem:[%s16923_s26 + $0x308] sm:$0xff]  ;;  %v12707_v39 = vld [vmem:[%s16923_s26 + $0x310] sm:$0xff] }
 0x2a7   : > { %14652 = vmatmul.mubr.msk.bf16.gmra.mrb[72].mxu1 %vm586_vm1, %v17977_v46  ;;  %v12654_v46 = vld [vmem:[%s16923_s26 + $0x100] sm:$0xff] }
 0x2a8   : > { %15108 = vmatmul.mubr.msk.bf16.gmra.mrb[8].mxu0 %vm586_vm1, %v6451_v25  ;;  %14655 = vmatprep.mubr.msk.bf16.mxu1 %vm586_vm1, %v17979_v58  ;;  %v12655_v58 = vld [vmem:[%s16923_s26 + $0x108] sm:$0xff]  ;;  %v12684_v25 = vld [vmem:[%s16923_s26 + $0x230] sm:$0xff] }
 0x2a9   : > { %15111 = vmatprep.mubr.msk.bf16.mxu0 %vm586_vm1, %v6452_v41  ;;  %v6455_v51 = vpack.c.bf16 %v12655_v58, %v12654_v46  ;;  %v12685_v41 = vld [vmem:[%s16923_s26 + $0x238] sm:$0xff]  ;;  %v12689_v58 = vld [vmem:[%s16923_s26 + $0x260] sm:$0xff] }
 0x2aa   : > { %v12688_v46 = vld [vmem:[%s16923_s26 + $0x258] sm:$0xff] }
 0x2af   : > { %14656 = vmatmul.mubr.msk.bf16.gmra.mrb[76].mxu1 %vm586_vm1, %v18000_v45  ;;  %v12658_v45 = vld [vmem:[%s16923_s26 + $0x128] sm:$0xff] }
 0x2b0   : > { %15112 = vmatmul.mubr.msk.bf16.gmra.mrb[12].mxu0 %vm586_vm1, %v6453_v33  ;;  %14659 = vmatprep.mubr.msk.bf16.mxu1 %vm586_vm1, %v18002_v10  ;;  %v12659_v10 = vld [vmem:[%s16923_s26 + $0x130] sm:$0xff]  ;;  %v12687_v33 = vld [vmem:[%s16923_s26 + $0x248] sm:$0xff] }
 0x2b1   : > { %15115 = vmatprep.mubr.msk.bf16.mxu0 %vm586_vm1, %v6454_v6  ;;  %v6457_v4 = vpack.c.bf16 %v12659_v10, %v12658_v45  ;;  %v6471_v19 = vpack.c.bf16 %v12687_v33, %v12686_v28  ;;  %v12691_v45 = vld [vmem:[%s16923_s26 + $0x270] sm:$0xff]  ;;  %v18446_v28 = vld [vmem:[%s20978_s1 + $0x20] sm:$0xf] }
 0x2b2   : > { %v12710_v33 = vld [vmem:[%s16923_s26 + $0x330] sm:$0xff]  ;;  %16842 = vmatprep.subr.msk.bf16.mxu0 %vm779_vm0, %v18446_v28 }
 0x2b7   : > { %14660 = vmatmul.mubr.msk.bf16.gmra.mrb[80].mxu1 %vm586_vm1, %v18016_v17  ;;  %v12662_v17 = vld [vmem:[%s16923_s26 + $0x150] sm:$0xff] }
 0x2b8   : > { %15116 = vmatmul.mubr.msk.bf16.gmra.mrb[16].mxu0 %vm586_vm1, %v6455_v51  ;;  %14663 = vmatprep.mubr.msk.bf16.mxu1 %vm586_vm1, %v18018_v42  ;;  %v12663_v42 = vld [vmem:[%s16923_s26 + $0x158] sm:$0xff] }
 0x2b9   : > { %15119 = vmatprep.mubr.msk.bf16.mxu0 %vm586_vm1, %v6456_v24  ;;  %v6459_v56 = vpack.c.bf16 %v12663_v42, %v12662_v17  ;;  %v12690_v24 = vld [vmem:[%s16923_s26 + $0x268] sm:$0xff]  ;;  %v12694_v42 = vld [vmem:[%s16923_s26 + $0x290] sm:$0xff] }
 0x2bf   : > { %14664 = vmatmul.mubr.msk.bf16.gmra.mrb[84].mxu1 %vm586_vm1, %v18032_v22  ;;  %v12666_v22 = vld [vmem:[%s16923_s26 + $0x178] sm:$0xff] }
 0x2c0   : > { %15120 = vmatmul.mubr.msk.bf16.gmra.mrb[20].mxu0 %vm586_vm1, %v6457_v4  ;;  %14667 = vmatprep.mubr.msk.bf16.mxu1 %vm586_vm1, %v18034_v57  ;;  %v12667_v57 = vld [vmem:[%s16923_s26 + $0x180] sm:$0xff] }
 0x2c1   : > { %15123 = vmatprep.mubr.msk.bf16.mxu0 %vm586_vm1, %v6458_v11  ;;  %v6461_v50 = vpack.c.bf16 %v12667_v57, %v12666_v22  ;;  %v6473_v11 = vpack.c.bf16 %v12691_v45, %v12690_v24  ;;  %v6475_v57 = vpack.c.bf16 %v12695_v60, %v12694_v42  ;;  %v12715_v42 = vld [vmem:[%s16923_s26 + $0x360] sm:$0xff] }
 0x2c7   : > { %14668 = vmatmul.mubr.msk.bf16.gmra.mrb[88].mxu1 %vm586_vm1, %v18048_v55  ;;  %v12670_v55 = vld [vmem:[%s16923_s26 + $0x1a0] sm:$0xff] }
 0x2c8   : > { %15124 = vmatmul.mubr.msk.bf16.gmra.mrb[24].mxu0 %vm586_vm1, %v6459_v56  ;;  %14671 = vmatprep.mubr.msk.bf16.mxu1 %vm586_vm1, %v18050_v21  ;;  %v12671_v21 = vld [vmem:[%s16923_s26 + $0x1a8] sm:$0xff] }
 0x2c9   : > { %15127 = vmatprep.mubr.msk.bf16.mxu0 %vm586_vm1, %v6460_v38  ;;  %v6463_v30 = vpack.c.bf16 %v12671_v21, %v12670_v55  ;;  %v12696_v56 = vld [vmem:[%s16923_s26 + $0x2a8] sm:$0xff]  ;;  %v12697_v38 = vld [vmem:[%s16923_s26 + $0x2b0] sm:$0xff]  ;;  %v12701_v21 = vld [vmem:[%s16923_s26 + $0x2d8] sm:$0xff] }
 0x2ca   : > { %v12700_v55 = vld [vmem:[%s16923_s26 + $0x2d0] sm:$0xff] }
 0x2cf   : > { %14672 = vmatmul.mubr.msk.bf16.gmra.mrb[92].mxu1 %vm586_vm1, %v18064_v61  ;;  %v12674_v61 = vld [vmem:[%s16923_s26 + $0x1c8] sm:$0xff] }
 0x2d0   : > { %15128 = vmatmul.mubr.msk.bf16.gmra.mrb[28].mxu0 %vm586_vm1, %v6461_v50  ;;  %14675 = vmatprep.mubr.msk.bf16.mxu1 %vm586_vm1, %v18066_v63  ;;  %v12675_v63 = vld [vmem:[%s16923_s26 + $0x1d0] sm:$0xff]  ;;  %v12699_v50 = vld [vmem:[%s16923_s26 + $0x2c0] sm:$0xff] }
 0x2d1   : > { %15131 = vmatprep.mubr.msk.bf16.mxu0 %vm586_vm1, %v6462_v37  ;;  %v6465_v53 = vpack.c.bf16 %v12675_v63, %v12674_v61  ;;  %v6477_v54 = vpack.c.bf16 %v12699_v50, %v12698_v23  ;;  %v12703_v61 = vld [vmem:[%s16923_s26 + $0x2e8] sm:$0xff] }
 0x2d7   : > { %14676 = vmatmul.mubr.msk.bf16.gmra.mrb[96].mxu1 %vm586_vm1, %v18080_v20  ;;  %v12678_v20 = vld [vmem:[%s16923_s26 + $0x1f0] sm:$0xff] }
 0x2d8   : > { %15132 = vmatmul.mubr.msk.bf16.gmra.mrb[32].mxu0 %vm586_vm1, %v6463_v30  ;;  %14679 = vmatprep.mubr.msk.bf16.mxu1 %vm586_vm1, %v18082_v16  ;;  %v12679_v16 = vld [vmem:[%s16923_s26 + $0x1f8] sm:$0xff] }
 0x2d9   : > { %15135 = vmatprep.mubr.msk.bf16.mxu0 %vm586_vm1, %v6464_v40  ;;  %v6467_v49 = vpack.c.bf16 %v12679_v16, %v12678_v20  ;;  %v12702_v40 = vld [vmem:[%s16923_s26 + $0x2e0] sm:$0xff]  ;;  %v6480_v16 = vpack.c.bf16 %v12705_v52, %v12704_v48 }
 0x2df   : > { %14680 = vmatmul.mubr.msk.bf16.gmra.mrb[100].mxu1 %vm586_vm1, %v18096_v32  ;;  %v12682_v32 = vld [vmem:[%s16923_s26 + $0x218] sm:$0xff] }
 0x2e0   : > { %15136 = vmatmul.mubr.msk.bf16.gmra.mrb[36].mxu0 %vm586_vm1, %v6465_v53  ;;  %14683 = vmatprep.mubr.msk.bf16.mxu1 %vm586_vm1, %v18098_v27  ;;  %v12683_v27 = vld [vmem:[%s16923_s26 + $0x220] sm:$0xff] }
 0x2e1   : > { %15139 = vmatprep.mubr.msk.bf16.mxu0 %vm586_vm1, %v6466_v3  ;;  %v6469_v14 = vpack.c.bf16 %v12683_v27, %v12682_v32  ;;  %v12709_v32 = vld [vmem:[%s16923_s26 + $0x328] sm:$0xff] }
 0x2e7   : > { %14684 = vmatmul.mubr.msk.bf16.gmra.mrb[104].mxu1 %vm586_vm1, %v18112_v7 }
 0x2e8   : > { %15140 = vmatmul.mubr.msk.bf16.gmra.mrb[40].mxu0 %vm586_vm1, %v6467_v49  ;;  %14687 = vmatprep.mubr.msk.bf16.mxu1 %vm586_vm1, %v18114_v0  ;;  %v6470_v0 = vpack.c.bf16 %v12685_v41, %v12684_v25  ;;  %v6481_v41 = vpack.c.bf16 %v12707_v39, %v12706_v43  ;;  %v12722_v39 = vld [vmem:[%s16923_s26 + $0x3a8] sm:$0xff] }
 0x2e9   : > { %15143 = vmatprep.mubr.msk.bf16.mxu0 %vm586_vm1, %v6468_v5  ;;  %v12708_v5 = vld [vmem:[%s16923_s26 + $0x320] sm:$0xff] }
 0x2ea   : > { %v18325_v8 = vpop.f32.mrb[0].mxu1 }
 0x2eb   : > { %v18329_v15 = vpop.f32.mrb[1].mxu1 }
 0x2ec   : > { %v18331_v7 = vpop.f32.mrb[2].mxu1 }
 0x2ed   : > { %v18333_v35 = vpop.f32.mrb[3].mxu1 }
 0x2ef   : > { %14688 = vmatmul.mubr.msk.bf16.gmra.mrb[108].mxu1 %vm586_vm1, %v18128_v26 }
 0x2f0   : > { %15144 = vmatmul.mubr.msk.bf16.gmra.mrb[44].mxu0 %vm586_vm1, %v6469_v14  ;;  %14691 = vmatprep.mubr.msk.bf16.mxu1 %vm586_vm1, %v18130_v18  ;;  %v6472_v18 = vpack.c.bf16 %v12689_v58, %v12688_v46  ;;  %v12711_v46 = vld [vmem:[%s16923_s26 + $0x338] sm:$0xff] }
 0x2f1   : > { %15147 = vmatprep.mubr.msk.bf16.mxu0 %vm586_vm1, %v6470_v0  ;;  %v6482_v0 = vpack.c.bf16 %v12709_v32, %v12708_v5  ;;  %v12723_v5 = vld [vmem:[%s16923_s26 + $0x3b0] sm:$0xff] }
 0x2f2   : > { %v18343_v6 = vpop.f32.mrb[4].mxu1 }
 0x2f3   : > { %v18347_v47 = vpop.f32.mrb[5].mxu1 }
 0x2f4   : > { %v18349_v26 = vpop.f32.mrb[6].mxu1 }
 0x2f5   : > { %v18351_v51 = vpop.f32.mrb[7].mxu1 }
 0x2f7   : > { %14692 = vmatmul.mubr.msk.bf16.gmra.mrb[112].mxu1 %vm586_vm1, %v18144_v36 }
 0x2f8   : > { %15148 = vmatmul.mubr.msk.bf16.gmra.mrb[48].mxu0 %vm586_vm1, %v6471_v19  ;;  %14695 = vmatprep.mubr.msk.bf16.mxu1 %vm586_vm1, %v18146_v31  ;;  %v6474_v31 = vpack.c.bf16 %v12693_v44, %v12692_v13  ;;  %v12712_v19 = vld [vmem:[%s16923_s26 + $0x348] sm:$0xff]  ;;  %v6483_v13 = vpack.c.bf16 %v12711_v46, %v12710_v33 }
 0x2f9   : > { %15151 = vmatprep.mubr.msk.bf16.mxu0 %vm586_vm1, %v6472_v18  ;;  %v12713_v18 = vld [vmem:[%s16923_s26 + $0x350] sm:$0xff] }
 0x2fa   : > { %v18361_v10 = vpop.f32.mrb[8].mxu1 }
 0x2fb   : > { %v18365_v4 = vpop.f32.mrb[9].mxu1 }
 0x2fc   : > { %v18367_v36 = vpop.f32.mrb[10].mxu1 }
 0x2fd   : > { %v18369_v17 = vpop.f32.mrb[11].mxu1 }
 0x2ff   : > { %14696 = vmatmul.mubr.msk.bf16.gmra.mrb[116].mxu1 %vm586_vm1, %v18160_v1 }
 0x300   : > { %15152 = vmatmul.mubr.msk.bf16.gmra.mrb[52].mxu0 %vm586_vm1, %v6473_v11  ;;  %14699 = vmatprep.mubr.msk.bf16.mxu1 %vm586_vm1, %v18162_v59  ;;  %v6476_v59 = vpack.c.bf16 %v12697_v38, %v12696_v56  ;;  %v6484_v11 = vpack.c.bf16 %v12713_v18, %v12712_v19  ;;  %v12716_v56 = vld [vmem:[%s16923_s26 + $0x370] sm:$0xff]  ;;  %v12717_v38 = vld [vmem:[%s16923_s26 + $0x378] sm:$0xff]  ;;  %v6489_v19 = vpack.c.bf16 %v12723_v5, %v12722_v39 }
 0x301   : > { %15155 = vmatprep.mubr.msk.bf16.mxu0 %vm586_vm1, %v6474_v31  ;;  %v12714_v31 = vld [vmem:[%s16923_s26 + $0x358] sm:$0xff]  ;;  %v12732_v39 = vld [vmem:[%s16923_s26 + $0x410] sm:$0xff] }
 0x302   : > { %v18379_v29 = vpop.f32.mrb[12].mxu1  ;;  %v6485_v23 = vpack.c.bf16 %v12715_v42, %v12714_v31  ;;  %v12727_v31 = vld [vmem:[%s16923_s26 + $0x3d8] sm:$0xff] }
 0x303   : > { %v18383_v22 = vpop.f32.mrb[13].mxu1  ;;  %v12733_v5 = vld [vmem:[%s16923_s26 + $0x418] sm:$0xff] }
 0x304   : > { %v18385_v1 = vpop.f32.mrb[14].mxu1 }
 0x305   : > { %v18387_v34 = vpop.f32.mrb[15].mxu1 }
 0x307   : > { %14700 = vmatmul.mubr.msk.bf16.gmra.mrb[120].mxu1 %vm586_vm1, %v18176_v62 }
 0x308   : > { %15156 = vmatmul.mubr.msk.bf16.gmra.mrb[56].mxu0 %vm586_vm1, %v6475_v57  ;;  %14703 = vmatprep.mubr.msk.bf16.mxu1 %vm586_vm1, %v18178_v9  ;;  %v6478_v9 = vpack.c.bf16 %v12701_v21, %v12700_v55  ;;  %v6486_v55 = vpack.c.bf16 %v12717_v38, %v12716_v56  ;;  %v12718_v21 = vld [vmem:[%s16923_s26 + $0x380] sm:$0xff]  ;;  %v12728_v56 = vld [vmem:[%s16923_s26 + $0x3e8] sm:$0xff]  ;;  %v12729_v38 = vld [vmem:[%s16923_s26 + $0x3f0] sm:$0xff] }
 0x309   : > { %15159 = vmatprep.mubr.msk.bf16.mxu0 %vm586_vm1, %v6476_v59 }
 0x30a   : > { %v18397_v37 = vpop.f32.mrb[16].mxu1 }
 0x30b   : > { %v18401_v2 = vpop.f32.mrb[17].mxu1 }
 0x30c   : > { %v18403_v62 = vpop.f32.mrb[18].mxu1 }
 0x30d   : > { %v18405_v30 = vpop.f32.mrb[19].mxu1 }
 0x30f   : > { %14704 = vmatmul.mubr.msk.bf16.gmra.mrb[124].mxu1 %vm586_vm1, %v18192_v12  ;;  %v6479_v12 = vpack.c.bf16 %v12703_v61, %v12702_v40  ;;  %v12720_v40 = vld [vmem:[%s16923_s26 + $0x398] sm:$0xff]  ;;  %v12721_v61 = vld [vmem:[%s16923_s26 + $0x3a0] sm:$0xff] }
 0x310   : > { %15160 = vmatmul.mubr.msk.bf16.gmra.mrb[60].mxu0 %vm586_vm1, %v6477_v54  ;;  %14773 = vmatprep.mubr.msk.bf16.mxu1 %vm586_vm1, %v6476_v59  ;;  %v6488_v43 = vpack.c.bf16 %v12721_v61, %v12720_v40  ;;  %v6492_v40 = vpack.c.bf16 %v12729_v38, %v12728_v56  ;;  %v12730_v61 = vld [vmem:[%s16923_s26 + $0x3f8] sm:$0xff]  ;;  %v12735_v56 = vld [vmem:[%s16923_s26 + $0x428] sm:$0xff] }
 0x311   : > { %15163 = vmatprep.mubr.msk.bf16.mxu0 %vm586_vm1, %v6478_v9 }
 0x312   : > { %v18414_v63 = vpop.f32.mrb[20].mxu1 }
 0x313   : > { %v18418_v53 = vpop.f32.mrb[21].mxu1 }
 0x314   : > { %v18420_v3 = vpop.f32.mrb[22].mxu1 }
 0x315   : > { %v18422_v20 = vpop.f32.mrb[23].mxu1 }
 0x317   : > { %14774 = vmatmul.mubr.msk.bf16.vlgmr.msra.gmra.mrb[64].mxu1 %vm586_vm1, %v6477_v54  ;;  %v12719_v54 = vld [vmem:[%s16923_s26 + $0x388] sm:$0xff] }
 0x318   : > { %15164 = vmatmul.mubr.msk.bf16.gmra.mrb[64].mxu0 %vm586_vm1, %v6479_v12  ;;  %14777 = vmatprep.mubr.msk.bf16.mxu1 %vm586_vm1, %v6478_v9 }
 0x319   : > { %15167 = vmatprep.mubr.msk.bf16.mxu0 %vm586_vm1, %v6480_v16 }
 0x31a   : > { %v18430_v49 = vpop.f32.mrb[24].mxu1 }
 0x31b   : > { %v18434_v27 = vpop.f32.mrb[25].mxu1 }
 0x31c   : > { %v18436_v25 = vpop.f32.mrb[26].mxu1 }
 0x31d   : > { %v18438_v14 = vpop.f32.mrb[27].mxu1 }
 0x31f   : > { %14778 = vmatmul.mubr.msk.bf16.gmra.mrb[68].mxu1 %vm586_vm1, %v6479_v12  ;;  %v6487_v12 = vpack.c.bf16 %v12719_v54, %v12718_v21 }
 0x320   : > { %15168 = vmatmul.mubr.msk.bf16.gmra.mrb[68].mxu0 %vm586_vm1, %v6481_v41  ;;  %14781 = vmatprep.mubr.msk.bf16.mxu1 %vm586_vm1, %v6480_v16 }
 0x321   : > { %15171 = vmatprep.mubr.msk.bf16.mxu0 %vm586_vm1, %v6482_v0 }
 0x322   : > { %v18453_v58 = vpop.f32.mrb[28].mxu1 }
 0x323   : > { %v18457_v24 = vpop.f32.mrb[29].mxu1 }
 0x324   : > { %v18459_v45 = vpop.f32.mrb[30].mxu1 }
 0x325   : > { %v18461_v44 = vpop.f32.mrb[31].mxu1 }
 0x327   : > { %14782 = vmatmul.mubr.msk.bf16.gmra.mrb[72].mxu1 %vm586_vm1, %v6481_v41  ;;  %v12724_v41 = vld [vmem:[%s16923_s26 + $0x3c0] sm:$0xff] }
 0x328   : > { %15172 = vmatmul.mubr.msk.bf16.gmra.mrb[72].mxu0 %vm586_vm1, %v6483_v13  ;;  %14785 = vmatprep.mubr.msk.bf16.mxu1 %vm586_vm1, %v6482_v0  ;;  %v12725_v0 = vld [vmem:[%s16923_s26 + $0x3c8] sm:$0xff] }
 0x329   : > { %15175 = vmatprep.mubr.msk.bf16.mxu0 %vm586_vm1, %v6484_v11 }
 0x32a   : > { %v18469_v60 = vpop.f32.mrb[32].mxu1 }
 0x32b   : > { %v18473_v57 = vpop.f32.mrb[33].mxu1 }
 0x32c   : > { %v18475_v59 = vpop.f32.mrb[34].mxu1 }
 0x32d   : > { %v18477_v50 = vpop.f32.mrb[35].mxu1 }
 0x32f   : > { %14786 = vmatmul.mubr.msk.bf16.gmra.mrb[76].mxu1 %vm586_vm1, %v6483_v13  ;;  %v6490_v13 = vpack.c.bf16 %v12725_v0, %v12724_v41 }
 0x330   : > { %15176 = vmatmul.mubr.msk.bf16.gmra.mrb[76].mxu0 %vm586_vm1, %v6485_v23  ;;  %14789 = vmatprep.mubr.msk.bf16.mxu1 %vm586_vm1, %v6484_v11  ;;  %v12726_v11 = vld [vmem:[%s16923_s26 + $0x3d0] sm:$0xff] }
 0x331   : > { %15179 = vmatprep.mubr.msk.bf16.mxu0 %vm586_vm1, %v6486_v55  ;;  %v6491_v21 = vpack.c.bf16 %v12727_v31, %v12726_v11  ;;  %v12734_v31 = vld [vmem:[%s16923_s26 + $0x420] sm:$0xff] }
 0x332   : > { %v18485_v9 = vpop.f32.mrb[36].mxu1 }
 0x333   : > { %v18489_v48 = vpop.f32.mrb[37].mxu1 }
 0x334   : > { %v18491_v52 = vpop.f32.mrb[38].mxu1 }
 0x335   : > { %v18493_v16 = vpop.f32.mrb[39].mxu1 }
 0x337   : > { %14790 = vmatmul.mubr.msk.bf16.gmra.mrb[80].mxu1 %vm586_vm1, %v6485_v23 }
 0x338   : > { %15180 = vmatmul.mubr.msk.bf16.gmra.mrb[80].mxu0 %vm586_vm1, %v6487_v12  ;;  %14793 = vmatprep.mubr.msk.bf16.mxu1 %vm586_vm1, %v6486_v55 }
 0x339   : > { %15183 = vmatprep.mubr.msk.bf16.mxu0 %vm586_vm1, %v6488_v43 }
 0x33a   : > { %v18501_v32 = vpop.f32.mrb[40].mxu1 }
 0x33b   : > { %v18505_v33 = vpop.f32.mrb[41].mxu1 }
 0x33c   : > { %v18507_v46 = vpop.f32.mrb[42].mxu1 }
 0x33d   : > { %v18509_v18 = vpop.f32.mrb[43].mxu1 }
 0x33e   : > { %21029 = vst [vmem:[#allocation2_spill] sm:$0xff] %v18509_v18 }
 0x33f   : > { %14794 = vmatmul.mubr.msk.bf16.gmra.mrb[84].mxu1 %vm586_vm1, %v6487_v12  ;;  %v12731_v12 = vld [vmem:[%s16923_s26 + $0x400] sm:$0xff] }
 0x340   : > { %15184 = vmatmul.mubr.msk.bf16.gmra.mrb[84].mxu0 %vm586_vm1, %v6489_v19  ;;  %14797 = vmatprep.mubr.msk.bf16.mxu1 %vm586_vm1, %v6488_v43 }
 0x341   : > { %15187 = vmatprep.mubr.msk.bf16.mxu0 %vm586_vm1, %v6490_v13 }
 0x342   : > { %v18517_v42 = vpop.f32.mrb[44].mxu1 }
 0x343   : > { %21030 = vst [vmem:[#allocation3_spill] sm:$0xff] %v18517_v42  ;;  %v18521_v23 = vpop.f32.mrb[45].mxu1 }
 0x344   : > { %21031 = vst [vmem:[#allocation4_spill] sm:$0xff] %v18521_v23  ;;  %v18523_v55 = vpop.f32.mrb[46].mxu1 }
 0x345   : > { %21032 = vst [vmem:[#allocation5_spill] sm:$0xff] %v18523_v55  ;;  %v18525_v54 = vpop.f32.mrb[47].mxu1 }
 0x346   : > { %21033 = vst [vmem:[#allocation6_spill] sm:$0xff] %v18525_v54 }
 0x347   : > { %14798 = vmatmul.mubr.msk.bf16.gmra.mrb[88].mxu1 %vm586_vm1, %v6489_v19  ;;  %v6493_v19 = vpack.c.bf16 %v12731_v12, %v12730_v61  ;;  %v12736_v61 = vld [vmem:[%s16923_s26 + $0x438] sm:$0xff]  ;;  %v12737_v12 = vld [vmem:[%s16923_s26 + $0x440] sm:$0xff] }
 0x348   : > { %15188 = vmatmul.mubr.msk.bf16.gmra.mrb[88].mxu0 %vm586_vm1, %v6491_v21  ;;  %14801 = vmatprep.mubr.msk.bf16.mxu1 %vm586_vm1, %v6490_v13  ;;  %v6494_v13 = vpack.c.bf16 %v12733_v5, %v12732_v39 }
 0x349   : > { %15191 = vmatprep.mubr.msk.bf16.mxu0 %vm586_vm1, %v6492_v40 }
 0x34a   : > { %v18533_v43 = vpop.f32.mrb[48].mxu1 }
 0x34b   : > { %21034 = vst [vmem:[#allocation7_spill] sm:$0xff] %v18533_v43  ;;  %v18537_v41 = vpop.f32.mrb[49].mxu1 }
 0x34c   : > { %21035 = vst [vmem:[#allocation8_spill] sm:$0xff] %v18537_v41  ;;  %v18539_v0 = vpop.f32.mrb[50].mxu1  ;;  %v13134_v41 = vld [vmem:[%s16923_s26 + $0x4b2] sm:$0xff] }
 0x34d   : > { %21036 = vst [vmem:[#allocation9_spill] sm:$0xff] %v18539_v0  ;;  %v18541_v11 = vpop.f32.mrb[51].mxu1  ;;  %v12739_v0 = vld [vmem:[%s16923_s26 + $0x450] sm:$0xff] }
 0x34e   : > { %21037 = vst [vmem:[#allocation10_spill] sm:$0xff] %v18541_v11 }
 0x34f   : > { %14802 = vmatmul.mubr.msk.bf16.gmra.mrb[92].mxu1 %vm586_vm1, %v6491_v21  ;;  %v6495_v21 = vpack.c.bf16 %v12735_v56, %v12734_v31  ;;  %v12740_v31 = vld [vmem:[%s16923_s26 + $0x460] sm:$0xff]  ;;  %v12741_v56 = vld [vmem:[%s16923_s26 + $0x468] sm:$0xff] }
 0x350   : > { %15192 = vmatmul.mubr.msk.bf16.gmra.mrb[92].mxu0 %vm586_vm1, %v6493_v19  ;;  %14805 = vmatprep.mubr.msk.bf16.mxu1 %vm586_vm1, %v6492_v40  ;;  %v6496_v40 = vpack.c.bf16 %v12737_v12, %v12736_v61 }
 0x351   : > { %15195 = vmatprep.mubr.msk.bf16.mxu0 %vm586_vm1, %v6494_v13 }
 0x352   : > { %v18549_v38 = vpop.f32.mrb[52].mxu1 }
 0x353   : > { %21038 = vst [vmem:[#allocation11_spill] sm:$0xff] %v18549_v38  ;;  %v18553_v11 = vpop.f32.mrb[53].mxu1  ;;  %v12738_v38 = vld [vmem:[%s16923_s26 + $0x448] sm:$0xff] }
 0x354   : > { %21039 = vst [vmem:[#allocation12_spill] sm:$0xff] %v18553_v11  ;;  %v18555_v39 = vpop.f32.mrb[54].mxu1 }
 0x355   : > { %21040 = vst [vmem:[#allocation13_spill] sm:$0xff] %v18555_v39  ;;  %v18557_v5 = vpop.f32.mrb[55].mxu1  ;;  %v12743_v39 = vld [vmem:[%s16923_s26 + $0x478] sm:$0xff] }
 0x356   : > { %21041 = vst [vmem:[#allocation14_spill] sm:$0xff] %v18557_v5 }
 0x357   : > { %14806 = vmatmul.mubr.msk.bf16.gmra.mrb[96].mxu1 %vm586_vm1, %v6493_v19  ;;  %v6497_v19 = vpack.c.bf16 %v12739_v0, %v12738_v38  ;;  %v12744_v0 = vld [vmem:[%s16923_s26 + $0x488] sm:$0xff]  ;;  %v12745_v38 = vld [vmem:[%s16923_s26 + $0x490] sm:$0xff] }
 0x358   : > { %15196 = vmatmul.mubr.msk.bf16.gmra.mrb[96].mxu0 %vm586_vm1, %v6495_v21  ;;  %14809 = vmatprep.mubr.msk.bf16.mxu1 %vm586_vm1, %v6494_v13  ;;  %v6498_v13 = vpack.c.bf16 %v12741_v56, %v12740_v31 }
 0x359   : > { %15199 = vmatprep.mubr.msk.bf16.mxu0 %vm586_vm1, %v6496_v40 }
 0x35a   : > { %v18565_v11 = vpop.f32.mrb[56].mxu1 }
 0x35b   : > { %21042 = vst [vmem:[#allocation15_spill] sm:$0xff] %v18565_v11  ;;  %v18569_v5 = vpop.f32.mrb[57].mxu1  ;;  %v12742_v11 = vld [vmem:[%s16923_s26 + $0x470] sm:$0xff] }
 0x35c   : > { %21043 = vst [vmem:[#allocation16_spill] sm:$0xff] %v18569_v5  ;;  %v18571_v61 = vpop.f32.mrb[58].mxu1 }
 0x35d   : > { %21044 = vst [vmem:[#allocation17_spill] sm:$0xff] %v18571_v61  ;;  %v18573_v12 = vpop.f32.mrb[59].mxu1  ;;  %v12748_v61 = vld [vmem:[%s16923_s26 + $0x4b0] sm:$0xff] }
 0x35e   : > { %21045 = vst [vmem:[#allocation18_spill] sm:$0xff] %v18573_v12 }
 0x35f   : > { %14810 = vmatmul.mubr.msk.bf16.gmra.mrb[100].mxu1 %vm586_vm1, %v6495_v21  ;;  %v6499_v21 = vpack.c.bf16 %v12743_v39, %v12742_v11 }
 0x360   : > { %15200 = vmatmul.mubr.msk.bf16.gmra.mrb[100].mxu0 %vm586_vm1, %v6497_v19  ;;  %14813 = vmatprep.mubr.msk.bf16.mxu1 %vm586_vm1, %v6496_v40  ;;  %v6500_v40 = vpack.c.bf16 %v12745_v38, %v12744_v0  ;;  %v12752_v0 = vld [vmem:[%s16923_s26 + $0x4d8] sm:$0xff]  ;;  %v12753_v38 = vld [vmem:[%s16923_s26 + $0x4e0] sm:$0xff] }
 0x361   : > { %15203 = vmatprep.mubr.msk.bf16.mxu0 %vm586_vm1, %v6498_v13 }
 0x362   : > { %v18581_v5 = vpop.f32.mrb[60].mxu1 }
 0x363   : > { %21046 = vst [vmem:[#allocation19_spill] sm:$0xff] %v18581_v5  ;;  %v18585_v12 = vpop.f32.mrb[61].mxu1  ;;  %v12746_v5 = vld [vmem:[%s16923_s26 + $0x498] sm:$0xff] }
 0x364   : > { %21047 = vst [vmem:[#allocation20_spill] sm:$0xff] %v18585_v12  ;;  %v18587_v31 = vpop.f32.mrb[62].mxu1  ;;  %v12747_v12 = vld [vmem:[%s16923_s26 + $0x4a0] sm:$0xff] }
 0x365   : > { %21048 = vst [vmem:[#allocation21_spill] sm:$0xff] %v18587_v31  ;;  %v18589_v56 = vpop.f32.mrb[63].mxu1  ;;  %v12749_v31 = vld [vmem:[%s16923_s26 + $0x4b8] sm:$0xff]  ;;  %v6501_v11 = vpack.c.bf16 %v12747_v12, %v12746_v5  ;;  %v6504_v5 = vpack.c.bf16 %v12753_v38, %v12752_v0  ;;  %v12755_v12 = vld [vmem:[%s16923_s26 + $0x4f0] sm:$0xff] }
 0x366   : > { %21049 = vst [vmem:[#allocation22_spill] sm:$0xff] %v18589_v56  ;;  %v6502_v39 = vpack.c.bf16 %v12749_v31, %v12748_v61  ;;  %v12754_v61 = vld [vmem:[%s16923_s26 + $0x4e8] sm:$0xff]  ;;  %v12756_v31 = vld [vmem:[%s16923_s26 + $0x500] sm:$0xff]  ;;  %v12761_v0 = vld [vmem:[%s16923_s26 + $0x530] sm:$0xff] }
 0x367   : > { %14814 = vmatmul.mubr.msk.bf16.gmra.mrb[104].mxu1 %vm586_vm1, %v6497_v19  ;;  %v12750_v19 = vld [vmem:[%s16923_s26 + $0x4c0] sm:$0xff] }
 0x368   : > { %15204 = vmatmul.mubr.msk.bf16.gmra.mrb[104].mxu0 %vm586_vm1, %v6499_v21  ;;  %14817 = vmatprep.mubr.msk.bf16.mxu1 %vm586_vm1, %v6498_v13  ;;  %v12751_v13 = vld [vmem:[%s16923_s26 + $0x4c8] sm:$0xff] }
 0x369   : > { %15207 = vmatprep.mubr.msk.bf16.mxu0 %vm586_vm1, %v6500_v40  ;;  %v6503_v56 = vpack.c.bf16 %v12751_v13, %v12750_v19  ;;  %v12760_v13 = vld [vmem:[%s16923_s26 + $0x528] sm:$0xff] }
 0x36f   : > { %14818 = vmatmul.mubr.msk.bf16.gmra.mrb[108].mxu1 %vm586_vm1, %v6499_v21  ;;  %v12757_v21 = vld [vmem:[%s16923_s26 + $0x508] sm:$0xff] }
 0x370   : > { %15208 = vmatmul.mubr.msk.bf16.gmra.mrb[108].mxu0 %vm586_vm1, %v6501_v11  ;;  %14821 = vmatprep.mubr.msk.bf16.mxu1 %vm586_vm1, %v6500_v40  ;;  %v6505_v40 = vpack.c.bf16 %v12755_v12, %v12754_v61  ;;  %v6506_v19 = vpack.c.bf16 %v12757_v21, %v12756_v31  ;;  %v6508_v61 = vpack.c.bf16 %v12761_v0, %v12760_v13  ;;  %v12829_v12 = vld [vmem:[%s16923_s26 + $0x51] sm:$0xff]  ;;  %v12830_v31 = vld [vmem:[%s16923_s26 + $0x59] sm:$0xff]  ;;  %v12834_v13 = vld [vmem:[%s16923_s26 + $0x81] sm:$0xff] }
 0x371   : > { %15211 = vmatprep.mubr.msk.bf16.mxu0 %vm586_vm1, %v6502_v39 }
 0x377   : > { %14822 = vmatmul.mubr.msk.bf16.gmra.mrb[112].mxu1 %vm586_vm1, %v6501_v11  ;;  %v12758_v11 = vld [vmem:[%s16923_s26 + $0x510] sm:$0xff] }
 0x378   : > { %15212 = vmatmul.mubr.msk.bf16.gmra.mrb[112].mxu0 %vm586_vm1, %v6503_v56  ;;  %14825 = vmatprep.mubr.msk.bf16.mxu1 %vm586_vm1, %v6502_v39  ;;  %v12759_v39 = vld [vmem:[%s16923_s26 + $0x518] sm:$0xff] }
 0x379   : > { %15215 = vmatprep.mubr.msk.bf16.mxu0 %vm586_vm1, %v6504_v5  ;;  %v6507_v38 = vpack.c.bf16 %v12759_v39, %v12758_v11  ;;  %v7508_v11 = vpack.c.bf16 %v12830_v31, %v12829_v12  ;;  %v12833_v39 = vld [vmem:[%s16923_s26 + $0x79] sm:$0xff]  ;;  %v12837_v12 = vld [vmem:[%s16923_s26 + $0xa1] sm:$0xff]  ;;  %v12838_v31 = vld [vmem:[%s16923_s26 + $0xa9] sm:$0xff] }
 0x37f   : > { %14826 = vmatmul.mubr.msk.bf16.gmra.mrb[116].mxu1 %vm586_vm1, %v6503_v56  ;;  %v12762_v56 = vld [vmem:[%s16923_s26 + $0x538] sm:$0xff] }
 0x380   : > { %15216 = vmatmul.mubr.msk.bf16.gmra.mrb[116].mxu0 %vm586_vm1, %v6505_v40  ;;  %14829 = vmatprep.mubr.msk.bf16.mxu1 %vm586_vm1, %v6504_v5  ;;  %v12763_v5 = vld [vmem:[%s16923_s26 + $0x540] sm:$0xff] }
 0x381   : > { %15219 = vmatprep.mubr.msk.bf16.mxu0 %vm586_vm1, %v6506_v19  ;;  %v6509_v21 = vpack.c.bf16 %v12763_v5, %v12762_v56  ;;  %v8829_v56 = vsel %vm779_vm0, %v18446_v28, 0  ;;  %v12836_v5 = vld [vmem:[%s16923_s26 + $0x91] sm:$0xff] }
 0x382   : > { %v12839_v28 = vld [vmem:[%s16923_s26 + $0xb1] sm:$0xff] }
 0x387   : > { %14830 = vmatmul.mubr.msk.bf16.gmra.mrb[120].mxu1 %vm586_vm1, %v6505_v40  ;;  %v12831_v40 = vld [vmem:[%s16923_s26 + $0x61] sm:$0xff] }
 0x388   : > { %15220 = vmatmul.mubr.msk.bf16.gmra.mrb[120].mxu0 %vm586_vm1, %v6507_v38  ;;  %14833 = vmatprep.mubr.msk.bf16.mxu1 %vm586_vm1, %v6506_v19  ;;  %v12832_v19 = vld [vmem:[%s16923_s26 + $0x69] sm:$0xff] }
 0x389   : > { %15223 = vmatprep.mubr.msk.bf16.mxu0 %vm586_vm1, %v6508_v61  ;;  %v7509_v0 = vpack.c.bf16 %v12832_v19, %v12831_v40  ;;  %v7510_v61 = vpack.c.bf16 %v12834_v13, %v12833_v39  ;;  %v12840_v40 = vld [vmem:[%s16923_s26 + $0xb9] sm:$0xff]  ;;  %v12841_v19 = vld [vmem:[%s16923_s26 + $0xc9] sm:$0xff]  ;;  %v12842_v39 = vld [vmem:[%s16923_s26 + $0xd1] sm:$0xff] }
 0x38a   : > { %v7513_v13 = vpack.c.bf16 %v12840_v40, %v12839_v28  ;;  %v12849_v28 = vld [vmem:[%s16923_s26 + $0x119] sm:$0xff]  ;;  %v12850_v40 = vld [vmem:[%s16923_s26 + $0x121] sm:$0xff] }
 0x38f   : > { %14834 = vmatmul.mubr.msk.bf16.gmra.mrb[124].mxu1 %vm586_vm1, %v6507_v38  ;;  %v12835_v38 = vld [vmem:[%s16923_s26 + $0x89] sm:$0xff] }
 0x390   : > { %15224 = vmatmul.mubr.msk.bf16.gmra.mrb[124].mxu0 %vm586_vm1, %v6509_v21  ;;  %v7511_v21 = vpack.c.bf16 %v12836_v5, %v12835_v38  ;;  %v12845_v38 = vld [vmem:[%s16923_s26 + $0xf1] sm:$0xff]  ;;  %v12846_v5 = vld [vmem:[%s16923_s26 + $0xf9] sm:$0xff] }
 0x391   : > { %15229 = vmatprep.mubr.msk.bf16.mxu0 %vm586_vm1, %v7508_v11  ;;  %v7512_v11 = vpack.c.bf16 %v12838_v31, %v12837_v12  ;;  %v7516_v31 = vpack.c.bf16 %v12846_v5, %v12845_v38 }
 0x398   : > { %15230 = vmatmul.mubr.msk.bf16.vlgmr.msra.gmra.mrb[0].mxu0 %vm586_vm1, %v7509_v0  ;;  %v7514_v0 = vpack.c.bf16 %v12842_v39, %v12841_v19  ;;  %v7518_v39 = vpack.c.bf16 %v12850_v40, %v12849_v28 }
 0x399   : > { %15233 = vmatprep.mubr.msk.bf16.mxu0 %vm586_vm1, %v7510_v61  ;;  %15358 = vmatpush3.bf16.msra.mxu0 %v8829_v56  ;;  %v12843_v61 = vld [vmem:[%s16923_s26 + $0xd9] sm:$0xff]  ;;  %v12844_v56 = vld [vmem:[%s16923_s26 + $0xe1] sm:$0xff] }
 0x39a   : > { %v7515_v12 = vpack.c.bf16 %v12844_v56, %v12843_v61  ;;  %v12853_v61 = vld [vmem:[%s16923_s26 + $0x141] sm:$0xff]  ;;  %v12854_v56 = vld [vmem:[%s16923_s26 + $0x149] sm:$0xff] }
 0x39b   : > { %v7520_v5 = vpack.c.bf16 %v12854_v56, %v12853_v61 }
 0x3a0   : > { %15234 = vmatmul.mubr.msk.bf16.gmra.mrb[4].mxu0 %vm586_vm1, %v7511_v21  ;;  %v12847_v21 = vld [vmem:[%s16923_s26 + $0x101] sm:$0xff] }
 0x3a1   : > { %15237 = vmatprep.mubr.msk.bf16.mxu0 %vm586_vm1, %v7512_v11  ;;  %v12848_v11 = vld [vmem:[%s16923_s26 + $0x109] sm:$0xff] }
 0x3a2   : > { %v7517_v19 = vpack.c.bf16 %v12848_v11, %v12847_v21  ;;  %v12857_v21 = vld [vmem:[%s16923_s26 + $0x169] sm:$0xff]  ;;  %v12858_v11 = vld [vmem:[%s16923_s26 + $0x171] sm:$0xff] }
 0x3a3   : > { %v7522_v40 = vpack.c.bf16 %v12858_v11, %v12857_v21 }
 0x3a8   : > { %15238 = vmatmul.mubr.msk.bf16.gmra.mrb[8].mxu0 %vm586_vm1, %v7513_v13  ;;  %v12851_v13 = vld [vmem:[%s16923_s26 + $0x129] sm:$0xff] }
 0x3a9   : > { %15241 = vmatprep.mubr.msk.bf16.mxu0 %vm586_vm1, %v7514_v0  ;;  %v12852_v0 = vld [vmem:[%s16923_s26 + $0x131] sm:$0xff] }
 0x3aa   : > { %v7519_v38 = vpack.c.bf16 %v12852_v0, %v12851_v13  ;;  %v12861_v13 = vld [vmem:[%s16923_s26 + $0x191] sm:$0xff]  ;;  %v12862_v0 = vld [vmem:[%s16923_s26 + $0x199] sm:$0xff] }
 0x3ab   : > { %v7524_v56 = vpack.c.bf16 %v12862_v0, %v12861_v13 }
 0x3b0   : > { %15242 = vmatmul.mubr.msk.bf16.gmra.mrb[12].mxu0 %vm586_vm1, %v7515_v12  ;;  %v12855_v12 = vld [vmem:[%s16923_s26 + $0x151] sm:$0xff] }
 0x3b1   : > { %15245 = vmatprep.mubr.msk.bf16.mxu0 %vm586_vm1, %v7516_v31  ;;  %v12856_v31 = vld [vmem:[%s16923_s26 + $0x159] sm:$0xff] }
 0x3b2   : > { %v7521_v28 = vpack.c.bf16 %v12856_v31, %v12855_v12  ;;  %v12865_v12 = vld [vmem:[%s16923_s26 + $0x1b9] sm:$0xff]  ;;  %v12866_v31 = vld [vmem:[%s16923_s26 + $0x1c1] sm:$0xff] }
 0x3b3   : > { %v7526_v11 = vpack.c.bf16 %v12866_v31, %v12865_v12 }
 0x3b8   : > { %15246 = vmatmul.mubr.msk.bf16.gmra.mrb[16].mxu0 %vm586_vm1, %v7517_v19  ;;  %v12859_v19 = vld [vmem:[%s16923_s26 + $0x179] sm:$0xff] }
 0x3b9   : > { %15249 = vmatprep.mubr.msk.bf16.mxu0 %vm586_vm1, %v7518_v39  ;;  %v12860_v39 = vld [vmem:[%s16923_s26 + $0x181] sm:$0xff] }
 0x3ba   : > { %v7523_v61 = vpack.c.bf16 %v12860_v39, %v12859_v19  ;;  %v12869_v19 = vld [vmem:[%s16923_s26 + $0x1e1] sm:$0xff]  ;;  %v12870_v39 = vld [vmem:[%s16923_s26 + $0x1e9] sm:$0xff] }
 0x3bb   : > { %v7528_v0 = vpack.c.bf16 %v12870_v39, %v12869_v19  ;;  %v12878_v19 = vld [vmem:[%s16923_s26 + $0x239] sm:$0xff] }
 0x3c0   : > { %15250 = vmatmul.mubr.msk.bf16.gmra.mrb[20].mxu0 %vm586_vm1, %v7519_v38  ;;  %v12863_v38 = vld [vmem:[%s16923_s26 + $0x1a1] sm:$0xff] }
 0x3c1   : > { %15253 = vmatprep.mubr.msk.bf16.mxu0 %vm586_vm1, %v7520_v5  ;;  %v12864_v5 = vld [vmem:[%s16923_s26 + $0x1a9] sm:$0xff] }
 0x3c2   : > { %v7525_v21 = vpack.c.bf16 %v12864_v5, %v12863_v38  ;;  %v12873_v38 = vld [vmem:[%s16923_s26 + $0x209] sm:$0xff]  ;;  %v12874_v5 = vld [vmem:[%s16923_s26 + $0x211] sm:$0xff] }
 0x3c3   : > { %v7530_v31 = vpack.c.bf16 %v12874_v5, %v12873_v38  ;;  %v12879_v38 = vld [vmem:[%s16923_s26 + $0x241] sm:$0xff]  ;;  %v12880_v5 = vld [vmem:[%s16923_s26 + $0x249] sm:$0xff] }
 0x3c8   : > { %15254 = vmatmul.mubr.msk.bf16.gmra.mrb[24].mxu0 %vm586_vm1, %v7521_v28  ;;  %v12867_v28 = vld [vmem:[%s16923_s26 + $0x1c9] sm:$0xff] }
 0x3c9   : > { %15257 = vmatprep.mubr.msk.bf16.mxu0 %vm586_vm1, %v7522_v40  ;;  %v12868_v40 = vld [vmem:[%s16923_s26 + $0x1d1] sm:$0xff] }
 0x3ca   : > { %v7527_v13 = vpack.c.bf16 %v12868_v40, %v12867_v28  ;;  %v12877_v40 = vld [vmem:[%s16923_s26 + $0x231] sm:$0xff] }
 0x3d0   : > { %15258 = vmatmul.mubr.msk.bf16.gmra.mrb[28].mxu0 %vm586_vm1, %v7523_v61  ;;  %v12871_v61 = vld [vmem:[%s16923_s26 + $0x1f1] sm:$0xff] }
 0x3d1   : > { %15261 = vmatprep.mubr.msk.bf16.mxu0 %vm586_vm1, %v7524_v56  ;;  %v12872_v56 = vld [vmem:[%s16923_s26 + $0x1f9] sm:$0xff] }
 0x3d2   : > { %v7529_v12 = vpack.c.bf16 %v12872_v56, %v12871_v61  ;;  %v7532_v56 = vpack.c.bf16 %v12878_v19, %v12877_v40  ;;  %v12883_v19 = vld [vmem:[%s16923_s26 + $0x269] sm:$0xff] }
 0x3d8   : > { %15262 = vmatmul.mubr.msk.bf16.gmra.mrb[32].mxu0 %vm586_vm1, %v7525_v21  ;;  %v12875_v21 = vld [vmem:[%s16923_s26 + $0x219] sm:$0xff] }
 0x3d9   : > { %15265 = vmatprep.mubr.msk.bf16.mxu0 %vm586_vm1, %v7526_v11  ;;  %v12876_v11 = vld [vmem:[%s16923_s26 + $0x221] sm:$0xff] }
 0x3e0   : > { %15266 = vmatmul.mubr.msk.bf16.gmra.mrb[36].mxu0 %vm586_vm1, %v7527_v13 }
 0x3e1   : > { %15269 = vmatprep.mubr.msk.bf16.mxu0 %vm586_vm1, %v7528_v0  ;;  %v7531_v0 = vpack.c.bf16 %v12876_v11, %v12875_v21  ;;  %v7533_v11 = vpack.c.bf16 %v12880_v5, %v12879_v38 }
 0x3e8   : > { %15270 = vmatmul.mubr.msk.bf16.gmra.mrb[40].mxu0 %vm586_vm1, %v7529_v12 }
 0x3e9   : > { %15273 = vmatprep.mubr.msk.bf16.mxu0 %vm586_vm1, %v7530_v31  ;;  %v12881_v31 = vld [vmem:[%s16923_s26 + $0x259] sm:$0xff] }
 0x3ea   : > { %v18704_v28 = vpop.f32.mrb[64].mxu1 }
 0x3eb   : > { %21050 = vst [vmem:[#allocation23_spill] sm:$0xff] %v18704_v28  ;;  %v18708_v39 = vpop.f32.mrb[65].mxu1 }
 0x3ec   : > { %21051 = vst [vmem:[#allocation24_spill] sm:$0xff] %v18708_v39  ;;  %v18710_v13 = vpop.f32.mrb[66].mxu1  ;;  %v12882_v39 = vld [vmem:[%s16923_s26 + $0x261] sm:$0xff] }
 0x3ed   : > { %21052 = vst [vmem:[#allocation25_spill] sm:$0xff] %v18710_v13  ;;  %v18712_v61 = vpop.f32.mrb[67].mxu1  ;;  %v7534_v40 = vpack.c.bf16 %v12882_v39, %v12881_v31  ;;  %v12887_v31 = vld [vmem:[%s16923_s26 + $0x291] sm:$0xff] }
 0x3ee   : > { %21053 = vst [vmem:[#allocation26_spill] sm:$0xff] %v18712_v61 }
 0x3f0   : > { %15274 = vmatmul.mubr.msk.bf16.gmra.mrb[44].mxu0 %vm586_vm1, %v7531_v0  ;;  %v12884_v0 = vld [vmem:[%s16923_s26 + $0x271] sm:$0xff] }
 0x3f1   : > { %15277 = vmatprep.mubr.msk.bf16.mxu0 %vm586_vm1, %v7532_v56  ;;  %v7535_v5 = vpack.c.bf16 %v12884_v0, %v12883_v19 }
 0x3f2   : > { %v18718_v12 = vpop.f32.mrb[68].mxu1 }
 0x3f3   : > { %21054 = vst [vmem:[#allocation27_spill] sm:$0xff] %v18718_v12  ;;  %v18722_v28 = vpop.f32.mrb[69].mxu1  ;;  %v12885_v12 = vld [vmem:[%s16923_s26 + $0x281] sm:$0xff] }
 0x3f4   : > { %21055 = vst [vmem:[#allocation28_spill] sm:$0xff] %v18722_v28  ;;  %v18724_v21 = vpop.f32.mrb[70].mxu1  ;;  %v12886_v28 = vld [vmem:[%s16923_s26 + $0x289] sm:$0xff] }
 0x3f5   : > { %21056 = vst [vmem:[#allocation29_spill] sm:$0xff] %v18724_v21  ;;  %v18726_v61 = vpop.f32.mrb[71].mxu1  ;;  %v7536_v39 = vpack.c.bf16 %v12886_v28, %v12885_v12  ;;  %v12891_v12 = vld [vmem:[%s16923_s26 + $0x2b9] sm:$0xff] }
 0x3f6   : > { %21057 = vst [vmem:[#allocation30_spill] sm:$0xff] %v18726_v61 }
 0x3f8   : > { %15278 = vmatmul.mubr.msk.bf16.gmra.mrb[48].mxu0 %vm586_vm1, %v7533_v11  ;;  %v12888_v11 = vld [vmem:[%s16923_s26 + $0x299] sm:$0xff] }
 0x3f9   : > { %15281 = vmatprep.mubr.msk.bf16.mxu0 %vm586_vm1, %v7534_v40  ;;  %v7537_v0 = vpack.c.bf16 %v12888_v11, %v12887_v31 }
 0x3fa   : > { %v18732_v56 = vpop.f32.mrb[72].mxu1 }
 0x3fb   : > { %21058 = vst [vmem:[#allocation31_spill] sm:$0xff] %v18732_v56  ;;  %v18736_v13 = vpop.f32.mrb[73].mxu1  ;;  %v12889_v56 = vld [vmem:[%s16923_s26 + $0x2a9] sm:$0xff] }
 0x3fc   : > { %21059 = vst [vmem:[#allocation32_spill] sm:$0xff] %v18736_v13  ;;  %v18738_v38 = vpop.f32.mrb[74].mxu1  ;;  %v12890_v13 = vld [vmem:[%s16923_s26 + $0x2b1] sm:$0xff] }
 0x3fd   : > { %21060 = vst [vmem:[#allocation33_spill] sm:$0xff] %v18738_v38  ;;  %v18740_v61 = vpop.f32.mrb[75].mxu1  ;;  %v7538_v28 = vpack.c.bf16 %v12890_v13, %v12889_v56  ;;  %v12895_v56 = vld [vmem:[%s16923_s26 + $0x2e1] sm:$0xff] }
 0x3fe   : > { %21061 = vst [vmem:[#allocation34_spill] sm:$0xff] %v18740_v61 }
 0x400   : > { %15282 = vmatmul.mubr.msk.bf16.gmra.mrb[52].mxu0 %vm586_vm1, %v7535_v5  ;;  %v12892_v5 = vld [vmem:[%s16923_s26 + $0x2c1] sm:$0xff] }
 0x401   : > { %15285 = vmatprep.mubr.msk.bf16.mxu0 %vm586_vm1, %v7536_v39  ;;  %v7539_v11 = vpack.c.bf16 %v12892_v5, %v12891_v12 }
 0x402   : > { %v18746_v40 = vpop.f32.mrb[76].mxu1 }
 0x403   : > { %21062 = vst [vmem:[#allocation35_spill] sm:$0xff] %v18746_v40  ;;  %v18750_v21 = vpop.f32.mrb[77].mxu1  ;;  %v12893_v40 = vld [vmem:[%s16923_s26 + $0x2d1] sm:$0xff] }
 0x404   : > { %21063 = vst [vmem:[#allocation36_spill] sm:$0xff] %v18750_v21  ;;  %v18752_v19 = vpop.f32.mrb[78].mxu1  ;;  %v12894_v21 = vld [vmem:[%s16923_s26 + $0x2d9] sm:$0xff] }
 0x405   : > { %21064 = vst [vmem:[#allocation37_spill] sm:$0xff] %v18752_v19  ;;  %v18754_v61 = vpop.f32.mrb[79].mxu1  ;;  %v7540_v13 = vpack.c.bf16 %v12894_v21, %v12893_v40  ;;  %v12899_v40 = vld [vmem:[%s16923_s26 + $0x309] sm:$0xff] }
 0x406   : > { %21065 = vst [vmem:[#allocation38_spill] sm:$0xff] %v18754_v61 }
 0x408   : > { %15286 = vmatmul.mubr.msk.bf16.gmra.mrb[56].mxu0 %vm586_vm1, %v7537_v0  ;;  %v12896_v0 = vld [vmem:[%s16923_s26 + $0x2e9] sm:$0xff] }
 0x409   : > { %15289 = vmatprep.mubr.msk.bf16.mxu0 %vm586_vm1, %v7538_v28  ;;  %v7541_v5 = vpack.c.bf16 %v12896_v0, %v12895_v56 }
 0x40a   : > { %v18760_v39 = vpop.f32.mrb[80].mxu1 }
 0x40b   : > { %21066 = vst [vmem:[#allocation39_spill] sm:$0xff] %v18760_v39  ;;  %v18764_v38 = vpop.f32.mrb[81].mxu1  ;;  %v12897_v39 = vld [vmem:[%s16923_s26 + $0x2f9] sm:$0xff] }
 0x40c   : > { %21067 = vst [vmem:[#allocation40_spill] sm:$0xff] %v18764_v38  ;;  %v18766_v31 = vpop.f32.mrb[82].mxu1  ;;  %v12898_v38 = vld [vmem:[%s16923_s26 + $0x301] sm:$0xff] }
 0x40d   : > { %21068 = vst [vmem:[#allocation41_spill] sm:$0xff] %v18766_v31  ;;  %v18768_v61 = vpop.f32.mrb[83].mxu1  ;;  %v7542_v21 = vpack.c.bf16 %v12898_v38, %v12897_v39  ;;  %v12903_v39 = vld [vmem:[%s16923_s26 + $0x331] sm:$0xff] }
 0x40e   : > { %21069 = vst [vmem:[#allocation42_spill] sm:$0xff] %v18768_v61 }
 0x410   : > { %15290 = vmatmul.mubr.msk.bf16.gmra.mrb[60].mxu0 %vm586_vm1, %v7539_v11  ;;  %v12900_v11 = vld [vmem:[%s16923_s26 + $0x311] sm:$0xff] }
 0x411   : > { %15293 = vmatprep.mubr.msk.bf16.mxu0 %vm586_vm1, %v7540_v13  ;;  %v7543_v0 = vpack.c.bf16 %v12900_v11, %v12899_v40 }
 0x412   : > { %v18774_v28 = vpop.f32.mrb[84].mxu1 }
 0x413   : > { %21070 = vst [vmem:[#allocation43_spill] sm:$0xff] %v18774_v28  ;;  %v18778_v19 = vpop.f32.mrb[85].mxu1  ;;  %v12901_v28 = vld [vmem:[%s16923_s26 + $0x321] sm:$0xff] }
 0x414   : > { %21071 = vst [vmem:[#allocation44_spill] sm:$0xff] %v18778_v19  ;;  %v18780_v12 = vpop.f32.mrb[86].mxu1  ;;  %v12902_v19 = vld [vmem:[%s16923_s26 + $0x329] sm:$0xff] }
 0x415   : > { %21072 = vst [vmem:[#allocation45_spill] sm:$0xff] %v18780_v12  ;;  %v18782_v61 = vpop.f32.mrb[87].mxu1  ;;  %v7544_v38 = vpack.c.bf16 %v12902_v19, %v12901_v28  ;;  %v12907_v28 = vld [vmem:[%s16923_s26 + $0x359] sm:$0xff] }
 0x416   : > { %21073 = vst [vmem:[#allocation46_spill] sm:$0xff] %v18782_v61 }
 0x418   : > { %15294 = vmatmul.mubr.msk.bf16.gmra.mrb[64].mxu0 %vm586_vm1, %v7541_v5  ;;  %v12904_v5 = vld [vmem:[%s16923_s26 + $0x339] sm:$0xff] }
 0x419   : > { %15297 = vmatprep.mubr.msk.bf16.mxu0 %vm586_vm1, %v7542_v21  ;;  %v7545_v11 = vpack.c.bf16 %v12904_v5, %v12903_v39 }
 0x41a   : > { %v18788_v13 = vpop.f32.mrb[88].mxu1 }
 0x41b   : > { %21074 = vst [vmem:[#allocation47_spill] sm:$0xff] %v18788_v13  ;;  %v18792_v31 = vpop.f32.mrb[89].mxu1  ;;  %v12905_v13 = vld [vmem:[%s16923_s26 + $0x349] sm:$0xff] }
 0x41c   : > { %21075 = vst [vmem:[#allocation48_spill] sm:$0xff] %v18792_v31  ;;  %v18794_v56 = vpop.f32.mrb[90].mxu1  ;;  %v12906_v31 = vld [vmem:[%s16923_s26 + $0x351] sm:$0xff] }
 0x41d   : > { %21076 = vst [vmem:[#allocation49_spill] sm:$0xff] %v18794_v56  ;;  %v18796_v61 = vpop.f32.mrb[91].mxu1  ;;  %v7546_v19 = vpack.c.bf16 %v12906_v31, %v12905_v13  ;;  %v12911_v13 = vld [vmem:[%s16923_s26 + $0x381] sm:$0xff] }
 0x41e   : > { %21077 = vst [vmem:[#allocation50_spill] sm:$0xff] %v18796_v61 }
 0x420   : > { %15298 = vmatmul.mubr.msk.bf16.gmra.mrb[68].mxu0 %vm586_vm1, %v7543_v0  ;;  %v12908_v0 = vld [vmem:[%s16923_s26 + $0x361] sm:$0xff] }
 0x421   : > { %15301 = vmatprep.mubr.msk.bf16.mxu0 %vm586_vm1, %v7544_v38  ;;  %v7547_v5 = vpack.c.bf16 %v12908_v0, %v12907_v28 }
 0x422   : > { %v18802_v21 = vpop.f32.mrb[92].mxu1 }
 0x423   : > { %21078 = vst [vmem:[#allocation51_spill] sm:$0xff] %v18802_v21  ;;  %v18806_v12 = vpop.f32.mrb[93].mxu1  ;;  %v12909_v21 = vld [vmem:[%s16923_s26 + $0x371] sm:$0xff] }
 0x424   : > { %21079 = vst [vmem:[#allocation52_spill] sm:$0xff] %v18806_v12  ;;  %v18808_v40 = vpop.f32.mrb[94].mxu1  ;;  %v12910_v12 = vld [vmem:[%s16923_s26 + $0x379] sm:$0xff] }
 0x425   : > { %21080 = vst [vmem:[#allocation53_spill] sm:$0xff] %v18808_v40  ;;  %v18810_v61 = vpop.f32.mrb[95].mxu1  ;;  %v7548_v31 = vpack.c.bf16 %v12910_v12, %v12909_v21  ;;  %v12915_v21 = vld [vmem:[%s16923_s26 + $0x3a9] sm:$0xff] }
 0x426   : > { %21081 = vst [vmem:[#allocation54_spill] sm:$0xff] %v18810_v61 }
 0x428   : > { %15302 = vmatmul.mubr.msk.bf16.gmra.mrb[72].mxu0 %vm586_vm1, %v7545_v11  ;;  %v12912_v11 = vld [vmem:[%s16923_s26 + $0x389] sm:$0xff] }
 0x429   : > { %15305 = vmatprep.mubr.msk.bf16.mxu0 %vm586_vm1, %v7546_v19  ;;  %v7549_v0 = vpack.c.bf16 %v12912_v11, %v12911_v13 }
 0x42a   : > { %v18816_v38 = vpop.f32.mrb[96].mxu1 }
 0x42b   : > { %21082 = vst [vmem:[#allocation55_spill] sm:$0xff] %v18816_v38  ;;  %v18820_v56 = vpop.f32.mrb[97].mxu1  ;;  %v12913_v38 = vld [vmem:[%s16923_s26 + $0x399] sm:$0xff] }
 0x42c   : > { %21083 = vst [vmem:[#allocation56_spill] sm:$0xff] %v18820_v56  ;;  %v18822_v39 = vpop.f32.mrb[98].mxu1  ;;  %v12914_v56 = vld [vmem:[%s16923_s26 + $0x3a1] sm:$0xff] }
 0x42d   : > { %21084 = vst [vmem:[#allocation57_spill] sm:$0xff] %v18822_v39  ;;  %v18824_v61 = vpop.f32.mrb[99].mxu1  ;;  %v7550_v12 = vpack.c.bf16 %v12914_v56, %v12913_v38  ;;  %v12919_v38 = vld [vmem:[%s16923_s26 + $0x3d1] sm:$0xff] }
 0x42e   : > { %21085 = vst [vmem:[#allocation58_spill] sm:$0xff] %v18824_v61 }
 0x430   : > { %15306 = vmatmul.mubr.msk.bf16.gmra.mrb[76].mxu0 %vm586_vm1, %v7547_v5  ;;  %v12916_v5 = vld [vmem:[%s16923_s26 + $0x3b1] sm:$0xff] }
 0x431   : > { %15309 = vmatprep.mubr.msk.bf16.mxu0 %vm586_vm1, %v7548_v31  ;;  %v7551_v11 = vpack.c.bf16 %v12916_v5, %v12915_v21 }
 0x432   : > { %v18830_v19 = vpop.f32.mrb[100].mxu1 }
 0x433   : > { %21086 = vst [vmem:[#allocation59_spill] sm:$0xff] %v18830_v19  ;;  %v18834_v40 = vpop.f32.mrb[101].mxu1  ;;  %v12917_v19 = vld [vmem:[%s16923_s26 + $0x3c1] sm:$0xff] }
 0x434   : > { %21087 = vst [vmem:[#allocation60_spill] sm:$0xff] %v18834_v40  ;;  %v18836_v28 = vpop.f32.mrb[102].mxu1  ;;  %v12918_v40 = vld [vmem:[%s16923_s26 + $0x3c9] sm:$0xff] }
 0x435   : > { %21088 = vst [vmem:[#allocation61_spill] sm:$0xff] %v18836_v28  ;;  %v18838_v61 = vpop.f32.mrb[103].mxu1  ;;  %v7552_v56 = vpack.c.bf16 %v12918_v40, %v12917_v19  ;;  %v12923_v19 = vld [vmem:[%s16923_s26 + $0x3f9] sm:$0xff] }
 0x436   : > { %21089 = vst [vmem:[#allocation62_spill] sm:$0xff] %v18838_v61 }
 0x438   : > { %15310 = vmatmul.mubr.msk.bf16.gmra.mrb[80].mxu0 %vm586_vm1, %v7549_v0  ;;  %v12920_v0 = vld [vmem:[%s16923_s26 + $0x3d9] sm:$0xff] }
 0x439   : > { %15313 = vmatprep.mubr.msk.bf16.mxu0 %vm586_vm1, %v7550_v12  ;;  %v7553_v5 = vpack.c.bf16 %v12920_v0, %v12919_v38 }
 0x43a   : > { %v18844_v31 = vpop.f32.mrb[104].mxu1 }
 0x43b   : > { %21090 = vst [vmem:[#allocation63_spill] sm:$0xff] %v18844_v31  ;;  %v18848_v39 = vpop.f32.mrb[105].mxu1  ;;  %v12921_v31 = vld [vmem:[%s16923_s26 + $0x3e9] sm:$0xff] }
 0x43c   : > { %21091 = vst [vmem:[#allocation64_spill] sm:$0xff] %v18848_v39  ;;  %v18850_v13 = vpop.f32.mrb[106].mxu1  ;;  %v12922_v39 = vld [vmem:[%s16923_s26 + $0x3f1] sm:$0xff] }
 0x43d   : > { %21092 = vst [vmem:[#allocation65_spill] sm:$0xff] %v18850_v13  ;;  %v18852_v61 = vpop.f32.mrb[107].mxu1  ;;  %v7554_v40 = vpack.c.bf16 %v12922_v39, %v12921_v31  ;;  %v12927_v31 = vld [vmem:[%s16923_s26 + $0x421] sm:$0xff] }
 0x43e   : > { %21093 = vst [vmem:[#allocation66_spill] sm:$0xff] %v18852_v61 }
 0x440   : > { %15314 = vmatmul.mubr.msk.bf16.gmra.mrb[84].mxu0 %vm586_vm1, %v7551_v11  ;;  %v12924_v11 = vld [vmem:[%s16923_s26 + $0x401] sm:$0xff] }
 0x441   : > { %15317 = vmatprep.mubr.msk.bf16.mxu0 %vm586_vm1, %v7552_v56  ;;  %v7555_v0 = vpack.c.bf16 %v12924_v11, %v12923_v19 }
 0x442   : > { %v18858_v12 = vpop.f32.mrb[108].mxu1 }
 0x443   : > { %21094 = vst [vmem:[#allocation67_spill] sm:$0xff] %v18858_v12  ;;  %v18862_v28 = vpop.f32.mrb[109].mxu1  ;;  %v12925_v12 = vld [vmem:[%s16923_s26 + $0x411] sm:$0xff] }
 0x444   : > { %21095 = vst [vmem:[#allocation68_spill] sm:$0xff] %v18862_v28  ;;  %v18864_v21 = vpop.f32.mrb[110].mxu1  ;;  %v12926_v28 = vld [vmem:[%s16923_s26 + $0x419] sm:$0xff] }
 0x445   : > { %21096 = vst [vmem:[#allocation69_spill] sm:$0xff] %v18864_v21  ;;  %v18866_v61 = vpop.f32.mrb[111].mxu1  ;;  %v7556_v39 = vpack.c.bf16 %v12926_v28, %v12925_v12  ;;  %v12931_v12 = vld [vmem:[%s16923_s26 + $0x449] sm:$0xff] }
 0x446   : > { %21097 = vst [vmem:[#allocation70_spill] sm:$0xff] %v18866_v61 }
 0x448   : > { %15318 = vmatmul.mubr.msk.bf16.gmra.mrb[88].mxu0 %vm586_vm1, %v7553_v5  ;;  %v12928_v5 = vld [vmem:[%s16923_s26 + $0x429] sm:$0xff] }
 0x449   : > { %15321 = vmatprep.mubr.msk.bf16.mxu0 %vm586_vm1, %v7554_v40  ;;  %v7557_v11 = vpack.c.bf16 %v12928_v5, %v12927_v31 }
 0x44a   : > { %v18872_v56 = vpop.f32.mrb[112].mxu1 }
 0x44b   : > { %21098 = vst [vmem:[#allocation71_spill] sm:$0xff] %v18872_v56  ;;  %v18876_v13 = vpop.f32.mrb[113].mxu1  ;;  %v12929_v56 = vld [vmem:[%s16923_s26 + $0x439] sm:$0xff] }
 0x44c   : > { %21099 = vst [vmem:[#allocation72_spill] sm:$0xff] %v18876_v13  ;;  %v18878_v38 = vpop.f32.mrb[114].mxu1  ;;  %v12930_v13 = vld [vmem:[%s16923_s26 + $0x441] sm:$0xff] }
 0x44d   : > { %21100 = vst [vmem:[#allocation73_spill] sm:$0xff] %v18878_v38  ;;  %v18880_v61 = vpop.f32.mrb[115].mxu1  ;;  %v7558_v28 = vpack.c.bf16 %v12930_v13, %v12929_v56  ;;  %v12935_v56 = vld [vmem:[%s16923_s26 + $0x471] sm:$0xff] }
 0x44e   : > { %21101 = vst [vmem:[#allocation74_spill] sm:$0xff] %v18880_v61 }
 0x450   : > { %15322 = vmatmul.mubr.msk.bf16.gmra.mrb[92].mxu0 %vm586_vm1, %v7555_v0  ;;  %v12932_v0 = vld [vmem:[%s16923_s26 + $0x451] sm:$0xff] }
 0x451   : > { %15325 = vmatprep.mubr.msk.bf16.mxu0 %vm586_vm1, %v7556_v39  ;;  %v7559_v5 = vpack.c.bf16 %v12932_v0, %v12931_v12 }
 0x452   : > { %v18886_v40 = vpop.f32.mrb[116].mxu1 }
 0x453   : > { %21102 = vst [vmem:[#allocation75_spill] sm:$0xff] %v18886_v40  ;;  %v18890_v21 = vpop.f32.mrb[117].mxu1  ;;  %v12933_v40 = vld [vmem:[%s16923_s26 + $0x461] sm:$0xff] }
 0x454   : > { %21103 = vst [vmem:[#allocation76_spill] sm:$0xff] %v18890_v21  ;;  %v18892_v19 = vpop.f32.mrb[118].mxu1  ;;  %v12934_v21 = vld [vmem:[%s16923_s26 + $0x469] sm:$0xff] }
 0x455   : > { %21104 = vst [vmem:[#allocation77_spill] sm:$0xff] %v18892_v19  ;;  %v18894_v61 = vpop.f32.mrb[119].mxu1  ;;  %v7560_v13 = vpack.c.bf16 %v12934_v21, %v12933_v40  ;;  %v13133_v19 = vld [vmem:[%s16923_s26 + $0x4a2] sm:$0xff] }
 0x456   : > { %21105 = vst [vmem:[#allocation78_spill] sm:$0xff] %v18894_v61 }
 0x458   : > { %15326 = vmatmul.mubr.msk.bf16.gmra.mrb[96].mxu0 %vm586_vm1, %v7557_v11  ;;  %v12936_v11 = vld [vmem:[%s16923_s26 + $0x479] sm:$0xff] }
 0x459   : > { %15329 = vmatprep.mubr.msk.bf16.mxu0 %vm586_vm1, %v7558_v28  ;;  %v7561_v21 = vpack.c.bf16 %v12936_v11, %v12935_v56  ;;  %v12943_v56 = vld [vmem:[%s16923_s26 + $0x4c1] sm:$0xff] }
 0x45a   : > { %v18900_v39 = vpop.f32.mrb[120].mxu1  ;;  %v12946_v11 = vld [vmem:[%s16923_s26 + $0x4e1] sm:$0xff] }
 0x45b   : > { %21106 = vst [vmem:[#allocation79_spill] sm:$0xff] %v18900_v39  ;;  %v18904_v38 = vpop.f32.mrb[121].mxu1  ;;  %v12937_v39 = vld [vmem:[%s16923_s26 + $0x489] sm:$0xff] }
 0x45c   : > { %21107 = vst [vmem:[#allocation80_spill] sm:$0xff] %v18904_v38  ;;  %v18906_v31 = vpop.f32.mrb[122].mxu1  ;;  %v12938_v38 = vld [vmem:[%s16923_s26 + $0x491] sm:$0xff] }
 0x45d   : > { %21108 = vst [vmem:[#allocation81_spill] sm:$0xff] %v18906_v31  ;;  %v18908_v61 = vpop.f32.mrb[123].mxu1  ;;  %v7562_v0 = vpack.c.bf16 %v12938_v38, %v12937_v39  ;;  %v12944_v38 = vld [vmem:[%s16923_s26 + $0x4c9] sm:$0xff]  ;;  %v12945_v39 = vld [vmem:[%s16923_s26 + $0x4d9] sm:$0xff] }
 0x45e   : > { %21109 = vst [vmem:[#allocation82_spill] sm:$0xff] %v18908_v61 }
 0x460   : > { %15330 = vmatmul.mubr.msk.bf16.gmra.mrb[100].mxu0 %vm586_vm1, %v7559_v5  ;;  %v12939_v5 = vld [vmem:[%s16923_s26 + $0x499] sm:$0xff] }
 0x461   : > { %15333 = vmatprep.mubr.msk.bf16.mxu0 %vm586_vm1, %v7560_v13  ;;  %v12940_v13 = vld [vmem:[%s16923_s26 + $0x4a1] sm:$0xff] }
 0x462   : > { %v18914_v28 = vpop.f32.mrb[124].mxu1  ;;  %v7563_v61 = vpack.c.bf16 %v12940_v13, %v12939_v5  ;;  %v12947_v5 = vld [vmem:[%s16923_s26 + $0x4e9] sm:$0xff] }
 0x463   : > { %21110 = vst [vmem:[#allocation83_spill] sm:$0xff] %v18914_v28  ;;  %v18918_v31 = vpop.f32.mrb[125].mxu1  ;;  %v12941_v28 = vld [vmem:[%s16923_s26 + $0x4b1] sm:$0xff] }
 0x464   : > { %21111 = vst [vmem:[#allocation84_spill] sm:$0xff] %v18918_v31  ;;  %v18920_v12 = vpop.f32.mrb[126].mxu1  ;;  %v12942_v31 = vld [vmem:[%s16923_s26 + $0x4b9] sm:$0xff] }
 0x465   : > { %21112 = vst [vmem:[#allocation85_spill] sm:$0xff] %v18920_v12  ;;  %v18922_v40 = vpop.f32.mrb[127].mxu1  ;;  %v7564_v12 = vpack.c.bf16 %v12942_v31, %v12941_v28  ;;  %v12948_v31 = vld [vmem:[%s16923_s26 + $0x4f1] sm:$0xff]  ;;  %v12950_v28 = vld [vmem:[%s16923_s26 + $0x509] sm:$0xff] }
 0x466   : > { %21113 = vst [vmem:[#allocation86_spill] sm:$0xff] %v18922_v40 }
 0x468   : > { %15334 = vmatmul.mubr.msk.bf16.gmra.mrb[104].mxu0 %vm586_vm1, %v7561_v21  ;;  %v7565_v21 = vpack.c.bf16 %v12944_v38, %v12943_v56  ;;  %v12951_v56 = vld [vmem:[%s16923_s26 + $0x511] sm:$0xff]  ;;  %v12952_v38 = vld [vmem:[%s16923_s26 + $0x519] sm:$0xff] }
 0x469   : > { %15337 = vmatprep.mubr.msk.bf16.mxu0 %vm586_vm1, %v7562_v0  ;;  %v7566_v0 = vpack.c.bf16 %v12946_v11, %v12945_v39  ;;  %v12953_v39 = vld [vmem:[%s16923_s26 + $0x529] sm:$0xff]  ;;  %v12954_v11 = vld [vmem:[%s16923_s26 + $0x531] sm:$0xff] }
 0x470   : > { %15338 = vmatmul.mubr.msk.bf16.gmra.mrb[108].mxu0 %vm586_vm1, %v7563_v61  ;;  %v12949_v61 = vld [vmem:[%s16923_s26 + $0x501] sm:$0xff] }
 0x471   : > { %15341 = vmatprep.mubr.msk.bf16.mxu0 %vm586_vm1, %v7564_v12  ;;  %v7567_v12 = vpack.c.bf16 %v12948_v31, %v12947_v5  ;;  %v7568_v13 = vpack.c.bf16 %v12950_v28, %v12949_v61  ;;  %v12955_v5 = vld [vmem:[%s16923_s26 + $0x539] sm:$0xff]  ;;  %v12956_v31 = vld [vmem:[%s16923_s26 + $0x541] sm:$0xff] }
 0x472   : > { %v13022_v61 = vld [vmem:[%s16923_s26 + $0x52] sm:$0xff]  ;;  %v13023_v28 = vld [vmem:[%s16923_s26 + $0x5a] sm:$0xff] }
 0x478   : > { %15342 = vmatmul.mubr.msk.bf16.gmra.mrb[112].mxu0 %vm586_vm1, %v7565_v21  ;;  %v7569_v21 = vpack.c.bf16 %v12952_v38, %v12951_v56  ;;  %v13024_v56 = vld [vmem:[%s16923_s26 + $0x62] sm:$0xff]  ;;  %v13025_v38 = vld [vmem:[%s16923_s26 + $0x6a] sm:$0xff] }
 0x479   : > { %15345 = vmatprep.mubr.msk.bf16.mxu0 %vm586_vm1, %v7566_v0  ;;  %v7570_v0 = vpack.c.bf16 %v12954_v11, %v12953_v39  ;;  %v13026_v39 = vld [vmem:[%s16923_s26 + $0x7a] sm:$0xff]  ;;  %v13027_v11 = vld [vmem:[%s16923_s26 + $0x82] sm:$0xff] }
 0x480   : > { %15346 = vmatmul.mubr.msk.bf16.gmra.mrb[116].mxu0 %vm586_vm1, %v7567_v12  ;;  %v7571_v12 = vpack.c.bf16 %v12956_v31, %v12955_v5  ;;  %v13028_v5 = vld [vmem:[%s16923_s26 + $0x8a] sm:$0xff]  ;;  %v13029_v31 = vld [vmem:[%s16923_s26 + $0x92] sm:$0xff] }
 0x481   : > { %15349 = vmatprep.mubr.msk.bf16.mxu0 %vm586_vm1, %v7568_v13  ;;  %v8570_v13 = vpack.c.bf16 %v13023_v28, %v13022_v61  ;;  %v13030_v61 = vld [vmem:[%s16923_s26 + $0xa2] sm:$0xff]  ;;  %v13031_v28 = vld [vmem:[%s16923_s26 + $0xaa] sm:$0xff] }
 0x488   : > { %15350 = vmatmul.mubr.msk.bf16.gmra.mrb[120].mxu0 %vm586_vm1, %v7569_v21  ;;  %v8571_v21 = vpack.c.bf16 %v13025_v38, %v13024_v56  ;;  %v13032_v56 = vld [vmem:[%s16923_s26 + $0xb2] sm:$0xff]  ;;  %v13033_v38 = vld [vmem:[%s16923_s26 + $0xba] sm:$0xff] }
 0x489   : > { %15353 = vmatprep.mubr.msk.bf16.mxu0 %vm586_vm1, %v7570_v0  ;;  %v8572_v0 = vpack.c.bf16 %v13027_v11, %v13026_v39  ;;  %v13034_v39 = vld [vmem:[%s16923_s26 + $0xca] sm:$0xff]  ;;  %v13035_v11 = vld [vmem:[%s16923_s26 + $0xd2] sm:$0xff] }
 0x490   : > { %15354 = vmatmul.mubr.msk.bf16.gmra.mrb[124].mxu0 %vm586_vm1, %v7571_v12  ;;  %v8573_v12 = vpack.c.bf16 %v13029_v31, %v13028_v5  ;;  %v13036_v5 = vld [vmem:[%s16923_s26 + $0xda] sm:$0xff]  ;;  %v13037_v31 = vld [vmem:[%s16923_s26 + $0xe2] sm:$0xff] }
 0x491   : > { %15359 = vmatprep.mubr.msk.bf16.mxu0 %vm586_vm1, %v8570_v13  ;;  %v8574_v13 = vpack.c.bf16 %v13031_v28, %v13030_v61  ;;  %v13038_v61 = vld [vmem:[%s16923_s26 + $0xf2] sm:$0xff]  ;;  %v13039_v28 = vld [vmem:[%s16923_s26 + $0xfa] sm:$0xff] }
 0x498   : > { %15360 = vmatmul.mubr.msk.bf16.vlgmr.msra.gmra.mrb[0].mxu0 %vm586_vm1, %v8571_v21  ;;  %v8575_v21 = vpack.c.bf16 %v13033_v38, %v13032_v56  ;;  %v13040_v56 = vld [vmem:[%s16923_s26 + $0x102] sm:$0xff]  ;;  %v13041_v38 = vld [vmem:[%s16923_s26 + $0x10a] sm:$0xff] }
 0x499   : > { %15363 = vmatprep.mubr.msk.bf16.mxu0 %vm586_vm1, %v8572_v0  ;;  %v8576_v0 = vpack.c.bf16 %v13035_v11, %v13034_v39  ;;  %v13042_v39 = vld [vmem:[%s16923_s26 + $0x11a] sm:$0xff]  ;;  %v13043_v11 = vld [vmem:[%s16923_s26 + $0x122] sm:$0xff] }
 0x4a0   : > { %15364 = vmatmul.mubr.msk.bf16.gmra.mrb[4].mxu0 %vm586_vm1, %v8573_v12  ;;  %v8577_v12 = vpack.c.bf16 %v13037_v31, %v13036_v5  ;;  %v13044_v5 = vld [vmem:[%s16923_s26 + $0x12a] sm:$0xff]  ;;  %v13045_v31 = vld [vmem:[%s16923_s26 + $0x132] sm:$0xff] }
 0x4a1   : > { %15367 = vmatprep.mubr.msk.bf16.mxu0 %vm586_vm1, %v8574_v13  ;;  %v8578_v13 = vpack.c.bf16 %v13039_v28, %v13038_v61  ;;  %v13046_v61 = vld [vmem:[%s16923_s26 + $0x142] sm:$0xff]  ;;  %v13047_v28 = vld [vmem:[%s16923_s26 + $0x14a] sm:$0xff] }
 0x4a8   : > { %15368 = vmatmul.mubr.msk.bf16.gmra.mrb[8].mxu0 %vm586_vm1, %v8575_v21  ;;  %v8579_v21 = vpack.c.bf16 %v13041_v38, %v13040_v56  ;;  %v13048_v56 = vld [vmem:[%s16923_s26 + $0x152] sm:$0xff]  ;;  %v13049_v38 = vld [vmem:[%s16923_s26 + $0x15a] sm:$0xff] }
 0x4a9   : > { %15371 = vmatprep.mubr.msk.bf16.mxu0 %vm586_vm1, %v8576_v0  ;;  %v8580_v0 = vpack.c.bf16 %v13043_v11, %v13042_v39  ;;  %v13050_v39 = vld [vmem:[%s16923_s26 + $0x16a] sm:$0xff]  ;;  %v13051_v11 = vld [vmem:[%s16923_s26 + $0x172] sm:$0xff] }
 0x4b0   : > { %15372 = vmatmul.mubr.msk.bf16.gmra.mrb[12].mxu0 %vm586_vm1, %v8577_v12  ;;  %v8581_v12 = vpack.c.bf16 %v13045_v31, %v13044_v5  ;;  %v13052_v5 = vld [vmem:[%s16923_s26 + $0x17a] sm:$0xff]  ;;  %v13053_v31 = vld [vmem:[%s16923_s26 + $0x182] sm:$0xff] }
 0x4b1   : > { %15375 = vmatprep.mubr.msk.bf16.mxu0 %vm586_vm1, %v8578_v13  ;;  %v8582_v13 = vpack.c.bf16 %v13047_v28, %v13046_v61  ;;  %v13054_v61 = vld [vmem:[%s16923_s26 + $0x192] sm:$0xff]  ;;  %v13055_v28 = vld [vmem:[%s16923_s26 + $0x19a] sm:$0xff] }
 0x4b8   : > { %15376 = vmatmul.mubr.msk.bf16.gmra.mrb[16].mxu0 %vm586_vm1, %v8579_v21  ;;  %v8583_v21 = vpack.c.bf16 %v13049_v38, %v13048_v56  ;;  %v13056_v56 = vld [vmem:[%s16923_s26 + $0x1a2] sm:$0xff]  ;;  %v13057_v38 = vld [vmem:[%s16923_s26 + $0x1aa] sm:$0xff] }
 0x4b9   : > { %15379 = vmatprep.mubr.msk.bf16.mxu0 %vm586_vm1, %v8580_v0  ;;  %v8584_v0 = vpack.c.bf16 %v13051_v11, %v13050_v39  ;;  %v13058_v39 = vld [vmem:[%s16923_s26 + $0x1ba] sm:$0xff]  ;;  %v13059_v11 = vld [vmem:[%s16923_s26 + $0x1c2] sm:$0xff] }
 0x4c0   : > { %15380 = vmatmul.mubr.msk.bf16.gmra.mrb[20].mxu0 %vm586_vm1, %v8581_v12  ;;  %v8585_v12 = vpack.c.bf16 %v13053_v31, %v13052_v5  ;;  %v13060_v5 = vld [vmem:[%s16923_s26 + $0x1ca] sm:$0xff]  ;;  %v13061_v31 = vld [vmem:[%s16923_s26 + $0x1d2] sm:$0xff] }
 0x4c1   : > { %15383 = vmatprep.mubr.msk.bf16.mxu0 %vm586_vm1, %v8582_v13  ;;  %v8586_v13 = vpack.c.bf16 %v13055_v28, %v13054_v61  ;;  %v13062_v61 = vld [vmem:[%s16923_s26 + $0x1e2] sm:$0xff]  ;;  %v13063_v28 = vld [vmem:[%s16923_s26 + $0x1ea] sm:$0xff] }
 0x4c8   : > { %15384 = vmatmul.mubr.msk.bf16.gmra.mrb[24].mxu0 %vm586_vm1, %v8583_v21  ;;  %v8587_v21 = vpack.c.bf16 %v13057_v38, %v13056_v56  ;;  %v13064_v56 = vld [vmem:[%s16923_s26 + $0x1f2] sm:$0xff]  ;;  %v13065_v38 = vld [vmem:[%s16923_s26 + $0x1fa] sm:$0xff] }
 0x4c9   : > { %15387 = vmatprep.mubr.msk.bf16.mxu0 %vm586_vm1, %v8584_v0  ;;  %v8588_v0 = vpack.c.bf16 %v13059_v11, %v13058_v39  ;;  %v13066_v39 = vld [vmem:[%s16923_s26 + $0x20a] sm:$0xff]  ;;  %v13067_v11 = vld [vmem:[%s16923_s26 + $0x212] sm:$0xff] }
 0x4d0   : > { %15388 = vmatmul.mubr.msk.bf16.gmra.mrb[28].mxu0 %vm586_vm1, %v8585_v12  ;;  %v8589_v12 = vpack.c.bf16 %v13061_v31, %v13060_v5  ;;  %v13068_v5 = vld [vmem:[%s16923_s26 + $0x21a] sm:$0xff]  ;;  %v13069_v31 = vld [vmem:[%s16923_s26 + $0x222] sm:$0xff] }
 0x4d1   : > { %15391 = vmatprep.mubr.msk.bf16.mxu0 %vm586_vm1, %v8586_v13  ;;  %v8590_v13 = vpack.c.bf16 %v13063_v28, %v13062_v61  ;;  %v13070_v61 = vld [vmem:[%s16923_s26 + $0x232] sm:$0xff]  ;;  %v13071_v28 = vld [vmem:[%s16923_s26 + $0x23a] sm:$0xff] }
 0x4d8   : > { %15392 = vmatmul.mubr.msk.bf16.gmra.mrb[32].mxu0 %vm586_vm1, %v8587_v21  ;;  %v8591_v21 = vpack.c.bf16 %v13065_v38, %v13064_v56  ;;  %v13072_v56 = vld [vmem:[%s16923_s26 + $0x242] sm:$0xff]  ;;  %v13073_v38 = vld [vmem:[%s16923_s26 + $0x24a] sm:$0xff] }
 0x4d9   : > { %15395 = vmatprep.mubr.msk.bf16.mxu0 %vm586_vm1, %v8588_v0  ;;  %v8592_v0 = vpack.c.bf16 %v13067_v11, %v13066_v39  ;;  %v13074_v39 = vld [vmem:[%s16923_s26 + $0x25a] sm:$0xff]  ;;  %v13075_v11 = vld [vmem:[%s16923_s26 + $0x262] sm:$0xff] }
 0x4e0   : > { %15396 = vmatmul.mubr.msk.bf16.gmra.mrb[36].mxu0 %vm586_vm1, %v8589_v12  ;;  %v8593_v12 = vpack.c.bf16 %v13069_v31, %v13068_v5  ;;  %v13076_v5 = vld [vmem:[%s16923_s26 + $0x26a] sm:$0xff]  ;;  %v13077_v31 = vld [vmem:[%s16923_s26 + $0x272] sm:$0xff] }
 0x4e1   : > { %15399 = vmatprep.mubr.msk.bf16.mxu0 %vm586_vm1, %v8590_v13  ;;  %v8594_v13 = vpack.c.bf16 %v13071_v28, %v13070_v61  ;;  %v13078_v61 = vld [vmem:[%s16923_s26 + $0x282] sm:$0xff]  ;;  %v13079_v28 = vld [vmem:[%s16923_s26 + $0x28a] sm:$0xff] }
 0x4e8   : > { %15400 = vmatmul.mubr.msk.bf16.gmra.mrb[40].mxu0 %vm586_vm1, %v8591_v21  ;;  %v8595_v21 = vpack.c.bf16 %v13073_v38, %v13072_v56  ;;  %v13080_v56 = vld [vmem:[%s16923_s26 + $0x292] sm:$0xff]  ;;  %v13081_v38 = vld [vmem:[%s16923_s26 + $0x29a] sm:$0xff] }
 0x4e9   : > { %15403 = vmatprep.mubr.msk.bf16.mxu0 %vm586_vm1, %v8592_v0  ;;  %v8596_v0 = vpack.c.bf16 %v13075_v11, %v13074_v39  ;;  %v13082_v39 = vld [vmem:[%s16923_s26 + $0x2aa] sm:$0xff]  ;;  %v13083_v11 = vld [vmem:[%s16923_s26 + $0x2b2] sm:$0xff] }
 0x4f0   : > { %15404 = vmatmul.mubr.msk.bf16.gmra.mrb[44].mxu0 %vm586_vm1, %v8593_v12  ;;  %v8597_v12 = vpack.c.bf16 %v13077_v31, %v13076_v5  ;;  %v8600_v5 = vpack.c.bf16 %v13083_v11, %v13082_v39  ;;  %v13084_v31 = vld [vmem:[%s16923_s26 + $0x2ba] sm:$0xff]  ;;  %v13091_v11 = vld [vmem:[%s16923_s26 + $0x302] sm:$0xff] }
 0x4f1   : > { %15407 = vmatprep.mubr.msk.bf16.mxu0 %vm586_vm1, %v8594_v13  ;;  %v8598_v13 = vpack.c.bf16 %v13079_v28, %v13078_v61  ;;  %v13085_v61 = vld [vmem:[%s16923_s26 + $0x2c2] sm:$0xff]  ;;  %v13086_v28 = vld [vmem:[%s16923_s26 + $0x2d2] sm:$0xff]  ;;  %v13090_v39 = vld [vmem:[%s16923_s26 + $0x2fa] sm:$0xff] }
 0x4f8   : > { %15408 = vmatmul.mubr.msk.bf16.gmra.mrb[48].mxu0 %vm586_vm1, %v8595_v21  ;;  %v20982_v21 = vmov 0.0|0.0  }
 0x4f9   : > { %15411 = vmatprep.mubr.msk.bf16.mxu0 %vm586_vm1, %v8596_v0  ;;  %15487 = vmatprep.subr.bf16.mxu1 %v20982_v21  ;;  %v8599_v0 = vpack.c.bf16 %v13081_v38, %v13080_v56  ;;  %v13088_v56 = vld [vmem:[%s16923_s26 + $0x2e2] sm:$0xff]  ;;  %v13089_v38 = vld [vmem:[%s16923_s26 + $0x2ea] sm:$0xff]  ;;  %v13132_v21 = vld [vmem:[%s16923_s26 + $0x49a] sm:$0xff] }
 0x500   : > { %15412 = vmatmul.mubr.msk.bf16.gmra.mrb[52].mxu0 %vm586_vm1, %v8597_v12  ;;  %v13087_v12 = vld [vmem:[%s16923_s26 + $0x2da] sm:$0xff] }
 0x501   : > { %15415 = vmatprep.mubr.msk.bf16.mxu0 %vm586_vm1, %v8598_v13  ;;  %v8601_v13 = vpack.c.bf16 %v13085_v61, %v13084_v31  ;;  %v8602_v40 = vpack.c.bf16 %v13087_v12, %v13086_v28  ;;  %v13092_v31 = vld [vmem:[%s16923_s26 + $0x30a] sm:$0xff]  ;;  %v13093_v61 = vld [vmem:[%s16923_s26 + $0x312] sm:$0xff]  ;;  %v13094_v28 = vld [vmem:[%s16923_s26 + $0x322] sm:$0xff] }
 0x502   : > { %v8605_v12 = vpack.c.bf16 %v13093_v61, %v13092_v31  ;;  %v13100_v31 = vld [vmem:[%s16923_s26 + $0x35a] sm:$0xff]  ;;  %v13101_v61 = vld [vmem:[%s16923_s26 + $0x362] sm:$0xff] }
 0x508   : > { %15416 = vmatmul.mubr.msk.bf16.gmra.mrb[56].mxu0 %vm586_vm1, %v8599_v0  ;;  %v8603_v0 = vpack.c.bf16 %v13089_v38, %v13088_v56  ;;  %v13096_v56 = vld [vmem:[%s16923_s26 + $0x332] sm:$0xff]  ;;  %v13097_v38 = vld [vmem:[%s16923_s26 + $0x33a] sm:$0xff] }
 0x509   : > { %15419 = vmatprep.mubr.msk.bf16.mxu0 %vm586_vm1, %v8600_v5  ;;  %v8604_v5 = vpack.c.bf16 %v13091_v11, %v13090_v39  ;;  %v13098_v39 = vld [vmem:[%s16923_s26 + $0x34a] sm:$0xff]  ;;  %v13099_v11 = vld [vmem:[%s16923_s26 + $0x352] sm:$0xff] }
 0x510   : > { %15420 = vmatmul.mubr.msk.bf16.gmra.mrb[60].mxu0 %vm586_vm1, %v8601_v13 }
 0x511   : > { %15423 = vmatprep.mubr.msk.bf16.mxu0 %vm586_vm1, %v8602_v40  ;;  %v13095_v40 = vld [vmem:[%s16923_s26 + $0x32a] sm:$0xff] }
 0x512   : > { %v8606_v13 = vpack.c.bf16 %v13095_v40, %v13094_v28  ;;  %v13102_v28 = vld [vmem:[%s16923_s26 + $0x372] sm:$0xff]  ;;  %v13103_v40 = vld [vmem:[%s16923_s26 + $0x37a] sm:$0xff] }
 0x518   : > { %15424 = vmatmul.mubr.msk.bf16.gmra.mrb[64].mxu0 %vm586_vm1, %v8603_v0  ;;  %v8607_v0 = vpack.c.bf16 %v13097_v38, %v13096_v56  ;;  %v13104_v56 = vld [vmem:[%s16923_s26 + $0x382] sm:$0xff]  ;;  %v13105_v38 = vld [vmem:[%s16923_s26 + $0x38a] sm:$0xff] }
 0x519   : > { %15427 = vmatprep.mubr.msk.bf16.mxu0 %vm586_vm1, %v8604_v5  ;;  %v8608_v5 = vpack.c.bf16 %v13099_v11, %v13098_v39  ;;  %v13106_v39 = vld [vmem:[%s16923_s26 + $0x39a] sm:$0xff]  ;;  %v13107_v11 = vld [vmem:[%s16923_s26 + $0x3a2] sm:$0xff] }
 0x520   : > { %15428 = vmatmul.mubr.msk.bf16.gmra.mrb[68].mxu0 %vm586_vm1, %v8605_v12  ;;  %v8609_v12 = vpack.c.bf16 %v13101_v61, %v13100_v31  ;;  %v13108_v31 = vld [vmem:[%s16923_s26 + $0x3aa] sm:$0xff]  ;;  %v13109_v61 = vld [vmem:[%s16923_s26 + $0x3b2] sm:$0xff] }
 0x521   : > { %15431 = vmatprep.mubr.msk.bf16.mxu0 %vm586_vm1, %v8606_v13  ;;  %v8610_v13 = vpack.c.bf16 %v13103_v40, %v13102_v28  ;;  %v13110_v28 = vld [vmem:[%s16923_s26 + $0x3c2] sm:$0xff]  ;;  %v13111_v40 = vld [vmem:[%s16923_s26 + $0x3ca] sm:$0xff] }
 0x528   : > { %15432 = vmatmul.mubr.msk.bf16.gmra.mrb[72].mxu0 %vm586_vm1, %v8607_v0  ;;  %v8611_v0 = vpack.c.bf16 %v13105_v38, %v13104_v56  ;;  %v13112_v56 = vld [vmem:[%s16923_s26 + $0x3d2] sm:$0xff]  ;;  %v13113_v38 = vld [vmem:[%s16923_s26 + $0x3da] sm:$0xff] }
 0x529   : > { %15435 = vmatprep.mubr.msk.bf16.mxu0 %vm586_vm1, %v8608_v5  ;;  %v8612_v5 = vpack.c.bf16 %v13107_v11, %v13106_v39  ;;  %v13114_v39 = vld [vmem:[%s16923_s26 + $0x3ea] sm:$0xff]  ;;  %v13115_v11 = vld [vmem:[%s16923_s26 + $0x3f2] sm:$0xff] }
 0x530   : > { %15436 = vmatmul.mubr.msk.bf16.gmra.mrb[76].mxu0 %vm586_vm1, %v8609_v12  ;;  %v8613_v12 = vpack.c.bf16 %v13109_v61, %v13108_v31  ;;  %v13116_v31 = vld [vmem:[%s16923_s26 + $0x3fa] sm:$0xff]  ;;  %v13117_v61 = vld [vmem:[%s16923_s26 + $0x402] sm:$0xff] }
 0x531   : > { %15439 = vmatprep.mubr.msk.bf16.mxu0 %vm586_vm1, %v8610_v13  ;;  %v8614_v13 = vpack.c.bf16 %v13111_v40, %v13110_v28  ;;  %v13118_v28 = vld [vmem:[%s16923_s26 + $0x412] sm:$0xff]  ;;  %v13119_v40 = vld [vmem:[%s16923_s26 + $0x41a] sm:$0xff] }
 0x538   : > { %15440 = vmatmul.mubr.msk.bf16.gmra.mrb[80].mxu0 %vm586_vm1, %v8611_v0  ;;  %v8615_v0 = vpack.c.bf16 %v13113_v38, %v13112_v56  ;;  %v13120_v56 = vld [vmem:[%s16923_s26 + $0x422] sm:$0xff]  ;;  %v13121_v38 = vld [vmem:[%s16923_s26 + $0x42a] sm:$0xff] }
 0x539   : > { %15443 = vmatprep.mubr.msk.bf16.mxu0 %vm586_vm1, %v8612_v5  ;;  %v8616_v5 = vpack.c.bf16 %v13115_v11, %v13114_v39  ;;  %v13122_v39 = vld [vmem:[%s16923_s26 + $0x43a] sm:$0xff]  ;;  %v13123_v11 = vld [vmem:[%s16923_s26 + $0x442] sm:$0xff] }
 0x540   : > { %15444 = vmatmul.mubr.msk.bf16.gmra.mrb[84].mxu0 %vm586_vm1, %v8613_v12  ;;  %v8617_v12 = vpack.c.bf16 %v13117_v61, %v13116_v31  ;;  %v13124_v31 = vld [vmem:[%s16923_s26 + $0x44a] sm:$0xff]  ;;  %v13125_v61 = vld [vmem:[%s16923_s26 + $0x452] sm:$0xff] }
 0x541   : > { %15447 = vmatprep.mubr.msk.bf16.mxu0 %vm586_vm1, %v8614_v13  ;;  %v8618_v13 = vpack.c.bf16 %v13119_v40, %v13118_v28  ;;  %v13126_v28 = vld [vmem:[%s16923_s26 + $0x462] sm:$0xff]  ;;  %v13127_v40 = vld [vmem:[%s16923_s26 + $0x46a] sm:$0xff] }
 0x548   : > { %15448 = vmatmul.mubr.msk.bf16.gmra.mrb[88].mxu0 %vm586_vm1, %v8615_v0  ;;  %v8619_v0 = vpack.c.bf16 %v13121_v38, %v13120_v56  ;;  %v13128_v56 = vld [vmem:[%s16923_s26 + $0x472] sm:$0xff]  ;;  %v13129_v38 = vld [vmem:[%s16923_s26 + $0x47a] sm:$0xff] }
 0x549   : > { %15451 = vmatprep.mubr.msk.bf16.mxu0 %vm586_vm1, %v8616_v5  ;;  %v8620_v5 = vpack.c.bf16 %v13123_v11, %v13122_v39  ;;  %v13130_v39 = vld [vmem:[%s16923_s26 + $0x48a] sm:$0xff]  ;;  %v13131_v11 = vld [vmem:[%s16923_s26 + $0x492] sm:$0xff] }
 0x550   : > { %15452 = vmatmul.mubr.msk.bf16.gmra.mrb[92].mxu0 %vm586_vm1, %v8617_v12  ;;  %v8621_v12 = vpack.c.bf16 %v13125_v61, %v13124_v31  ;;  %v13135_v31 = vld [vmem:[%s16923_s26 + $0x4ba] sm:$0xff] }
 0x551   : > { %15455 = vmatprep.mubr.msk.bf16.mxu0 %vm586_vm1, %v8618_v13  ;;  %v8622_v13 = vpack.c.bf16 %v13127_v40, %v13126_v28 }
 0x558   : > { %15456 = vmatmul.mubr.msk.bf16.gmra.mrb[96].mxu0 %vm586_vm1, %v8619_v0  ;;  %v8623_v0 = vpack.c.bf16 %v13129_v38, %v13128_v56  ;;  %v8626_v38 = vpack.c.bf16 %v13135_v31, %v13134_v41  ;;  %v19140_v41 = vld [vmem:[%s20980_s3] ss:$0 sm:$0xff]  ;;  %v13139_v31 = vld [vmem:[%s16923_s26 + $0x4e2] sm:$0xff] }
 0x559   : > { %15459 = vmatprep.mubr.msk.bf16.mxu0 %vm586_vm1, %v8620_v5  ;;  %v8624_v5 = vpack.c.bf16 %v13131_v11, %v13130_v39  ;;  %v19128_v39 = vld [vmem:[%s20979_s2] ss:$0 sm:$0xff] }
 0x560   : > { %15460 = vmatmul.mubr.msk.bf16.gmra.mrb[100].mxu0 %vm586_vm1, %v8621_v12  ;;  %v8625_v12 = vpack.c.bf16 %v13133_v19, %v13132_v21  ;;  %v13136_v19 = vld [vmem:[%s16923_s26 + $0x4c2] sm:$0xff]  ;;  %v13138_v21 = vld [vmem:[%s16923_s26 + $0x4da] sm:$0xff] }
 0x561   : > { %15463 = vmatprep.mubr.msk.bf16.mxu0 %vm586_vm1, %v8622_v13 }
 0x568   : > { %15464 = vmatmul.mubr.msk.bf16.gmra.mrb[104].mxu0 %vm586_vm1, %v8623_v0 }
 0x569   : > { %15467 = vmatprep.mubr.msk.bf16.mxu0 %vm586_vm1, %v8624_v5 }
 0x56b   : > { %v15361_v61 = vpop.f32.mrb[0].mxu0 }
 0x56c   : > { %v15681_v28 = vadd.f32 %v15361_v61, %v18325_v8  ;;  %v8865_v40 = vpop.f32.mrb[1].mxu0  ;;  %v9966_v61 = vlaneseq }
 0x56d   : > { %v15682_v13 = vadd.f32 %v8865_v40, %v18329_v15  ;;  %v15362_v56 = vpop.f32.mrb[2].mxu0  ;;  %v13137_v15 = vld [vmem:[%s16923_s26 + $0x4ca] sm:$0xff] }
 0x56e   : > { %v15683_v11 = vadd.f32 %v15362_v56, %v18331_v7  ;;  %v8868_v0 = vpop.f32.mrb[3].mxu0  ;;  %v9513_v8 = vmul.f32 %v15681_v28, %v19128_v39  ;;  %v8627_v56 = vpack.c.bf16 %v13137_v15, %v13136_v19 }
 0x56f   : > { %v15684_v5 = vadd.f32 %v8868_v0, %v18333_v35  ;;  %v9511_v7 = vmul.f32 %v15682_v13, %v19128_v39  ;;  %v19149_v0 = vand.u32 127, %v9966_v61 }
 0x570   : > { %15468 = vmatmul.mubr.msk.bf16.gmra.mrb[108].mxu0 %vm586_vm1, %v8625_v12  ;;  %v9514_v35 = vmul.f32 %v15683_v11, %v19128_v39  ;;  %v9648_v43 = vadd.f32 %v19140_v41, %v9513_v8  ;;  %v8628_v11 = vpack.c.bf16 %v13139_v31, %v13138_v21  ;;  %v13140_v31 = vld [vmem:[%s16923_s26 + $0x4ea] sm:$0xff] }
 0x571   : > { %15471 = vmatprep.mubr.msk.bf16.mxu0 %vm586_vm1, %v8626_v38  ;;  %v19147_v38 = vshrl.u32 %v9966_v61, 7  ;;  %21115 = vst [vmem:[#allocation88_spill] sm:$0xff] %v19149_v0  ;;  %v9512_v54 = vmul.f32 %v15684_v5, %v19128_v39  ;;  %v9646_v8 = vadd.f32 %v19140_v41, %v9511_v7 }
 0x572   : > { %v9649_v5 = vadd.f32 %v19140_v41, %v9514_v35 }
 0x573   : > { %v15365_v40 = vpop.f32.mrb[4].mxu0  ;;  %21114 = vst [vmem:[#allocation87_spill] sm:$0xff] %v19147_v38  ;;  %v19160_v61 = vmul.u32 2, %v19147_v38  ;;  %v9647_v7 = vadd.f32 %v19140_v41, %v9512_v54  ;;  %v9774_v38 = vmax.f32 %v9646_v8, 0.0 }
 0x574   : > { %v15685_v12 = vadd.f32 %v15365_v40, %v18343_v6  ;;  %v8881_v28 = vpop.f32.mrb[5].mxu0  ;;  %v19157_v40 = vadd.s32 128, %v19149_v0  ;;  %v13143_v0 = vld [vmem:[%s16923_s26 + $0x50a] sm:$0xff]  ;;  %v9777_v42 = vmax.f32 %v9649_v5, 0.0 }
 0x575   : > { %v15686_v55 = vadd.f32 %v8881_v28, %v18347_v47  ;;  %v15366_v13 = vpop.f32.mrb[6].mxu0  ;;  %21117 = vst [vmem:[#allocation90_spill] sm:$0xff] %v19160_v61  ;;  %v13141_v28 = vld [vmem:[%s16923_s26 + $0x4f2] sm:$0xff] }
 0x576   : > { %v9517_v6 = vmul.f32 %v15685_v12, %v19128_v39  ;;  %v15687_v19 = vadd.f32 %v15366_v13, %v18349_v26  ;;  %v8884_v15 = vpop.f32.mrb[7].mxu0  ;;  %21116 = vst [vmem:[#allocation89_spill] sm:$0xff] %v19157_v40  ;;  %v13142_v13 = vld [vmem:[%s16923_s26 + $0x502] sm:$0xff]  ;;  %vm10037_vm2 = vcmp.eq.s32.totalorder %v19157_v40, %v19160_v61 }
 0x577   : > { %v9515_v47 = vmul.f32 %v15686_v55, %v19128_v39  ;;  %v15688_v21 = vadd.f32 %v8884_v15, %v18351_v51  ;;  %v20992_v51 = vmov 1.0   ;;  %v8629_v15 = vpack.c.bf16 %v13141_v28, %v13140_v31 }
 0x578   : > { %v9652_v12 = vadd.f32 %v19140_v41, %v9517_v6  ;;  %v9518_v26 = vmul.f32 %v15687_v19, %v19128_v39  ;;  %15472 = vmatmul.mubr.msk.bf16.gmra.mrb[112].mxu0 %vm586_vm1, %v8627_v56  ;;  %13473 = vmatprep.mubr.msk.f32.mxu1 %vm10037_vm2, %v20992_v51  ;;  %v9776_v6 = vmax.f32 %v9648_v43, 0.0  ;;  %v8630_v54 = vpack.c.bf16 %v13143_v0, %v13142_v13 }
 0x579   : > { %v9650_v35 = vadd.f32 %v19140_v41, %v9515_v47  ;;  %v9516_v55 = vmul.f32 %v15688_v21, %v19128_v39  ;;  %15475 = vmatprep.mubr.msk.bf16.mxu0 %vm586_vm1, %v8628_v11  ;;  %v9775_v51 = vmax.f32 %v9647_v7, 0.0 }
 0x57a   : > { %v9780_v19 = vmax.f32 %v9652_v12, 0.0  ;;  %v9653_v56 = vadd.f32 %v19140_v41, %v9518_v26 }
 0x57b   : > { %v9778_v23 = vmax.f32 %v9650_v35, 0.0  ;;  %v9651_v40 = vadd.f32 %v19140_v41, %v9516_v55  ;;  %v15369_v61 = vpop.f32.mrb[8].mxu0  ;;  %v21118_v55 = vmov 0.0|0.0  }
 0x57c   : > { %v9904_v47 = vmax.f32 %v9776_v6, %v9780_v19  ;;  %v9781_v18 = vmax.f32 %v9653_v56, 0.0  ;;  %v15689_v21 = vadd.f32 %v15369_v61, %v18361_v10  ;;  %v8897_v11 = vpop.f32.mrb[9].mxu0 }
 0x57d   : > { %v9902_v43 = vmax.f32 %v9774_v38, %v9778_v23  ;;  %v9779_v12 = vmax.f32 %v9651_v40, 0.0  ;;  %v15690_v8 = vadd.f32 %v8897_v11, %v18365_v4  ;;  %v15370_v31 = vpop.f32.mrb[10].mxu0  ;;  %v13144_v23 = vld [vmem:[%s16923_s26 + $0x512] sm:$0xff]  ;;  %v13145_v38 = vld [vmem:[%s16923_s26 + $0x51a] sm:$0xff]  ;;  %v13146_v40 = vld [vmem:[%s16923_s26 + $0x52a] sm:$0xff] }
 0x57e   : > { %v9905_v28 = vmax.f32 %v9777_v42, %v9781_v18  ;;  %v15691_v26 = vadd.f32 %v15370_v31, %v18367_v36  ;;  %v8900_v0 = vpop.f32.mrb[11].mxu0  ;;  %v9521_v4 = vmul.f32 %v15689_v21, %v19128_v39  ;;  %v13147_v18 = vld [vmem:[%s16923_s26 + $0x532] sm:$0xff] }
 0x57f   : > { %v9903_v5 = vmax.f32 %v9775_v51, %v9779_v12  ;;  %v15692_v13 = vadd.f32 %v8900_v0, %v18369_v17  ;;  %v9519_v36 = vmul.f32 %v15690_v8, %v19128_v39  ;;  %v8631_v51 = vpack.c.bf16 %v13145_v38, %v13144_v23 }
 0x580   : > { %15476 = vmatmul.mubr.msk.bf16.gmra.mrb[116].mxu0 %vm586_vm1, %v8629_v15  ;;  %v19187_v10 = vpack.c.bf16 %v9905_v28, %v9904_v47  ;;  %v9522_v17 = vmul.f32 %v15691_v26, %v19128_v39  ;;  %v8632_v15 = vpack.c.bf16 %v13147_v18, %v13146_v40  ;;  %v13148_v28 = vld [vmem:[%s16923_s26 + $0x53a] sm:$0xff]  ;;  %v13149_v26 = vld [vmem:[%s16923_s26 + $0x542] sm:$0xff] }
 0x581   : > { %v19189_v61 = vpack.c.bf16 %v9903_v5, %v9902_v43  ;;  %15479 = vmatprep.mubr.msk.bf16.mxu0 %vm586_vm1, %v8630_v54  ;;  %v9520_v6 = vmul.f32 %v15692_v13, %v19128_v39  ;;  %v9656_v54 = vadd.f32 %v19140_v41, %v9521_v4 }
 0x583   : > { %v15373_v42 = vpop.f32.mrb[12].mxu0  ;;  %15489 = vmatpush1.bf16.msra.mxu1 %v19189_v61  ;;  %v9784_v5 = vmax.f32 %v9656_v54, 0.0 }
 0x584   : > { %v15693_v7 = vadd.f32 %v15373_v42, %v18379_v29  ;;  %v8913_v35 = vpop.f32.mrb[13].mxu0  ;;  %15490 = vmatprep.subr.bf16.mxu1 %v21118_v55  ;;  %v9654_v29 = vadd.f32 %v19140_v41, %v9519_v36  ;;  %v8633_v36 = vpack.c.bf16 %v13149_v26, %v13148_v28 }
 0x585   : > { %v15694_v19 = vadd.f32 %v8913_v35, %v18383_v22  ;;  %v15374_v56 = vpop.f32.mrb[14].mxu0  ;;  %v9657_v22 = vadd.f32 %v19140_v41, %v9522_v17 }
 0x586   : > { %v9525_v47 = vmul.f32 %v15693_v7, %v19128_v39  ;;  %v15695_v21 = vadd.f32 %v15374_v56, %v18385_v1  ;;  %v8916_v11 = vpop.f32.mrb[15].mxu0  ;;  %v9655_v1 = vadd.f32 %v19140_v41, %v9520_v6  ;;  %v9782_v38 = vmax.f32 %v9654_v29, 0.0 }
 0x587   : > { %v9523_v43 = vmul.f32 %v15694_v19, %v19128_v39  ;;  %v15696_v12 = vadd.f32 %v8916_v11, %v18387_v34  ;;  %15492 = vmatpush1.bf16.msra.mxu1 %v19187_v10  ;;  %v9785_v42 = vmax.f32 %v9657_v22, 0.0 }
 0x588   : > { %v9660_v8 = vadd.f32 %v19140_v41, %v9525_v47  ;;  %v9526_v31 = vmul.f32 %v15695_v21, %v19128_v39  ;;  %15480 = vmatmul.mubr.msk.bf16.gmra.mrb[120].mxu0 %vm586_vm1, %v8631_v51  ;;  %15493 = vmatprep.subr.bf16.mxu1 %v21118_v55  ;;  %v9783_v6 = vmax.f32 %v9655_v1, 0.0 }
 0x589   : > { %v9658_v0 = vadd.f32 %v19140_v41, %v9523_v43  ;;  %v9524_v34 = vmul.f32 %v15696_v12, %v19128_v39  ;;  %15483 = vmatprep.mubr.msk.bf16.mxu0 %vm586_vm1, %v8632_v15 }
 0x58a   : > { %v9788_v13 = vmax.f32 %v9660_v8, 0.0  ;;  %v9661_v23 = vadd.f32 %v19140_v41, %v9526_v31 }
 0x58b   : > { %v9786_v4 = vmax.f32 %v9658_v0, 0.0  ;;  %v9659_v40 = vadd.f32 %v19140_v41, %v9524_v34  ;;  %v15377_v18 = vpop.f32.mrb[16].mxu0 }
 0x58c   : > { %v9908_v17 = vmax.f32 %v9784_v5, %v9788_v13  ;;  %v9789_v7 = vmax.f32 %v9661_v23, 0.0  ;;  %v15697_v35 = vadd.f32 %v15377_v18, %v18397_v37  ;;  %v8929_v51 = vpop.f32.mrb[17].mxu0 }
 0x58d   : > { %v9906_v19 = vmax.f32 %v9782_v38, %v9786_v4  ;;  %v9787_v56 = vmax.f32 %v9659_v40, 0.0  ;;  %v15698_v15 = vadd.f32 %v8929_v51, %v18401_v2  ;;  %v15378_v54 = vpop.f32.mrb[18].mxu0 }
 0x58e   : > { %v9909_v47 = vmax.f32 %v9785_v42, %v9789_v7  ;;  %v15699_v21 = vadd.f32 %v15378_v54, %v18403_v62  ;;  %v8932_v11 = vpop.f32.mrb[19].mxu0  ;;  %v9529_v37 = vmul.f32 %v15697_v35, %v19128_v39 }
 0x58f   : > { %v9907_v29 = vmax.f32 %v9783_v6, %v9787_v56  ;;  %v15700_v43 = vadd.f32 %v8932_v11, %v18405_v30  ;;  %v9527_v8 = vmul.f32 %v15698_v15, %v19128_v39 }
 0x590   : > { %15484 = vmatmul.mubr.msk.bf16.gmra.mrb[124].mxu0 %vm586_vm1, %v8633_v36  ;;  %v19229_v12 = vpack.c.bf16 %v9909_v47, %v9908_v17  ;;  %v9530_v2 = vmul.f32 %v15699_v21, %v19128_v39  ;;  %v9664_v0 = vadd.f32 %v19140_v41, %v9529_v37 }
 0x591   : > { %v19231_v22 = vpack.c.bf16 %v9907_v29, %v9906_v19  ;;  %v9528_v30 = vmul.f32 %v15700_v43, %v19128_v39  ;;  %v9662_v23 = vadd.f32 %v19140_v41, %v9527_v8 }
 0x592   : > { %v9665_v4 = vadd.f32 %v19140_v41, %v9530_v2  ;;  %v9792_v42 = vmax.f32 %v9664_v0, 0.0 }
 0x593   : > { %v15381_v31 = vpop.f32.mrb[20].mxu0  ;;  %15495 = vmatpush1.bf16.msra.mxu1 %v19231_v22  ;;  %v9663_v18 = vadd.f32 %v19140_v41, %v9528_v30  ;;  %v9790_v7 = vmax.f32 %v9662_v23, 0.0 }
 0x594   : > { %v15701_v62 = vadd.f32 %v15381_v31, %v18414_v63  ;;  %v8945_v28 = vpop.f32.mrb[21].mxu0  ;;  %15496 = vmatprep.subr.bf16.mxu1 %v21118_v55  ;;  %v9793_v19 = vmax.f32 %v9665_v4, 0.0 }
 0x595   : > { %v15702_v26 = vadd.f32 %v8945_v28, %v18418_v53  ;;  %v15382_v1 = vpop.f32.mrb[22].mxu0  ;;  %v9791_v21 = vmax.f32 %v9663_v18, 0.0 }
 0x596   : > { %v9533_v34 = vmul.f32 %v15701_v62, %v19128_v39  ;;  %v15703_v5 = vadd.f32 %v15382_v1, %v18420_v3  ;;  %v8948_v13 = vpop.f32.mrb[23].mxu0 }
 0x597   : > { %v9531_v38 = vmul.f32 %v15702_v26, %v19128_v39  ;;  %v15704_v63 = vadd.f32 %v8948_v13, %v18422_v20  ;;  %15498 = vmatpush1.bf16.msra.mxu1 %v19229_v12 }
 0x598   : > { %v9668_v53 = vadd.f32 %v19140_v41, %v9533_v34  ;;  %v9534_v40 = vmul.f32 %v15703_v5, %v19128_v39  ;;  %15499 = vmatprep.subr.bf16.mxu1 %v21118_v55 }
 0x599   : > { %v9666_v3 = vadd.f32 %v19140_v41, %v9531_v38  ;;  %v9532_v36 = vmul.f32 %v15704_v63, %v19128_v39 }
 0x59a   : > { %v9796_v17 = vmax.f32 %v9668_v53, 0.0  ;;  %v9669_v20 = vadd.f32 %v19140_v41, %v9534_v40 }
 0x59b   : > { %v9794_v35 = vmax.f32 %v9666_v3, 0.0  ;;  %v9667_v51 = vadd.f32 %v19140_v41, %v9532_v36  ;;  %v15385_v6 = vpop.f32.mrb[24].mxu0 }
 0x59c   : > { %v9912_v56 = vmax.f32 %v9792_v42, %v9796_v17  ;;  %v9797_v15 = vmax.f32 %v9669_v20, 0.0  ;;  %v15705_v54 = vadd.f32 %v15385_v6, %v18430_v49  ;;  %v8961_v47 = vpop.f32.mrb[25].mxu0 }
 0x59d   : > { %v9910_v11 = vmax.f32 %v9790_v7, %v9794_v35  ;;  %v9795_v29 = vmax.f32 %v9667_v51, 0.0  ;;  %v15706_v43 = vadd.f32 %v8961_v47, %v18434_v27  ;;  %v15386_v37 = vpop.f32.mrb[26].mxu0 }
 0x59e   : > { %v9913_v8 = vmax.f32 %v9793_v19, %v9797_v15  ;;  %v15707_v31 = vadd.f32 %v15386_v37, %v18436_v25  ;;  %v8964_v2 = vpop.f32.mrb[27].mxu0  ;;  %v9537_v49 = vmul.f32 %v15705_v54, %v19128_v39 }
 0x59f   : > { %v9911_v62 = vmax.f32 %v9791_v21, %v9795_v29  ;;  %v15708_v28 = vadd.f32 %v8964_v2, %v18438_v14  ;;  %v9535_v1 = vmul.f32 %v15706_v43, %v19128_v39 }
 0x5a0   : > { %v19261_v30 = vpack.c.bf16 %v9913_v8, %v9912_v56  ;;  %v9538_v27 = vmul.f32 %v15707_v31, %v19128_v39  ;;  %v9672_v23 = vadd.f32 %v19140_v41, %v9537_v49 }
 0x5a1   : > { %v19263_v26 = vpack.c.bf16 %v9911_v62, %v9910_v11  ;;  %v9536_v14 = vmul.f32 %v15708_v28, %v19128_v39  ;;  %v9670_v53 = vadd.f32 %v19140_v41, %v9535_v1 }
 0x5a2   : > { %v9673_v18 = vadd.f32 %v19140_v41, %v9538_v27  ;;  %v9800_v17 = vmax.f32 %v9672_v23, 0.0 }
 0x5a3   : > { %v15389_v0 = vpop.f32.mrb[28].mxu0  ;;  %15501 = vmatpush1.bf16.msra.mxu1 %v19263_v26  ;;  %v9671_v36 = vadd.f32 %v19140_v41, %v9536_v14  ;;  %v9798_v7 = vmax.f32 %v9670_v53, 0.0 }
 0x5a4   : > { %v15709_v34 = vadd.f32 %v15389_v0, %v18453_v58  ;;  %v8977_v25 = vpop.f32.mrb[29].mxu0  ;;  %15502 = vmatprep.subr.bf16.mxu1 %v21118_v55  ;;  %v9801_v19 = vmax.f32 %v9673_v18, 0.0 }
 0x5a5   : > { %v15710_v5 = vadd.f32 %v8977_v25, %v18457_v24  ;;  %v15390_v13 = vpop.f32.mrb[30].mxu0  ;;  %v9799_v21 = vmax.f32 %v9671_v36, 0.0 }
 0x5a6   : > { %v9541_v38 = vmul.f32 %v15709_v34, %v19128_v39  ;;  %v15711_v63 = vadd.f32 %v15390_v13, %v18459_v45  ;;  %v8980_v4 = vpop.f32.mrb[31].mxu0 }
 0x5a7   : > { %v9539_v40 = vmul.f32 %v15710_v5, %v19128_v39  ;;  %v15712_v58 = vadd.f32 %v8980_v4, %v18461_v44  ;;  %15504 = vmatpush1.bf16.msra.mxu1 %v19261_v30 }
 0x5a8   : > { %v9676_v24 = vadd.f32 %v19140_v41, %v9541_v38  ;;  %v9542_v3 = vmul.f32 %v15711_v63, %v19128_v39  ;;  %15505 = vmatprep.subr.bf16.mxu1 %v21118_v55 }
 0x5a9   : > { %v9674_v45 = vadd.f32 %v19140_v41, %v9539_v40  ;;  %v9540_v42 = vmul.f32 %v15712_v58, %v19128_v39 }
 0x5aa   : > { %v9804_v20 = vmax.f32 %v9676_v24, 0.0  ;;  %v9677_v44 = vadd.f32 %v19140_v41, %v9542_v3 }
 0x5ab   : > { %v9802_v35 = vmax.f32 %v9674_v45, 0.0  ;;  %v9675_v51 = vadd.f32 %v19140_v41, %v9540_v42  ;;  %v15393_v6 = vpop.f32.mrb[32].mxu0 }
 0x5ac   : > { %v9916_v56 = vmax.f32 %v9800_v17, %v9804_v20  ;;  %v9805_v15 = vmax.f32 %v9677_v44, 0.0  ;;  %v15713_v54 = vadd.f32 %v15393_v6, %v18469_v60  ;;  %v8993_v47 = vpop.f32.mrb[33].mxu0 }
 0x5ad   : > { %v9914_v11 = vmax.f32 %v9798_v7, %v9802_v35  ;;  %v9803_v29 = vmax.f32 %v9675_v51, 0.0  ;;  %v15714_v43 = vadd.f32 %v8993_v47, %v18473_v57  ;;  %v15394_v37 = vpop.f32.mrb[34].mxu0 }
 0x5ae   : > { %v9917_v8 = vmax.f32 %v9801_v19, %v9805_v15  ;;  %v15715_v31 = vadd.f32 %v15394_v37, %v18475_v59  ;;  %v8996_v2 = vpop.f32.mrb[35].mxu0  ;;  %v9545_v60 = vmul.f32 %v15713_v54, %v19128_v39 }
 0x5af   : > { %v9915_v62 = vmax.f32 %v9799_v21, %v9803_v29  ;;  %v15716_v28 = vadd.f32 %v8996_v2, %v18477_v50  ;;  %v9543_v0 = vmul.f32 %v15714_v43, %v19128_v39  ;;  %v21119_v43 = vld [vmem:[#allocation2_spill] sm:$0xff] }
 0x5b0   : > { %v19293_v49 = vpack.c.bf16 %v9917_v8, %v9916_v56  ;;  %v9546_v57 = vmul.f32 %v15715_v31, %v19128_v39  ;;  %v9680_v5 = vadd.f32 %v19140_v41, %v9545_v60 }
 0x5b1   : > { %v19295_v1 = vpack.c.bf16 %v9915_v62, %v9914_v11  ;;  %v9544_v50 = vmul.f32 %v15716_v28, %v19128_v39  ;;  %v9678_v63 = vadd.f32 %v19140_v41, %v9543_v0  ;;  %v21120_v28 = vld [vmem:[#allocation3_spill] sm:$0xff] }
 0x5b2   : > { %v9681_v53 = vadd.f32 %v19140_v41, %v9546_v57  ;;  %v9808_v24 = vmax.f32 %v9680_v5, 0.0 }
 0x5b3   : > { %v15397_v27 = vpop.f32.mrb[36].mxu0  ;;  %15507 = vmatpush1.bf16.msra.mxu1 %v19295_v1  ;;  %v9679_v58 = vadd.f32 %v19140_v41, %v9544_v50  ;;  %v9806_v36 = vmax.f32 %v9678_v63, 0.0 }
 0x5b4   : > { %v15717_v34 = vadd.f32 %v15397_v27, %v18485_v9  ;;  %v9009_v59 = vpop.f32.mrb[37].mxu0  ;;  %15508 = vmatprep.subr.bf16.mxu1 %v21118_v55  ;;  %v9809_v20 = vmax.f32 %v9681_v53, 0.0  ;;  %v21121_v27 = vld [vmem:[#allocation4_spill] sm:$0xff] }
 0x5b5   : > { %v15718_v25 = vadd.f32 %v9009_v59, %v18489_v48  ;;  %v15398_v14 = vpop.f32.mrb[38].mxu0  ;;  %v9807_v6 = vmax.f32 %v9679_v58, 0.0 }
 0x5b6   : > { %v9549_v13 = vmul.f32 %v15717_v34, %v19128_v39  ;;  %v15719_v23 = vadd.f32 %v15398_v14, %v18491_v52  ;;  %v9012_v38 = vpop.f32.mrb[39].mxu0 }
 0x5b7   : > { %v9547_v4 = vmul.f32 %v15718_v25, %v19128_v39  ;;  %v15720_v9 = vadd.f32 %v9012_v38, %v18493_v16  ;;  %15510 = vmatpush1.bf16.msra.mxu1 %v19293_v49  ;;  %v21122_v25 = vld [vmem:[#allocation5_spill] sm:$0xff]  ;;  %v21123_v38 = vld [vmem:[#allocation6_spill] sm:$0xff] }
 0x5b8   : > { %v9684_v48 = vadd.f32 %v19140_v41, %v9549_v13  ;;  %v9550_v40 = vmul.f32 %v15719_v23, %v19128_v39  ;;  %15511 = vmatprep.subr.bf16.mxu1 %v21118_v55 }
 0x5b9   : > { %v9682_v52 = vadd.f32 %v19140_v41, %v9547_v4  ;;  %v9548_v18 = vmul.f32 %v15720_v9, %v19128_v39 }
 0x5ba   : > { %v9812_v3 = vmax.f32 %v9684_v48, 0.0  ;;  %v9685_v16 = vadd.f32 %v19140_v41, %v9550_v40 }
 0x5bb   : > { %v9810_v45 = vmax.f32 %v9682_v52, 0.0  ;;  %v9683_v42 = vadd.f32 %v19140_v41, %v9548_v18  ;;  %v15401_v17 = vpop.f32.mrb[40].mxu0 }
 0x5bc   : > { %v9920_v44 = vmax.f32 %v9808_v24, %v9812_v3  ;;  %v9813_v7 = vmax.f32 %v9685_v16, 0.0  ;;  %v15721_v35 = vadd.f32 %v15401_v17, %v18501_v32  ;;  %v9025_v51 = vpop.f32.mrb[41].mxu0 }
 0x5bd   : > { %v9918_v19 = vmax.f32 %v9806_v36, %v9810_v45  ;;  %v9811_v56 = vmax.f32 %v9683_v42, 0.0  ;;  %v15722_v15 = vadd.f32 %v9025_v51, %v18505_v33  ;;  %v15402_v54 = vpop.f32.mrb[42].mxu0 }
 0x5be   : > { %v9921_v47 = vmax.f32 %v9809_v20, %v9813_v7  ;;  %v15723_v21 = vadd.f32 %v15402_v54, %v18507_v46  ;;  %v9028_v11 = vpop.f32.mrb[43].mxu0  ;;  %v9553_v32 = vmul.f32 %v15721_v35, %v19128_v39 }
 0x5bf   : > { %v9919_v29 = vmax.f32 %v9807_v6, %v9811_v56  ;;  %v15724_v37 = vadd.f32 %v9028_v11, %v21119_v43  ;;  %v9551_v2 = vmul.f32 %v15722_v15, %v19128_v39  ;;  %v21125_v56 = vld [vmem:[#allocation8_spill] sm:$0xff] }
 0x5c0   : > { %v19325_v8 = vpack.c.bf16 %v9921_v47, %v9920_v44  ;;  %v9554_v33 = vmul.f32 %v15723_v21, %v19128_v39  ;;  %v9688_v59 = vadd.f32 %v19140_v41, %v9553_v32  ;;  %v21124_v44 = vld [vmem:[#allocation7_spill] sm:$0xff]  ;;  %v21126_v21 = vld [vmem:[#allocation9_spill] sm:$0xff] }
 0x5c1   : > { %v19327_v31 = vpack.c.bf16 %v9919_v29, %v9918_v19  ;;  %v9552_v0 = vmul.f32 %v15724_v37, %v19128_v39  ;;  %v9686_v13 = vadd.f32 %v19140_v41, %v9551_v2  ;;  %v21127_v37 = vld [vmem:[#allocation10_spill] sm:$0xff] }
 0x5c2   : > { %v9689_v4 = vadd.f32 %v19140_v41, %v9554_v33  ;;  %v9816_v52 = vmax.f32 %v9688_v59, 0.0  ;;  %v21129_v59 = vld [vmem:[#allocation12_spill] sm:$0xff] }
 0x5c3   : > { %v15405_v62 = vpop.f32.mrb[44].mxu0  ;;  %15513 = vmatpush1.bf16.msra.mxu1 %v19327_v31  ;;  %v9687_v48 = vadd.f32 %v19140_v41, %v9552_v0  ;;  %v9814_v3 = vmax.f32 %v9686_v13, 0.0  ;;  %v21128_v0 = vld [vmem:[#allocation11_spill] sm:$0xff]  ;;  %v21130_v13 = vld [vmem:[#allocation13_spill] sm:$0xff] }
 0x5c4   : > { %v15725_v60 = vadd.f32 %v15405_v62, %v21120_v28  ;;  %v9041_v46 = vpop.f32.mrb[45].mxu0  ;;  %15514 = vmatprep.subr.bf16.mxu1 %v21118_v55  ;;  %v9817_v42 = vmax.f32 %v9689_v4, 0.0 }
 0x5c5   : > { %v15726_v57 = vadd.f32 %v9041_v46, %v21121_v27  ;;  %v15406_v34 = vpop.f32.mrb[46].mxu0  ;;  %v9815_v51 = vmax.f32 %v9687_v48, 0.0 }
 0x5c6   : > { %v9557_v50 = vmul.f32 %v15725_v60, %v19128_v39  ;;  %v15727_v14 = vadd.f32 %v15406_v34, %v21122_v25  ;;  %v9044_v5 = vpop.f32.mrb[47].mxu0 }
 0x5c7   : > { %v9555_v23 = vmul.f32 %v15726_v57, %v19128_v39  ;;  %v15728_v63 = vadd.f32 %v9044_v5, %v21123_v38  ;;  %15516 = vmatpush1.bf16.msra.mxu1 %v19325_v8 }
 0x5c8   : > { %v9692_v9 = vadd.f32 %v19140_v41, %v9557_v50  ;;  %v9558_v53 = vmul.f32 %v15727_v14, %v19128_v39  ;;  %15517 = vmatprep.subr.bf16.mxu1 %v21118_v55 }
 0x5c9   : > { %v9690_v40 = vadd.f32 %v19140_v41, %v9555_v23  ;;  %v9556_v58 = vmul.f32 %v15728_v63, %v19128_v39 }
 0x5ca   : > { %v9820_v18 = vmax.f32 %v9692_v9, 0.0  ;;  %v9693_v24 = vadd.f32 %v19140_v41, %v9558_v53  ;;  %v21131_v9 = vld [vmem:[#allocation14_spill] sm:$0xff] }
 0x5cb   : > { %v9818_v16 = vmax.f32 %v9690_v40, 0.0  ;;  %v9691_v36 = vadd.f32 %v19140_v41, %v9556_v58  ;;  %v15409_v45 = vpop.f32.mrb[48].mxu0 }
 0x5cc   : > { %v9924_v17 = vmax.f32 %v9816_v52, %v9820_v18  ;;  %v9821_v20 = vmax.f32 %v9693_v24, 0.0  ;;  %v15729_v7 = vadd.f32 %v15409_v45, %v21124_v44  ;;  %v9057_v35 = vpop.f32.mrb[49].mxu0 }
 0x5cd   : > { %v9922_v6 = vmax.f32 %v9814_v3, %v9818_v16  ;;  %v9819_v19 = vmax.f32 %v9691_v36, 0.0  ;;  %v15730_v15 = vadd.f32 %v9057_v35, %v21125_v56  ;;  %v15410_v54 = vpop.f32.mrb[50].mxu0 }
 0x5ce   : > { %v9925_v47 = vmax.f32 %v9817_v42, %v9821_v20  ;;  %v15731_v11 = vadd.f32 %v15410_v54, %v21126_v21  ;;  %v9060_v29 = vpop.f32.mrb[51].mxu0  ;;  %v9561_v33 = vmul.f32 %v15729_v7, %v19128_v39 }
 0x5cf   : > { %v9923_v43 = vmax.f32 %v9815_v51, %v9819_v19  ;;  %v15732_v32 = vadd.f32 %v9060_v29, %v21127_v37  ;;  %v9559_v28 = vmul.f32 %v15730_v15, %v19128_v39  ;;  %v21132_v51 = vld [vmem:[#allocation15_spill] sm:$0xff] }
 0x5d0   : > { %v19357_v2 = vpack.c.bf16 %v9925_v47, %v9924_v17  ;;  %v9562_v46 = vmul.f32 %v15731_v11, %v19128_v39  ;;  %v9696_v14 = vadd.f32 %v19140_v41, %v9561_v33  ;;  %v21133_v47 = vld [vmem:[#allocation16_spill] sm:$0xff] }
 0x5d1   : > { %v19359_v62 = vpack.c.bf16 %v9923_v43, %v9922_v6  ;;  %v9560_v34 = vmul.f32 %v15732_v32, %v19128_v39  ;;  %v9694_v63 = vadd.f32 %v19140_v41, %v9559_v28  ;;  %v21134_v43 = vld [vmem:[#allocation17_spill] sm:$0xff]  ;;  %v21135_v28 = vld [vmem:[#allocation18_spill] sm:$0xff] }
 0x5d2   : > { %v9697_v48 = vadd.f32 %v19140_v41, %v9562_v46  ;;  %v9824_v3 = vmax.f32 %v9696_v14, 0.0 }
 0x5d3   : > { %v15413_v60 = vpop.f32.mrb[52].mxu0  ;;  %15519 = vmatpush1.bf16.msra.mxu1 %v19359_v62  ;;  %v9695_v52 = vadd.f32 %v19140_v41, %v9560_v34  ;;  %v9822_v45 = vmax.f32 %v9694_v63, 0.0 }
 0x5d4   : > { %v15733_v27 = vadd.f32 %v15413_v60, %v21128_v0  ;;  %v9073_v57 = vpop.f32.mrb[53].mxu0  ;;  %15520 = vmatprep.subr.bf16.mxu1 %v21118_v55  ;;  %v9825_v44 = vmax.f32 %v9697_v48, 0.0 }
 0x5d5   : > { %v15734_v50 = vadd.f32 %v9073_v57, %v21129_v59  ;;  %v15414_v25 = vpop.f32.mrb[54].mxu0  ;;  %v9823_v56 = vmax.f32 %v9695_v52, 0.0  ;;  %v21140_v52 = vld [vmem:[#allocation22_spill] sm:$0xff] }
 0x5d6   : > { %v9565_v5 = vmul.f32 %v15733_v27, %v19128_v39  ;;  %v15735_v23 = vadd.f32 %v15414_v25, %v21130_v13  ;;  %v9076_v38 = vpop.f32.mrb[55].mxu0  ;;  %v21138_v13 = vld [vmem:[#allocation20_spill] sm:$0xff] }
 0x5d7   : > { %v9563_v4 = vmul.f32 %v15734_v50, %v19128_v39  ;;  %v15736_v53 = vadd.f32 %v9076_v38, %v21131_v9  ;;  %15522 = vmatpush1.bf16.msra.mxu1 %v19357_v2  ;;  %v21137_v50 = vld [vmem:[#allocation19_spill] sm:$0xff]  ;;  %v21139_v9 = vld [vmem:[#allocation21_spill] sm:$0xff] }
 0x5d8   : > { %v9700_v40 = vadd.f32 %v19140_v41, %v9565_v5  ;;  %v9566_v58 = vmul.f32 %v15735_v23, %v19128_v39  ;;  %15523 = vmatprep.subr.bf16.mxu1 %v21118_v55 }
 0x5d9   : > { %v9698_v18 = vadd.f32 %v19140_v41, %v9563_v4  ;;  %v9564_v24 = vmul.f32 %v15736_v53, %v19128_v39 }
 0x5da   : > { %v9828_v16 = vmax.f32 %v9700_v40, 0.0  ;;  %v9701_v36 = vadd.f32 %v19140_v41, %v9566_v58 }
 0x5db   : > { %v9826_v42 = vmax.f32 %v9698_v18, 0.0  ;;  %v9699_v17 = vadd.f32 %v19140_v41, %v9564_v24  ;;  %v15417_v20 = vpop.f32.mrb[56].mxu0 }
 0x5dc   : > { %v9928_v7 = vmax.f32 %v9824_v3, %v9828_v16  ;;  %v9829_v35 = vmax.f32 %v9701_v36, 0.0  ;;  %v15737_v6 = vadd.f32 %v15417_v20, %v21132_v51  ;;  %v9089_v19 = vpop.f32.mrb[57].mxu0 }
 0x5dd   : > { %v9926_v15 = vmax.f32 %v9822_v45, %v9826_v42  ;;  %v9827_v54 = vmax.f32 %v9699_v17, 0.0  ;;  %v15738_v21 = vadd.f32 %v9089_v19, %v21133_v47  ;;  %v15418_v11 = vpop.f32.mrb[58].mxu0 }
 0x5de   : > { %v9929_v29 = vmax.f32 %v9825_v44, %v9829_v35  ;;  %v15739_v37 = vadd.f32 %v15418_v11, %v21134_v43  ;;  %v9092_v32 = vpop.f32.mrb[59].mxu0  ;;  %v9569_v27 = vmul.f32 %v15737_v6, %v19128_v39 }
 0x5df   : > { %v9927_v33 = vmax.f32 %v9823_v56, %v9827_v54  ;;  %v15740_v60 = vadd.f32 %v9092_v32, %v21135_v28  ;;  %v9567_v57 = vmul.f32 %v15738_v21, %v19128_v39  ;;  %v21141_v54 = vld [vmem:[#allocation23_spill] sm:$0xff] }
 0x5e0   : > { %v19389_v46 = vpack.c.bf16 %v9929_v29, %v9928_v7  ;;  %v9570_v59 = vmul.f32 %v15739_v37, %v19128_v39  ;;  %v9704_v63 = vadd.f32 %v19140_v41, %v9569_v27  ;;  %v21142_v37 = vld [vmem:[#allocation24_spill] sm:$0xff] }
 0x5e1   : > { %v19391_v0 = vpack.c.bf16 %v9927_v33, %v9926_v15  ;;  %v9568_v5 = vmul.f32 %v15740_v60, %v19128_v39  ;;  %v9702_v40 = vadd.f32 %v19140_v41, %v9567_v57  ;;  %v21143_v60 = vld [vmem:[#allocation25_spill] sm:$0xff] }
 0x5e2   : > { %21136 = vst [vmem:[#allocation2_spill] sm:$0xff] %v19389_v46  ;;  %v9705_v24 = vadd.f32 %v19140_v41, %v9570_v59  ;;  %v9832_v17 = vmax.f32 %v9704_v63, 0.0 }
 0x5e3   : > { %v15421_v34 = vpop.f32.mrb[60].mxu0  ;;  %15525 = vmatpush1.bf16.msra.mxu1 %v19391_v0  ;;  %v9703_v36 = vadd.f32 %v19140_v41, %v9568_v5  ;;  %v9830_v7 = vmax.f32 %v9702_v40, 0.0 }
 0x5e4   : > { %v15741_v25 = vadd.f32 %v15421_v34, %v21137_v50  ;;  %v9105_v14 = vpop.f32.mrb[61].mxu0  ;;  %15526 = vmatprep.subr.bf16.mxu1 %v21118_v55  ;;  %v9833_v19 = vmax.f32 %v9705_v24, 0.0  ;;  %v21144_v34 = vld [vmem:[#allocation87_spill] sm:$0xff]  ;;  %v21149_v24 = vld [vmem:[#allocation28_spill] sm:$0xff] }
 0x5e5   : > { %v15742_v23 = vadd.f32 %v9105_v14, %v21138_v13  ;;  %v15422_v38 = vpop.f32.mrb[62].mxu0  ;;  %v9831_v11 = vmax.f32 %v9703_v36, 0.0  ;;  %v9968_v59 = vadd.s32 8, %v21144_v34  ;;  %v9969_v13 = vadd.s32 16, %v21144_v34  ;;  %v21150_v36 = vld [vmem:[#allocation90_spill] sm:$0xff] }
 0x5e6   : > { %v9573_v4 = vmul.f32 %v15741_v25, %v19128_v39  ;;  %v15743_v53 = vadd.f32 %v15422_v38, %v21139_v9  ;;  %v9108_v48 = vpop.f32.mrb[63].mxu0  ;;  %v21145_v25 = vld [vmem:[#allocation26_spill] sm:$0xff] }
 0x5e7   : > { %v9571_v58 = vmul.f32 %v15742_v23, %v19128_v39  ;;  %v15744_v18 = vadd.f32 %v9108_v48, %v21140_v52  ;;  %15528 = vmatpush1.bf16.msra.mxu1 %v19389_v46  ;;  %v19428_v63 = vmul.u32 2, %v9968_v59  ;;  %v21148_v48 = vld [vmem:[#allocation27_spill] sm:$0xff]  ;;  %v19435_v52 = vmul.u32 2, %v9969_v13 }
 0x5e8   : > { %v9708_v3 = vadd.f32 %v19140_v41, %v9573_v4  ;;  %v9574_v16 = vmul.f32 %v15743_v53, %v19128_v39  ;;  %15529 = vmatprep.subr.bf16.mxu1 %v21118_v55 }
 0x5e9   : > { %v9706_v45 = vadd.f32 %v19140_v41, %v9571_v58  ;;  %v9572_v42 = vmul.f32 %v15744_v18, %v19128_v39 }
 0x5ea   : > { %v9836_v20 = vmax.f32 %v9708_v3, 0.0  ;;  %v9709_v44 = vadd.f32 %v19140_v41, %v9574_v16 }
 0x5eb   : > { %v9834_v35 = vmax.f32 %v9706_v45, 0.0  ;;  %v9707_v51 = vadd.f32 %v19140_v41, %v9572_v42  ;;  %v15425_v6 = vpop.f32.mrb[64].mxu0  ;;  %v21151_v45 = vld [vmem:[#allocation88_spill] sm:$0xff]  ;;  %v9970_v42 = vadd.s32 24, %v21144_v34 }
 0x5ec   : > { %v9932_v56 = vmax.f32 %v9832_v17, %v9836_v20  ;;  %v9837_v15 = vmax.f32 %v9709_v44, 0.0  ;;  %v15745_v47 = vadd.f32 %v15425_v6, %v21141_v54  ;;  %v9121_v21 = vpop.f32.mrb[65].mxu0  ;;  %vm10036_vm3 = vcmp.eq.s32.totalorder %v21151_v45, %v21150_v36  ;;  %v21152_v44 = vld [vmem:[#allocation29_spill] sm:$0xff] }
 0x5ed   : > { %v9930_v29 = vmax.f32 %v9830_v7, %v9834_v35  ;;  %v9835_v43 = vmax.f32 %v9707_v51, 0.0  ;;  %v15746_v32 = vadd.f32 %v9121_v21, %v21142_v37  ;;  %v15426_v33 = vpop.f32.mrb[66].mxu0  ;;  %v21153_v51 = vld [vmem:[#allocation89_spill] sm:$0xff]  ;;  %vm10040_vm5 = vcmp.eq.s32.totalorder %v21151_v45, %v19428_v63 }
 0x5ee   : > { %v9933_v28 = vmax.f32 %v9833_v19, %v9837_v15  ;;  %v15747_v27 = vadd.f32 %v15426_v33, %v21143_v60  ;;  %v9124_v57 = vpop.f32.mrb[67].mxu0  ;;  %v9577_v38 = vmul.f32 %v15745_v47, %v19128_v39  ;;  %vm10041_vm4 = vcmp.eq.s32.totalorder %v21153_v51, %v19428_v63 }
 0x5ef   : > { %v9931_v50 = vmax.f32 %v9831_v11, %v9835_v43  ;;  %v15748_v14 = vadd.f32 %v9124_v57, %v21145_v25  ;;  %v9575_v4 = vmul.f32 %v15746_v32, %v19128_v39  ;;  %vm10045_vm6 = vcmp.eq.s32.totalorder %v21153_v51, %v19435_v52 }
 0x5f0   : > { %v19422_v5 = vpack.c.bf16 %v9933_v28, %v9932_v56  ;;  %v9578_v53 = vmul.f32 %v15747_v27, %v19128_v39  ;;  %v9712_v17 = vadd.f32 %v19140_v41, %v9577_v38  ;;  %v21154_v56 = vld [vmem:[#allocation30_spill] sm:$0xff]  ;;  %v19462_v37 = vmul.u32 2, %v9970_v42  ;;  %v21158_v42 = vld [vmem:[#allocation33_spill] sm:$0xff] }
 0x5f1   : > { %v19425_v23 = vpack.c.bf16 %v9931_v50, %v9930_v29  ;;  %v9576_v18 = vmul.f32 %v15748_v14, %v19128_v39  ;;  %v9710_v6 = vadd.f32 %v19140_v41, %v9575_v4  ;;  %v21155_v60 = vmov 1.0  }
 0x5f2   : > { %21146 = vst [vmem:[#allocation3_spill] sm:$0xff] %v19422_v5  ;;  %v9713_v54 = vadd.f32 %v19140_v41, %v9578_v53  ;;  %v9840_v32 = vmax.f32 %v9712_v17, 0.0  ;;  %v9971_v27 = vadd.s32 32, %v21144_v34  ;;  %v9972_v14 = vadd.s32 40, %v21144_v34 }
 0x5f3   : > { %21147 = vst [vmem:[#allocation4_spill] sm:$0xff] %v19425_v23  ;;  %v15429_v9 = vpop.f32.mrb[68].mxu0  ;;  %15531 = vmatpush1.bf16.msra.mxu1 %v19425_v23  ;;  %v9711_v11 = vadd.f32 %v19140_v41, %v9576_v18  ;;  %v9838_v57 = vmax.f32 %v9710_v6, 0.0  ;;  %vm10044_vm7 = vcmp.eq.s32.totalorder %v21151_v45, %v19435_v52  ;;  %vm10049_vm8 = vcmp.eq.s32.totalorder %v21153_v51, %v19462_v37 }
 0x5f4   : > { %v15749_v40 = vadd.f32 %v15429_v9, %v21148_v48  ;;  %v9137_v58 = vpop.f32.mrb[69].mxu0  ;;  %15532 = vmatprep.subr.bf16.mxu1 %v21118_v55  ;;  %v9841_v13 = vmax.f32 %v9713_v54, 0.0  ;;  %v21156_v9 = vld [vmem:[#allocation31_spill] sm:$0xff]  ;;  %v19490_v6 = vmul.u32 2, %v9971_v27  ;;  %v19499_v54 = vmul.u32 2, %v9972_v14 }
 0x5f5   : > { %v15750_v3 = vadd.f32 %v9137_v58, %v21149_v24  ;;  %v15430_v16 = vpop.f32.mrb[70].mxu0  ;;  %v21157_v24 = vld [vmem:[#allocation32_spill] sm:$0xff]  ;;  %vm10048_vm9 = vcmp.eq.s32.totalorder %v21151_v45, %v19462_v37  ;;  %v19530_v14 = vld [vmem:[%s20980_s3] ss:$0 sm:$0xff] }
 0x5f6   : > { %v9581_v20 = vmul.f32 %v15749_v40, %v19128_v39  ;;  %v15751_v7 = vadd.f32 %v15430_v16, %v21152_v44  ;;  %v9140_v35 = vpop.f32.mrb[71].mxu0  ;;  %v9839_v40 = vmax.f32 %v9711_v11, 0.0  ;;  %vm10053_vm10 = vcmp.eq.s32.totalorder %v21153_v51, %v19490_v6 }
 0x5f7   : > { %v9579_v19 = vmul.f32 %v15750_v3, %v19128_v39  ;;  %v15752_v15 = vadd.f32 %v9140_v35, %v21154_v56  ;;  %15534 = vmatpush1.bf16.msra.mxu1 %v19422_v5  ;;  %v9973_v56 = vadd.s32 48, %v21144_v34  ;;  %vm10052_vm11 = vcmp.eq.s32.totalorder %v21151_v45, %v19490_v6 }
 0x5f8   : > { %v9716_v47 = vadd.f32 %v19140_v41, %v9581_v20  ;;  %v9582_v21 = vmul.f32 %v15751_v7, %v19128_v39  ;;  %15535 = vmatprep.subr.bf16.mxu1 %v21118_v55  ;;  %v21159_v7 = vld [vmem:[#allocation34_spill] sm:$0xff]  ;;  %vm10057_vm12 = vcmp.eq.s32.totalorder %v21153_v51, %v19499_v54  ;;  %vm10056_vm13 = vcmp.eq.s32.totalorder %v21151_v45, %v19499_v54 }
 0x5f9   : > { %v9714_v29 = vadd.f32 %v19140_v41, %v9579_v19  ;;  %v9580_v43 = vmul.f32 %v15752_v15, %v19128_v39 }
 0x5fa   : > { %v9844_v33 = vmax.f32 %v9716_v47, 0.0  ;;  %v9717_v28 = vadd.f32 %v19140_v41, %v9582_v21  ;;  %13474 = vmatmul.mubr.msk.f32.vlgmr.msra.gmra.mrb[128].mxu1 %vm10036_vm3, %v21155_v60  ;;  %v19506_v21 = vld [vmem:[%s20979_s2] ss:$0 sm:$0xff] }
 0x5fb   : > { %v9842_v59 = vmax.f32 %v9714_v29, 0.0  ;;  %v9715_v50 = vadd.f32 %v19140_v41, %v9580_v43  ;;  %v15433_v25 = vpop.f32.mrb[72].mxu0  ;;  %13475 = vmatprep.mubr.msk.f32.mxu1 %vm10041_vm4, %v21155_v60  ;;  %v21162_v43 = vld [vmem:[#allocation35_spill] sm:$0xff] }
 0x5fc   : > { %v9936_v38 = vmax.f32 %v9840_v32, %v9844_v33  ;;  %v9845_v4 = vmax.f32 %v9717_v28, 0.0  ;;  %v15753_v53 = vadd.f32 %v15433_v25, %v21156_v9  ;;  %v9153_v48 = vpop.f32.mrb[73].mxu0  ;;  %v19520_v28 = vmul.u32 2, %v9973_v56 }
 0x5fd   : > { %v9934_v58 = vmax.f32 %v9838_v57, %v9842_v59  ;;  %v9843_v18 = vmax.f32 %v9715_v50, 0.0  ;;  %v15754_v3 = vadd.f32 %v9153_v48, %v21157_v24  ;;  %v15434_v41 = vpop.f32.mrb[74].mxu0  ;;  %v21163_v57 = vld [vmem:[#allocation36_spill] sm:$0xff]  ;;  %v9974_v25 = vadd.s32 56, %v21144_v34 }
 0x5fe   : > { %v9937_v16 = vmax.f32 %v9841_v13, %v9845_v4  ;;  %v15755_v17 = vadd.f32 %v15434_v41, %v21158_v42  ;;  %v9156_v20 = vpop.f32.mrb[75].mxu0  ;;  %13476 = vmatmul.mubr.msk.f32.gmra.mrb[130].mxu1 %vm10040_vm5, %v21155_v60  ;;  %v9585_v47 = vmul.f32 %v15753_v53, %v19128_v39  ;;  %v21164_v4 = vld [vmem:[#allocation37_spill] sm:$0xff]  ;;  %vm10061_vm14 = vcmp.eq.s32.totalorder %v21153_v51, %v19520_v28 }
 0x5ff   : > { %v9935_v44 = vmax.f32 %v9839_v40, %v9843_v18  ;;  %v15756_v35 = vadd.f32 %v9156_v20, %v21159_v7  ;;  %13477 = vmatprep.mubr.msk.f32.mxu1 %vm10045_vm6, %v21155_v60  ;;  %v9583_v11 = vmul.f32 %v19506_v21, %v15754_v3  ;;  %v19558_v20 = vmul.u32 2, %v9974_v25 }
 0x600   : > { %v19494_v19 = vpack.c.bf16 %v9937_v16, %v9936_v38  ;;  %v9586_v39 = vmul.f32 %v19506_v21, %v15755_v17  ;;  %v9720_v13 = vadd.f32 %v19530_v14, %v9585_v47  ;;  %v9975_v56 = vadd.s32 64, %v21144_v34 }
 0x601   : > { %v19497_v15 = vpack.c.bf16 %v9935_v44, %v9934_v58  ;;  %v9584_v27 = vmul.f32 %v19506_v21, %v15756_v35  ;;  %v9718_v48 = vadd.f32 %v19530_v14, %v9583_v11  ;;  %v21165_v58 = vld [vmem:[#allocation38_spill] sm:$0xff]  ;;  %vm10060_vm15 = vcmp.eq.s32.totalorder %v21151_v45, %v19520_v28 }
 0x602   : > { %21160 = vst [vmem:[#allocation5_spill] sm:$0xff] %v19494_v19  ;;  %13478 = vmatmul.mubr.msk.f32.gmra.mrb[132].mxu1 %vm10044_vm7, %v21155_v60  ;;  %v9721_v24 = vadd.f32 %v19530_v14, %v9586_v39  ;;  %v9848_v44 = vmax.f32 %v9720_v13, 0.0  ;;  %vm10065_vm0 = vcmp.eq.s32.totalorder %v21153_v51, %v19558_v20  ;;  %vm10064_vm1 = vcmp.eq.s32.totalorder %v21151_v45, %v19558_v20 }
 0x603   : > { %21161 = vst [vmem:[#allocation6_spill] sm:$0xff] %v19497_v15  ;;  %v15437_v29 = vpop.f32.mrb[76].mxu0  ;;  %15537 = vmatpush1.bf16.msra.mxu1 %v19497_v15  ;;  %13479 = vmatprep.mubr.msk.f32.mxu1 %vm10049_vm8, %v21155_v60  ;;  %v9719_v16 = vadd.f32 %v19530_v14, %v9584_v27  ;;  %v9846_v47 = vmax.f32 %v9718_v48, 0.0  ;;  %v21190_v15 = vld [vmem:[#allocation57_spill] sm:$0xff] }
 0x604   : > { %v15757_v32 = vadd.f32 %v15437_v29, %v21162_v43  ;;  %v9169_v33 = vpop.f32.mrb[77].mxu0  ;;  %15538 = vmatprep.subr.bf16.mxu1 %v21118_v55  ;;  %v9976_v43 = vadd.s32 72, %v21144_v34 }
 0x605   : > { %v15758_v59 = vadd.f32 %v9169_v33, %v21163_v57  ;;  %v15438_v50 = vpop.f32.mrb[78].mxu0  ;;  %v21166_v57 = vld [vmem:[#allocation39_spill] sm:$0xff]  ;;  %v9847_v25 = vmax.f32 %v9719_v16, 0.0  ;;  %v19586_v16 = vmul.u32 2, %v9975_v56 }
 0x606   : > { %v9589_v38 = vmul.f32 %v19506_v21, %v15757_v32  ;;  %v15759_v9 = vadd.f32 %v15438_v50, %v21164_v4  ;;  %v9172_v53 = vpop.f32.mrb[79].mxu0  ;;  %13480 = vmatmul.mubr.msk.f32.gmra.mrb[134].mxu1 %vm10048_vm9, %v21155_v60  ;;  %v9849_v32 = vmax.f32 %v9721_v24, 0.0  ;;  %v21167_v4 = vld [vmem:[#allocation40_spill] sm:$0xff] }
 0x607   : > { %v9587_v40 = vmul.f32 %v19506_v21, %v15758_v59  ;;  %v15760_v18 = vadd.f32 %v9172_v53, %v21165_v58  ;;  %15540 = vmatpush1.bf16.msra.mxu1 %v19494_v19  ;;  %13481 = vmatprep.mubr.msk.f32.mxu1 %vm10053_vm10, %v21155_v60  ;;  %vm10069_vm2 = vcmp.eq.s32.totalorder %v21153_v51, %v19586_v16 }
 0x608   : > { %v9724_v3 = vadd.f32 %v19530_v14, %v9589_v38  ;;  %v9590_v41 = vmul.f32 %v19506_v21, %v15759_v9  ;;  %15541 = vmatprep.subr.bf16.mxu1 %v21118_v55  ;;  %vm10068_vm3 = vcmp.eq.s32.totalorder %v21151_v45, %v19586_v16 }
 0x609   : > { %v9722_v42 = vadd.f32 %v19530_v14, %v9587_v40  ;;  %v9588_v17 = vmul.f32 %v19506_v21, %v15760_v18  ;;  %v21168_v40 = vld [vmem:[#allocation41_spill] sm:$0xff] }
 0x60a   : > { %v9852_v7 = vmax.f32 %v9724_v3, 0.0  ;;  %v9725_v35 = vadd.f32 %v19530_v14, %v9590_v41  ;;  %13482 = vmatmul.mubr.msk.f32.gmra.mrb[136].mxu1 %vm10052_vm11, %v21155_v60  ;;  %v21169_v3 = vld [vmem:[#allocation42_spill] sm:$0xff] }
 0x60b   : > { %v9850_v11 = vmax.f32 %v9722_v42, 0.0  ;;  %v9723_v29 = vadd.f32 %v19530_v14, %v9588_v17  ;;  %v15441_v39 = vpop.f32.mrb[80].mxu0  ;;  %13483 = vmatprep.mubr.msk.f32.mxu1 %vm10057_vm12, %v21155_v60  ;;  %v9977_v17 = vadd.s32 80, %v21144_v34 }
 0x60c   : > { %v9940_v33 = vmax.f32 %v9848_v44, %v9852_v7  ;;  %v9853_v27 = vmax.f32 %v9725_v35, 0.0  ;;  %v15761_v59 = vadd.f32 %v15441_v39, %v21166_v57  ;;  %v9185_v50 = vpop.f32.mrb[81].mxu0  ;;  %v19595_v7 = vmul.u32 2, %v9976_v43 }
 0x60d   : > { %v9938_v13 = vmax.f32 %v9846_v47, %v9850_v11  ;;  %v9851_v38 = vmax.f32 %v9723_v29, 0.0  ;;  %v15762_v9 = vadd.f32 %v9185_v50, %v21167_v4  ;;  %v15442_v53 = vpop.f32.mrb[82].mxu0  ;;  %v21172_v29 = vld [vmem:[#allocation43_spill] sm:$0xff]  ;;  %v9978_v50 = vadd.s32 88, %v21144_v34 }
 0x60e   : > { %v9941_v48 = vmax.f32 %v9849_v32, %v9853_v27  ;;  %v15763_v58 = vadd.f32 %v15442_v53, %v21168_v40  ;;  %v9188_v18 = vpop.f32.mrb[83].mxu0  ;;  %13484 = vmatmul.mubr.msk.f32.gmra.mrb[138].mxu1 %vm10056_vm13, %v21155_v60  ;;  %v9593_v35 = vmul.f32 %v19506_v21, %v15761_v59  ;;  %v19611_v32 = vmul.u32 2, %v9977_v17  ;;  %v21173_v27 = vld [vmem:[#allocation44_spill] sm:$0xff]  ;;  %v21175_v40 = vld [vmem:[#allocation46_spill] sm:$0xff] }
 0x60f   : > { %v9939_v24 = vmax.f32 %v9847_v25, %v9851_v38  ;;  %v15764_v41 = vadd.f32 %v9188_v18, %v21169_v3  ;;  %13485 = vmatprep.mubr.msk.f32.mxu1 %vm10061_vm14, %v21155_v60  ;;  %v9591_v47 = vmul.f32 %v19506_v21, %v15762_v9  ;;  %vm10073_vm4 = vcmp.eq.s32.totalorder %v21153_v51, %v19595_v7  ;;  %v21174_v38 = vld [vmem:[#allocation45_spill] sm:$0xff] }
 0x610   : > { %v19590_v42 = vpack.c.bf16 %v9941_v48, %v9940_v33  ;;  %v9594_v56 = vmul.f32 %v19506_v21, %v15763_v58  ;;  %v9728_v25 = vadd.f32 %v19530_v14, %v9593_v35  ;;  %vm10072_vm5 = vcmp.eq.s32.totalorder %v21151_v45, %v19595_v7 }
 0x611   : > { %v19593_v44 = vpack.c.bf16 %v9939_v24, %v9938_v13  ;;  %v9592_v33 = vmul.f32 %v19506_v21, %v15764_v41  ;;  %v9726_v53 = vadd.f32 %v19530_v14, %v9591_v47  ;;  %vm10077_vm6 = vcmp.eq.s32.totalorder %v21153_v51, %v19611_v32 }
 0x612   : > { %21170 = vst [vmem:[#allocation7_spill] sm:$0xff] %v19590_v42  ;;  %13486 = vmatmul.mubr.msk.f32.gmra.mrb[140].mxu1 %vm10060_vm15, %v21155_v60  ;;  %v9729_v18 = vadd.f32 %v19530_v14, %v9594_v56  ;;  %v19644_v47 = vmul.u32 2, %v9978_v50  ;;  %vm10076_vm7 = vcmp.eq.s32.totalorder %v21151_v45, %v19611_v32 }
 0x613   : > { %21171 = vst [vmem:[#allocation8_spill] sm:$0xff] %v19593_v44  ;;  %v15445_v11 = vpop.f32.mrb[84].mxu0  ;;  %15543 = vmatpush1.bf16.msra.mxu1 %v19593_v44  ;;  %13487 = vmatprep.mubr.msk.f32.mxu1 %vm10065_vm0, %v21155_v60  ;;  %v9727_v41 = vadd.f32 %v19530_v14, %v9592_v33 }
 0x614   : > { %v15765_v39 = vadd.f32 %v15445_v11, %v21172_v29  ;;  %v9201_v43 = vpop.f32.mrb[85].mxu0  ;;  %15544 = vmatprep.subr.bf16.mxu1 %v21118_v55  ;;  %v9856_v11 = vmax.f32 %v9728_v25, 0.0  ;;  %v9857_v50 = vmax.f32 %v9729_v18, 0.0  ;;  %vm10081_vm8 = vcmp.eq.s32.totalorder %v21153_v51, %v19644_v47 }
 0x615   : > { %v15766_v57 = vadd.f32 %v9201_v43, %v21173_v27  ;;  %v15446_v59 = vpop.f32.mrb[86].mxu0  ;;  %v9854_v43 = vmax.f32 %v9726_v53, 0.0  ;;  %vm10080_vm9 = vcmp.eq.s32.totalorder %v21151_v45, %v19644_v47 }
 0x616   : > { %v9597_v13 = vmul.f32 %v19506_v21, %v15765_v39  ;;  %v15767_v4 = vadd.f32 %v15446_v59, %v21174_v38  ;;  %v9204_v9 = vpop.f32.mrb[87].mxu0  ;;  %13488 = vmatmul.mubr.msk.f32.gmra.mrb[142].mxu1 %vm10064_vm1, %v21155_v60  ;;  %v9979_v39 = vadd.s32 96, %v21144_v34  ;;  %v9980_v59 = vadd.s32 104, %v21144_v34  ;;  %v21176_v38 = vld [vmem:[#allocation47_spill] sm:$0xff] }
 0x617   : > { %v9595_v48 = vmul.f32 %v19506_v21, %v15766_v57  ;;  %v15768_v58 = vadd.f32 %v9204_v9, %v21175_v40  ;;  %15546 = vmatpush1.bf16.msra.mxu1 %v19590_v42  ;;  %13489 = vmatprep.mubr.msk.f32.mxu1 %vm10069_vm2, %v21155_v60 }
 0x618   : > { %v9732_v24 = vadd.f32 %v19530_v14, %v9597_v13  ;;  %v9598_v3 = vmul.f32 %v19506_v21, %v15767_v4  ;;  %15547 = vmatprep.subr.bf16.mxu1 %v21118_v55 }
 0x619   : > { %v9730_v17 = vadd.f32 %v19530_v14, %v9595_v48  ;;  %v9596_v35 = vmul.f32 %v19506_v21, %v15768_v58  ;;  %v9855_v48 = vmax.f32 %v9727_v41, 0.0  ;;  %v21177_v58 = vld [vmem:[#allocation48_spill] sm:$0xff]  ;;  %v19672_v41 = vmul.u32 2, %v9979_v39 }
 0x61a   : > { %v9860_v29 = vmax.f32 %v9732_v24, 0.0  ;;  %v9733_v56 = vadd.f32 %v19530_v14, %v9598_v3  ;;  %13490 = vmatmul.mubr.msk.f32.gmra.mrb[144].mxu1 %vm10068_vm3, %v21155_v60 }
 0x61b   : > { %v9858_v27 = vmax.f32 %v9730_v17, 0.0  ;;  %v9731_v33 = vadd.f32 %v19530_v14, %v9596_v35  ;;  %v15449_v57 = vpop.f32.mrb[88].mxu0  ;;  %13491 = vmatprep.mubr.msk.f32.mxu1 %vm10073_vm4, %v21155_v60  ;;  %v21178_v35 = vld [vmem:[#allocation49_spill] sm:$0xff]  ;;  %vm10085_vm10 = vcmp.eq.s32.totalorder %v21153_v51, %v19672_v41  ;;  %vm10084_vm11 = vcmp.eq.s32.totalorder %v21151_v45, %v19672_v41 }
 0x61c   : > { %v9944_v25 = vmax.f32 %v9856_v11, %v9860_v29  ;;  %v9861_v13 = vmax.f32 %v9733_v56, 0.0  ;;  %v15769_v4 = vadd.f32 %v15449_v57, %v21176_v38  ;;  %v9217_v9 = vpop.f32.mrb[89].mxu0  ;;  %v21179_v11 = vld [vmem:[#allocation50_spill] sm:$0xff] }
 0x61d   : > { %v9942_v40 = vmax.f32 %v9854_v43, %v9858_v27  ;;  %v9859_v53 = vmax.f32 %v9731_v33, 0.0  ;;  %v15770_v24 = vadd.f32 %v9217_v9, %v21177_v58  ;;  %v15450_v3 = vpop.f32.mrb[90].mxu0  ;;  %v9981_v43 = vadd.s32 112, %v21144_v34  ;;  %v21184_v9 = vld [vmem:[#allocation52_spill] sm:$0xff] }
 0x61e   : > { %v9945_v17 = vmax.f32 %v9857_v50, %v9861_v13  ;;  %v15771_v42 = vadd.f32 %v15450_v3, %v21178_v35  ;;  %v9220_v44 = vpop.f32.mrb[91].mxu0  ;;  %13492 = vmatmul.mubr.msk.f32.gmra.mrb[146].mxu1 %vm10072_vm5, %v21155_v60  ;;  %v9601_v33 = vmul.f32 %v19506_v21, %v15769_v4 }
 0x61f   : > { %v9943_v18 = vmax.f32 %v9855_v48, %v9859_v53  ;;  %v15772_v29 = vadd.f32 %v9220_v44, %v21179_v11  ;;  %13493 = vmatprep.mubr.msk.f32.mxu1 %vm10077_vm6, %v21155_v60  ;;  %v19681_v44 = vmul.u32 2, %v9980_v59  ;;  %v9599_v57 = vmul.f32 %v19506_v21, %v15770_v24  ;;  %v21182_v59 = vld [vmem:[#allocation51_spill] sm:$0xff]  ;;  %v21185_v24 = vld [vmem:[#allocation53_spill] sm:$0xff]  ;;  %v21186_v11 = vld [vmem:[#allocation54_spill] sm:$0xff] }
 0x620   : > { %v19676_v56 = vpack.c.bf16 %v9945_v17, %v9944_v25  ;;  %v9602_v39 = vmul.f32 %v19506_v21, %v15771_v42  ;;  %v19697_v38 = vmul.u32 2, %v9981_v43  ;;  %v9982_v42 = vadd.s32 120, %v21144_v34 }
 0x621   : > { %v19679_v27 = vpack.c.bf16 %v9943_v18, %v9942_v40  ;;  %v9600_v4 = vmul.f32 %v19506_v21, %v15772_v29  ;;  %vm10089_vm12 = vcmp.eq.s32.totalorder %v21153_v51, %v19681_v44  ;;  %v9736_v53 = vadd.f32 %v19530_v14, %v9601_v33 }
 0x622   : > { %21180 = vst [vmem:[#allocation9_spill] sm:$0xff] %v19676_v56  ;;  %13494 = vmatmul.mubr.msk.f32.gmra.mrb[148].mxu1 %vm10076_vm7, %v21155_v60  ;;  %21183 = vst [vmem:[#allocation11_spill] sm:$0xff] %v19697_v38  ;;  %vm10088_vm13 = vcmp.eq.s32.totalorder %v21151_v45, %v19681_v44  ;;  %v9734_v35 = vadd.f32 %v19530_v14, %v9599_v57  ;;  %v9737_v43 = vadd.f32 %v19530_v14, %v9602_v39 }
 0x623   : > { %21181 = vst [vmem:[#allocation10_spill] sm:$0xff] %v19679_v27  ;;  %v15453_v50 = vpop.f32.mrb[92].mxu0  ;;  %15549 = vmatpush1.bf16.msra.mxu1 %v19679_v27  ;;  %13495 = vmatprep.mubr.msk.f32.mxu1 %vm10081_vm8, %v21155_v60  ;;  %vm10093_vm14 = vcmp.eq.s32.totalorder %v21153_v51, %v19697_v38  ;;  %v9735_v57 = vadd.f32 %v19530_v14, %v9600_v4 }
 0x624   : > { %v15773_v25 = vadd.f32 %v15453_v50, %v21182_v59  ;;  %v9233_v13 = vpop.f32.mrb[93].mxu0  ;;  %15550 = vmatprep.subr.bf16.mxu1 %v21118_v55  ;;  %vm10092_vm15 = vcmp.eq.s32.totalorder %v21151_v45, %v19697_v38 }
 0x625   : > { %v15774_v48 = vadd.f32 %v9233_v13, %v21184_v9  ;;  %v15454_v40 = vpop.f32.mrb[94].mxu0  ;;  %v19730_v13 = vmul.u32 2, %v9982_v42  ;;  %v9864_v9 = vmax.f32 %v9736_v53, 0.0  ;;  %v9984_v42 = vadd.s32 136, %v21144_v34 }
 0x626   : > { %v9605_v58 = vmul.f32 %v19506_v21, %v15773_v25  ;;  %v15775_v3 = vadd.f32 %v15454_v40, %v21185_v24  ;;  %v9236_v17 = vpop.f32.mrb[95].mxu0  ;;  %13496 = vmatmul.mubr.msk.f32.gmra.mrb[150].mxu1 %vm10080_vm9, %v21155_v60  ;;  %v9983_v40 = vadd.s32 128, %v21144_v34  ;;  %v9865_v53 = vmax.f32 %v9737_v43, 0.0 }
 0x627   : > { %v9603_v18 = vmul.f32 %v19506_v21, %v15774_v48  ;;  %v15776_v29 = vadd.f32 %v9236_v17, %v21186_v11  ;;  %15552 = vmatpush1.bf16.msra.mxu1 %v19676_v56  ;;  %13497 = vmatprep.mubr.msk.f32.mxu1 %vm10085_vm10, %v21155_v60  ;;  %21187 = vst [vmem:[#allocation12_spill] sm:$0xff] %v19730_v13  ;;  %v21188_v11 = vld [vmem:[#allocation55_spill] sm:$0xff] }
 0x628   : > { %v9740_v33 = vadd.f32 %v19530_v14, %v9605_v58  ;;  %v9606_v50 = vmul.f32 %v19506_v21, %v15775_v3  ;;  %15553 = vmatprep.subr.bf16.mxu1 %v21118_v55  ;;  %v9862_v58 = vmax.f32 %v9734_v35, 0.0  ;;  %vm10097_vm0 = vcmp.eq.s32.totalorder %v21153_v51, %v19730_v13 }
 0x629   : > { %v9738_v59 = vadd.f32 %v19530_v14, %v9603_v18  ;;  %v9604_v25 = vmul.f32 %v19506_v21, %v15776_v29  ;;  %vm10096_vm1 = vcmp.eq.s32.totalorder %v21151_v45, %v19730_v13  ;;  %v21204_v13 = vld [vmem:[#allocation65_spill] sm:$0xff] }
 0x62a   : > { %v9868_v48 = vmax.f32 %v9740_v33, 0.0  ;;  %v9741_v39 = vadd.f32 %v19530_v14, %v9606_v50  ;;  %13498 = vmatmul.mubr.msk.f32.gmra.mrb[152].mxu1 %vm10084_vm11, %v21155_v60  ;;  %v9863_v50 = vmax.f32 %v9735_v57, 0.0  ;;  %v19758_v57 = vmul.u32 2, %v9983_v40 }
 0x62b   : > { %v9866_v24 = vmax.f32 %v9738_v59, 0.0  ;;  %v9739_v4 = vadd.f32 %v19530_v14, %v9604_v25  ;;  %v15457_v3 = vpop.f32.mrb[96].mxu0  ;;  %13499 = vmatprep.mubr.msk.f32.mxu1 %vm10089_vm12, %v21155_v60  ;;  %v21189_v59 = vld [vmem:[#allocation56_spill] sm:$0xff] }
 0x62c   : > { %v9948_v17 = vmax.f32 %v9864_v9, %v9868_v48  ;;  %v9869_v18 = vmax.f32 %v9741_v39, 0.0  ;;  %v15777_v29 = vadd.f32 %v15457_v3, %v21188_v11  ;;  %v9249_v33 = vpop.f32.mrb[97].mxu0  ;;  %v21191_v9 = vld [vmem:[#allocation58_spill] sm:$0xff]  ;;  %21192 = vst [vmem:[#allocation13_spill] sm:$0xff] %v19758_v57  ;;  %v9985_v39 = vadd.s32 144, %v21144_v34 }
 0x62d   : > { %v9946_v56 = vmax.f32 %v9862_v58, %v9866_v24  ;;  %v9867_v35 = vmax.f32 %v9739_v4, 0.0  ;;  %v15778_v27 = vadd.f32 %v9249_v33, %v21189_v59  ;;  %v15458_v25 = vpop.f32.mrb[98].mxu0  ;;  %vm10101_vm2 = vcmp.eq.s32.totalorder %v21153_v51, %v19758_v57 }
 0x62e   : > { %v9949_v19 = vmax.f32 %v9865_v53, %v9869_v18  ;;  %v15779_v5 = vadd.f32 %v15458_v25, %v21190_v15  ;;  %v9252_v23 = vpop.f32.mrb[99].mxu0  ;;  %13500 = vmatmul.mubr.msk.f32.gmra.mrb[154].mxu1 %vm10088_vm13, %v21155_v60  ;;  %v9609_v24 = vmul.f32 %v19506_v21, %v15777_v29  ;;  %vm10100_vm3 = vcmp.eq.s32.totalorder %v21151_v45, %v19758_v57 }
 0x62f   : > { %v9947_v43 = vmax.f32 %v9863_v50, %v9867_v35  ;;  %v15780_v48 = vadd.f32 %v9252_v23, %v21191_v9  ;;  %13501 = vmatprep.mubr.msk.f32.mxu1 %vm10093_vm14, %v21155_v60  ;;  %v19767_v23 = vmul.u32 2, %v9984_v42  ;;  %v9607_v4 = vmul.f32 %v19506_v21, %v15778_v27  ;;  %v21199_v50 = vld [vmem:[#allocation61_spill] sm:$0xff]  ;;  %v21200_v9 = vld [vmem:[#allocation62_spill] sm:$0xff] }
 0x630   : > { %v19762_v15 = vpack.c.bf16 %v9949_v19, %v9948_v17  ;;  %v9610_v19 = vmul.f32 %v19506_v21, %v15779_v5  ;;  %v19783_v27 = vmul.u32 2, %v9985_v39  ;;  %v21198_v17 = vld [vmem:[#allocation60_spill] sm:$0xff]  ;;  %v9986_v5 = vadd.s32 152, %v21144_v34 }
 0x631   : > { %v19765_v58 = vpack.c.bf16 %v9947_v43, %v9946_v56  ;;  %21195 = vst [vmem:[#allocation16_spill] sm:$0xff] %v19767_v23  ;;  %v21196_v56 = vld [vmem:[#allocation59_spill] sm:$0xff]  ;;  %v9608_v53 = vmul.f32 %v19506_v21, %v15780_v48  ;;  %vm10105_vm4 = vcmp.eq.s32.totalorder %v21153_v51, %v19767_v23  ;;  %v9744_v29 = vadd.f32 %v19530_v14, %v9609_v24 }
 0x632   : > { %21193 = vst [vmem:[#allocation14_spill] sm:$0xff] %v19762_v15  ;;  %13502 = vmatmul.mubr.msk.f32.gmra.mrb[156].mxu1 %vm10092_vm15, %v21155_v60  ;;  %21197 = vst [vmem:[#allocation17_spill] sm:$0xff] %v19783_v27  ;;  %vm10104_vm5 = vcmp.eq.s32.totalorder %v21151_v45, %v19767_v23  ;;  %v9742_v25 = vadd.f32 %v19530_v14, %v9607_v4  ;;  %v9745_v39 = vadd.f32 %v19530_v14, %v9610_v19 }
 0x633   : > { %21194 = vst [vmem:[#allocation15_spill] sm:$0xff] %v19765_v58  ;;  %v15461_v3 = vpop.f32.mrb[100].mxu0  ;;  %15555 = vmatpush1.bf16.msra.mxu1 %v19765_v58  ;;  %13503 = vmatprep.mubr.msk.f32.mxu1 %vm10097_vm0, %v21155_v60  ;;  %vm10109_vm6 = vcmp.eq.s32.totalorder %v21153_v51, %v19783_v27  ;;  %v9743_v4 = vadd.f32 %v19530_v14, %v9608_v53 }
 0x634   : > { %v15781_v40 = vadd.f32 %v15461_v3, %v21196_v56  ;;  %v9265_v42 = vpop.f32.mrb[101].mxu0  ;;  %15556 = vmatprep.subr.bf16.mxu1 %v21118_v55  ;;  %vm10108_vm7 = vcmp.eq.s32.totalorder %v21151_v45, %v19783_v27 }
 0x635   : > { %v15782_v18 = vadd.f32 %v9265_v42, %v21198_v17  ;;  %v15462_v11 = vpop.f32.mrb[102].mxu0  ;;  %v19816_v42 = vmul.u32 2, %v9986_v5  ;;  %v9872_v17 = vmax.f32 %v9744_v29, 0.0  ;;  %v9988_v5 = vadd.s32 168, %v21144_v34 }
 0x636   : > { %v9613_v33 = vmul.f32 %v19506_v21, %v15781_v40  ;;  %v15783_v35 = vadd.f32 %v15462_v11, %v21199_v50  ;;  %v9268_v59 = vpop.f32.mrb[103].mxu0  ;;  %13504 = vmatmul.mubr.msk.f32.gmra.mrb[158].mxu1 %vm10096_vm1, %v21155_v60  ;;  %v9987_v11 = vadd.s32 160, %v21144_v34  ;;  %v9873_v29 = vmax.f32 %v9745_v39, 0.0 }
 0x637   : > { %v9611_v43 = vmul.f32 %v19506_v21, %v15782_v18  ;;  %v15784_v48 = vadd.f32 %v9268_v59, %v21200_v9  ;;  %15558 = vmatpush1.bf16.msra.mxu1 %v19762_v15  ;;  %13505 = vmatprep.mubr.msk.f32.mxu1 %vm10101_vm2, %v21155_v60  ;;  %21201 = vst [vmem:[#allocation18_spill] sm:$0xff] %v19816_v42  ;;  %v21202_v9 = vld [vmem:[#allocation63_spill] sm:$0xff] }
 0x638   : > { %v9748_v24 = vadd.f32 %v19530_v14, %v9613_v33  ;;  %v9614_v3 = vmul.f32 %v19506_v21, %v15783_v35  ;;  %15559 = vmatprep.subr.bf16.mxu1 %v21118_v55  ;;  %v9870_v33 = vmax.f32 %v9742_v25, 0.0  ;;  %vm10113_vm8 = vcmp.eq.s32.totalorder %v21153_v51, %v19816_v42 }
 0x639   : > { %v9746_v56 = vadd.f32 %v19530_v14, %v9611_v43  ;;  %v9612_v40 = vmul.f32 %v19506_v21, %v15784_v48  ;;  %vm10112_vm9 = vcmp.eq.s32.totalorder %v21151_v45, %v19816_v42  ;;  %v21217_v42 = vld [vmem:[#allocation73_spill] sm:$0xff] }
 0x63a   : > { %v9876_v18 = vmax.f32 %v9748_v24, 0.0  ;;  %v9749_v19 = vadd.f32 %v19530_v14, %v9614_v3  ;;  %13506 = vmatmul.mubr.msk.f32.gmra.mrb[160].mxu1 %vm10100_vm3, %v21155_v60  ;;  %v9871_v3 = vmax.f32 %v9743_v4, 0.0  ;;  %v19844_v4 = vmul.u32 2, %v9987_v11 }
 0x63b   : > { %v9874_v50 = vmax.f32 %v9746_v56, 0.0  ;;  %v9747_v53 = vadd.f32 %v19530_v14, %v9612_v40  ;;  %v15465_v35 = vpop.f32.mrb[104].mxu0  ;;  %13507 = vmatprep.mubr.msk.f32.mxu1 %vm10105_vm4, %v21155_v60  ;;  %v21203_v56 = vld [vmem:[#allocation64_spill] sm:$0xff] }
 0x63c   : > { %v9952_v59 = vmax.f32 %v9872_v17, %v9876_v18  ;;  %v9877_v43 = vmax.f32 %v9749_v19, 0.0  ;;  %v15785_v48 = vadd.f32 %v15465_v35, %v21202_v9  ;;  %v9281_v24 = vpop.f32.mrb[105].mxu0  ;;  %v21205_v17 = vld [vmem:[#allocation66_spill] sm:$0xff]  ;;  %21206 = vst [vmem:[#allocation19_spill] sm:$0xff] %v19844_v4  ;;  %v9989_v19 = vadd.s32 176, %v21144_v34 }
 0x63d   : > { %v9950_v15 = vmax.f32 %v9870_v33, %v9874_v50  ;;  %v9875_v25 = vmax.f32 %v9747_v53, 0.0  ;;  %v15786_v58 = vadd.f32 %v9281_v24, %v21203_v56  ;;  %v15466_v40 = vpop.f32.mrb[106].mxu0  ;;  %vm10117_vm10 = vcmp.eq.s32.totalorder %v21153_v51, %v19844_v4 }
 0x63e   : > { %v9953_v57 = vmax.f32 %v9873_v29, %v9877_v43  ;;  %v15787_v46 = vadd.f32 %v15466_v40, %v21204_v13  ;;  %v9284_v38 = vpop.f32.mrb[107].mxu0  ;;  %13508 = vmatmul.mubr.msk.f32.gmra.mrb[162].mxu1 %vm10104_vm5, %v21155_v60  ;;  %v9617_v50 = vmul.f32 %v19506_v21, %v15785_v48  ;;  %vm10116_vm11 = vcmp.eq.s32.totalorder %v21151_v45, %v19844_v4 }
 0x63f   : > { %v9951_v39 = vmax.f32 %v9871_v3, %v9875_v25  ;;  %v15788_v18 = vadd.f32 %v9284_v38, %v21205_v17  ;;  %13509 = vmatprep.mubr.msk.f32.mxu1 %vm10109_vm6, %v21155_v60  ;;  %v19853_v38 = vmul.u32 2, %v9988_v5  ;;  %v9615_v53 = vmul.f32 %v19506_v21, %v15786_v58  ;;  %v21212_v3 = vld [vmem:[#allocation69_spill] sm:$0xff]  ;;  %v21213_v17 = vld [vmem:[#allocation70_spill] sm:$0xff] }
 0x640   : > { %v19848_v13 = vpack.c.bf16 %v9953_v57, %v9952_v59  ;;  %v9618_v57 = vmul.f32 %v19506_v21, %v15787_v46  ;;  %v19869_v58 = vmul.u32 2, %v9989_v19  ;;  %v21211_v59 = vld [vmem:[#allocation68_spill] sm:$0xff]  ;;  %v9990_v46 = vadd.s32 184, %v21144_v34 }
 0x641   : > { %v19851_v33 = vpack.c.bf16 %v9951_v39, %v9950_v15  ;;  %v21209_v15 = vld [vmem:[#allocation67_spill] sm:$0xff]  ;;  %v9616_v29 = vmul.f32 %v19506_v21, %v15788_v18  ;;  %vm10121_vm12 = vcmp.eq.s32.totalorder %v21153_v51, %v19853_v38  ;;  %v9752_v48 = vadd.f32 %v19530_v14, %v9617_v50 }
 0x642   : > { %21207 = vst [vmem:[#allocation20_spill] sm:$0xff] %v19848_v13  ;;  %13510 = vmatmul.mubr.msk.f32.gmra.mrb[164].mxu1 %vm10108_vm7, %v21155_v60  ;;  %21210 = vst [vmem:[#allocation22_spill] sm:$0xff] %v19869_v58  ;;  %vm10120_vm13 = vcmp.eq.s32.totalorder %v21151_v45, %v19853_v38  ;;  %v9750_v40 = vadd.f32 %v19530_v14, %v9615_v53  ;;  %v9753_v19 = vadd.f32 %v19530_v14, %v9618_v57 }
 0x643   : > { %21208 = vst [vmem:[#allocation21_spill] sm:$0xff] %v19851_v33  ;;  %v15469_v35 = vpop.f32.mrb[108].mxu0  ;;  %15561 = vmatpush1.bf16.msra.mxu1 %v19851_v33  ;;  %13511 = vmatprep.mubr.msk.f32.mxu1 %vm10113_vm8, %v21155_v60  ;;  %vm10125_vm14 = vcmp.eq.s32.totalorder %v21153_v51, %v19869_v58  ;;  %v9751_v53 = vadd.f32 %v19530_v14, %v9616_v29 }
 0x644   : > { %v15789_v11 = vadd.f32 %v15469_v35, %v21209_v15  ;;  %v9297_v5 = vpop.f32.mrb[109].mxu0  ;;  %15562 = vmatprep.subr.bf16.mxu1 %v21118_v55  ;;  %vm10124_vm15 = vcmp.eq.s32.totalorder %v21151_v45, %v19869_v58 }
 0x645   : > { %v15790_v43 = vadd.f32 %v9297_v5, %v21211_v59  ;;  %v15470_v9 = vpop.f32.mrb[110].mxu0  ;;  %v19902_v5 = vmul.u32 2, %v9990_v46  ;;  %v9880_v59 = vmax.f32 %v9752_v48, 0.0  ;;  %v9992_v46 = vadd.s32 200, %v21144_v34 }
 0x646   : > { %v9621_v24 = vmul.f32 %v19506_v21, %v15789_v11  ;;  %v15791_v25 = vadd.f32 %v15470_v9, %v21212_v3  ;;  %v9300_v56 = vpop.f32.mrb[111].mxu0  ;;  %13512 = vmatmul.mubr.msk.f32.gmra.mrb[166].mxu1 %vm10112_vm9, %v21155_v60  ;;  %v9991_v9 = vadd.s32 192, %v21144_v34  ;;  %v9881_v48 = vmax.f32 %v9753_v19, 0.0 }
 0x647   : > { %v9619_v39 = vmul.f32 %v19506_v21, %v15790_v43  ;;  %v15792_v18 = vadd.f32 %v9300_v56, %v21213_v17  ;;  %15564 = vmatpush1.bf16.msra.mxu1 %v19848_v13  ;;  %13513 = vmatprep.mubr.msk.f32.mxu1 %vm10117_vm10, %v21155_v60  ;;  %21214 = vst [vmem:[#allocation23_spill] sm:$0xff] %v19902_v5  ;;  %v21215_v17 = vld [vmem:[#allocation71_spill] sm:$0xff] }
 0x648   : > { %v9756_v50 = vadd.f32 %v19530_v14, %v9621_v24  ;;  %v9622_v35 = vmul.f32 %v19506_v21, %v15791_v25  ;;  %15565 = vmatprep.subr.bf16.mxu1 %v21118_v55  ;;  %v9878_v24 = vmax.f32 %v9750_v40, 0.0  ;;  %vm10129_vm0 = vcmp.eq.s32.totalorder %v21153_v51, %v19902_v5 }
 0x649   : > { %v9754_v15 = vadd.f32 %v19530_v14, %v9619_v39  ;;  %v9620_v11 = vmul.f32 %v19506_v21, %v15792_v18  ;;  %vm10128_vm1 = vcmp.eq.s32.totalorder %v21151_v45, %v19902_v5 }
 0x64a   : > { %v9884_v43 = vmax.f32 %v9756_v50, 0.0  ;;  %v9757_v57 = vadd.f32 %v19530_v14, %v9622_v35  ;;  %13514 = vmatmul.mubr.msk.f32.gmra.mrb[168].mxu1 %vm10116_vm11, %v21155_v60  ;;  %v9879_v35 = vmax.f32 %v9751_v53, 0.0  ;;  %v19934_v53 = vmul.u32 2, %v9991_v9 }
 0x64b   : > { %v9882_v3 = vmax.f32 %v9754_v15, 0.0  ;;  %v9755_v29 = vadd.f32 %v19530_v14, %v9620_v11  ;;  %v15473_v25 = vpop.f32.mrb[112].mxu0  ;;  %13515 = vmatprep.mubr.msk.f32.mxu1 %vm10121_vm12, %v21155_v60  ;;  %v21216_v15 = vld [vmem:[#allocation72_spill] sm:$0xff] }
 0x64c   : > { %v9956_v56 = vmax.f32 %v9880_v59, %v9884_v43  ;;  %v9885_v39 = vmax.f32 %v9757_v57, 0.0  ;;  %v15793_v18 = vadd.f32 %v15473_v25, %v21215_v17  ;;  %v9313_v50 = vpop.f32.mrb[113].mxu0  ;;  %v21218_v59 = vld [vmem:[#allocation74_spill] sm:$0xff]  ;;  %21220 = vst [vmem:[#allocation25_spill] sm:$0xff] %v19934_v53  ;;  %vm10133_vm2 = vcmp.eq.s32.totalorder %v21153_v51, %v19934_v53 }
 0x64d   : > { %v9954_v13 = vmax.f32 %v9878_v24, %v9882_v3  ;;  %v9883_v40 = vmax.f32 %v9755_v29, 0.0  ;;  %v15794_v33 = vadd.f32 %v9313_v50, %v21216_v15  ;;  %v15474_v11 = vpop.f32.mrb[114].mxu0  ;;  %v19938_v24 = vmul.u32 2, %v9992_v46  ;;  %v21224_v50 = vld [vmem:[#allocation77_spill] sm:$0xff] }
 0x64e   : > { %v9957_v4 = vmax.f32 %v9881_v48, %v9885_v39  ;;  %v15795_v27 = vadd.f32 %v15474_v11, %v21217_v42  ;;  %v9316_v23 = vpop.f32.mrb[115].mxu0  ;;  %13516 = vmatmul.mubr.msk.f32.gmra.mrb[170].mxu1 %vm10120_vm13, %v21155_v60  ;;  %v9625_v3 = vmul.f32 %v19506_v21, %v15793_v18  ;;  %vm10132_vm3 = vcmp.eq.s32.totalorder %v21151_v45, %v19934_v53  ;;  %v21223_v48 = vld [vmem:[#allocation76_spill] sm:$0xff]  ;;  %v21228_v53 = vld [vmem:[#allocation81_spill] sm:$0xff] }
 0x64f   : > { %v9955_v19 = vmax.f32 %v9879_v35, %v9883_v40  ;;  %v15796_v43 = vadd.f32 %v9316_v23, %v21218_v59  ;;  %13517 = vmatprep.mubr.msk.f32.mxu1 %vm10125_vm14, %v21155_v60  ;;  %v9993_v23 = vadd.s32 208, %v21144_v34  ;;  %v9623_v29 = vmul.f32 %v19506_v21, %v15794_v33  ;;  %v21225_v59 = vld [vmem:[#allocation78_spill] sm:$0xff] }
 0x650   : > { %v19932_v42 = vpack.c.bf16 %v9957_v4, %v9956_v56  ;;  %v9626_v4 = vmul.f32 %v19506_v21, %v15795_v27  ;;  %vm10137_vm4 = vcmp.eq.s32.totalorder %v21153_v51, %v19938_v24  ;;  %v9760_v17 = vadd.f32 %v19530_v14, %v9625_v3 }
 0x651   : > { %v19936_v57 = vpack.c.bf16 %v9955_v19, %v9954_v13  ;;  %v21222_v13 = vld [vmem:[#allocation75_spill] sm:$0xff]  ;;  %v9624_v33 = vmul.f32 %v19506_v21, %v15796_v43  ;;  %v19959_v27 = vmul.u32 2, %v9993_v23  ;;  %v9994_v15 = vadd.s32 216, %v21144_v34 }
 0x652   : > { %21219 = vst [vmem:[#allocation24_spill] sm:$0xff] %v19932_v42  ;;  %13518 = vmatmul.mubr.msk.f32.gmra.mrb[172].mxu1 %vm10124_vm15, %v21155_v60  ;;  %v9758_v11 = vadd.f32 %v19530_v14, %v9623_v29  ;;  %v9761_v23 = vadd.f32 %v19530_v14, %v9626_v4  ;;  %vm10136_vm5 = vcmp.eq.s32.totalorder %v21151_v45, %v19938_v24 }
 0x653   : > { %21221 = vst [vmem:[#allocation87_spill] sm:$0xff] %v19936_v57  ;;  %v15477_v25 = vpop.f32.mrb[116].mxu0  ;;  %15567 = vmatpush1.bf16.msra.mxu1 %v19936_v57  ;;  %13519 = vmatprep.mubr.msk.f32.mxu1 %vm10129_vm0, %v21155_v60  ;;  %v9759_v29 = vadd.f32 %v19530_v14, %v9624_v33  ;;  %vm10141_vm6 = vcmp.eq.s32.totalorder %v21153_v51, %v19959_v27 }
 0x654   : > { %v15797_v9 = vadd.f32 %v15477_v25, %v21222_v13  ;;  %v9329_v46 = vpop.f32.mrb[117].mxu0  ;;  %15568 = vmatprep.subr.bf16.mxu1 %v21118_v55  ;;  %vm10140_vm7 = vcmp.eq.s32.totalorder %v21151_v45, %v19959_v27 }
 0x655   : > { %v15798_v56 = vadd.f32 %v9329_v46, %v21223_v48  ;;  %v15478_v39 = vpop.f32.mrb[118].mxu0  ;;  %v9888_v46 = vmax.f32 %v9760_v17, 0.0  ;;  %v9995_v17 = vadd.s32 224, %v21144_v34 }
 0x656   : > { %v9629_v18 = vmul.f32 %v19506_v21, %v15797_v9  ;;  %v15799_v35 = vadd.f32 %v15478_v39, %v21224_v50  ;;  %v9332_v40 = vpop.f32.mrb[119].mxu0  ;;  %13520 = vmatmul.mubr.msk.f32.gmra.mrb[174].mxu1 %vm10128_vm1, %v21155_v60  ;;  %v9886_v39 = vmax.f32 %v9758_v11, 0.0 }
 0x657   : > { %v9627_v19 = vmul.f32 %v19506_v21, %v15798_v56  ;;  %v15800_v43 = vadd.f32 %v9332_v40, %v21225_v59  ;;  %15570 = vmatpush1.bf16.msra.mxu1 %v19932_v42  ;;  %13521 = vmatprep.mubr.msk.f32.mxu1 %vm10133_vm2, %v21155_v60  ;;  %v19993_v56 = vmul.u32 2, %v9994_v15  ;;  %v21226_v59 = vld [vmem:[#allocation79_spill] sm:$0xff]  ;;  %v9887_v15 = vmax.f32 %v9759_v29, 0.0 }
 0x658   : > { %v9764_v3 = vadd.f32 %v19530_v14, %v9629_v18  ;;  %v9630_v25 = vmul.f32 %v19506_v21, %v15799_v35  ;;  %15571 = vmatprep.subr.bf16.mxu1 %v21118_v55  ;;  %v9889_v35 = vmax.f32 %v9761_v23, 0.0  ;;  %v9996_v23 = vadd.s32 232, %v21144_v34 }
 0x659   : > { %v9762_v13 = vadd.f32 %v19530_v14, %v9627_v19  ;;  %v9628_v9 = vmul.f32 %v19506_v21, %v15800_v43  ;;  %vm10145_vm8 = vcmp.eq.s32.totalorder %v21153_v51, %v19993_v56  ;;  %v20020_v29 = vmul.u32 2, %v9995_v17 }
 0x65a   : > { %v9892_v4 = vmax.f32 %v9764_v3, 0.0  ;;  %v9765_v48 = vadd.f32 %v19530_v14, %v9630_v25  ;;  %13522 = vmatmul.mubr.msk.f32.gmra.mrb[176].mxu1 %vm10132_vm3, %v21155_v60  ;;  %vm10144_vm9 = vcmp.eq.s32.totalorder %v21151_v45, %v19993_v56 }
 0x65b   : > { %v9890_v33 = vmax.f32 %v9762_v13, 0.0  ;;  %v9763_v18 = vadd.f32 %v19530_v14, %v9628_v9  ;;  %v15481_v50 = vpop.f32.mrb[120].mxu0  ;;  %13523 = vmatprep.mubr.msk.f32.mxu1 %vm10137_vm4, %v21155_v60  ;;  %v21227_v13 = vld [vmem:[#allocation80_spill] sm:$0xff]  ;;  %vm10149_vm10 = vcmp.eq.s32.totalorder %v21153_v51, %v20020_v29  ;;  %vm10148_vm11 = vcmp.eq.s32.totalorder %v21151_v45, %v20020_v29 }
 0x65c   : > { %v9960_v40 = vmax.f32 %v9888_v46, %v9892_v4  ;;  %v9893_v19 = vmax.f32 %v9765_v48, 0.0  ;;  %v15801_v43 = vadd.f32 %v15481_v50, %v21226_v59  ;;  %v9345_v3 = vpop.f32.mrb[121].mxu0  ;;  %v21229_v4 = vld [vmem:[#allocation82_spill] sm:$0xff]  ;;  %v21231_v59 = vld [vmem:[#allocation84_spill] sm:$0xff] }
 0x65d   : > { %v9958_v25 = vmax.f32 %v9886_v39, %v9890_v33  ;;  %v9891_v11 = vmax.f32 %v9763_v18, 0.0  ;;  %v15802_v42 = vadd.f32 %v9345_v3, %v21227_v13  ;;  %v15482_v9 = vpop.f32.mrb[122].mxu0 }
 0x65e   : > { %v9961_v57 = vmax.f32 %v9889_v35, %v9893_v19  ;;  %v15803_v5 = vadd.f32 %v15482_v9, %v21228_v53  ;;  %v9348_v58 = vpop.f32.mrb[123].mxu0  ;;  %13524 = vmatmul.mubr.msk.f32.gmra.mrb[178].mxu1 %vm10136_vm5, %v21155_v60  ;;  %v9633_v33 = vmul.f32 %v19506_v21, %v15801_v43  ;;  %v21230_v35 = vld [vmem:[#allocation83_spill] sm:$0xff] }
 0x65f   : > { %v9959_v46 = vmax.f32 %v9887_v15, %v9891_v11  ;;  %v15804_v48 = vadd.f32 %v9348_v58, %v21229_v4  ;;  %13525 = vmatprep.mubr.msk.f32.mxu1 %vm10141_vm6, %v21155_v60  ;;  %v20026_v58 = vmul.u32 2, %v9996_v23  ;;  %v9631_v18 = vmul.f32 %v19506_v21, %v15802_v42 }
 0x660   : > { %v20018_v53 = vpack.c.bf16 %v9961_v57, %v9960_v40  ;;  %v9997_v57 = vadd.s32 240, %v21144_v34  ;;  %v9634_v17 = vmul.f32 %v19506_v21, %v15803_v5  ;;  %v9768_v15 = vadd.f32 %v19530_v14, %v9633_v33 }
 0x661   : > { %v20022_v39 = vpack.c.bf16 %v9959_v46, %v9958_v25  ;;  %v9632_v42 = vmul.f32 %v19506_v21, %v15804_v48  ;;  %v21232_v25 = vld [vmem:[#allocation85_spill] sm:$0xff]  ;;  %vm10153_vm12 = vcmp.eq.s32.totalorder %v21153_v51, %v20026_v58  ;;  %v9766_v9 = vadd.f32 %v19530_v14, %v9631_v18  ;;  %v21233_v46 = vld [vmem:[#allocation86_spill] sm:$0xff] }
 0x662   : > { %13526 = vmatmul.mubr.msk.f32.gmra.mrb[180].mxu1 %vm10140_vm7, %v21155_v60  ;;  %v20054_v48 = vmul.u32 2, %v9997_v57  ;;  %v9769_v33 = vadd.f32 %v19530_v14, %v9634_v17  ;;  %v9998_v18 = vadd.s32 248, %v21144_v34  ;;  %vm10152_vm13 = vcmp.eq.s32.totalorder %v21151_v45, %v20026_v58 }
 0x663   : > { %v15485_v50 = vpop.f32.mrb[124].mxu0  ;;  %15573 = vmatpush1.bf16.msra.mxu1 %v20022_v39  ;;  %13527 = vmatprep.mubr.msk.f32.mxu1 %vm10145_vm8, %v21155_v60  ;;  %v9894_v17 = vmax.f32 %v9766_v9, 0.0 }
 0x664   : > { %v15805_v40 = vadd.f32 %v15485_v50, %v21230_v35  ;;  %v9361_v19 = vpop.f32.mrb[125].mxu0  ;;  %15574 = vmatprep.subr.bf16.mxu1 %v21118_v55  ;;  %vm10157_vm14 = vcmp.eq.s32.totalorder %v21153_v51, %v20054_v48  ;;  %vm10156_vm15 = vcmp.eq.s32.totalorder %v21151_v45, %v20054_v48 }
 0x665   : > { %v15806_v43 = vadd.f32 %v9361_v19, %v21231_v59  ;;  %v15486_v3 = vpop.f32.mrb[126].mxu0 }
 0x666   : > { %v9637_v5 = vmul.f32 %v19506_v21, %v15805_v40  ;;  %v15807_v11 = vadd.f32 %v15486_v3, %v21232_v25  ;;  %v9364_v13 = vpop.f32.mrb[127].mxu0  ;;  %13528 = vmatmul.mubr.msk.f32.gmra.mrb[182].mxu1 %vm10144_vm9, %v21155_v60  ;;  %v9767_v40 = vadd.f32 %v19530_v14, %v9632_v42  ;;  %v20078_v25 = vmul.u32 2, %v9998_v18 }
 0x667   : > { %v9635_v23 = vmul.f32 %v19506_v21, %v15806_v43  ;;  %v15808_v4 = vadd.f32 %v9364_v13, %v21233_v46  ;;  %15576 = vmatpush1.bf16.msra.mxu1 %v20018_v53  ;;  %13529 = vmatprep.mubr.msk.f32.mxu1 %vm10149_vm10, %v21155_v60  ;;  %v9896_v43 = vmax.f32 %v9768_v15, 0.0  ;;  %v20334_v18 = vadd.s32 1, %v19428_v63 }
 0x668   : > { %v9772_v50 = vadd.f32 %v19530_v14, %v9637_v5  ;;  %v9638_v35 = vmul.f32 %v19506_v21, %v15807_v11  ;;  %15577 = vmatprep.subr.bf16.mxu1 %v21118_v55  ;;  %v9895_v11 = vmax.f32 %v9767_v40, 0.0  ;;  %vm10161_vm0 = vcmp.eq.s32.totalorder %v21153_v51, %v20078_v25  ;;  %v21247_v40 = vld [vmem:[#allocation6_spill] sm:$0xff] }
 0x669   : > { %v9770_v19 = vadd.f32 %v19530_v14, %v9635_v23  ;;  %v9636_v59 = vmul.f32 %v19506_v21, %v15808_v4  ;;  %v9897_v21 = vmax.f32 %v9769_v33, 0.0  ;;  %v20089_v4 = vadd.s32 384, %v21151_v45 }
 0x66a   : > { %v9900_v3 = vmax.f32 %v9772_v50, 0.0  ;;  %v9773_v57 = vadd.f32 %v19530_v14, %v9638_v35  ;;  %13530 = vmatmul.mubr.msk.f32.gmra.mrb[184].mxu1 %vm10148_vm11, %v21155_v60  ;;  %vm10160_vm1 = vcmp.eq.s32.totalorder %v21151_v45, %v20078_v25  ;;  %v20099_v50 = vadd.s32 256, %v21151_v45 }
 0x66b   : > { %v9898_v34 = vmax.f32 %v9770_v19, 0.0  ;;  %v9771_v42 = vadd.f32 %v19530_v14, %v9636_v59  ;;  %13531 = vmatprep.mubr.msk.f32.mxu1 %vm10153_vm12, %v21155_v60  ;;  %vm10039_vm2 = vcmp.eq.s32.totalorder %v20089_v4, %v21150_v36  ;;  %vm10043_vm4 = vcmp.eq.s32.totalorder %v20089_v4, %v19428_v63 }
 0x66c   : > { %v9964_v15 = vmax.f32 %v9896_v43, %v9900_v3  ;;  %v9901_v5 = vmax.f32 %v9773_v57, 0.0  ;;  %vm10038_vm3 = vcmp.eq.s32.totalorder %v20099_v50, %v21150_v36  ;;  %vm10042_vm5 = vcmp.eq.s32.totalorder %v20099_v50, %v19428_v63 }
 0x66d   : > { %v9962_v13 = vmax.f32 %v9894_v17, %v9898_v34  ;;  %v9899_v23 = vmax.f32 %v9771_v42, 0.0  ;;  %vm10047_vm6 = vcmp.eq.s32.totalorder %v20089_v4, %v19435_v52  ;;  %vm10046_vm7 = vcmp.eq.s32.totalorder %v20099_v50, %v19435_v52 }
 0x66e   : > { %v9965_v9 = vmax.f32 %v9897_v21, %v9901_v5  ;;  %13532 = vmatmul.mubr.msk.f32.gmra.mrb[186].mxu1 %vm10152_vm13, %v21155_v60  ;;  %vm10051_vm8 = vcmp.eq.s32.totalorder %v20089_v4, %v19462_v37  ;;  %vm10050_vm9 = vcmp.eq.s32.totalorder %v20099_v50, %v19462_v37  ;;  %vm10055_vm10 = vcmp.eq.s32.totalorder %v20089_v4, %v19490_v6 }
 0x66f   : > { %v9963_v14 = vmax.f32 %v9895_v11, %v9899_v23  ;;  %13533 = vmatprep.mubr.msk.f32.mxu1 %vm10157_vm14, %v21155_v60  ;;  %vm10054_vm11 = vcmp.eq.s32.totalorder %v20099_v50, %v19490_v6  ;;  %vm10059_vm12 = vcmp.eq.s32.totalorder %v20089_v4, %v19499_v54  ;;  %vm10058_vm13 = vcmp.eq.s32.totalorder %v20099_v50, %v19499_v54 }
 0x670   : > { %v20086_v46 = vpack.c.bf16 %v9965_v9, %v9964_v15  ;;  %vm10063_vm14 = vcmp.eq.s32.totalorder %v20089_v4, %v19520_v28  ;;  %v20325_v35 = vadd.s32 1, %v21150_v36  ;;  %v20343_v36 = vadd.s32 1, %v19435_v52  ;;  %v21248_v52 = vld [vmem:[#allocation5_spill] sm:$0xff] }
 0x671   : > { %v20091_v33 = vpack.c.bf16 %v9963_v14, %v9962_v13  ;;  %v20354_v63 = vadd.s32 1, %v19462_v37  ;;  %v20365_v19 = vadd.s32 1, %v19490_v6  ;;  %v21249_v37 = vld [vmem:[#allocation8_spill] sm:$0xff]  ;;  %v20376_v59 = vadd.s32 1, %v19499_v54  ;;  %v21250_v6 = vld [vmem:[#allocation7_spill] sm:$0xff]  ;;  %v21251_v54 = vld [vmem:[#allocation10_spill] sm:$0xff] }
 0x672   : > { %13534 = vmatmul.mubr.msk.f32.gmra.mrb[188].mxu1 %vm10156_vm15, %v21155_v60  ;;  %vm10062_vm15 = vcmp.eq.s32.totalorder %v20099_v50, %v19520_v28  ;;  %v20387_v43 = vadd.s32 1, %v19520_v28  ;;  %v20398_v3 = vadd.s32 1, %v19558_v20  ;;  %v21252_v28 = vld [vmem:[#allocation9_spill] sm:$0xff]  ;;  %v20409_v57 = vadd.s32 1, %v19586_v16 }
 0x673   : > { %15579 = vmatpush1.bf16.msra.mxu1 %v20091_v33  ;;  %13535 = vmatprep.mubr.msk.f32.mxu1 %vm10161_vm0, %v21155_v60  ;;  %vm10067_vm0 = vcmp.eq.s32.totalorder %v20089_v4, %v19558_v20  ;;  %v20420_v17 = vadd.s32 1, %v19595_v7  ;;  %v20431_v34 = vadd.s32 1, %v19611_v32  ;;  %v20442_v42 = vadd.s32 1, %v19644_v47 }
 0x674   : > { %15580 = vmatprep.subr.bf16.mxu1 %v21118_v55  ;;  %v20453_v21 = vadd.s32 1, %v19672_v41  ;;  %v20464_v15 = vadd.s32 1, %v19681_v44  ;;  %v20545_v23 = vadd.s32 1, %v19853_v38 }
 0x676   : > { %13536 = vmatmul.mubr.msk.f32.gmra.mrb[190].mxu1 %vm10160_vm1, %v21155_v60  ;;  %vm10066_vm1 = vcmp.eq.s32.totalorder %v20099_v50, %v19558_v20  ;;  %v21253_v20 = vld [vmem:[#allocation15_spill] sm:$0xff] }
 0x677   : > { %15582 = vmatpush1.bf16.msra.mxu1 %v20086_v46  ;;  %13537 = vmatprep.mubr.msk.f32.mxu1 %vm10039_vm2, %v21155_v60  ;;  %vm10071_vm2 = vcmp.eq.s32.totalorder %v20089_v4, %v19586_v16 }
 0x678   : > { %15583 = vmatprep.subr.bf16.mxu1 %v21118_v55 }
 0x67a   : > { %13538 = vmatmul.mubr.msk.f32.vlgmr.msra.gmra.mrb[128].mxu1 %vm10038_vm3, %v21155_v60  ;;  %vm10070_vm3 = vcmp.eq.s32.totalorder %v20099_v50, %v19586_v16  ;;  %v21254_v16 = vld [vmem:[#allocation14_spill] sm:$0xff] }
 0x67b   : > { %15585 = vmatpush1.bf16.msra.mxu1 %v19189_v61  ;;  %13539 = vmatprep.mubr.msk.f32.mxu1 %vm10043_vm4, %v21155_v60  ;;  %vm10075_vm4 = vcmp.eq.s32.totalorder %v20089_v4, %v19595_v7  ;;  %v21235_v61 = vld [vmem:[#allocation2_spill] sm:$0xff] }
 0x67c   : > { %15586 = vmatprep.subr.bf16.mxu1 %v21118_v55 }
 0x67e   : > { %13540 = vmatmul.mubr.msk.f32.gmra.mrb[130].mxu1 %vm10042_vm5, %v21155_v60  ;;  %vm10074_vm5 = vcmp.eq.s32.totalorder %v20099_v50, %v19595_v7  ;;  %v21255_v7 = vld [vmem:[#allocation21_spill] sm:$0xff] }
 0x67f   : > { %15588 = vmatpush1.bf16.msra.mxu1 %v19187_v10  ;;  %13541 = vmatprep.mubr.msk.f32.mxu1 %vm10047_vm6, %v21155_v60  ;;  %vm10079_vm6 = vcmp.eq.s32.totalorder %v20089_v4, %v19611_v32  ;;  %v21234_v10 = vld [vmem:[#allocation11_spill] sm:$0xff] }
 0x680   : > { %15589 = vmatprep.subr.bf16.mxu1 %v21118_v55  ;;  %v20475_v5 = vadd.s32 1, %v21234_v10 }
 0x682   : > { %13542 = vmatmul.mubr.msk.f32.gmra.mrb[132].mxu1 %vm10046_vm7, %v21155_v60  ;;  %vm10078_vm7 = vcmp.eq.s32.totalorder %v20099_v50, %v19611_v32  ;;  %v21256_v32 = vld [vmem:[#allocation20_spill] sm:$0xff] }
 0x683   : > { %15591 = vmatpush1.bf16.msra.mxu1 %v19231_v22  ;;  %13543 = vmatprep.mubr.msk.f32.mxu1 %vm10051_vm8, %v21155_v60  ;;  %vm10083_vm8 = vcmp.eq.s32.totalorder %v20089_v4, %v19644_v47  ;;  %v21237_v22 = vld [vmem:[#allocation4_spill] sm:$0xff] }
 0x684   : > { %15592 = vmatprep.subr.bf16.mxu1 %v21118_v55 }
 0x686   : > { %13544 = vmatmul.mubr.msk.f32.gmra.mrb[134].mxu1 %vm10050_vm9, %v21155_v60  ;;  %vm10082_vm9 = vcmp.eq.s32.totalorder %v20099_v50, %v19644_v47  ;;  %v21257_v47 = vld [vmem:[#allocation87_spill] sm:$0xff] }
 0x687   : > { %15594 = vmatpush1.bf16.msra.mxu1 %v19229_v12  ;;  %13545 = vmatprep.mubr.msk.f32.mxu1 %vm10055_vm10, %v21155_v60  ;;  %vm10087_vm10 = vcmp.eq.s32.totalorder %v20089_v4, %v19672_v41  ;;  %v21236_v12 = vld [vmem:[#allocation12_spill] sm:$0xff] }
 0x688   : > { %15595 = vmatprep.subr.bf16.mxu1 %v21118_v55 }
 0x68a   : > { %13546 = vmatmul.mubr.msk.f32.gmra.mrb[136].mxu1 %vm10054_vm11, %v21155_v60  ;;  %vm10086_vm11 = vcmp.eq.s32.totalorder %v20099_v50, %v19672_v41  ;;  %v21258_v41 = vld [vmem:[#allocation24_spill] sm:$0xff] }
 0x68b   : > { %15597 = vmatpush1.bf16.msra.mxu1 %v19263_v26  ;;  %13547 = vmatprep.mubr.msk.f32.mxu1 %vm10059_vm12, %v21155_v60  ;;  %vm10091_vm12 = vcmp.eq.s32.totalorder %v20089_v4, %v19681_v44  ;;  %v21239_v26 = vld [vmem:[#allocation3_spill] sm:$0xff] }
 0x68c   : > { %15598 = vmatprep.subr.bf16.mxu1 %v21118_v55 }
 0x68e   : > { %13548 = vmatmul.mubr.msk.f32.gmra.mrb[138].mxu1 %vm10058_vm13, %v21155_v60  ;;  %vm10090_vm13 = vcmp.eq.s32.totalorder %v20099_v50, %v19681_v44  ;;  %v20486_v44 = vadd.s32 1, %v21236_v12 }
 0x68f   : > { %15600 = vmatpush1.bf16.msra.mxu1 %v19261_v30  ;;  %13549 = vmatprep.mubr.msk.f32.mxu1 %vm10063_vm14, %v21155_v60  ;;  %vm10095_vm14 = vcmp.eq.s32.totalorder %v20089_v4, %v21234_v10  ;;  %v21238_v30 = vld [vmem:[#allocation13_spill] sm:$0xff] }
 0x690   : > { %15601 = vmatprep.subr.bf16.mxu1 %v21118_v55 }
 0x692   : > { %13550 = vmatmul.mubr.msk.f32.gmra.mrb[140].mxu1 %vm10062_vm15, %v21155_v60  ;;  %vm10094_vm15 = vcmp.eq.s32.totalorder %v20099_v50, %v21234_v10 }
 0x693   : > { %15603 = vmatpush1.bf16.msra.mxu1 %v19295_v1  ;;  %13551 = vmatprep.mubr.msk.f32.mxu1 %vm10067_vm0, %v21155_v60  ;;  %vm10099_vm0 = vcmp.eq.s32.totalorder %v20089_v4, %v21236_v12  ;;  %v21241_v1 = vld [vmem:[#allocation17_spill] sm:$0xff] }
 0x694   : > { %15604 = vmatprep.subr.bf16.mxu1 %v21118_v55 }
 0x696   : > { %13552 = vmatmul.mubr.msk.f32.gmra.mrb[142].mxu1 %vm10066_vm1, %v21155_v60  ;;  %vm10098_vm1 = vcmp.eq.s32.totalorder %v20099_v50, %v21236_v12  ;;  %v20585_v12 = vadd.s32 1, %v19938_v24 }
 0x697   : > { %15606 = vmatpush1.bf16.msra.mxu1 %v19293_v49  ;;  %13553 = vmatprep.mubr.msk.f32.mxu1 %vm10071_vm2, %v21155_v60  ;;  %vm10103_vm2 = vcmp.eq.s32.totalorder %v20089_v4, %v21238_v30  ;;  %v21240_v49 = vld [vmem:[#allocation16_spill] sm:$0xff] }
 0x698   : > { %15607 = vmatprep.subr.bf16.mxu1 %v21118_v55 }
 0x69a   : > { %13554 = vmatmul.mubr.msk.f32.gmra.mrb[144].mxu1 %vm10070_vm3, %v21155_v60  ;;  %vm10102_vm3 = vcmp.eq.s32.totalorder %v20099_v50, %v21238_v30 }
 0x69b   : > { %15609 = vmatpush1.bf16.msra.mxu1 %v19327_v31  ;;  %13555 = vmatprep.mubr.msk.f32.mxu1 %vm10075_vm4, %v21155_v60  ;;  %vm10107_vm4 = vcmp.eq.s32.totalorder %v20089_v4, %v21240_v49  ;;  %v21243_v31 = vld [vmem:[#allocation19_spill] sm:$0xff] }
 0x69c   : > { %15610 = vmatprep.subr.bf16.mxu1 %v21118_v55  ;;  %v20536_v13 = vadd.s32 1, %v21243_v31 }
 0x69e   : > { %13556 = vmatmul.mubr.msk.f32.gmra.mrb[146].mxu1 %vm10074_vm5, %v21155_v60  ;;  %vm10106_vm5 = vcmp.eq.s32.totalorder %v20099_v50, %v21240_v49 }
 0x69f   : > { %15612 = vmatpush1.bf16.msra.mxu1 %v19325_v8  ;;  %13557 = vmatprep.mubr.msk.f32.mxu1 %vm10079_vm6, %v21155_v60  ;;  %vm10111_vm6 = vcmp.eq.s32.totalorder %v20089_v4, %v21241_v1  ;;  %v21242_v8 = vld [vmem:[#allocation18_spill] sm:$0xff] }
 0x6a0   : > { %15613 = vmatprep.subr.bf16.mxu1 %v21118_v55  ;;  %v20527_v11 = vadd.s32 1, %v21242_v8 }
 0x6a2   : > { %13558 = vmatmul.mubr.msk.f32.gmra.mrb[148].mxu1 %vm10078_vm7, %v21155_v60  ;;  %vm10110_vm7 = vcmp.eq.s32.totalorder %v20099_v50, %v21241_v1 }
 0x6a3   : > { %15615 = vmatpush1.bf16.msra.mxu1 %v19359_v62  ;;  %13559 = vmatprep.mubr.msk.f32.mxu1 %vm10083_vm8, %v21155_v60  ;;  %vm10115_vm8 = vcmp.eq.s32.totalorder %v20089_v4, %v21242_v8  ;;  %v21245_v62 = vld [vmem:[#allocation23_spill] sm:$0xff] }
 0x6a4   : > { %15616 = vmatprep.subr.bf16.mxu1 %v21118_v55 }
 0x6a6   : > { %13560 = vmatmul.mubr.msk.f32.gmra.mrb[150].mxu1 %vm10082_vm9, %v21155_v60  ;;  %vm10114_vm9 = vcmp.eq.s32.totalorder %v20099_v50, %v21242_v8 }
 0x6a7   : > { %15618 = vmatpush1.bf16.msra.mxu1 %v19357_v2  ;;  %13561 = vmatprep.mubr.msk.f32.mxu1 %vm10087_vm10, %v21155_v60  ;;  %vm10119_vm10 = vcmp.eq.s32.totalorder %v20089_v4, %v21243_v31  ;;  %v21244_v2 = vld [vmem:[#allocation22_spill] sm:$0xff] }
 0x6a8   : > { %15619 = vmatprep.subr.bf16.mxu1 %v21118_v55  ;;  %v20554_v9 = vadd.s32 1, %v21244_v2 }
 0x6aa   : > { %13562 = vmatmul.mubr.msk.f32.gmra.mrb[152].mxu1 %vm10086_vm11, %v21155_v60  ;;  %vm10118_vm11 = vcmp.eq.s32.totalorder %v20099_v50, %v21243_v31  ;;  %v20618_v31 = vadd.s32 1, %v20020_v29 }
 0x6ab   : > { %15621 = vmatpush1.bf16.msra.mxu1 %v19391_v0  ;;  %13563 = vmatprep.mubr.msk.f32.mxu1 %vm10091_vm12, %v21155_v60  ;;  %vm10123_vm12 = vcmp.eq.s32.totalorder %v20089_v4, %v19853_v38  ;;  %v21246_v0 = vld [vmem:[#allocation25_spill] sm:$0xff] }
 0x6ac   : > { %15622 = vmatprep.subr.bf16.mxu1 %v21118_v55 }
 0x6ae   : > { %13564 = vmatmul.mubr.msk.f32.gmra.mrb[154].mxu1 %vm10090_vm13, %v21155_v60  ;;  %vm10122_vm13 = vcmp.eq.s32.totalorder %v20099_v50, %v19853_v38  ;;  %v20563_v38 = vadd.s32 1, %v21245_v62 }
 0x6af   : > { %15624 = vmatpush1.bf16.msra.mxu1 %v21235_v61  ;;  %13565 = vmatprep.mubr.msk.f32.mxu1 %vm10095_vm14, %v21155_v60  ;;  %vm10127_vm14 = vcmp.eq.s32.totalorder %v20089_v4, %v21244_v2 }
 0x6b0   : > { %15625 = vmatprep.subr.bf16.mxu1 %v21118_v55 }
 0x6b2   : > { %13566 = vmatmul.mubr.msk.f32.gmra.mrb[156].mxu1 %vm10094_vm15, %v21155_v60  ;;  %vm10126_vm15 = vcmp.eq.s32.totalorder %v20099_v50, %v21244_v2 }
 0x6b3   : > { %15627 = vmatpush1.bf16.msra.mxu1 %v21237_v22  ;;  %13567 = vmatprep.mubr.msk.f32.mxu1 %vm10099_vm0, %v21155_v60  ;;  %vm10131_vm0 = vcmp.eq.s32.totalorder %v20089_v4, %v21245_v62 }
 0x6b4   : > { %15628 = vmatprep.subr.bf16.mxu1 %v21118_v55 }
 0x6b6   : > { %13568 = vmatmul.mubr.msk.f32.gmra.mrb[158].mxu1 %vm10098_vm1, %v21155_v60  ;;  %vm10130_vm1 = vcmp.eq.s32.totalorder %v20099_v50, %v21245_v62  ;;  %v20629_v62 = vadd.s32 1, %v20026_v58 }
 0x6b7   : > { %15630 = vmatpush1.bf16.msra.mxu1 %v21239_v26  ;;  %13569 = vmatprep.mubr.msk.f32.mxu1 %vm10103_vm2, %v21155_v60  ;;  %vm10135_vm2 = vcmp.eq.s32.totalorder %v20089_v4, %v21246_v0  ;;  %v20596_v26 = vadd.s32 1, %v19959_v27 }
 0x6b8   : > { %15631 = vmatprep.subr.bf16.mxu1 %v21118_v55 }
 0x6ba   : > { %13570 = vmatmul.mubr.msk.f32.gmra.mrb[160].mxu1 %vm10102_vm3, %v21155_v60  ;;  %vm10134_vm3 = vcmp.eq.s32.totalorder %v20099_v50, %v21246_v0 }
 0x6bb   : > { %13571 = vmatprep.mubr.msk.f32.mxu1 %vm10107_vm4, %v21155_v60  ;;  %vm10139_vm4 = vcmp.eq.s32.totalorder %v20089_v4, %v19938_v24 }
 0x6be   : > { %13572 = vmatmul.mubr.msk.f32.gmra.mrb[162].mxu1 %vm10106_vm5, %v21155_v60  ;;  %vm10138_vm5 = vcmp.eq.s32.totalorder %v20099_v50, %v19938_v24 }
 0x6bf   : > { %13573 = vmatprep.mubr.msk.f32.mxu1 %vm10111_vm6, %v21155_v60  ;;  %vm10143_vm6 = vcmp.eq.s32.totalorder %v20089_v4, %v19959_v27 }
 0x6c2   : > { %13574 = vmatmul.mubr.msk.f32.gmra.mrb[164].mxu1 %vm10110_vm7, %v21155_v60  ;;  %vm10142_vm7 = vcmp.eq.s32.totalorder %v20099_v50, %v19959_v27 }
 0x6c3   : > { %13575 = vmatprep.mubr.msk.f32.mxu1 %vm10115_vm8, %v21155_v60  ;;  %vm10147_vm8 = vcmp.eq.s32.totalorder %v20089_v4, %v19993_v56 }
 0x6c6   : > { %13576 = vmatmul.mubr.msk.f32.gmra.mrb[166].mxu1 %vm10114_vm9, %v21155_v60  ;;  %vm10146_vm9 = vcmp.eq.s32.totalorder %v20099_v50, %v19993_v56 }
 0x6c7   : > { %13577 = vmatprep.mubr.msk.f32.mxu1 %vm10119_vm10, %v21155_v60  ;;  %vm10151_vm10 = vcmp.eq.s32.totalorder %v20089_v4, %v20020_v29 }
 0x6ca   : > { %13578 = vmatmul.mubr.msk.f32.gmra.mrb[168].mxu1 %vm10118_vm11, %v21155_v60  ;;  %vm10150_vm11 = vcmp.eq.s32.totalorder %v20099_v50, %v20020_v29 }
 0x6cb   : > { %13579 = vmatprep.mubr.msk.f32.mxu1 %vm10123_vm12, %v21155_v60  ;;  %vm10155_vm12 = vcmp.eq.s32.totalorder %v20089_v4, %v20026_v58 }
 0x6ce   : > { %13580 = vmatmul.mubr.msk.f32.gmra.mrb[170].mxu1 %vm10122_vm13, %v21155_v60  ;;  %vm10154_vm13 = vcmp.eq.s32.totalorder %v20099_v50, %v20026_v58 }
 0x6cf   : > { %13581 = vmatprep.mubr.msk.f32.mxu1 %vm10127_vm14, %v21155_v60  ;;  %vm10159_vm14 = vcmp.eq.s32.totalorder %v20089_v4, %v20054_v48 }
 0x6d2   : > { %13582 = vmatmul.mubr.msk.f32.gmra.mrb[172].mxu1 %vm10126_vm15, %v21155_v60  ;;  %vm10158_vm15 = vcmp.eq.s32.totalorder %v20099_v50, %v20054_v48 }
 0x6d3   : > { %13583 = vmatprep.mubr.msk.f32.mxu1 %vm10131_vm0, %v21155_v60  ;;  %vm10163_vm0 = vcmp.eq.s32.totalorder %v20089_v4, %v20078_v25 }
 0x6d6   : > { %13584 = vmatmul.mubr.msk.f32.gmra.mrb[174].mxu1 %vm10130_vm1, %v21155_v60  ;;  %vm10162_vm1 = vcmp.eq.s32.totalorder %v20099_v50, %v20078_v25 }
 0x6d7   : > { %13585 = vmatprep.mubr.msk.f32.mxu1 %vm10135_vm2, %v21155_v60  ;;  %vm10453_vm2 = vcmp.eq.s32.totalorder %v21153_v51, %v20325_v35 }
 0x6da   : > { %13586 = vmatmul.mubr.msk.f32.gmra.mrb[176].mxu1 %vm10134_vm3, %v21155_v60  ;;  %vm10452_vm3 = vcmp.eq.s32.totalorder %v21151_v45, %v20325_v35 }
 0x6db   : > { %13587 = vmatprep.mubr.msk.f32.mxu1 %vm10139_vm4, %v21155_v60  ;;  %vm10457_vm4 = vcmp.eq.s32.totalorder %v21153_v51, %v20334_v18 }
 0x6de   : > { %13588 = vmatmul.mubr.msk.f32.gmra.mrb[178].mxu1 %vm10138_vm5, %v21155_v60  ;;  %vm10456_vm5 = vcmp.eq.s32.totalorder %v21151_v45, %v20334_v18 }
 0x6df   : > { %13589 = vmatprep.mubr.msk.f32.mxu1 %vm10143_vm6, %v21155_v60  ;;  %vm10461_vm6 = vcmp.eq.s32.totalorder %v21153_v51, %v20343_v36 }
 0x6e2   : > { %13590 = vmatmul.mubr.msk.f32.gmra.mrb[180].mxu1 %vm10142_vm7, %v21155_v60  ;;  %vm10460_vm7 = vcmp.eq.s32.totalorder %v21151_v45, %v20343_v36 }
 0x6e3   : > { %13591 = vmatprep.mubr.msk.f32.mxu1 %vm10147_vm8, %v21155_v60  ;;  %vm10465_vm8 = vcmp.eq.s32.totalorder %v21153_v51, %v20354_v63 }
 0x6e6   : > { %13592 = vmatmul.mubr.msk.f32.gmra.mrb[182].mxu1 %vm10146_vm9, %v21155_v60  ;;  %vm10464_vm9 = vcmp.eq.s32.totalorder %v21151_v45, %v20354_v63 }
 0x6e7   : > { %13593 = vmatprep.mubr.msk.f32.mxu1 %vm10151_vm10, %v21155_v60  ;;  %vm10469_vm10 = vcmp.eq.s32.totalorder %v21153_v51, %v20365_v19 }
 0x6ea   : > { %13594 = vmatmul.mubr.msk.f32.gmra.mrb[184].mxu1 %vm10150_vm11, %v21155_v60  ;;  %vm10468_vm11 = vcmp.eq.s32.totalorder %v21151_v45, %v20365_v19 }
 0x6eb   : > { %13595 = vmatprep.mubr.msk.f32.mxu1 %vm10155_vm12, %v21155_v60  ;;  %vm10473_vm12 = vcmp.eq.s32.totalorder %v21153_v51, %v20376_v59 }
 0x6ee   : > { %13596 = vmatmul.mubr.msk.f32.gmra.mrb[186].mxu1 %vm10154_vm13, %v21155_v60  ;;  %vm10472_vm13 = vcmp.eq.s32.totalorder %v21151_v45, %v20376_v59 }
 0x6ef   : > { %13597 = vmatprep.mubr.msk.f32.mxu1 %vm10159_vm14, %v21155_v60  ;;  %vm10477_vm14 = vcmp.eq.s32.totalorder %v21153_v51, %v20387_v43 }
 0x6f2   : > { %13598 = vmatmul.mubr.msk.f32.gmra.mrb[188].mxu1 %vm10158_vm15, %v21155_v60  ;;  %vm10476_vm15 = vcmp.eq.s32.totalorder %v21151_v45, %v20387_v43 }
 0x6f3   : > { %13599 = vmatprep.mubr.msk.f32.mxu1 %vm10163_vm0, %v21155_v60  ;;  %vm10481_vm0 = vcmp.eq.s32.totalorder %v21153_v51, %v20398_v3 }
 0x6f6   : > { %13600 = vmatmul.mubr.msk.f32.gmra.mrb[190].mxu1 %vm10162_vm1, %v21155_v60  ;;  %vm10480_vm1 = vcmp.eq.s32.totalorder %v21151_v45, %v20398_v3 }
 0x6f7   : > { %13601 = vmatprep.mubr.msk.f32.mxu1 %vm10453_vm2, %v21155_v60  ;;  %vm10485_vm2 = vcmp.eq.s32.totalorder %v21153_v51, %v20409_v57 }
 0x6fa   : > { %13602 = vmatmul.mubr.msk.f32.vlgmr.msra.gmra.mrb[192].mxu1 %vm10452_vm3, %v21155_v60  ;;  %vm10484_vm3 = vcmp.eq.s32.totalorder %v21151_v45, %v20409_v57 }
 0x6fb   : > { %15633 = vmatpush1.bf16.msra.mxu1 %v21247_v40  ;;  %13603 = vmatprep.mubr.msk.f32.mxu1 %vm10457_vm4, %v21155_v60  ;;  %vm10489_vm4 = vcmp.eq.s32.totalorder %v21153_v51, %v20420_v17  ;;  %v20640_v40 = vadd.s32 1, %v20054_v48 }
 0x6fc   : > { %15634 = vmatprep.subr.bf16.mxu1 %v21118_v55 }
 0x6fe   : > { %13604 = vmatmul.mubr.msk.f32.gmra.mrb[194].mxu1 %vm10456_vm5, %v21155_v60  ;;  %vm10488_vm5 = vcmp.eq.s32.totalorder %v21151_v45, %v20420_v17 }
 0x6ff   : > { %15636 = vmatpush1.bf16.msra.mxu1 %v21248_v52  ;;  %13605 = vmatprep.mubr.msk.f32.mxu1 %vm10461_vm6, %v21155_v60  ;;  %vm10493_vm6 = vcmp.eq.s32.totalorder %v21153_v51, %v20431_v34 }
 0x700   : > { %15637 = vmatprep.subr.bf16.mxu1 %v21118_v55 }
 0x702   : > { %13606 = vmatmul.mubr.msk.f32.gmra.mrb[196].mxu1 %vm10460_vm7, %v21155_v60  ;;  %vm10492_vm7 = vcmp.eq.s32.totalorder %v21151_v45, %v20431_v34 }
 0x703   : > { %15639 = vmatpush1.bf16.msra.mxu1 %v21249_v37  ;;  %13607 = vmatprep.mubr.msk.f32.mxu1 %vm10465_vm8, %v21155_v60  ;;  %vm10497_vm8 = vcmp.eq.s32.totalorder %v21153_v51, %v20442_v42  ;;  %v20651_v37 = vadd.s32 1, %v20078_v25 }
 0x704   : > { %15640 = vmatprep.subr.bf16.mxu1 %v21118_v55 }
 0x706   : > { %13608 = vmatmul.mubr.msk.f32.gmra.mrb[198].mxu1 %vm10464_vm9, %v21155_v60  ;;  %vm10496_vm9 = vcmp.eq.s32.totalorder %v21151_v45, %v20442_v42 }
 0x707   : > { %15642 = vmatpush1.bf16.msra.mxu1 %v21250_v6  ;;  %13609 = vmatprep.mubr.msk.f32.mxu1 %vm10469_vm10, %v21155_v60  ;;  %vm10501_vm10 = vcmp.eq.s32.totalorder %v21153_v51, %v20453_v21 }
 0x708   : > { %15643 = vmatprep.subr.bf16.mxu1 %v21118_v55 }
 0x70a   : > { %13610 = vmatmul.mubr.msk.f32.gmra.mrb[200].mxu1 %vm10468_vm11, %v21155_v60  ;;  %vm10500_vm11 = vcmp.eq.s32.totalorder %v21151_v45, %v20453_v21 }
 0x70b   : > { %15645 = vmatpush1.bf16.msra.mxu1 %v21251_v54  ;;  %13611 = vmatprep.mubr.msk.f32.mxu1 %vm10473_vm12, %v21155_v60  ;;  %vm10505_vm12 = vcmp.eq.s32.totalorder %v21153_v51, %v20464_v15 }
 0x70c   : > { %15646 = vmatprep.subr.bf16.mxu1 %v21118_v55 }
 0x70e   : > { %13612 = vmatmul.mubr.msk.f32.gmra.mrb[202].mxu1 %vm10472_vm13, %v21155_v60  ;;  %vm10504_vm13 = vcmp.eq.s32.totalorder %v21151_v45, %v20464_v15 }
 0x70f   : > { %15648 = vmatpush1.bf16.msra.mxu1 %v21252_v28  ;;  %13613 = vmatprep.mubr.msk.f32.mxu1 %vm10477_vm14, %v21155_v60  ;;  %vm10509_vm14 = vcmp.eq.s32.totalorder %v21153_v51, %v20475_v5 }
 0x710   : > { %15649 = vmatprep.subr.bf16.mxu1 %v21118_v55 }
 0x712   : > { %13614 = vmatmul.mubr.msk.f32.gmra.mrb[204].mxu1 %vm10476_vm15, %v21155_v60  ;;  %vm10508_vm15 = vcmp.eq.s32.totalorder %v21151_v45, %v20475_v5 }
 0x713   : > { %15651 = vmatpush1.bf16.msra.mxu1 %v21253_v20  ;;  %13615 = vmatprep.mubr.msk.f32.mxu1 %vm10481_vm0, %v21155_v60  ;;  %vm10513_vm0 = vcmp.eq.s32.totalorder %v21153_v51, %v20486_v44 }
 0x714   : > { %15652 = vmatprep.subr.bf16.mxu1 %v21118_v55 }
 0x716   : > { %13616 = vmatmul.mubr.msk.f32.gmra.mrb[206].mxu1 %vm10480_vm1, %v21155_v60  ;;  %vm10512_vm1 = vcmp.eq.s32.totalorder %v21151_v45, %v20486_v44 }
 0x717   : > { %15654 = vmatpush1.bf16.msra.mxu1 %v21254_v16  ;;  %13617 = vmatprep.mubr.msk.f32.mxu1 %vm10485_vm2, %v21155_v60 }
 0x718   : > { %15655 = vmatprep.subr.bf16.mxu1 %v21118_v55 }
 0x71a   : > { %13618 = vmatmul.mubr.msk.f32.gmra.mrb[208].mxu1 %vm10484_vm3, %v21155_v60 }
 0x71b   : > { %15657 = vmatpush1.bf16.msra.mxu1 %v21255_v7  ;;  %13619 = vmatprep.mubr.msk.f32.mxu1 %vm10489_vm4, %v21155_v60 }
 0x71c   : > { %15658 = vmatprep.subr.bf16.mxu1 %v21118_v55 }
 0x71e   : > { %13620 = vmatmul.mubr.msk.f32.gmra.mrb[210].mxu1 %vm10488_vm5, %v21155_v60 }
 0x71f   : > { %15660 = vmatpush1.bf16.msra.mxu1 %v21256_v32  ;;  %13621 = vmatprep.mubr.msk.f32.mxu1 %vm10493_vm6, %v21155_v60 }
 0x720   : > { %15661 = vmatprep.subr.bf16.mxu1 %v21118_v55 }
 0x722   : > { %13622 = vmatmul.mubr.msk.f32.gmra.mrb[212].mxu1 %vm10492_vm7, %v21155_v60 }
 0x723   : > { %15663 = vmatpush1.bf16.msra.mxu1 %v21257_v47  ;;  %13623 = vmatprep.mubr.msk.f32.mxu1 %vm10497_vm8, %v21155_v60  ;;  %vm10529_vm8 = vcmp.eq.s32.totalorder %v21153_v51, %v20527_v11 }
 0x724   : > { %15664 = vmatprep.subr.bf16.mxu1 %v21118_v55 }
 0x726   : > { %13624 = vmatmul.mubr.msk.f32.gmra.mrb[214].mxu1 %vm10496_vm9, %v21155_v60  ;;  %vm10528_vm9 = vcmp.eq.s32.totalorder %v21151_v45, %v20527_v11 }
 0x727   : > { %15666 = vmatpush1.bf16.msra.mxu1 %v21258_v41  ;;  %13625 = vmatprep.mubr.msk.f32.mxu1 %vm10501_vm10, %v21155_v60  ;;  %vm10533_vm10 = vcmp.eq.s32.totalorder %v21153_v51, %v20536_v13 }
 0x728   : > { %15667 = vmatprep.subr.bf16.mxu1 %v21118_v55 }
 0x72a   : > { %13626 = vmatmul.mubr.msk.f32.gmra.mrb[216].mxu1 %vm10500_vm11, %v21155_v60  ;;  %vm10532_vm11 = vcmp.eq.s32.totalorder %v21151_v45, %v20536_v13 }
 0x72b   : > { %15669 = vmatpush1.bf16.msra.mxu1 %v20022_v39  ;;  %13627 = vmatprep.mubr.msk.f32.mxu1 %vm10505_vm12, %v21155_v60  ;;  %v20497_v39 = vadd.s32 1, %v21238_v30  ;;  %vm10537_vm12 = vcmp.eq.s32.totalorder %v21153_v51, %v20545_v23 }
 0x72c   : > { %15670 = vmatprep.subr.bf16.mxu1 %v21118_v55 }
 0x72d   : > { %vm10517_vm2 = vcmp.eq.s32.totalorder %v21153_v51, %v20497_v39  ;;  %vm10516_vm3 = vcmp.eq.s32.totalorder %v21151_v45, %v20497_v39 }
 0x72e   : > { %13628 = vmatmul.mubr.msk.f32.gmra.mrb[218].mxu1 %vm10504_vm13, %v21155_v60  ;;  %vm10536_vm13 = vcmp.eq.s32.totalorder %v21151_v45, %v20545_v23 }
 0x72f   : > { %15672 = vmatpush1.bf16.msra.mxu1 %v20018_v53  ;;  %13629 = vmatprep.mubr.msk.f32.mxu1 %vm10509_vm14, %v21155_v60  ;;  %v20508_v53 = vadd.s32 1, %v21240_v49  ;;  %vm10541_vm14 = vcmp.eq.s32.totalorder %v21153_v51, %v20554_v9 }
 0x730   : > { %15673 = vmatprep.subr.bf16.mxu1 %v21118_v55 }
 0x731   : > { %vm10521_vm4 = vcmp.eq.s32.totalorder %v21153_v51, %v20508_v53  ;;  %vm10520_vm5 = vcmp.eq.s32.totalorder %v21151_v45, %v20508_v53 }
 0x732   : > { %13630 = vmatmul.mubr.msk.f32.gmra.mrb[220].mxu1 %vm10508_vm15, %v21155_v60  ;;  %vm10540_vm15 = vcmp.eq.s32.totalorder %v21151_v45, %v20554_v9 }
 0x733   : > { %15675 = vmatpush1.bf16.msra.mxu1 %v20091_v33  ;;  %13631 = vmatprep.mubr.msk.f32.mxu1 %vm10513_vm0, %v21155_v60  ;;  %vm10545_vm0 = vcmp.eq.s32.totalorder %v21153_v51, %v20563_v38  ;;  %v20574_v33 = vadd.s32 1, %v21246_v0 }
 0x734   : > { %15676 = vmatprep.subr.bf16.mxu1 %v21118_v55  ;;  %v20518_v55 = vadd.s32 1, %v21241_v1  ;;  %v20607_v1 = vadd.s32 1, %v19993_v56 }
 0x736   : > { %13632 = vmatmul.mubr.msk.f32.gmra.mrb[222].mxu1 %vm10512_vm1, %v21155_v60  ;;  %vm10525_vm6 = vcmp.eq.s32.totalorder %v21153_v51, %v20518_v55  ;;  %vm10524_vm7 = vcmp.eq.s32.totalorder %v21151_v45, %v20518_v55  ;;  %vm10544_vm1 = vcmp.eq.s32.totalorder %v21151_v45, %v20563_v38 }
 0x737   : > { %15678 = vmatpush1.bf16.msra.mxu1 %v20086_v46  ;;  %13633 = vmatprep.mubr.msk.f32.mxu1 %vm10517_vm2, %v21155_v60  ;;  %vm10549_vm2 = vcmp.eq.s32.totalorder %v21153_v51, %v20574_v33 }
 0x73a   : > { %13634 = vmatmul.mubr.msk.f32.gmra.mrb[224].mxu1 %vm10516_vm3, %v21155_v60  ;;  %vm10548_vm3 = vcmp.eq.s32.totalorder %v21151_v45, %v20574_v33 }
 0x73b   : > { %13635 = vmatprep.mubr.msk.f32.mxu1 %vm10521_vm4, %v21155_v60  ;;  %vm10553_vm4 = vcmp.eq.s32.totalorder %v21153_v51, %v20585_v12 }
 0x73e   : > { %13636 = vmatmul.mubr.msk.f32.gmra.mrb[226].mxu1 %vm10520_vm5, %v21155_v60  ;;  %vm10552_vm5 = vcmp.eq.s32.totalorder %v21151_v45, %v20585_v12 }
 0x73f   : > { %13637 = vmatprep.mubr.msk.f32.mxu1 %vm10525_vm6, %v21155_v60  ;;  %vm10557_vm6 = vcmp.eq.s32.totalorder %v21153_v51, %v20596_v26 }
 0x742   : > { %13638 = vmatmul.mubr.msk.f32.gmra.mrb[228].mxu1 %vm10524_vm7, %v21155_v60  ;;  %vm10556_vm7 = vcmp.eq.s32.totalorder %v21151_v45, %v20596_v26 }
 0x743   : > { %13639 = vmatprep.mubr.msk.f32.mxu1 %vm10529_vm8, %v21155_v60  ;;  %vm10561_vm8 = vcmp.eq.s32.totalorder %v21153_v51, %v20607_v1 }
 0x746   : > { %13640 = vmatmul.mubr.msk.f32.gmra.mrb[230].mxu1 %vm10528_vm9, %v21155_v60  ;;  %vm10560_vm9 = vcmp.eq.s32.totalorder %v21151_v45, %v20607_v1 }
 0x747   : > { %13641 = vmatprep.mubr.msk.f32.mxu1 %vm10533_vm10, %v21155_v60  ;;  %vm10565_vm10 = vcmp.eq.s32.totalorder %v21153_v51, %v20618_v31 }
 0x74a   : > { %13642 = vmatmul.mubr.msk.f32.gmra.mrb[232].mxu1 %vm10532_vm11, %v21155_v60  ;;  %vm10564_vm11 = vcmp.eq.s32.totalorder %v21151_v45, %v20618_v31 }
 0x74b   : > { %13643 = vmatprep.mubr.msk.f32.mxu1 %vm10537_vm12, %v21155_v60  ;;  %vm10569_vm12 = vcmp.eq.s32.totalorder %v21153_v51, %v20629_v62 }
 0x74d   : > { %v20565_v14 = vpop.f32.mrb[128].mxu1 }
 0x74e   : > { %v11129_v46 = vpop.f32.mrb[129].mxu1  ;;  %13644 = vmatmul.mubr.msk.f32.gmra.mrb[234].mxu1 %vm10536_vm13, %v21155_v60  ;;  %vm10568_vm13 = vcmp.eq.s32.totalorder %v21151_v45, %v20629_v62 }
 0x74f   : > { %13645 = vmatprep.mubr.msk.f32.mxu1 %vm10541_vm14, %v21155_v60  ;;  %vm10573_vm14 = vcmp.eq.s32.totalorder %v21153_v51, %v20640_v40 }
 0x751   : > { %v20576_v10 = vpop.f32.mrb[130].mxu1 }
 0x752   : > { %v11134_v61 = vpop.f32.mrb[131].mxu1  ;;  %13646 = vmatmul.mubr.msk.f32.gmra.mrb[236].mxu1 %vm10540_vm15, %v21155_v60  ;;  %vm10572_vm15 = vcmp.eq.s32.totalorder %v21151_v45, %v20640_v40 }
 0x753   : > { %13647 = vmatprep.mubr.msk.f32.mxu1 %vm10545_vm0, %v21155_v60  ;;  %vm10577_vm0 = vcmp.eq.s32.totalorder %v21153_v51, %v20651_v37 }
 0x755   : > { %v20587_v22 = vpop.f32.mrb[132].mxu1 }
 0x756   : > { %v11139_v30 = vpop.f32.mrb[133].mxu1  ;;  %13648 = vmatmul.mubr.msk.f32.gmra.mrb[238].mxu1 %vm10544_vm1, %v21155_v60  ;;  %vm10576_vm1 = vcmp.eq.s32.totalorder %v21151_v45, %v20651_v37 }
 0x757   : > { %13649 = vmatprep.mubr.msk.f32.mxu1 %vm10549_vm2, %v21155_v60  ;;  %vm10455_vm2 = vcmp.eq.s32.totalorder %v20089_v4, %v20325_v35 }
 0x759   : > { %v20598_v49 = vpop.f32.mrb[134].mxu1 }
 0x75a   : > { %v11144_v24 = vpop.f32.mrb[135].mxu1  ;;  %13650 = vmatmul.mubr.msk.f32.gmra.mrb[240].mxu1 %vm10548_vm3, %v21155_v60  ;;  %vm10454_vm3 = vcmp.eq.s32.totalorder %v20099_v50, %v20325_v35 }
 0x75b   : > { %13651 = vmatprep.mubr.msk.f32.mxu1 %vm10553_vm4, %v21155_v60  ;;  %vm10459_vm4 = vcmp.eq.s32.totalorder %v20089_v4, %v20334_v18 }
 0x75d   : > { %v20609_v8 = vpop.f32.mrb[136].mxu1 }
 0x75e   : > { %v11149_v27 = vpop.f32.mrb[137].mxu1  ;;  %13652 = vmatmul.mubr.msk.f32.gmra.mrb[242].mxu1 %vm10552_vm5, %v21155_v60  ;;  %vm10458_vm5 = vcmp.eq.s32.totalorder %v20099_v50, %v20334_v18 }
 0x75f   : > { %13653 = vmatprep.mubr.msk.f32.mxu1 %vm10557_vm6, %v21155_v60  ;;  %vm10463_vm6 = vcmp.eq.s32.totalorder %v20089_v4, %v20343_v36 }
 0x761   : > { %v20620_v2 = vpop.f32.mrb[138].mxu1 }
 0x762   : > { %v11154_v56 = vpop.f32.mrb[139].mxu1  ;;  %13654 = vmatmul.mubr.msk.f32.gmra.mrb[244].mxu1 %vm10556_vm7, %v21155_v60  ;;  %vm10462_vm7 = vcmp.eq.s32.totalorder %v20099_v50, %v20343_v36 }
 0x763   : > { %13655 = vmatprep.mubr.msk.f32.mxu1 %vm10561_vm8, %v21155_v60  ;;  %vm10467_vm8 = vcmp.eq.s32.totalorder %v20089_v4, %v20354_v63 }
 0x765   : > { %v20631_v0 = vpop.f32.mrb[140].mxu1 }
 0x766   : > { %v11159_v29 = vpop.f32.mrb[141].mxu1  ;;  %13656 = vmatmul.mubr.msk.f32.gmra.mrb[246].mxu1 %vm10560_vm9, %v21155_v60  ;;  %vm10466_vm9 = vcmp.eq.s32.totalorder %v20099_v50, %v20354_v63 }
 0x767   : > { %13657 = vmatprep.mubr.msk.f32.mxu1 %vm10565_vm10, %v21155_v60  ;;  %vm10471_vm10 = vcmp.eq.s32.totalorder %v20089_v4, %v20365_v19 }
 0x769   : > { %v20642_v52 = vpop.f32.mrb[142].mxu1 }
 0x76a   : > { %v11164_v58 = vpop.f32.mrb[143].mxu1  ;;  %13658 = vmatmul.mubr.msk.f32.gmra.mrb[248].mxu1 %vm10564_vm11, %v21155_v60  ;;  %vm10470_vm11 = vcmp.eq.s32.totalorder %v20099_v50, %v20365_v19 }
 0x76b   : > { %13659 = vmatprep.mubr.msk.f32.mxu1 %vm10569_vm12, %v21155_v60  ;;  %vm10475_vm12 = vcmp.eq.s32.totalorder %v20089_v4, %v20376_v59 }
 0x76d   : > { %v20653_v6 = vpop.f32.mrb[144].mxu1 }
 0x76e   : > { %v11169_v48 = vpop.f32.mrb[145].mxu1  ;;  %13660 = vmatmul.mubr.msk.f32.gmra.mrb[250].mxu1 %vm10568_vm13, %v21155_v60  ;;  %vm10474_vm13 = vcmp.eq.s32.totalorder %v20099_v50, %v20376_v59 }
 0x76f   : > { %13661 = vmatprep.mubr.msk.f32.mxu1 %vm10573_vm14, %v21155_v60  ;;  %vm10479_vm14 = vcmp.eq.s32.totalorder %v20089_v4, %v20387_v43 }
 0x771   : > { %v20661_v54 = vpop.f32.mrb[146].mxu1 }
 0x772   : > { %v11174_v28 = vpop.f32.mrb[147].mxu1  ;;  %13662 = vmatmul.mubr.msk.f32.gmra.mrb[252].mxu1 %vm10572_vm15, %v21155_v60  ;;  %vm10478_vm15 = vcmp.eq.s32.totalorder %v20099_v50, %v20387_v43 }
 0x773   : > { %13663 = vmatprep.mubr.msk.f32.mxu1 %vm10577_vm0, %v21155_v60  ;;  %vm10483_vm0 = vcmp.eq.s32.totalorder %v20089_v4, %v20398_v3 }
 0x775   : > { %v20669_v25 = vpop.f32.mrb[148].mxu1 }
 0x776   : > { %v11179_v20 = vpop.f32.mrb[149].mxu1  ;;  %13664 = vmatmul.mubr.msk.f32.gmra.mrb[254].mxu1 %vm10576_vm1, %v21155_v60  ;;  %vm10482_vm1 = vcmp.eq.s32.totalorder %v20099_v50, %v20398_v3 }
 0x777   : > { %13665 = vmatprep.mubr.msk.f32.mxu1 %vm10455_vm2, %v21155_v60  ;;  %vm10487_vm2 = vcmp.eq.s32.totalorder %v20089_v4, %v20409_v57 }
 0x779   : > { %v20677_v51 = vpop.f32.mrb[150].mxu1 }
 0x77a   : > { %v11184_v16 = vpop.f32.mrb[151].mxu1  ;;  %13666 = vmatmul.mubr.msk.f32.vlgmr.msra.gmra.mrb[192].mxu1 %vm10454_vm3, %v21155_v60  ;;  %vm10486_vm3 = vcmp.eq.s32.totalorder %v20099_v50, %v20409_v57 }
 0x77b   : > { %13667 = vmatprep.mubr.msk.f32.mxu1 %vm10459_vm4, %v21155_v60  ;;  %vm10491_vm4 = vcmp.eq.s32.totalorder %v20089_v4, %v20420_v17 }
 0x77d   : > { %v20685_v45 = vpop.f32.mrb[152].mxu1 }
 0x77e   : > { %v11189_v7 = vpop.f32.mrb[153].mxu1  ;;  %13668 = vmatmul.mubr.msk.f32.gmra.mrb[194].mxu1 %vm10458_vm5, %v21155_v60  ;;  %vm10490_vm5 = vcmp.eq.s32.totalorder %v20099_v50, %v20420_v17 }
 0x77f   : > { %13669 = vmatprep.mubr.msk.f32.mxu1 %vm10463_vm6, %v21155_v60  ;;  %vm10495_vm6 = vcmp.eq.s32.totalorder %v20089_v4, %v20431_v34 }
 0x781   : > { %v20693_v35 = vpop.f32.mrb[154].mxu1 }
 0x782   : > { %v11194_v32 = vpop.f32.mrb[155].mxu1  ;;  %13670 = vmatmul.mubr.msk.f32.gmra.mrb[196].mxu1 %vm10462_vm7, %v21155_v60  ;;  %vm10494_vm7 = vcmp.eq.s32.totalorder %v20099_v50, %v20431_v34 }
 0x783   : > { %13671 = vmatprep.mubr.msk.f32.mxu1 %vm10467_vm8, %v21155_v60  ;;  %vm10499_vm8 = vcmp.eq.s32.totalorder %v20089_v4, %v20442_v42 }
 0x785   : > { %v20701_v18 = vpop.f32.mrb[156].mxu1 }
 0x786   : > { %v11199_v47 = vpop.f32.mrb[157].mxu1  ;;  %13672 = vmatmul.mubr.msk.f32.gmra.mrb[198].mxu1 %vm10466_vm9, %v21155_v60  ;;  %vm10498_vm9 = vcmp.eq.s32.totalorder %v20099_v50, %v20442_v42 }
 0x787   : > { %13673 = vmatprep.mubr.msk.f32.mxu1 %vm10471_vm10, %v21155_v60  ;;  %vm10503_vm10 = vcmp.eq.s32.totalorder %v20089_v4, %v20453_v21 }
 0x789   : > { %v20709_v36 = vpop.f32.mrb[158].mxu1 }
 0x78a   : > { %v11204_v41 = vpop.f32.mrb[159].mxu1  ;;  %13674 = vmatmul.mubr.msk.f32.gmra.mrb[200].mxu1 %vm10470_vm11, %v21155_v60  ;;  %vm10502_vm11 = vcmp.eq.s32.totalorder %v20099_v50, %v20453_v21 }
 0x78b   : > { %13675 = vmatprep.mubr.msk.f32.mxu1 %vm10475_vm12, %v21155_v60  ;;  %vm10507_vm12 = vcmp.eq.s32.totalorder %v20089_v4, %v20464_v15 }
 0x78d   : > { %v20717_v63 = vpop.f32.mrb[160].mxu1 }
 0x78e   : > { %v11209_v46 = vpop.f32.mrb[161].mxu1  ;;  %13676 = vmatmul.mubr.msk.f32.gmra.mrb[202].mxu1 %vm10474_vm13, %v21155_v60  ;;  %vm10506_vm13 = vcmp.eq.s32.totalorder %v20099_v50, %v20464_v15 }
 0x78f   : > { %13677 = vmatprep.mubr.msk.f32.mxu1 %vm10479_vm14, %v21155_v60  ;;  %vm10511_vm14 = vcmp.eq.s32.totalorder %v20089_v4, %v20475_v5 }
 0x791   : > { %v20725_v19 = vpop.f32.mrb[162].mxu1 }
 0x792   : > { %v11214_v61 = vpop.f32.mrb[163].mxu1  ;;  %13678 = vmatmul.mubr.msk.f32.gmra.mrb[204].mxu1 %vm10478_vm15, %v21155_v60  ;;  %vm10510_vm15 = vcmp.eq.s32.totalorder %v20099_v50, %v20475_v5 }
 0x793   : > { %13679 = vmatprep.mubr.msk.f32.mxu1 %vm10483_vm0, %v21155_v60  ;;  %vm10515_vm0 = vcmp.eq.s32.totalorder %v20089_v4, %v20486_v44 }
 0x795   : > { %v20733_v59 = vpop.f32.mrb[164].mxu1 }
 0x796   : > { %v11219_v30 = vpop.f32.mrb[165].mxu1  ;;  %13680 = vmatmul.mubr.msk.f32.gmra.mrb[206].mxu1 %vm10482_vm1, %v21155_v60  ;;  %vm10514_vm1 = vcmp.eq.s32.totalorder %v20099_v50, %v20486_v44 }
 0x797   : > { %13681 = vmatprep.mubr.msk.f32.mxu1 %vm10487_vm2, %v21155_v60  ;;  %vm10519_vm2 = vcmp.eq.s32.totalorder %v20089_v4, %v20497_v39 }
 0x799   : > { %v20741_v43 = vpop.f32.mrb[166].mxu1 }
 0x79a   : > { %v11224_v24 = vpop.f32.mrb[167].mxu1  ;;  %13682 = vmatmul.mubr.msk.f32.gmra.mrb[208].mxu1 %vm10486_vm3, %v21155_v60  ;;  %vm10518_vm3 = vcmp.eq.s32.totalorder %v20099_v50, %v20497_v39 }
 0x79b   : > { %13683 = vmatprep.mubr.msk.f32.mxu1 %vm10491_vm4, %v21155_v60  ;;  %vm10523_vm4 = vcmp.eq.s32.totalorder %v20089_v4, %v20508_v53 }
 0x79d   : > { %v20749_v3 = vpop.f32.mrb[168].mxu1 }
 0x79e   : > { %v11229_v27 = vpop.f32.mrb[169].mxu1  ;;  %13684 = vmatmul.mubr.msk.f32.gmra.mrb[210].mxu1 %vm10490_vm5, %v21155_v60  ;;  %vm10522_vm5 = vcmp.eq.s32.totalorder %v20099_v50, %v20508_v53 }
 0x79f   : > { %13685 = vmatprep.mubr.msk.f32.mxu1 %vm10495_vm6, %v21155_v60  ;;  %vm10527_vm6 = vcmp.eq.s32.totalorder %v20089_v4, %v20518_v55 }
 0x7a1   : > { %v20757_v57 = vpop.f32.mrb[170].mxu1 }
 0x7a2   : > { %v11234_v56 = vpop.f32.mrb[171].mxu1  ;;  %13686 = vmatmul.mubr.msk.f32.gmra.mrb[212].mxu1 %vm10494_vm7, %v21155_v60  ;;  %vm10526_vm7 = vcmp.eq.s32.totalorder %v20099_v50, %v20518_v55 }
 0x7a3   : > { %13687 = vmatprep.mubr.msk.f32.mxu1 %vm10499_vm8, %v21155_v60  ;;  %vm10531_vm8 = vcmp.eq.s32.totalorder %v20089_v4, %v20527_v11 }
 0x7a5   : > { %v20765_v17 = vpop.f32.mrb[172].mxu1 }
 0x7a6   : > { %v11239_v29 = vpop.f32.mrb[173].mxu1  ;;  %13688 = vmatmul.mubr.msk.f32.gmra.mrb[214].mxu1 %vm10498_vm9, %v21155_v60  ;;  %vm10530_vm9 = vcmp.eq.s32.totalorder %v20099_v50, %v20527_v11 }
 0x7a7   : > { %13689 = vmatprep.mubr.msk.f32.mxu1 %vm10503_vm10, %v21155_v60  ;;  %vm10535_vm10 = vcmp.eq.s32.totalorder %v20089_v4, %v20536_v13 }
 0x7a9   : > { %v20773_v34 = vpop.f32.mrb[174].mxu1 }
 0x7aa   : > { %v11244_v58 = vpop.f32.mrb[175].mxu1  ;;  %13690 = vmatmul.mubr.msk.f32.gmra.mrb[216].mxu1 %vm10502_vm11, %v21155_v60  ;;  %vm10534_vm11 = vcmp.eq.s32.totalorder %v20099_v50, %v20536_v13 }
 0x7ab   : > { %13691 = vmatprep.mubr.msk.f32.mxu1 %vm10507_vm12, %v21155_v60  ;;  %vm10539_vm12 = vcmp.eq.s32.totalorder %v20089_v4, %v20545_v23 }
 0x7ad   : > { %v20781_v42 = vpop.f32.mrb[176].mxu1 }
 0x7ae   : > { %v11249_v48 = vpop.f32.mrb[177].mxu1  ;;  %13692 = vmatmul.mubr.msk.f32.gmra.mrb[218].mxu1 %vm10506_vm13, %v21155_v60  ;;  %vm10538_vm13 = vcmp.eq.s32.totalorder %v20099_v50, %v20545_v23 }
 0x7af   : > { %13693 = vmatprep.mubr.msk.f32.mxu1 %vm10511_vm14, %v21155_v60  ;;  %vm10543_vm14 = vcmp.eq.s32.totalorder %v20089_v4, %v20554_v9 }
 0x7b1   : > { %v20789_v21 = vpop.f32.mrb[178].mxu1 }
 0x7b2   : > { %v11254_v28 = vpop.f32.mrb[179].mxu1  ;;  %13694 = vmatmul.mubr.msk.f32.gmra.mrb[220].mxu1 %vm10510_vm15, %v21155_v60  ;;  %vm10542_vm15 = vcmp.eq.s32.totalorder %v20099_v50, %v20554_v9 }
 0x7b3   : > { %13695 = vmatprep.mubr.msk.f32.mxu1 %vm10515_vm0, %v21155_v60  ;;  %vm10547_vm0 = vcmp.eq.s32.totalorder %v20089_v4, %v20563_v38 }
 0x7b5   : > { %v20797_v15 = vpop.f32.mrb[180].mxu1 }
 0x7b6   : > { %v11259_v20 = vpop.f32.mrb[181].mxu1  ;;  %13696 = vmatmul.mubr.msk.f32.gmra.mrb[222].mxu1 %vm10514_vm1, %v21155_v60  ;;  %vm10546_vm1 = vcmp.eq.s32.totalorder %v20099_v50, %v20563_v38 }
 0x7b7   : > { %13697 = vmatprep.mubr.msk.f32.mxu1 %vm10519_vm2, %v21155_v60  ;;  %vm10551_vm2 = vcmp.eq.s32.totalorder %v20089_v4, %v20574_v33 }
 0x7b9   : > { %v20805_v5 = vpop.f32.mrb[182].mxu1 }
 0x7ba   : > { %v11264_v16 = vpop.f32.mrb[183].mxu1  ;;  %13698 = vmatmul.mubr.msk.f32.gmra.mrb[224].mxu1 %vm10518_vm3, %v21155_v60  ;;  %vm10550_vm3 = vcmp.eq.s32.totalorder %v20099_v50, %v20574_v33 }
 0x7bb   : > { %13699 = vmatprep.mubr.msk.f32.mxu1 %vm10523_vm4, %v21155_v60  ;;  %vm10555_vm4 = vcmp.eq.s32.totalorder %v20089_v4, %v20585_v12 }
 0x7bd   : > { %v20813_v44 = vpop.f32.mrb[184].mxu1 }
 0x7be   : > { %v11269_v7 = vpop.f32.mrb[185].mxu1  ;;  %13700 = vmatmul.mubr.msk.f32.gmra.mrb[226].mxu1 %vm10522_vm5, %v21155_v60  ;;  %vm10554_vm5 = vcmp.eq.s32.totalorder %v20099_v50, %v20585_v12 }
 0x7bf   : > { %13701 = vmatprep.mubr.msk.f32.mxu1 %vm10527_vm6, %v21155_v60  ;;  %vm10559_vm6 = vcmp.eq.s32.totalorder %v20089_v4, %v20596_v26 }
 0x7c1   : > { %v20821_v39 = vpop.f32.mrb[186].mxu1 }
 0x7c2   : > { %v11274_v32 = vpop.f32.mrb[187].mxu1  ;;  %13702 = vmatmul.mubr.msk.f32.gmra.mrb[228].mxu1 %vm10526_vm7, %v21155_v60  ;;  %vm10558_vm7 = vcmp.eq.s32.totalorder %v20099_v50, %v20596_v26 }
 0x7c3   : > { %13703 = vmatprep.mubr.msk.f32.mxu1 %vm10531_vm8, %v21155_v60  ;;  %vm10563_vm8 = vcmp.eq.s32.totalorder %v20089_v4, %v20607_v1 }
 0x7c5   : > { %v20829_v53 = vpop.f32.mrb[188].mxu1 }
 0x7c6   : > { %v11279_v47 = vpop.f32.mrb[189].mxu1  ;;  %13704 = vmatmul.mubr.msk.f32.gmra.mrb[230].mxu1 %vm10530_vm9, %v21155_v60  ;;  %vm10562_vm9 = vcmp.eq.s32.totalorder %v20099_v50, %v20607_v1 }
 0x7c7   : > { %13705 = vmatprep.mubr.msk.f32.mxu1 %vm10535_vm10, %v21155_v60  ;;  %vm10567_vm10 = vcmp.eq.s32.totalorder %v20089_v4, %v20618_v31 }
 0x7c9   : > { %v20837_v55 = vpop.f32.mrb[190].mxu1 }
 0x7ca   : > { %v11284_v41 = vpop.f32.mrb[191].mxu1  ;;  %13706 = vmatmul.mubr.msk.f32.gmra.mrb[232].mxu1 %vm10534_vm11, %v21155_v60  ;;  %vm10566_vm11 = vcmp.eq.s32.totalorder %v20099_v50, %v20618_v31 }
 0x7cb   : > { %13707 = vmatprep.mubr.msk.f32.mxu1 %vm10539_vm12, %v21155_v60  ;;  %vm10571_vm12 = vcmp.eq.s32.totalorder %v20089_v4, %v20629_v62 }
 0x7ce   : > { %13708 = vmatmul.mubr.msk.f32.gmra.mrb[234].mxu1 %vm10538_vm13, %v21155_v60  ;;  %vm10570_vm13 = vcmp.eq.s32.totalorder %v20099_v50, %v20629_v62 }
 0x7cf   : > { %13709 = vmatprep.mubr.msk.f32.mxu1 %vm10543_vm14, %v21155_v60  ;;  %vm10575_vm14 = vcmp.eq.s32.totalorder %v20089_v4, %v20640_v40 }
 0x7d2   : > { %13710 = vmatmul.mubr.msk.f32.gmra.mrb[236].mxu1 %vm10542_vm15, %v21155_v60  ;;  %vm10574_vm15 = vcmp.eq.s32.totalorder %v20099_v50, %v20640_v40 }
 0x7d3   : > { %13711 = vmatprep.mubr.msk.f32.mxu1 %vm10547_vm0, %v21155_v60  ;;  %vm10579_vm0 = vcmp.eq.s32.totalorder %v20089_v4, %v20651_v37 }
 0x7d6   : > { %13712 = vmatmul.mubr.msk.f32.gmra.mrb[238].mxu1 %vm10546_vm1, %v21155_v60  ;;  %vm10578_vm1 = vcmp.eq.s32.totalorder %v20099_v50, %v20651_v37 }
 0x7d7   : > { %13713 = vmatprep.mubr.msk.f32.mxu1 %vm10551_vm2, %v21155_v60 }
 0x7da   : > { %13714 = vmatmul.mubr.msk.f32.gmra.mrb[240].mxu1 %vm10550_vm3, %v21155_v60 }
 0x7db   : > { %13715 = vmatprep.mubr.msk.f32.mxu1 %vm10555_vm4, %v21155_v60 }
 0x7de   : > { %13716 = vmatmul.mubr.msk.f32.gmra.mrb[242].mxu1 %vm10554_vm5, %v21155_v60 }
 0x7df   : > { %13717 = vmatprep.mubr.msk.f32.mxu1 %vm10559_vm6, %v21155_v60 }
 0x7e2   : > { %13718 = vmatmul.mubr.msk.f32.gmra.mrb[244].mxu1 %vm10558_vm7, %v21155_v60 }
 0x7e3   : > { %13719 = vmatprep.mubr.msk.f32.mxu1 %vm10563_vm8, %v21155_v60 }
 0x7e6   : > { %13720 = vmatmul.mubr.msk.f32.gmra.mrb[246].mxu1 %vm10562_vm9, %v21155_v60 }
 0x7e7   : > { %13721 = vmatprep.mubr.msk.f32.mxu1 %vm10567_vm10, %v21155_v60 }
 0x7ea   : > { %13722 = vmatmul.mubr.msk.f32.gmra.mrb[248].mxu1 %vm10566_vm11, %v21155_v60 }
 0x7eb   : > { %13723 = vmatprep.mubr.msk.f32.mxu1 %vm10571_vm12, %v21155_v60 }
 0x7ee   : > { %13724 = vmatmul.mubr.msk.f32.gmra.mrb[250].mxu1 %vm10570_vm13, %v21155_v60 }
 0x7ef   : > { %13725 = vmatprep.mubr.msk.f32.mxu1 %vm10575_vm14, %v21155_v60 }
 0x7f2   : > { %13726 = vmatmul.mubr.msk.f32.gmra.mrb[252].mxu1 %vm10574_vm15, %v21155_v60 }
 0x7f3   : > { %13727 = vmatprep.mubr.msk.f32.mxu1 %vm10579_vm0, %v21155_v60 }
 0x7f6   : > { %13728 = vmatmul.mubr.msk.f32.gmra.mrb[254].mxu1 %vm10578_vm1, %v21155_v60 }
 0x84d   : > { %v11577_v4 = vpop.f32.mrb[192].mxu1 }
 0x84e   : > { %v11736_v11 = vmax.f32 %v20565_v14, %v11577_v4  ;;  %v11579_v13 = vpop.f32.mrb[193].mxu1 }
 0x850   : > { %11768 = vst [vmem:[%s20908_s28] sm:$0xff] %v11736_v11 }
 0x851   : > { %v11582_v23 = vpop.f32.mrb[194].mxu1 }
 0x852   : > { %v11737_v50 = vmax.f32 %v20576_v10, %v11582_v23  ;;  %v11584_v60 = vpop.f32.mrb[195].mxu1 }
 0x854   : > { %11769 = vst [vmem:[%s20908_s28 + $0x8] sm:$0xff] %v11737_v50 }
 0x855   : > { %v11587_v9 = vpop.f32.mrb[196].mxu1 }
 0x856   : > { %v11738_v38 = vmax.f32 %v20587_v22, %v11587_v9  ;;  %v11589_v33 = vpop.f32.mrb[197].mxu1 }
 0x858   : > { %11770 = vst [vmem:[%s20908_s28 + $0x10] sm:$0xff] %v11738_v38 }
 0x859   : > { %v11592_v12 = vpop.f32.mrb[198].mxu1 }
 0x85a   : > { %v11739_v26 = vmax.f32 %v20598_v49, %v11592_v12  ;;  %v11594_v1 = vpop.f32.mrb[199].mxu1 }
 0x85c   : > { %11771 = vst [vmem:[%s20908_s28 + $0x18] sm:$0xff] %v11739_v26 }
 0x85d   : > { %v11597_v14 = vpop.f32.mrb[200].mxu1 }
 0x85e   : > { %v11740_v31 = vmax.f32 %v20609_v8, %v11597_v14  ;;  %v11599_v62 = vpop.f32.mrb[201].mxu1 }
 0x860   : > { %11772 = vst [vmem:[%s20908_s28 + $0x20] sm:$0xff] %v11740_v31 }
 0x861   : > { %v11602_v10 = vpop.f32.mrb[202].mxu1 }
 0x862   : > { %v11741_v40 = vmax.f32 %v20620_v2, %v11602_v10  ;;  %v11604_v37 = vpop.f32.mrb[203].mxu1 }
 0x864   : > { %11773 = vst [vmem:[%s20908_s28 + $0x28] sm:$0xff] %v11741_v40 }
 0x865   : > { %v11607_v22 = vpop.f32.mrb[204].mxu1 }
 0x866   : > { %v11742_v46 = vmax.f32 %v20631_v0, %v11607_v22  ;;  %v11609_v61 = vpop.f32.mrb[205].mxu1 }
 0x868   : > { %11774 = vst [vmem:[%s20908_s28 + $0x30] sm:$0xff] %v11742_v46 }
 0x869   : > { %v11612_v49 = vpop.f32.mrb[206].mxu1 }
 0x86a   : > { %v11743_v30 = vmax.f32 %v20642_v52, %v11612_v49  ;;  %v11614_v24 = vpop.f32.mrb[207].mxu1 }
 0x86c   : > { %11775 = vst [vmem:[%s20908_s28 + $0x38] sm:$0xff] %v11743_v30 }
 0x86d   : > { %v11617_v8 = vpop.f32.mrb[208].mxu1 }
 0x86e   : > { %v11744_v27 = vmax.f32 %v20653_v6, %v11617_v8  ;;  %v11619_v56 = vpop.f32.mrb[209].mxu1 }
 0x870   : > { %11776 = vst [vmem:[%s20908_s28 + $0x40] sm:$0xff] %v11744_v27 }
 0x871   : > { %v11622_v2 = vpop.f32.mrb[210].mxu1 }
 0x872   : > { %v11745_v29 = vmax.f32 %v20661_v54, %v11622_v2  ;;  %v11624_v58 = vpop.f32.mrb[211].mxu1 }
 0x874   : > { %11777 = vst [vmem:[%s20908_s28 + $0x48] sm:$0xff] %v11745_v29 }
 0x875   : > { %v11627_v0 = vpop.f32.mrb[212].mxu1 }
 0x876   : > { %v11746_v48 = vmax.f32 %v20669_v25, %v11627_v0  ;;  %v11629_v28 = vpop.f32.mrb[213].mxu1 }
 0x878   : > { %11778 = vst [vmem:[%s20908_s28 + $0x50] sm:$0xff] %v11746_v48 }
 0x879   : > { %v11632_v52 = vpop.f32.mrb[214].mxu1 }
 0x87a   : > { %v11747_v20 = vmax.f32 %v20677_v51, %v11632_v52  ;;  %v11634_v16 = vpop.f32.mrb[215].mxu1 }
 0x87c   : > { %11779 = vst [vmem:[%s20908_s28 + $0x58] sm:$0xff] %v11747_v20 }
 0x87d   : > { %v11637_v6 = vpop.f32.mrb[216].mxu1 }
 0x87e   : > { %v11748_v7 = vmax.f32 %v20685_v45, %v11637_v6  ;;  %v11639_v32 = vpop.f32.mrb[217].mxu1 }
 0x880   : > { %11780 = vst [vmem:[%s20908_s28 + $0x60] sm:$0xff] %v11748_v7 }
 0x881   : > { %v11642_v54 = vpop.f32.mrb[218].mxu1 }
 0x882   : > { %v11749_v47 = vmax.f32 %v20693_v35, %v11642_v54  ;;  %v11644_v41 = vpop.f32.mrb[219].mxu1 }
 0x884   : > { %11781 = vst [vmem:[%s20908_s28 + $0x68] sm:$0xff] %v11749_v47 }
 0x885   : > { %v11647_v25 = vpop.f32.mrb[220].mxu1 }
 0x886   : > { %v11750_v4 = vmax.f32 %v20701_v18, %v11647_v25  ;;  %v11649_v11 = vpop.f32.mrb[221].mxu1 }
 0x888   : > { %11782 = vst [vmem:[%s20908_s28 + $0x70] sm:$0xff] %v11750_v4 }
 0x889   : > { %v11652_v51 = vpop.f32.mrb[222].mxu1 }
 0x88a   : > { %v11751_v13 = vmax.f32 %v20709_v36, %v11652_v51  ;;  %v11654_v23 = vpop.f32.mrb[223].mxu1 }
 0x88c   : > { %11783 = vst [vmem:[%s20908_s28 + $0x78] sm:$0xff] %v11751_v13 }
 0x88d   : > { %v11657_v45 = vpop.f32.mrb[224].mxu1 }
 0x88e   : > { %v11752_v50 = vmax.f32 %v20717_v63, %v11657_v45  ;;  %v11659_v60 = vpop.f32.mrb[225].mxu1 }
 0x890   : > { %11784 = vst [vmem:[%s20908_s28 + $0x80] sm:$0xff] %v11752_v50 }
 0x891   : > { %v11662_v35 = vpop.f32.mrb[226].mxu1 }
 0x892   : > { %v11753_v9 = vmax.f32 %v20725_v19, %v11662_v35  ;;  %v11664_v38 = vpop.f32.mrb[227].mxu1 }
 0x894   : > { %11785 = vst [vmem:[%s20908_s28 + $0x88] sm:$0xff] %v11753_v9 }
 0x895   : > { %v11667_v18 = vpop.f32.mrb[228].mxu1 }
 0x896   : > { %v11754_v33 = vmax.f32 %v20733_v59, %v11667_v18  ;;  %v11669_v12 = vpop.f32.mrb[229].mxu1 }
 0x898   : > { %11786 = vst [vmem:[%s20908_s28 + $0x90] sm:$0xff] %v11754_v33 }
 0x899   : > { %v11672_v36 = vpop.f32.mrb[230].mxu1 }
 0x89a   : > { %v11755_v26 = vmax.f32 %v20741_v43, %v11672_v36  ;;  %v11674_v1 = vpop.f32.mrb[231].mxu1 }
 0x89c   : > { %11787 = vst [vmem:[%s20908_s28 + $0x98] sm:$0xff] %v11755_v26 }
 0x89d   : > { %v11677_v63 = vpop.f32.mrb[232].mxu1 }
 0x89e   : > { %v11756_v14 = vmax.f32 %v20749_v3, %v11677_v63  ;;  %v11679_v31 = vpop.f32.mrb[233].mxu1 }
 0x8a0   : > { %11788 = vst [vmem:[%s20908_s28 + $0xa0] sm:$0xff] %v11756_v14 }
 0x8a1   : > { %v11682_v19 = vpop.f32.mrb[234].mxu1 }
 0x8a2   : > { %v11757_v62 = vmax.f32 %v20757_v57, %v11682_v19  ;;  %v11684_v10 = vpop.f32.mrb[235].mxu1 }
 0x8a4   : > { %11789 = vst [vmem:[%s20908_s28 + $0xa8] sm:$0xff] %v11757_v62 }
 0x8a5   : > { %v11687_v59 = vpop.f32.mrb[236].mxu1 }
 0x8a6   : > { %v11758_v40 = vmax.f32 %v20765_v17, %v11687_v59  ;;  %v11689_v37 = vpop.f32.mrb[237].mxu1 }
 0x8a8   : > { %11790 = vst [vmem:[%s20908_s28 + $0xb0] sm:$0xff] %v11758_v40 }
 0x8a9   : > { %v11692_v43 = vpop.f32.mrb[238].mxu1 }
 0x8aa   : > { %v11759_v22 = vmax.f32 %v20773_v34, %v11692_v43  ;;  %v11694_v46 = vpop.f32.mrb[239].mxu1 }
 0x8ac   : > { %11791 = vst [vmem:[%s20908_s28 + $0xb8] sm:$0xff] %v11759_v22 }
 0x8ad   : > { %v11697_v3 = vpop.f32.mrb[240].mxu1 }
 0x8ae   : > { %v11760_v61 = vmax.f32 %v20781_v42, %v11697_v3  ;;  %v11699_v49 = vpop.f32.mrb[241].mxu1 }
 0x8b0   : > { %11792 = vst [vmem:[%s20908_s28 + $0xc0] sm:$0xff] %v11760_v61 }
 0x8b1   : > { %v11702_v57 = vpop.f32.mrb[242].mxu1 }
 0x8b2   : > { %v11761_v30 = vmax.f32 %v20789_v21, %v11702_v57  ;;  %v11704_v24 = vpop.f32.mrb[243].mxu1 }
 0x8b4   : > { %11793 = vst [vmem:[%s20908_s28 + $0xc8] sm:$0xff] %v11761_v30 }
 0x8b5   : > { %v11707_v17 = vpop.f32.mrb[244].mxu1 }
 0x8b6   : > { %v11762_v8 = vmax.f32 %v20797_v15, %v11707_v17  ;;  %v11709_v27 = vpop.f32.mrb[245].mxu1 }
 0x8b8   : > { %11794 = vst [vmem:[%s20908_s28 + $0xd0] sm:$0xff] %v11762_v8 }
 0x8b9   : > { %v11712_v34 = vpop.f32.mrb[246].mxu1 }
 0x8ba   : > { %v11763_v56 = vmax.f32 %v20805_v5, %v11712_v34  ;;  %v11714_v2 = vpop.f32.mrb[247].mxu1 }
 0x8bc   : > { %11795 = vst [vmem:[%s20908_s28 + $0xd8] sm:$0xff] %v11763_v56 }
 0x8bd   : > { %v11717_v42 = vpop.f32.mrb[248].mxu1 }
 0x8be   : > { %v11764_v29 = vmax.f32 %v20813_v44, %v11717_v42  ;;  %v11719_v58 = vpop.f32.mrb[249].mxu1 }
 0x8c0   : > { %11796 = vst [vmem:[%s20908_s28 + $0xe0] sm:$0xff] %v11764_v29 }
 0x8c1   : > { %v11722_v21 = vpop.f32.mrb[250].mxu1 }
 0x8c2   : > { %v11765_v0 = vmax.f32 %v20821_v39, %v11722_v21  ;;  %v11724_v48 = vpop.f32.mrb[251].mxu1 }
 0x8c4   : > { %11797 = vst [vmem:[%s20908_s28 + $0xe8] sm:$0xff] %v11765_v0 }
 0x8c5   : > { %v11727_v15 = vpop.f32.mrb[252].mxu1 }
 0x8c6   : > { %v11766_v28 = vmax.f32 %v20829_v53, %v11727_v15  ;;  %v11729_v52 = vpop.f32.mrb[253].mxu1 }
 0x8c8   : > { %11798 = vst [vmem:[%s20908_s28 + $0xf0] sm:$0xff] %v11766_v28 }
 0x8c9   : > { %v11732_v20 = vpop.f32.mrb[254].mxu1 }
 0x8ca   : > { %v11767_v5 = vmax.f32 %v20837_v55, %v11732_v20  ;;  %v11734_v16 = vpop.f32.mrb[255].mxu1 }
 0x8cc   : > { %11799 = vst [vmem:[%s20908_s28 + $0xf8] sm:$0xff] %v11767_v5 }
 0x8cd PF: > { %s14_s15 = sadd.s32 1, %s16863_s15  }
 0x8ce   : > { %p11_p4 = scmp.ge.s32.totalorder %s14_s15, 4  }
 0x8d0   :  { %13 = sbr.rel (!%p11_p4) target bundleno = 1 (0x1), region = 76 }

</bundles_post_ra>
